<compile_context>
chip_gen: v6e
topology: v6e:2x2x1
jax: 0.10.0
libtpu: 0.0.40
codegen_flags: <defaults>
</compile_context>

<pallas_src>
import functools

import jax
import jax.numpy as jnp
from jax.experimental import pallas as pl
from jax.experimental.pallas import tpu as pltpu

KSIZE = 7
PAD = KSIZE // 2


def cbam_kernel(x_ref, w1t_ref, w2_ref, wsp_ref, o_ref, *, W):
    """Process a block of Nb images.

    x_ref   : (Nb, C, H*W) VMEM   input, spatial dims flattened onto lanes
    w1t_ref : (C, Cr)      VMEM   fc1 weight transposed (column r = fc1 row r)
    w2_ref  : (C, Cr)      VMEM   fc2 weight         (column r = fc2[:, r])
    wsp_ref : (2*7*7,)     SMEM   flattened 7x7 spatial conv weight
    o_ref   : (Nb, C, H*W) VMEM   output
    """
    Nb, C, HW = x_ref.shape
    Cr = w1t_ref.shape[1]
    x = x_ref[...].astype(jnp.float32)

    # ---------------- Channel attention (VPU, batched over Nb) ----------------
    avg_c = jnp.mean(x, axis=2, keepdims=True)              # (Nb, C, 1)
    max_c = jnp.max(x, axis=2, keepdims=True)               # (Nb, C, 1)
    pooled = jnp.concatenate([avg_c, max_c], axis=0)        # (2Nb, C, 1)

    # Shared MLP fc2(relu(fc1(.))): Cr broadcast-multiply-reduce passes.
    z = jnp.zeros_like(pooled)                               # (2Nb, C, 1)
    for r in range(Cr):
        w1_row = w1t_ref[:, r:r + 1]                         # (C, 1) = fc1[r, :]
        w2_col = w2_ref[:, r:r + 1]                          # (C, 1) = fc2[:, r]
        h_r = jnp.sum(pooled * w1_row, axis=1, keepdims=True)  # (2Nb, 1, 1)
        h_r = jnp.maximum(h_r, 0.0)
        z = z + h_r * w2_col                                  # (2Nb, C, 1)

    ca = jax.nn.sigmoid(z[:Nb] + z[Nb:])                      # (Nb, C, 1)
    x_ca = x * ca                                             # (Nb, C, HW)

    # ---------------- Spatial attention (flat-layout 7x7 conv) ---------------
    avg_s = jnp.mean(x_ca, axis=1)                            # (Nb, HW)
    max_s = jnp.max(x_ca, axis=1)                             # (Nb, HW)

    # Zero-pad the flat maps so any tap offset stays in range.  Rows outside
    # the image land in the zero pad; column wrap-around is masked below.
    r_need = PAD * W + PAD
    R = ((r_need + 127) // 128) * 128                         # lane-aligned pad
    zpad = jnp.zeros((Nb, R), jnp.float32)
    planes = (jnp.concatenate([zpad, avg_s, zpad], axis=1),
              jnp.concatenate([zpad, max_s, zpad], axis=1))   # (Nb, HW + 2R)

    # Column-validity masks, one per horizontal offset dj (hoisted out of the
    # 98-tap loop).
    col = jax.lax.broadcasted_iota(jnp.int32, (1, HW), 1) % W
    col_masks = []
    for kj in range(KSIZE):
        dj = kj - PAD
        col_masks.append(jnp.logical_and(col + dj >= 0, col + dj < W))

    # 2x7x7 cross-correlation: 98 shift+mask+FMA taps on (Nb, HW) values,
    # 4 independent accumulators to expose ILP to the VALUs.
    accs = [jnp.zeros((Nb, HW), jnp.float32) for _ in range(4)]
    for ci in range(2):
        plane = planes[ci]
        for ki in range(KSIZE):
            di = ki - PAD
            for kj in range(KSIZE):
                dj = kj - PAD
                d = di * W + dj
                shifted = plane[:, R + d:R + d + HW]          # (Nb, HW)
                wtap = wsp_ref[ci * KSIZE * KSIZE + ki * KSIZE + kj]
                a = ci * 2 + (ki & 1)
                accs[a] = accs[a] + jnp.where(col_masks[kj], shifted * wtap, 0.0)

    sa = jax.nn.sigmoid((accs[0] + accs[1]) + (accs[2] + accs[3]))  # (Nb, HW)

    o_ref[...] = (x_ca * sa[:, None, :]).astype(o_ref.dtype)


def _pick_block_batch(n, c, hw, itemsize, block_budget_bytes=1 << 20):
    """Largest divisor of n whose input block fits a ~1 MiB VMEM budget."""
    per_image = c * hw * itemsize
    cap = max(1, block_budget_bytes // per_image)
    nb = 1
    for d in range(1, n + 1):
        if n % d == 0 and d <= cap:
            nb = d
    return nb


@functools.partial(jax.jit, static_argnames=("block_batch",))
def cbam_pallas(x, w1, w2, w_sp_flat, block_batch=None):
    N, C, H, W = x.shape
    Cr = w1.shape[0]
    HW = H * W

    if block_batch is None:
        Nb = _pick_block_batch(N, C, HW, x.dtype.itemsize)
    else:
        Nb = int(block_batch)
    assert N % Nb == 0, "block_batch must divide the batch size"

    x_flat = x.reshape(N, C, HW)
    kernel = functools.partial(cbam_kernel, W=W)

    out_flat = pl.pallas_call(
        kernel,
        out_shape=jax.ShapeDtypeStruct((N, C, HW), x.dtype),
        grid=(N // Nb,),
        in_specs=[
            pl.BlockSpec((Nb, C, HW), lambda n: (n, 0, 0)),
            pl.BlockSpec((C, Cr), lambda n: (0, 0)),
            pl.BlockSpec((C, Cr), lambda n: (0, 0)),
            pl.BlockSpec(memory_space=pltpu.MemorySpace.SMEM),
        ],
        out_specs=pl.BlockSpec((Nb, C, HW), lambda n: (n, 0, 0)),
        compiler_params=pltpu.CompilerParams(
            dimension_semantics=("parallel",),
            vmem_limit_bytes=32 * 1024 * 1024),
    )(x_flat, w1.T, w2, w_sp_flat)
    return out_flat.reshape(N, C, H, W)


def cbam_ref(x, w1, w2, w_sp_flat):
    """Pure-JAX reference mirroring the PyTorch CBAM forward."""
    # Channel attention
    avg = jnp.mean(x, axis=(2, 3), keepdims=True)      # (N, C, 1, 1)
    mx = jnp.max(x, axis=(2, 3), keepdims=True)

    def mlp(v):
        h = jnp.maximum(jnp.einsum('rc,nchw->nrhw', w1, v), 0.0)
        return jnp.einsum('cr,nrhw->nchw', w2, h)

    ca = jax.nn.sigmoid(mlp(avg) + mlp(mx))
    x = x * ca

    # Spatial attention
    avg_s = jnp.mean(x, axis=1, keepdims=True)
    max_s = jnp.max(x, axis=1, keepdims=True)
    cat = jnp.concatenate([avg_s, max_s], axis=1)        # (N, 2, H, W)
    w = w_sp_flat.reshape(1, 2, KSIZE, KSIZE)
    conv = jax.lax.conv_general_dilated(
        cat, w, window_strides=(1, 1), padding=[(PAD, PAD), (PAD, PAD)],
        dimension_numbers=('NCHW', 'OIHW', 'NCHW'))
    sa = jax.nn.sigmoid(conv)
    return x * sa


if __name__ == "__main__":
    N, C, H, W = 4, 32, 16, 16
    reduction_ratio = 16
    Cr = C // reduction_ratio

    key = jax.random.PRNGKey(0)
    kx, k1, k2, k3 = jax.random.split(key, 4)

    x = jax.random.normal(kx, (N, C, H, W), jnp.float32)
    # Deterministic synthetic weights (shapes from the module __init__).
    w1 = jax.random.normal(k1, (Cr, C), jnp.float32) * (1.0 / jnp.sqrt(C))
    w2 = jax.random.normal(k2, (C, Cr), jnp.float32) * (1.0 / jnp.sqrt(Cr))
    w_sp = jax.random.normal(k3, (2 * KSIZE * KSIZE,), jnp.float32) * 0.1

    ref = cbam_ref(x, w1, w2, w_sp)

    # Auto-picked batch block (Nb = N here -> single grid step).
    out = jax.block_until_ready(cbam_pallas(x, w1, w2, w_sp))
    assert out.shape == ref.shape == (N, C, H, W)
    assert jnp.allclose(out, ref, atol=1e-4, rtol=1e-4), (
        f"max abs err = {jnp.max(jnp.abs(out - ref))}")

    # Explicit smaller batch block -> multi-step grid exercises the pipeline.
    out2 = jax.block_until_ready(cbam_pallas(x, w1, w2, w_sp, block_batch=2))
    assert jnp.allclose(out2, ref, atol=1e-4, rtol=1e-4), (
        f"max abs err = {jnp.max(jnp.abs(out2 - ref))}")

    print("KERNEL_OK")
</pallas_src>

<mosaic_0001>
module attributes {stable_mosaic.version = 11 : i64} {
  func.func @cbam_kernel(%arg0: i32, %arg1: memref<4x32x256xf32, #tpu.memory_space<vmem>>, %arg2: memref<32x2xf32, #tpu.memory_space<vmem>>, %arg3: memref<32x2xf32, #tpu.memory_space<vmem>>, %arg4: memref<98xf32, #tpu.memory_space<smem>>, %arg5: memref<4x32x256xf32, #tpu.memory_space<vmem>>) attributes {dimension_semantics = [#tpu.dimension_semantics<parallel>], iteration_bounds = array<i64: 1>, scalar_prefetch = 0 : i64, scratch_operands = 0 : i64, tpu.core_type = #tpu.core_type<tc>, window_params = [{transform_indices = @transform_0, window_bounds = array<i64: 4, 32, 256>}, {pipeline_mode = #tpu.pipeline_mode<synchronous>, transform_indices = @transform_1, window_bounds = array<i64: 32, 2>}, {pipeline_mode = #tpu.pipeline_mode<synchronous>, transform_indices = @transform_2, window_bounds = array<i64: 32, 2>}, {transform_indices = @transform_3, window_bounds = array<i64: 98>}, {transform_indices = @transform_4, window_bounds = array<i64: 4, 32, 256>}]} {
    %c0 = arith.constant 0 : index
    %c0_0 = arith.constant 0 : index
    %c0_1 = arith.constant 0 : index
    %0 = vector.load %arg1[%c0, %c0_0, %c0_1] : memref<4x32x256xf32, #tpu.memory_space<vmem>>, vector<4x32x256xf32>
    %cst = arith.constant dense<0.000000e+00> : vector<4x32xf32>
    %1 = vector.multi_reduction <add>, %0, %cst [2] : vector<4x32x256xf32> to vector<4x32xf32>
    %2 = vector.shape_cast %1 : vector<4x32xf32> to vector<4x32x1xf32>
    %cst_2 = arith.constant 2.560000e+02 : f32
    %3 = vector.broadcast %cst_2 : f32 to vector<4x32x1xf32>
    %4 = arith.divf %2, %3 : vector<4x32x1xf32>
    %cst_3 = arith.constant dense<0xFF800000> : vector<4x32xf32>
    %5 = vector.multi_reduction <maximumf>, %0, %cst_3 [2] : vector<4x32x256xf32> to vector<4x32xf32>
    %6 = vector.shape_cast %5 : vector<4x32xf32> to vector<4x32x1xf32>
    %7 = tpu.concatenate %4, %6 in 0 : vector<4x32x1xf32>, vector<4x32x1xf32> -> vector<8x32x1xf32>
    %cst_4 = arith.constant 0.000000e+00 : f32
    %8 = vector.broadcast %cst_4 : f32 to vector<8x32x1xf32>
    %c0_5 = arith.constant 0 : index
    %c0_6 = arith.constant 0 : index
    %9 = vector.load %arg2[%c0_5, %c0_6] : memref<32x2xf32, #tpu.memory_space<vmem>>, vector<32x1xf32>
    %c0_7 = arith.constant 0 : index
    %c0_8 = arith.constant 0 : index
    %10 = vector.load %arg3[%c0_7, %c0_8] : memref<32x2xf32, #tpu.memory_space<vmem>>, vector<32x1xf32>
    %11 = vector.shape_cast %9 : vector<32x1xf32> to vector<1x32x1xf32>
    %12 = vector.broadcast %11 : vector<1x32x1xf32> to vector<8x32x1xf32>
    %13 = arith.mulf %7, %12 : vector<8x32x1xf32>
    %cst_9 = arith.constant dense<0.000000e+00> : vector<8x1xf32>
    %14 = vector.multi_reduction <add>, %13, %cst_9 [1] : vector<8x32x1xf32> to vector<8x1xf32>
    %15 = vector.shape_cast %14 : vector<8x1xf32> to vector<8x1x1xf32>
    %cst_10 = arith.constant 0.000000e+00 : f32
    %16 = vector.broadcast %cst_10 : f32 to vector<8x1x1xf32>
    %17 = arith.maximumf %15, %16 : vector<8x1x1xf32>
    %18 = vector.shape_cast %10 : vector<32x1xf32> to vector<1x32x1xf32>
    %19 = vector.broadcast %17 : vector<8x1x1xf32> to vector<8x32x1xf32>
    %20 = vector.broadcast %18 : vector<1x32x1xf32> to vector<8x32x1xf32>
    %21 = arith.mulf %19, %20 : vector<8x32x1xf32>
    %22 = arith.addf %8, %21 : vector<8x32x1xf32>
    %c0_11 = arith.constant 0 : index
    %c1 = arith.constant 1 : index
    %23 = vector.load %arg2[%c0_11, %c1] : memref<32x2xf32, #tpu.memory_space<vmem>>, vector<32x1xf32>
    %c0_12 = arith.constant 0 : index
    %c1_13 = arith.constant 1 : index
    %24 = vector.load %arg3[%c0_12, %c1_13] : memref<32x2xf32, #tpu.memory_space<vmem>>, vector<32x1xf32>
    %25 = vector.shape_cast %23 : vector<32x1xf32> to vector<1x32x1xf32>
    %26 = vector.broadcast %25 : vector<1x32x1xf32> to vector<8x32x1xf32>
    %27 = arith.mulf %7, %26 : vector<8x32x1xf32>
    %cst_14 = arith.constant dense<0.000000e+00> : vector<8x1xf32>
    %28 = vector.multi_reduction <add>, %27, %cst_14 [1] : vector<8x32x1xf32> to vector<8x1xf32>
    %29 = vector.shape_cast %28 : vector<8x1xf32> to vector<8x1x1xf32>
    %cst_15 = arith.constant 0.000000e+00 : f32
    %30 = vector.broadcast %cst_15 : f32 to vector<8x1x1xf32>
    %31 = arith.maximumf %29, %30 : vector<8x1x1xf32>
    %32 = vector.shape_cast %24 : vector<32x1xf32> to vector<1x32x1xf32>
    %33 = vector.broadcast %31 : vector<8x1x1xf32> to vector<8x32x1xf32>
    %34 = vector.broadcast %32 : vector<1x32x1xf32> to vector<8x32x1xf32>
    %35 = arith.mulf %33, %34 : vector<8x32x1xf32>
    %36 = arith.addf %22, %35 : vector<8x32x1xf32>
    %37 = vector.extract_strided_slice %36 {offsets = [0, 0, 0], sizes = [4, 32, 1], strides = [1, 1, 1]} : vector<8x32x1xf32> to vector<4x32x1xf32>
    %38 = vector.extract_strided_slice %36 {offsets = [4, 0, 0], sizes = [4, 32, 1], strides = [1, 1, 1]} : vector<8x32x1xf32> to vector<4x32x1xf32>
    %39 = arith.addf %37, %38 : vector<4x32x1xf32>
    %40 = arith.negf %39 : vector<4x32x1xf32>
    %41 = math.exp %40 : vector<4x32x1xf32>
    %cst_16 = arith.constant 1.000000e+00 : f32
    %42 = vector.broadcast %cst_16 : f32 to vector<4x32x1xf32>
    %43 = arith.addf %42, %41 : vector<4x32x1xf32>
    %44 = arith.divf %42, %43 : vector<4x32x1xf32>
    %45 = vector.broadcast %44 : vector<4x32x1xf32> to vector<4x32x256xf32>
    %46 = arith.mulf %0, %45 : vector<4x32x256xf32>
    %cst_17 = arith.constant dense<0.000000e+00> : vector<4x256xf32>
    %47 = vector.multi_reduction <add>, %46, %cst_17 [1] : vector<4x32x256xf32> to vector<4x256xf32>
    %cst_18 = arith.constant 3.200000e+01 : f32
    %48 = vector.broadcast %cst_18 : f32 to vector<4x256xf32>
    %49 = arith.divf %47, %48 : vector<4x256xf32>
    %cst_19 = arith.constant dense<0xFF800000> : vector<4x256xf32>
    %50 = vector.multi_reduction <maximumf>, %46, %cst_19 [1] : vector<4x32x256xf32> to vector<4x256xf32>
    %cst_20 = arith.constant 0.000000e+00 : f32
    %51 = vector.broadcast %cst_20 : f32 to vector<4x128xf32>
    %52 = tpu.concatenate %51, %49, %51 in 1 : vector<4x128xf32>, vector<4x256xf32>, vector<4x128xf32> -> vector<4x512xf32>
    %53 = tpu.concatenate %51, %50, %51 in 1 : vector<4x128xf32>, vector<4x256xf32>, vector<4x128xf32> -> vector<4x512xf32>
    %54 = tpu.iota {dimensions = array<i32: 1>} : vector<1x256xi32>
    %c16_i32 = arith.constant 16 : i32
    %c0_i32 = arith.constant 0 : i32
    %55 = arith.cmpi eq, %c16_i32, %c0_i32 : i32
    %c1_i32 = arith.constant 1 : i32
    %56 = arith.select %55, %c1_i32, %c16_i32 : i32
    %57 = vector.broadcast %56 : i32 to vector<1x256xi32>
    %58 = arith.remsi %54, %57 : vector<1x256xi32>
    %c0_i32_21 = arith.constant 0 : i32
    %59 = vector.broadcast %c0_i32_21 : i32 to vector<1x256xi32>
    %60 = arith.cmpi ne, %58, %59 : vector<1x256xi32>
    %c0_i32_22 = arith.constant 0 : i32
    %61 = vector.broadcast %c0_i32_22 : i32 to vector<1x256xi32>
    %62 = arith.cmpi slt, %58, %61 : vector<1x256xi32>
    %c0_i32_23 = arith.constant 0 : i32
    %63 = arith.cmpi slt, %56, %c0_i32_23 : i32
    %64 = vector.broadcast %63 : i1 to vector<1x256xi1>
    %65 = vector.broadcast %64 : vector<1x256xi1> to vector<1x256xi1>
    %66 = arith.xori %62, %65 : vector<1x256xi1>
    %67 = arith.andi %66, %60 : vector<1x256xi1>
    %68 = vector.broadcast %56 : i32 to vector<1x256xi32>
    %69 = arith.addi %58, %68 : vector<1x256xi32>
    %70 = arith.select %67, %69, %58 : vector<1x256xi1>, vector<1x256xi32>
    %c-3_i32 = arith.constant -3 : i32
    %71 = vector.broadcast %c-3_i32 : i32 to vector<1x256xi32>
    %72 = arith.addi %70, %71 : vector<1x256xi32>
    %c0_i32_24 = arith.constant 0 : i32
    %73 = vector.broadcast %c0_i32_24 : i32 to vector<1x256xi32>
    %74 = arith.cmpi sge, %72, %73 : vector<1x256xi32>
    %c-3_i32_25 = arith.constant -3 : i32
    %75 = vector.broadcast %c-3_i32_25 : i32 to vector<1x256xi32>
    %76 = arith.addi %70, %75 : vector<1x256xi32>
    %c16_i32_26 = arith.constant 16 : i32
    %77 = vector.broadcast %c16_i32_26 : i32 to vector<1x256xi32>
    %78 = arith.cmpi slt, %76, %77 : vector<1x256xi32>
    %79 = arith.andi %74, %78 : vector<1x256xi1>
    %c-2_i32 = arith.constant -2 : i32
    %80 = vector.broadcast %c-2_i32 : i32 to vector<1x256xi32>
    %81 = arith.addi %70, %80 : vector<1x256xi32>
    %c0_i32_27 = arith.constant 0 : i32
    %82 = vector.broadcast %c0_i32_27 : i32 to vector<1x256xi32>
    %83 = arith.cmpi sge, %81, %82 : vector<1x256xi32>
    %c-2_i32_28 = arith.constant -2 : i32
    %84 = vector.broadcast %c-2_i32_28 : i32 to vector<1x256xi32>
    %85 = arith.addi %70, %84 : vector<1x256xi32>
    %c16_i32_29 = arith.constant 16 : i32
    %86 = vector.broadcast %c16_i32_29 : i32 to vector<1x256xi32>
    %87 = arith.cmpi slt, %85, %86 : vector<1x256xi32>
    %88 = arith.andi %83, %87 : vector<1x256xi1>
    %c-1_i32 = arith.constant -1 : i32
    %89 = vector.broadcast %c-1_i32 : i32 to vector<1x256xi32>
    %90 = arith.addi %70, %89 : vector<1x256xi32>
    %c0_i32_30 = arith.constant 0 : i32
    %91 = vector.broadcast %c0_i32_30 : i32 to vector<1x256xi32>
    %92 = arith.cmpi sge, %90, %91 : vector<1x256xi32>
    %c-1_i32_31 = arith.constant -1 : i32
    %93 = vector.broadcast %c-1_i32_31 : i32 to vector<1x256xi32>
    %94 = arith.addi %70, %93 : vector<1x256xi32>
    %c16_i32_32 = arith.constant 16 : i32
    %95 = vector.broadcast %c16_i32_32 : i32 to vector<1x256xi32>
    %96 = arith.cmpi slt, %94, %95 : vector<1x256xi32>
    %97 = arith.andi %92, %96 : vector<1x256xi1>
    %c0_i32_33 = arith.constant 0 : i32
    %98 = vector.broadcast %c0_i32_33 : i32 to vector<1x256xi32>
    %99 = arith.addi %70, %98 : vector<1x256xi32>
    %c0_i32_34 = arith.constant 0 : i32
    %100 = vector.broadcast %c0_i32_34 : i32 to vector<1x256xi32>
    %101 = arith.cmpi sge, %99, %100 : vector<1x256xi32>
    %c0_i32_35 = arith.constant 0 : i32
    %102 = vector.broadcast %c0_i32_35 : i32 to vector<1x256xi32>
    %103 = arith.addi %70, %102 : vector<1x256xi32>
    %c16_i32_36 = arith.constant 16 : i32
    %104 = vector.broadcast %c16_i32_36 : i32 to vector<1x256xi32>
    %105 = arith.cmpi slt, %103, %104 : vector<1x256xi32>
    %106 = arith.andi %101, %105 : vector<1x256xi1>
    %c1_i32_37 = arith.constant 1 : i32
    %107 = vector.broadcast %c1_i32_37 : i32 to vector<1x256xi32>
    %108 = arith.addi %70, %107 : vector<1x256xi32>
    %c0_i32_38 = arith.constant 0 : i32
    %109 = vector.broadcast %c0_i32_38 : i32 to vector<1x256xi32>
    %110 = arith.cmpi sge, %108, %109 : vector<1x256xi32>
    %c1_i32_39 = arith.constant 1 : i32
    %111 = vector.broadcast %c1_i32_39 : i32 to vector<1x256xi32>
    %112 = arith.addi %70, %111 : vector<1x256xi32>
    %c16_i32_40 = arith.constant 16 : i32
    %113 = vector.broadcast %c16_i32_40 : i32 to vector<1x256xi32>
    %114 = arith.cmpi slt, %112, %113 : vector<1x256xi32>
    %115 = arith.andi %110, %114 : vector<1x256xi1>
    %c2_i32 = arith.constant 2 : i32
    %116 = vector.broadcast %c2_i32 : i32 to vector<1x256xi32>
    %117 = arith.addi %70, %116 : vector<1x256xi32>
    %c0_i32_41 = arith.constant 0 : i32
    %118 = vector.broadcast %c0_i32_41 : i32 to vector<1x256xi32>
    %119 = arith.cmpi sge, %117, %118 : vector<1x256xi32>
    %c2_i32_42 = arith.constant 2 : i32
    %120 = vector.broadcast %c2_i32_42 : i32 to vector<1x256xi32>
    %121 = arith.addi %70, %120 : vector<1x256xi32>
    %c16_i32_43 = arith.constant 16 : i32
    %122 = vector.broadcast %c16_i32_43 : i32 to vector<1x256xi32>
    %123 = arith.cmpi slt, %121, %122 : vector<1x256xi32>
    %124 = arith.andi %119, %123 : vector<1x256xi1>
    %c3_i32 = arith.constant 3 : i32
    %125 = vector.broadcast %c3_i32 : i32 to vector<1x256xi32>
    %126 = arith.addi %70, %125 : vector<1x256xi32>
    %c0_i32_44 = arith.constant 0 : i32
    %127 = vector.broadcast %c0_i32_44 : i32 to vector<1x256xi32>
    %128 = arith.cmpi sge, %126, %127 : vector<1x256xi32>
    %c3_i32_45 = arith.constant 3 : i32
    %129 = vector.broadcast %c3_i32_45 : i32 to vector<1x256xi32>
    %130 = arith.addi %70, %129 : vector<1x256xi32>
    %c16_i32_46 = arith.constant 16 : i32
    %131 = vector.broadcast %c16_i32_46 : i32 to vector<1x256xi32>
    %132 = arith.cmpi slt, %130, %131 : vector<1x256xi32>
    %133 = arith.andi %128, %132 : vector<1x256xi1>
    %cst_47 = arith.constant 0.000000e+00 : f32
    %134 = vector.broadcast %cst_47 : f32 to vector<4x256xf32>
    %cst_48 = arith.constant 0.000000e+00 : f32
    %135 = vector.broadcast %cst_48 : f32 to vector<4x256xf32>
    %cst_49 = arith.constant 0.000000e+00 : f32
    %136 = vector.broadcast %cst_49 : f32 to vector<4x256xf32>
    %cst_50 = arith.constant 0.000000e+00 : f32
    %137 = vector.broadcast %cst_50 : f32 to vector<4x256xf32>
    %138 = vector.extract_strided_slice %52 {offsets = [0, 77], sizes = [4, 256], strides = [1, 1]} : vector<4x512xf32> to vector<4x256xf32>
    %c0_51 = arith.constant 0 : index
    %139 = memref.load %arg4[%c0_51] : memref<98xf32, #tpu.memory_space<smem>>
    %140 = vector.broadcast %139 : f32 to vector<4x256xf32>
    %141 = arith.mulf %138, %140 : vector<4x256xf32>
    %cst_52 = arith.constant 0.000000e+00 : f32
    %142 = vector.shape_cast %79 : vector<1x256xi1> to vector<1x256xi1>
    %143 = vector.broadcast %142 : vector<1x256xi1> to vector<4x256xi1>
    %144 = vector.broadcast %cst_52 : f32 to vector<4x256xf32>
    %145 = arith.select %143, %141, %144 : vector<4x256xi1>, vector<4x256xf32>
    %146 = arith.addf %134, %145 : vector<4x256xf32>
    %147 = vector.extract_strided_slice %52 {offsets = [0, 78], sizes = [4, 256], strides = [1, 1]} : vector<4x512xf32> to vector<4x256xf32>
    %c1_53 = arith.constant 1 : index
    %148 = memref.load %arg4[%c1_53] : memref<98xf32, #tpu.memory_space<smem>>
    %149 = vector.broadcast %148 : f32 to vector<4x256xf32>
    %150 = arith.mulf %147, %149 : vector<4x256xf32>
    %cst_54 = arith.constant 0.000000e+00 : f32
    %151 = vector.shape_cast %88 : vector<1x256xi1> to vector<1x256xi1>
    %152 = vector.broadcast %151 : vector<1x256xi1> to vector<4x256xi1>
    %153 = vector.broadcast %cst_54 : f32 to vector<4x256xf32>
    %154 = arith.select %152, %150, %153 : vector<4x256xi1>, vector<4x256xf32>
    %155 = arith.addf %146, %154 : vector<4x256xf32>
    %156 = vector.extract_strided_slice %52 {offsets = [0, 79], sizes = [4, 256], strides = [1, 1]} : vector<4x512xf32> to vector<4x256xf32>
    %c2 = arith.constant 2 : index
    %157 = memref.load %arg4[%c2] : memref<98xf32, #tpu.memory_space<smem>>
    %158 = vector.broadcast %157 : f32 to vector<4x256xf32>
    %159 = arith.mulf %156, %158 : vector<4x256xf32>
    %cst_55 = arith.constant 0.000000e+00 : f32
    %160 = vector.shape_cast %97 : vector<1x256xi1> to vector<1x256xi1>
    %161 = vector.broadcast %160 : vector<1x256xi1> to vector<4x256xi1>
    %162 = vector.broadcast %cst_55 : f32 to vector<4x256xf32>
    %163 = arith.select %161, %159, %162 : vector<4x256xi1>, vector<4x256xf32>
    %164 = arith.addf %155, %163 : vector<4x256xf32>
    %165 = vector.extract_strided_slice %52 {offsets = [0, 80], sizes = [4, 256], strides = [1, 1]} : vector<4x512xf32> to vector<4x256xf32>
    %c3 = arith.constant 3 : index
    %166 = memref.load %arg4[%c3] : memref<98xf32, #tpu.memory_space<smem>>
    %167 = vector.broadcast %166 : f32 to vector<4x256xf32>
    %168 = arith.mulf %165, %167 : vector<4x256xf32>
    %cst_56 = arith.constant 0.000000e+00 : f32
    %169 = vector.shape_cast %106 : vector<1x256xi1> to vector<1x256xi1>
    %170 = vector.broadcast %169 : vector<1x256xi1> to vector<4x256xi1>
    %171 = vector.broadcast %cst_56 : f32 to vector<4x256xf32>
    %172 = arith.select %170, %168, %171 : vector<4x256xi1>, vector<4x256xf32>
    %173 = arith.addf %164, %172 : vector<4x256xf32>
    %174 = vector.extract_strided_slice %52 {offsets = [0, 81], sizes = [4, 256], strides = [1, 1]} : vector<4x512xf32> to vector<4x256xf32>
    %c4 = arith.constant 4 : index
    %175 = memref.load %arg4[%c4] : memref<98xf32, #tpu.memory_space<smem>>
    %176 = vector.broadcast %175 : f32 to vector<4x256xf32>
    %177 = arith.mulf %174, %176 : vector<4x256xf32>
    %cst_57 = arith.constant 0.000000e+00 : f32
    %178 = vector.shape_cast %115 : vector<1x256xi1> to vector<1x256xi1>
    %179 = vector.broadcast %178 : vector<1x256xi1> to vector<4x256xi1>
    %180 = vector.broadcast %cst_57 : f32 to vector<4x256xf32>
    %181 = arith.select %179, %177, %180 : vector<4x256xi1>, vector<4x256xf32>
    %182 = arith.addf %173, %181 : vector<4x256xf32>
    %183 = vector.extract_strided_slice %52 {offsets = [0, 82], sizes = [4, 256], strides = [1, 1]} : vector<4x512xf32> to vector<4x256xf32>
    %c5 = arith.constant 5 : index
    %184 = memref.load %arg4[%c5] : memref<98xf32, #tpu.memory_space<smem>>
    %185 = vector.broadcast %184 : f32 to vector<4x256xf32>
    %186 = arith.mulf %183, %185 : vector<4x256xf32>
    %cst_58 = arith.constant 0.000000e+00 : f32
    %187 = vector.shape_cast %124 : vector<1x256xi1> to vector<1x256xi1>
    %188 = vector.broadcast %187 : vector<1x256xi1> to vector<4x256xi1>
    %189 = vector.broadcast %cst_58 : f32 to vector<4x256xf32>
    %190 = arith.select %188, %186, %189 : vector<4x256xi1>, vector<4x256xf32>
    %191 = arith.addf %182, %190 : vector<4x256xf32>
    %192 = vector.extract_strided_slice %52 {offsets = [0, 83], sizes = [4, 256], strides = [1, 1]} : vector<4x512xf32> to vector<4x256xf32>
    %c6 = arith.constant 6 : index
    %193 = memref.load %arg4[%c6] : memref<98xf32, #tpu.memory_space<smem>>
    %194 = vector.broadcast %193 : f32 to vector<4x256xf32>
    %195 = arith.mulf %192, %194 : vector<4x256xf32>
    %cst_59 = arith.constant 0.000000e+00 : f32
    %196 = vector.shape_cast %133 : vector<1x256xi1> to vector<1x256xi1>
    %197 = vector.broadcast %196 : vector<1x256xi1> to vector<4x256xi1>
    %198 = vector.broadcast %cst_59 : f32 to vector<4x256xf32>
    %199 = arith.select %197, %195, %198 : vector<4x256xi1>, vector<4x256xf32>
    %200 = arith.addf %191, %199 : vector<4x256xf32>
    %201 = vector.extract_strided_slice %52 {offsets = [0, 93], sizes = [4, 256], strides = [1, 1]} : vector<4x512xf32> to vector<4x256xf32>
    %c7 = arith.constant 7 : index
    %202 = memref.load %arg4[%c7] : memref<98xf32, #tpu.memory_space<smem>>
    %203 = vector.broadcast %202 : f32 to vector<4x256xf32>
    %204 = arith.mulf %201, %203 : vector<4x256xf32>
    %cst_60 = arith.constant 0.000000e+00 : f32
    %205 = vector.shape_cast %79 : vector<1x256xi1> to vector<1x256xi1>
    %206 = vector.broadcast %205 : vector<1x256xi1> to vector<4x256xi1>
    %207 = vector.broadcast %cst_60 : f32 to vector<4x256xf32>
    %208 = arith.select %206, %204, %207 : vector<4x256xi1>, vector<4x256xf32>
    %209 = arith.addf %135, %208 : vector<4x256xf32>
    %210 = vector.extract_strided_slice %52 {offsets = [0, 94], sizes = [4, 256], strides = [1, 1]} : vector<4x512xf32> to vector<4x256xf32>
    %c8 = arith.constant 8 : index
    %211 = memref.load %arg4[%c8] : memref<98xf32, #tpu.memory_space<smem>>
    %212 = vector.broadcast %211 : f32 to vector<4x256xf32>
    %213 = arith.mulf %210, %212 : vector<4x256xf32>
    %cst_61 = arith.constant 0.000000e+00 : f32
    %214 = vector.shape_cast %88 : vector<1x256xi1> to vector<1x256xi1>
    %215 = vector.broadcast %214 : vector<1x256xi1> to vector<4x256xi1>
    %216 = vector.broadcast %cst_61 : f32 to vector<4x256xf32>
    %217 = arith.select %215, %213, %216 : vector<4x256xi1>, vector<4x256xf32>
    %218 = arith.addf %209, %217 : vector<4x256xf32>
    %219 = vector.extract_strided_slice %52 {offsets = [0, 95], sizes = [4, 256], strides = [1, 1]} : vector<4x512xf32> to vector<4x256xf32>
    %c9 = arith.constant 9 : index
    %220 = memref.load %arg4[%c9] : memref<98xf32, #tpu.memory_space<smem>>
    %221 = vector.broadcast %220 : f32 to vector<4x256xf32>
    %222 = arith.mulf %219, %221 : vector<4x256xf32>
    %cst_62 = arith.constant 0.000000e+00 : f32
    %223 = vector.shape_cast %97 : vector<1x256xi1> to vector<1x256xi1>
    %224 = vector.broadcast %223 : vector<1x256xi1> to vector<4x256xi1>
    %225 = vector.broadcast %cst_62 : f32 to vector<4x256xf32>
    %226 = arith.select %224, %222, %225 : vector<4x256xi1>, vector<4x256xf32>
    %227 = arith.addf %218, %226 : vector<4x256xf32>
    %228 = vector.extract_strided_slice %52 {offsets = [0, 96], sizes = [4, 256], strides = [1, 1]} : vector<4x512xf32> to vector<4x256xf32>
    %c10 = arith.constant 10 : index
    %229 = memref.load %arg4[%c10] : memref<98xf32, #tpu.memory_space<smem>>
    %230 = vector.broadcast %229 : f32 to vector<4x256xf32>
    %231 = arith.mulf %228, %230 : vector<4x256xf32>
    %cst_63 = arith.constant 0.000000e+00 : f32
    %232 = vector.shape_cast %106 : vector<1x256xi1> to vector<1x256xi1>
    %233 = vector.broadcast %232 : vector<1x256xi1> to vector<4x256xi1>
    %234 = vector.broadcast %cst_63 : f32 to vector<4x256xf32>
    %235 = arith.select %233, %231, %234 : vector<4x256xi1>, vector<4x256xf32>
    %236 = arith.addf %227, %235 : vector<4x256xf32>
    %237 = vector.extract_strided_slice %52 {offsets = [0, 97], sizes = [4, 256], strides = [1, 1]} : vector<4x512xf32> to vector<4x256xf32>
    %c11 = arith.constant 11 : index
    %238 = memref.load %arg4[%c11] : memref<98xf32, #tpu.memory_space<smem>>
    %239 = vector.broadcast %238 : f32 to vector<4x256xf32>
    %240 = arith.mulf %237, %239 : vector<4x256xf32>
    %cst_64 = arith.constant 0.000000e+00 : f32
    %241 = vector.shape_cast %115 : vector<1x256xi1> to vector<1x256xi1>
    %242 = vector.broadcast %241 : vector<1x256xi1> to vector<4x256xi1>
    %243 = vector.broadcast %cst_64 : f32 to vector<4x256xf32>
    %244 = arith.select %242, %240, %243 : vector<4x256xi1>, vector<4x256xf32>
    %245 = arith.addf %236, %244 : vector<4x256xf32>
    %246 = vector.extract_strided_slice %52 {offsets = [0, 98], sizes = [4, 256], strides = [1, 1]} : vector<4x512xf32> to vector<4x256xf32>
    %c12 = arith.constant 12 : index
    %247 = memref.load %arg4[%c12] : memref<98xf32, #tpu.memory_space<smem>>
    %248 = vector.broadcast %247 : f32 to vector<4x256xf32>
    %249 = arith.mulf %246, %248 : vector<4x256xf32>
    %cst_65 = arith.constant 0.000000e+00 : f32
    %250 = vector.shape_cast %124 : vector<1x256xi1> to vector<1x256xi1>
    %251 = vector.broadcast %250 : vector<1x256xi1> to vector<4x256xi1>
    %252 = vector.broadcast %cst_65 : f32 to vector<4x256xf32>
    %253 = arith.select %251, %249, %252 : vector<4x256xi1>, vector<4x256xf32>
    %254 = arith.addf %245, %253 : vector<4x256xf32>
    %255 = vector.extract_strided_slice %52 {offsets = [0, 99], sizes = [4, 256], strides = [1, 1]} : vector<4x512xf32> to vector<4x256xf32>
    %c13 = arith.constant 13 : index
    %256 = memref.load %arg4[%c13] : memref<98xf32, #tpu.memory_space<smem>>
    %257 = vector.broadcast %256 : f32 to vector<4x256xf32>
    %258 = arith.mulf %255, %257 : vector<4x256xf32>
    %cst_66 = arith.constant 0.000000e+00 : f32
    %259 = vector.shape_cast %133 : vector<1x256xi1> to vector<1x256xi1>
    %260 = vector.broadcast %259 : vector<1x256xi1> to vector<4x256xi1>
    %261 = vector.broadcast %cst_66 : f32 to vector<4x256xf32>
    %262 = arith.select %260, %258, %261 : vector<4x256xi1>, vector<4x256xf32>
    %263 = arith.addf %254, %262 : vector<4x256xf32>
    %264 = vector.extract_strided_slice %52 {offsets = [0, 109], sizes = [4, 256], strides = [1, 1]} : vector<4x512xf32> to vector<4x256xf32>
    %c14 = arith.constant 14 : index
    %265 = memref.load %arg4[%c14] : memref<98xf32, #tpu.memory_space<smem>>
    %266 = vector.broadcast %265 : f32 to vector<4x256xf32>
    %267 = arith.mulf %264, %266 : vector<4x256xf32>
    %cst_67 = arith.constant 0.000000e+00 : f32
    %268 = vector.shape_cast %79 : vector<1x256xi1> to vector<1x256xi1>
    %269 = vector.broadcast %268 : vector<1x256xi1> to vector<4x256xi1>
    %270 = vector.broadcast %cst_67 : f32 to vector<4x256xf32>
    %271 = arith.select %269, %267, %270 : vector<4x256xi1>, vector<4x256xf32>
    %272 = arith.addf %200, %271 : vector<4x256xf32>
    %273 = vector.extract_strided_slice %52 {offsets = [0, 110], sizes = [4, 256], strides = [1, 1]} : vector<4x512xf32> to vector<4x256xf32>
    %c15 = arith.constant 15 : index
    %274 = memref.load %arg4[%c15] : memref<98xf32, #tpu.memory_space<smem>>
    %275 = vector.broadcast %274 : f32 to vector<4x256xf32>
    %276 = arith.mulf %273, %275 : vector<4x256xf32>
    %cst_68 = arith.constant 0.000000e+00 : f32
    %277 = vector.shape_cast %88 : vector<1x256xi1> to vector<1x256xi1>
    %278 = vector.broadcast %277 : vector<1x256xi1> to vector<4x256xi1>
    %279 = vector.broadcast %cst_68 : f32 to vector<4x256xf32>
    %280 = arith.select %278, %276, %279 : vector<4x256xi1>, vector<4x256xf32>
    %281 = arith.addf %272, %280 : vector<4x256xf32>
    %282 = vector.extract_strided_slice %52 {offsets = [0, 111], sizes = [4, 256], strides = [1, 1]} : vector<4x512xf32> to vector<4x256xf32>
    %c16 = arith.constant 16 : index
    %283 = memref.load %arg4[%c16] : memref<98xf32, #tpu.memory_space<smem>>
    %284 = vector.broadcast %283 : f32 to vector<4x256xf32>
    %285 = arith.mulf %282, %284 : vector<4x256xf32>
    %cst_69 = arith.constant 0.000000e+00 : f32
    %286 = vector.shape_cast %97 : vector<1x256xi1> to vector<1x256xi1>
    %287 = vector.broadcast %286 : vector<1x256xi1> to vector<4x256xi1>
    %288 = vector.broadcast %cst_69 : f32 to vector<4x256xf32>
    %289 = arith.select %287, %285, %288 : vector<4x256xi1>, vector<4x256xf32>
    %290 = arith.addf %281, %289 : vector<4x256xf32>
    %291 = vector.extract_strided_slice %52 {offsets = [0, 112], sizes = [4, 256], strides = [1, 1]} : vector<4x512xf32> to vector<4x256xf32>
    %c17 = arith.constant 17 : index
    %292 = memref.load %arg4[%c17] : memref<98xf32, #tpu.memory_space<smem>>
    %293 = vector.broadcast %292 : f32 to vector<4x256xf32>
    %294 = arith.mulf %291, %293 : vector<4x256xf32>
    %cst_70 = arith.constant 0.000000e+00 : f32
    %295 = vector.shape_cast %106 : vector<1x256xi1> to vector<1x256xi1>
    %296 = vector.broadcast %295 : vector<1x256xi1> to vector<4x256xi1>
    %297 = vector.broadcast %cst_70 : f32 to vector<4x256xf32>
    %298 = arith.select %296, %294, %297 : vector<4x256xi1>, vector<4x256xf32>
    %299 = arith.addf %290, %298 : vector<4x256xf32>
    %300 = vector.extract_strided_slice %52 {offsets = [0, 113], sizes = [4, 256], strides = [1, 1]} : vector<4x512xf32> to vector<4x256xf32>
    %c18 = arith.constant 18 : index
    %301 = memref.load %arg4[%c18] : memref<98xf32, #tpu.memory_space<smem>>
    %302 = vector.broadcast %301 : f32 to vector<4x256xf32>
    %303 = arith.mulf %300, %302 : vector<4x256xf32>
    %cst_71 = arith.constant 0.000000e+00 : f32
    %304 = vector.shape_cast %115 : vector<1x256xi1> to vector<1x256xi1>
    %305 = vector.broadcast %304 : vector<1x256xi1> to vector<4x256xi1>
    %306 = vector.broadcast %cst_71 : f32 to vector<4x256xf32>
    %307 = arith.select %305, %303, %306 : vector<4x256xi1>, vector<4x256xf32>
    %308 = arith.addf %299, %307 : vector<4x256xf32>
    %309 = vector.extract_strided_slice %52 {offsets = [0, 114], sizes = [4, 256], strides = [1, 1]} : vector<4x512xf32> to vector<4x256xf32>
    %c19 = arith.constant 19 : index
    %310 = memref.load %arg4[%c19] : memref<98xf32, #tpu.memory_space<smem>>
    %311 = vector.broadcast %310 : f32 to vector<4x256xf32>
    %312 = arith.mulf %309, %311 : vector<4x256xf32>
    %cst_72 = arith.constant 0.000000e+00 : f32
    %313 = vector.shape_cast %124 : vector<1x256xi1> to vector<1x256xi1>
    %314 = vector.broadcast %313 : vector<1x256xi1> to vector<4x256xi1>
    %315 = vector.broadcast %cst_72 : f32 to vector<4x256xf32>
    %316 = arith.select %314, %312, %315 : vector<4x256xi1>, vector<4x256xf32>
    %317 = arith.addf %308, %316 : vector<4x256xf32>
    %318 = vector.extract_strided_slice %52 {offsets = [0, 115], sizes = [4, 256], strides = [1, 1]} : vector<4x512xf32> to vector<4x256xf32>
    %c20 = arith.constant 20 : index
    %319 = memref.load %arg4[%c20] : memref<98xf32, #tpu.memory_space<smem>>
    %320 = vector.broadcast %319 : f32 to vector<4x256xf32>
    %321 = arith.mulf %318, %320 : vector<4x256xf32>
    %cst_73 = arith.constant 0.000000e+00 : f32
    %322 = vector.shape_cast %133 : vector<1x256xi1> to vector<1x256xi1>
    %323 = vector.broadcast %322 : vector<1x256xi1> to vector<4x256xi1>
    %324 = vector.broadcast %cst_73 : f32 to vector<4x256xf32>
    %325 = arith.select %323, %321, %324 : vector<4x256xi1>, vector<4x256xf32>
    %326 = arith.addf %317, %325 : vector<4x256xf32>
    %327 = vector.extract_strided_slice %52 {offsets = [0, 125], sizes = [4, 256], strides = [1, 1]} : vector<4x512xf32> to vector<4x256xf32>
    %c21 = arith.constant 21 : index
    %328 = memref.load %arg4[%c21] : memref<98xf32, #tpu.memory_space<smem>>
    %329 = vector.broadcast %328 : f32 to vector<4x256xf32>
    %330 = arith.mulf %327, %329 : vector<4x256xf32>
    %cst_74 = arith.constant 0.000000e+00 : f32
    %331 = vector.shape_cast %79 : vector<1x256xi1> to vector<1x256xi1>
    %332 = vector.broadcast %331 : vector<1x256xi1> to vector<4x256xi1>
    %333 = vector.broadcast %cst_74 : f32 to vector<4x256xf32>
    %334 = arith.select %332, %330, %333 : vector<4x256xi1>, vector<4x256xf32>
    %335 = arith.addf %263, %334 : vector<4x256xf32>
    %336 = vector.extract_strided_slice %52 {offsets = [0, 126], sizes = [4, 256], strides = [1, 1]} : vector<4x512xf32> to vector<4x256xf32>
    %c22 = arith.constant 22 : index
    %337 = memref.load %arg4[%c22] : memref<98xf32, #tpu.memory_space<smem>>
    %338 = vector.broadcast %337 : f32 to vector<4x256xf32>
    %339 = arith.mulf %336, %338 : vector<4x256xf32>
    %cst_75 = arith.constant 0.000000e+00 : f32
    %340 = vector.shape_cast %88 : vector<1x256xi1> to vector<1x256xi1>
    %341 = vector.broadcast %340 : vector<1x256xi1> to vector<4x256xi1>
    %342 = vector.broadcast %cst_75 : f32 to vector<4x256xf32>
    %343 = arith.select %341, %339, %342 : vector<4x256xi1>, vector<4x256xf32>
    %344 = arith.addf %335, %343 : vector<4x256xf32>
    %345 = vector.extract_strided_slice %52 {offsets = [0, 127], sizes = [4, 256], strides = [1, 1]} : vector<4x512xf32> to vector<4x256xf32>
    %c23 = arith.constant 23 : index
    %346 = memref.load %arg4[%c23] : memref<98xf32, #tpu.memory_space<smem>>
    %347 = vector.broadcast %346 : f32 to vector<4x256xf32>
    %348 = arith.mulf %345, %347 : vector<4x256xf32>
    %cst_76 = arith.constant 0.000000e+00 : f32
    %349 = vector.shape_cast %97 : vector<1x256xi1> to vector<1x256xi1>
    %350 = vector.broadcast %349 : vector<1x256xi1> to vector<4x256xi1>
    %351 = vector.broadcast %cst_76 : f32 to vector<4x256xf32>
    %352 = arith.select %350, %348, %351 : vector<4x256xi1>, vector<4x256xf32>
    %353 = arith.addf %344, %352 : vector<4x256xf32>
    %354 = vector.extract_strided_slice %52 {offsets = [0, 128], sizes = [4, 256], strides = [1, 1]} : vector<4x512xf32> to vector<4x256xf32>
    %c24 = arith.constant 24 : index
    %355 = memref.load %arg4[%c24] : memref<98xf32, #tpu.memory_space<smem>>
    %356 = vector.broadcast %355 : f32 to vector<4x256xf32>
    %357 = arith.mulf %354, %356 : vector<4x256xf32>
    %cst_77 = arith.constant 0.000000e+00 : f32
    %358 = vector.shape_cast %106 : vector<1x256xi1> to vector<1x256xi1>
    %359 = vector.broadcast %358 : vector<1x256xi1> to vector<4x256xi1>
    %360 = vector.broadcast %cst_77 : f32 to vector<4x256xf32>
    %361 = arith.select %359, %357, %360 : vector<4x256xi1>, vector<4x256xf32>
    %362 = arith.addf %353, %361 : vector<4x256xf32>
    %363 = vector.extract_strided_slice %52 {offsets = [0, 129], sizes = [4, 256], strides = [1, 1]} : vector<4x512xf32> to vector<4x256xf32>
    %c25 = arith.constant 25 : index
    %364 = memref.load %arg4[%c25] : memref<98xf32, #tpu.memory_space<smem>>
    %365 = vector.broadcast %364 : f32 to vector<4x256xf32>
    %366 = arith.mulf %363, %365 : vector<4x256xf32>
    %cst_78 = arith.constant 0.000000e+00 : f32
    %367 = vector.shape_cast %115 : vector<1x256xi1> to vector<1x256xi1>
    %368 = vector.broadcast %367 : vector<1x256xi1> to vector<4x256xi1>
    %369 = vector.broadcast %cst_78 : f32 to vector<4x256xf32>
    %370 = arith.select %368, %366, %369 : vector<4x256xi1>, vector<4x256xf32>
    %371 = arith.addf %362, %370 : vector<4x256xf32>
    %372 = vector.extract_strided_slice %52 {offsets = [0, 130], sizes = [4, 256], strides = [1, 1]} : vector<4x512xf32> to vector<4x256xf32>
    %c26 = arith.constant 26 : index
    %373 = memref.load %arg4[%c26] : memref<98xf32, #tpu.memory_space<smem>>
    %374 = vector.broadcast %373 : f32 to vector<4x256xf32>
    %375 = arith.mulf %372, %374 : vector<4x256xf32>
    %cst_79 = arith.constant 0.000000e+00 : f32
    %376 = vector.shape_cast %124 : vector<1x256xi1> to vector<1x256xi1>
    %377 = vector.broadcast %376 : vector<1x256xi1> to vector<4x256xi1>
    %378 = vector.broadcast %cst_79 : f32 to vector<4x256xf32>
    %379 = arith.select %377, %375, %378 : vector<4x256xi1>, vector<4x256xf32>
    %380 = arith.addf %371, %379 : vector<4x256xf32>
    %381 = vector.extract_strided_slice %52 {offsets = [0, 131], sizes = [4, 256], strides = [1, 1]} : vector<4x512xf32> to vector<4x256xf32>
    %c27 = arith.constant 27 : index
    %382 = memref.load %arg4[%c27] : memref<98xf32, #tpu.memory_space<smem>>
    %383 = vector.broadcast %382 : f32 to vector<4x256xf32>
    %384 = arith.mulf %381, %383 : vector<4x256xf32>
    %cst_80 = arith.constant 0.000000e+00 : f32
    %385 = vector.shape_cast %133 : vector<1x256xi1> to vector<1x256xi1>
    %386 = vector.broadcast %385 : vector<1x256xi1> to vector<4x256xi1>
    %387 = vector.broadcast %cst_80 : f32 to vector<4x256xf32>
    %388 = arith.select %386, %384, %387 : vector<4x256xi1>, vector<4x256xf32>
    %389 = arith.addf %380, %388 : vector<4x256xf32>
    %390 = vector.extract_strided_slice %52 {offsets = [0, 141], sizes = [4, 256], strides = [1, 1]} : vector<4x512xf32> to vector<4x256xf32>
    %c28 = arith.constant 28 : index
    %391 = memref.load %arg4[%c28] : memref<98xf32, #tpu.memory_space<smem>>
    %392 = vector.broadcast %391 : f32 to vector<4x256xf32>
    %393 = arith.mulf %390, %392 : vector<4x256xf32>
    %cst_81 = arith.constant 0.000000e+00 : f32
    %394 = vector.shape_cast %79 : vector<1x256xi1> to vector<1x256xi1>
    %395 = vector.broadcast %394 : vector<1x256xi1> to vector<4x256xi1>
    %396 = vector.broadcast %cst_81 : f32 to vector<4x256xf32>
    %397 = arith.select %395, %393, %396 : vector<4x256xi1>, vector<4x256xf32>
    %398 = arith.addf %326, %397 : vector<4x256xf32>
    %399 = vector.extract_strided_slice %52 {offsets = [0, 142], sizes = [4, 256], strides = [1, 1]} : vector<4x512xf32> to vector<4x256xf32>
    %c29 = arith.constant 29 : index
    %400 = memref.load %arg4[%c29] : memref<98xf32, #tpu.memory_space<smem>>
    %401 = vector.broadcast %400 : f32 to vector<4x256xf32>
    %402 = arith.mulf %399, %401 : vector<4x256xf32>
    %cst_82 = arith.constant 0.000000e+00 : f32
    %403 = vector.shape_cast %88 : vector<1x256xi1> to vector<1x256xi1>
    %404 = vector.broadcast %403 : vector<1x256xi1> to vector<4x256xi1>
    %405 = vector.broadcast %cst_82 : f32 to vector<4x256xf32>
    %406 = arith.select %404, %402, %405 : vector<4x256xi1>, vector<4x256xf32>
    %407 = arith.addf %398, %406 : vector<4x256xf32>
    %408 = vector.extract_strided_slice %52 {offsets = [0, 143], sizes = [4, 256], strides = [1, 1]} : vector<4x512xf32> to vector<4x256xf32>
    %c30 = arith.constant 30 : index
    %409 = memref.load %arg4[%c30] : memref<98xf32, #tpu.memory_space<smem>>
    %410 = vector.broadcast %409 : f32 to vector<4x256xf32>
    %411 = arith.mulf %408, %410 : vector<4x256xf32>
    %cst_83 = arith.constant 0.000000e+00 : f32
    %412 = vector.shape_cast %97 : vector<1x256xi1> to vector<1x256xi1>
    %413 = vector.broadcast %412 : vector<1x256xi1> to vector<4x256xi1>
    %414 = vector.broadcast %cst_83 : f32 to vector<4x256xf32>
    %415 = arith.select %413, %411, %414 : vector<4x256xi1>, vector<4x256xf32>
    %416 = arith.addf %407, %415 : vector<4x256xf32>
    %417 = vector.extract_strided_slice %52 {offsets = [0, 144], sizes = [4, 256], strides = [1, 1]} : vector<4x512xf32> to vector<4x256xf32>
    %c31 = arith.constant 31 : index
    %418 = memref.load %arg4[%c31] : memref<98xf32, #tpu.memory_space<smem>>
    %419 = vector.broadcast %418 : f32 to vector<4x256xf32>
    %420 = arith.mulf %417, %419 : vector<4x256xf32>
    %cst_84 = arith.constant 0.000000e+00 : f32
    %421 = vector.shape_cast %106 : vector<1x256xi1> to vector<1x256xi1>
    %422 = vector.broadcast %421 : vector<1x256xi1> to vector<4x256xi1>
    %423 = vector.broadcast %cst_84 : f32 to vector<4x256xf32>
    %424 = arith.select %422, %420, %423 : vector<4x256xi1>, vector<4x256xf32>
    %425 = arith.addf %416, %424 : vector<4x256xf32>
    %426 = vector.extract_strided_slice %52 {offsets = [0, 145], sizes = [4, 256], strides = [1, 1]} : vector<4x512xf32> to vector<4x256xf32>
    %c32 = arith.constant 32 : index
    %427 = memref.load %arg4[%c32] : memref<98xf32, #tpu.memory_space<smem>>
    %428 = vector.broadcast %427 : f32 to vector<4x256xf32>
    %429 = arith.mulf %426, %428 : vector<4x256xf32>
    %cst_85 = arith.constant 0.000000e+00 : f32
    %430 = vector.shape_cast %115 : vector<1x256xi1> to vector<1x256xi1>
    %431 = vector.broadcast %430 : vector<1x256xi1> to vector<4x256xi1>
    %432 = vector.broadcast %cst_85 : f32 to vector<4x256xf32>
    %433 = arith.select %431, %429, %432 : vector<4x256xi1>, vector<4x256xf32>
    %434 = arith.addf %425, %433 : vector<4x256xf32>
    %435 = vector.extract_strided_slice %52 {offsets = [0, 146], sizes = [4, 256], strides = [1, 1]} : vector<4x512xf32> to vector<4x256xf32>
    %c33 = arith.constant 33 : index
    %436 = memref.load %arg4[%c33] : memref<98xf32, #tpu.memory_space<smem>>
    %437 = vector.broadcast %436 : f32 to vector<4x256xf32>
    %438 = arith.mulf %435, %437 : vector<4x256xf32>
    %cst_86 = arith.constant 0.000000e+00 : f32
    %439 = vector.shape_cast %124 : vector<1x256xi1> to vector<1x256xi1>
    %440 = vector.broadcast %439 : vector<1x256xi1> to vector<4x256xi1>
    %441 = vector.broadcast %cst_86 : f32 to vector<4x256xf32>
    %442 = arith.select %440, %438, %441 : vector<4x256xi1>, vector<4x256xf32>
    %443 = arith.addf %434, %442 : vector<4x256xf32>
    %444 = vector.extract_strided_slice %52 {offsets = [0, 147], sizes = [4, 256], strides = [1, 1]} : vector<4x512xf32> to vector<4x256xf32>
    %c34 = arith.constant 34 : index
    %445 = memref.load %arg4[%c34] : memref<98xf32, #tpu.memory_space<smem>>
    %446 = vector.broadcast %445 : f32 to vector<4x256xf32>
    %447 = arith.mulf %444, %446 : vector<4x256xf32>
    %cst_87 = arith.constant 0.000000e+00 : f32
    %448 = vector.shape_cast %133 : vector<1x256xi1> to vector<1x256xi1>
    %449 = vector.broadcast %448 : vector<1x256xi1> to vector<4x256xi1>
    %450 = vector.broadcast %cst_87 : f32 to vector<4x256xf32>
    %451 = arith.select %449, %447, %450 : vector<4x256xi1>, vector<4x256xf32>
    %452 = arith.addf %443, %451 : vector<4x256xf32>
    %453 = vector.extract_strided_slice %52 {offsets = [0, 157], sizes = [4, 256], strides = [1, 1]} : vector<4x512xf32> to vector<4x256xf32>
    %c35 = arith.constant 35 : index
    %454 = memref.load %arg4[%c35] : memref<98xf32, #tpu.memory_space<smem>>
    %455 = vector.broadcast %454 : f32 to vector<4x256xf32>
    %456 = arith.mulf %453, %455 : vector<4x256xf32>
    %cst_88 = arith.constant 0.000000e+00 : f32
    %457 = vector.shape_cast %79 : vector<1x256xi1> to vector<1x256xi1>
    %458 = vector.broadcast %457 : vector<1x256xi1> to vector<4x256xi1>
    %459 = vector.broadcast %cst_88 : f32 to vector<4x256xf32>
    %460 = arith.select %458, %456, %459 : vector<4x256xi1>, vector<4x256xf32>
    %461 = arith.addf %389, %460 : vector<4x256xf32>
    %462 = vector.extract_strided_slice %52 {offsets = [0, 158], sizes = [4, 256], strides = [1, 1]} : vector<4x512xf32> to vector<4x256xf32>
    %c36 = arith.constant 36 : index
    %463 = memref.load %arg4[%c36] : memref<98xf32, #tpu.memory_space<smem>>
    %464 = vector.broadcast %463 : f32 to vector<4x256xf32>
    %465 = arith.mulf %462, %464 : vector<4x256xf32>
    %cst_89 = arith.constant 0.000000e+00 : f32
    %466 = vector.shape_cast %88 : vector<1x256xi1> to vector<1x256xi1>
    %467 = vector.broadcast %466 : vector<1x256xi1> to vector<4x256xi1>
    %468 = vector.broadcast %cst_89 : f32 to vector<4x256xf32>
    %469 = arith.select %467, %465, %468 : vector<4x256xi1>, vector<4x256xf32>
    %470 = arith.addf %461, %469 : vector<4x256xf32>
    %471 = vector.extract_strided_slice %52 {offsets = [0, 159], sizes = [4, 256], strides = [1, 1]} : vector<4x512xf32> to vector<4x256xf32>
    %c37 = arith.constant 37 : index
    %472 = memref.load %arg4[%c37] : memref<98xf32, #tpu.memory_space<smem>>
    %473 = vector.broadcast %472 : f32 to vector<4x256xf32>
    %474 = arith.mulf %471, %473 : vector<4x256xf32>
    %cst_90 = arith.constant 0.000000e+00 : f32
    %475 = vector.shape_cast %97 : vector<1x256xi1> to vector<1x256xi1>
    %476 = vector.broadcast %475 : vector<1x256xi1> to vector<4x256xi1>
    %477 = vector.broadcast %cst_90 : f32 to vector<4x256xf32>
    %478 = arith.select %476, %474, %477 : vector<4x256xi1>, vector<4x256xf32>
    %479 = arith.addf %470, %478 : vector<4x256xf32>
    %480 = vector.extract_strided_slice %52 {offsets = [0, 160], sizes = [4, 256], strides = [1, 1]} : vector<4x512xf32> to vector<4x256xf32>
    %c38 = arith.constant 38 : index
    %481 = memref.load %arg4[%c38] : memref<98xf32, #tpu.memory_space<smem>>
    %482 = vector.broadcast %481 : f32 to vector<4x256xf32>
    %483 = arith.mulf %480, %482 : vector<4x256xf32>
    %cst_91 = arith.constant 0.000000e+00 : f32
    %484 = vector.shape_cast %106 : vector<1x256xi1> to vector<1x256xi1>
    %485 = vector.broadcast %484 : vector<1x256xi1> to vector<4x256xi1>
    %486 = vector.broadcast %cst_91 : f32 to vector<4x256xf32>
    %487 = arith.select %485, %483, %486 : vector<4x256xi1>, vector<4x256xf32>
    %488 = arith.addf %479, %487 : vector<4x256xf32>
    %489 = vector.extract_strided_slice %52 {offsets = [0, 161], sizes = [4, 256], strides = [1, 1]} : vector<4x512xf32> to vector<4x256xf32>
    %c39 = arith.constant 39 : index
    %490 = memref.load %arg4[%c39] : memref<98xf32, #tpu.memory_space<smem>>
    %491 = vector.broadcast %490 : f32 to vector<4x256xf32>
    %492 = arith.mulf %489, %491 : vector<4x256xf32>
    %cst_92 = arith.constant 0.000000e+00 : f32
    %493 = vector.shape_cast %115 : vector<1x256xi1> to vector<1x256xi1>
    %494 = vector.broadcast %493 : vector<1x256xi1> to vector<4x256xi1>
    %495 = vector.broadcast %cst_92 : f32 to vector<4x256xf32>
    %496 = arith.select %494, %492, %495 : vector<4x256xi1>, vector<4x256xf32>
    %497 = arith.addf %488, %496 : vector<4x256xf32>
    %498 = vector.extract_strided_slice %52 {offsets = [0, 162], sizes = [4, 256], strides = [1, 1]} : vector<4x512xf32> to vector<4x256xf32>
    %c40 = arith.constant 40 : index
    %499 = memref.load %arg4[%c40] : memref<98xf32, #tpu.memory_space<smem>>
    %500 = vector.broadcast %499 : f32 to vector<4x256xf32>
    %501 = arith.mulf %498, %500 : vector<4x256xf32>
    %cst_93 = arith.constant 0.000000e+00 : f32
    %502 = vector.shape_cast %124 : vector<1x256xi1> to vector<1x256xi1>
    %503 = vector.broadcast %502 : vector<1x256xi1> to vector<4x256xi1>
    %504 = vector.broadcast %cst_93 : f32 to vector<4x256xf32>
    %505 = arith.select %503, %501, %504 : vector<4x256xi1>, vector<4x256xf32>
    %506 = arith.addf %497, %505 : vector<4x256xf32>
    %507 = vector.extract_strided_slice %52 {offsets = [0, 163], sizes = [4, 256], strides = [1, 1]} : vector<4x512xf32> to vector<4x256xf32>
    %c41 = arith.constant 41 : index
    %508 = memref.load %arg4[%c41] : memref<98xf32, #tpu.memory_space<smem>>
    %509 = vector.broadcast %508 : f32 to vector<4x256xf32>
    %510 = arith.mulf %507, %509 : vector<4x256xf32>
    %cst_94 = arith.constant 0.000000e+00 : f32
    %511 = vector.shape_cast %133 : vector<1x256xi1> to vector<1x256xi1>
    %512 = vector.broadcast %511 : vector<1x256xi1> to vector<4x256xi1>
    %513 = vector.broadcast %cst_94 : f32 to vector<4x256xf32>
    %514 = arith.select %512, %510, %513 : vector<4x256xi1>, vector<4x256xf32>
    %515 = arith.addf %506, %514 : vector<4x256xf32>
    %516 = vector.extract_strided_slice %52 {offsets = [0, 173], sizes = [4, 256], strides = [1, 1]} : vector<4x512xf32> to vector<4x256xf32>
    %c42 = arith.constant 42 : index
    %517 = memref.load %arg4[%c42] : memref<98xf32, #tpu.memory_space<smem>>
    %518 = vector.broadcast %517 : f32 to vector<4x256xf32>
    %519 = arith.mulf %516, %518 : vector<4x256xf32>
    %cst_95 = arith.constant 0.000000e+00 : f32
    %520 = vector.shape_cast %79 : vector<1x256xi1> to vector<1x256xi1>
    %521 = vector.broadcast %520 : vector<1x256xi1> to vector<4x256xi1>
    %522 = vector.broadcast %cst_95 : f32 to vector<4x256xf32>
    %523 = arith.select %521, %519, %522 : vector<4x256xi1>, vector<4x256xf32>
    %524 = arith.addf %452, %523 : vector<4x256xf32>
    %525 = vector.extract_strided_slice %52 {offsets = [0, 174], sizes = [4, 256], strides = [1, 1]} : vector<4x512xf32> to vector<4x256xf32>
    %c43 = arith.constant 43 : index
    %526 = memref.load %arg4[%c43] : memref<98xf32, #tpu.memory_space<smem>>
    %527 = vector.broadcast %526 : f32 to vector<4x256xf32>
    %528 = arith.mulf %525, %527 : vector<4x256xf32>
    %cst_96 = arith.constant 0.000000e+00 : f32
    %529 = vector.shape_cast %88 : vector<1x256xi1> to vector<1x256xi1>
    %530 = vector.broadcast %529 : vector<1x256xi1> to vector<4x256xi1>
    %531 = vector.broadcast %cst_96 : f32 to vector<4x256xf32>
    %532 = arith.select %530, %528, %531 : vector<4x256xi1>, vector<4x256xf32>
    %533 = arith.addf %524, %532 : vector<4x256xf32>
    %534 = vector.extract_strided_slice %52 {offsets = [0, 175], sizes = [4, 256], strides = [1, 1]} : vector<4x512xf32> to vector<4x256xf32>
    %c44 = arith.constant 44 : index
    %535 = memref.load %arg4[%c44] : memref<98xf32, #tpu.memory_space<smem>>
    %536 = vector.broadcast %535 : f32 to vector<4x256xf32>
    %537 = arith.mulf %534, %536 : vector<4x256xf32>
    %cst_97 = arith.constant 0.000000e+00 : f32
    %538 = vector.shape_cast %97 : vector<1x256xi1> to vector<1x256xi1>
    %539 = vector.broadcast %538 : vector<1x256xi1> to vector<4x256xi1>
    %540 = vector.broadcast %cst_97 : f32 to vector<4x256xf32>
    %541 = arith.select %539, %537, %540 : vector<4x256xi1>, vector<4x256xf32>
    %542 = arith.addf %533, %541 : vector<4x256xf32>
    %543 = vector.extract_strided_slice %52 {offsets = [0, 176], sizes = [4, 256], strides = [1, 1]} : vector<4x512xf32> to vector<4x256xf32>
    %c45 = arith.constant 45 : index
    %544 = memref.load %arg4[%c45] : memref<98xf32, #tpu.memory_space<smem>>
    %545 = vector.broadcast %544 : f32 to vector<4x256xf32>
    %546 = arith.mulf %543, %545 : vector<4x256xf32>
    %cst_98 = arith.constant 0.000000e+00 : f32
    %547 = vector.shape_cast %106 : vector<1x256xi1> to vector<1x256xi1>
    %548 = vector.broadcast %547 : vector<1x256xi1> to vector<4x256xi1>
    %549 = vector.broadcast %cst_98 : f32 to vector<4x256xf32>
    %550 = arith.select %548, %546, %549 : vector<4x256xi1>, vector<4x256xf32>
    %551 = arith.addf %542, %550 : vector<4x256xf32>
    %552 = vector.extract_strided_slice %52 {offsets = [0, 177], sizes = [4, 256], strides = [1, 1]} : vector<4x512xf32> to vector<4x256xf32>
    %c46 = arith.constant 46 : index
    %553 = memref.load %arg4[%c46] : memref<98xf32, #tpu.memory_space<smem>>
    %554 = vector.broadcast %553 : f32 to vector<4x256xf32>
    %555 = arith.mulf %552, %554 : vector<4x256xf32>
    %cst_99 = arith.constant 0.000000e+00 : f32
    %556 = vector.shape_cast %115 : vector<1x256xi1> to vector<1x256xi1>
    %557 = vector.broadcast %556 : vector<1x256xi1> to vector<4x256xi1>
    %558 = vector.broadcast %cst_99 : f32 to vector<4x256xf32>
    %559 = arith.select %557, %555, %558 : vector<4x256xi1>, vector<4x256xf32>
    %560 = arith.addf %551, %559 : vector<4x256xf32>
    %561 = vector.extract_strided_slice %52 {offsets = [0, 178], sizes = [4, 256], strides = [1, 1]} : vector<4x512xf32> to vector<4x256xf32>
    %c47 = arith.constant 47 : index
    %562 = memref.load %arg4[%c47] : memref<98xf32, #tpu.memory_space<smem>>
    %563 = vector.broadcast %562 : f32 to vector<4x256xf32>
    %564 = arith.mulf %561, %563 : vector<4x256xf32>
    %cst_100 = arith.constant 0.000000e+00 : f32
    %565 = vector.shape_cast %124 : vector<1x256xi1> to vector<1x256xi1>
    %566 = vector.broadcast %565 : vector<1x256xi1> to vector<4x256xi1>
    %567 = vector.broadcast %cst_100 : f32 to vector<4x256xf32>
    %568 = arith.select %566, %564, %567 : vector<4x256xi1>, vector<4x256xf32>
    %569 = arith.addf %560, %568 : vector<4x256xf32>
    %570 = vector.extract_strided_slice %52 {offsets = [0, 179], sizes = [4, 256], strides = [1, 1]} : vector<4x512xf32> to vector<4x256xf32>
    %c48 = arith.constant 48 : index
    %571 = memref.load %arg4[%c48] : memref<98xf32, #tpu.memory_space<smem>>
    %572 = vector.broadcast %571 : f32 to vector<4x256xf32>
    %573 = arith.mulf %570, %572 : vector<4x256xf32>
    %cst_101 = arith.constant 0.000000e+00 : f32
    %574 = vector.shape_cast %133 : vector<1x256xi1> to vector<1x256xi1>
    %575 = vector.broadcast %574 : vector<1x256xi1> to vector<4x256xi1>
    %576 = vector.broadcast %cst_101 : f32 to vector<4x256xf32>
    %577 = arith.select %575, %573, %576 : vector<4x256xi1>, vector<4x256xf32>
    %578 = arith.addf %569, %577 : vector<4x256xf32>
    %579 = vector.extract_strided_slice %53 {offsets = [0, 77], sizes = [4, 256], strides = [1, 1]} : vector<4x512xf32> to vector<4x256xf32>
    %c49 = arith.constant 49 : index
    %580 = memref.load %arg4[%c49] : memref<98xf32, #tpu.memory_space<smem>>
    %581 = vector.broadcast %580 : f32 to vector<4x256xf32>
    %582 = arith.mulf %579, %581 : vector<4x256xf32>
    %cst_102 = arith.constant 0.000000e+00 : f32
    %583 = vector.shape_cast %79 : vector<1x256xi1> to vector<1x256xi1>
    %584 = vector.broadcast %583 : vector<1x256xi1> to vector<4x256xi1>
    %585 = vector.broadcast %cst_102 : f32 to vector<4x256xf32>
    %586 = arith.select %584, %582, %585 : vector<4x256xi1>, vector<4x256xf32>
    %587 = arith.addf %136, %586 : vector<4x256xf32>
    %588 = vector.extract_strided_slice %53 {offsets = [0, 78], sizes = [4, 256], strides = [1, 1]} : vector<4x512xf32> to vector<4x256xf32>
    %c50 = arith.constant 50 : index
    %589 = memref.load %arg4[%c50] : memref<98xf32, #tpu.memory_space<smem>>
    %590 = vector.broadcast %589 : f32 to vector<4x256xf32>
    %591 = arith.mulf %588, %590 : vector<4x256xf32>
    %cst_103 = arith.constant 0.000000e+00 : f32
    %592 = vector.shape_cast %88 : vector<1x256xi1> to vector<1x256xi1>
    %593 = vector.broadcast %592 : vector<1x256xi1> to vector<4x256xi1>
    %594 = vector.broadcast %cst_103 : f32 to vector<4x256xf32>
    %595 = arith.select %593, %591, %594 : vector<4x256xi1>, vector<4x256xf32>
    %596 = arith.addf %587, %595 : vector<4x256xf32>
    %597 = vector.extract_strided_slice %53 {offsets = [0, 79], sizes = [4, 256], strides = [1, 1]} : vector<4x512xf32> to vector<4x256xf32>
    %c51 = arith.constant 51 : index
    %598 = memref.load %arg4[%c51] : memref<98xf32, #tpu.memory_space<smem>>
    %599 = vector.broadcast %598 : f32 to vector<4x256xf32>
    %600 = arith.mulf %597, %599 : vector<4x256xf32>
    %cst_104 = arith.constant 0.000000e+00 : f32
    %601 = vector.shape_cast %97 : vector<1x256xi1> to vector<1x256xi1>
    %602 = vector.broadcast %601 : vector<1x256xi1> to vector<4x256xi1>
    %603 = vector.broadcast %cst_104 : f32 to vector<4x256xf32>
    %604 = arith.select %602, %600, %603 : vector<4x256xi1>, vector<4x256xf32>
    %605 = arith.addf %596, %604 : vector<4x256xf32>
    %606 = vector.extract_strided_slice %53 {offsets = [0, 80], sizes = [4, 256], strides = [1, 1]} : vector<4x512xf32> to vector<4x256xf32>
    %c52 = arith.constant 52 : index
    %607 = memref.load %arg4[%c52] : memref<98xf32, #tpu.memory_space<smem>>
    %608 = vector.broadcast %607 : f32 to vector<4x256xf32>
    %609 = arith.mulf %606, %608 : vector<4x256xf32>
    %cst_105 = arith.constant 0.000000e+00 : f32
    %610 = vector.shape_cast %106 : vector<1x256xi1> to vector<1x256xi1>
    %611 = vector.broadcast %610 : vector<1x256xi1> to vector<4x256xi1>
    %612 = vector.broadcast %cst_105 : f32 to vector<4x256xf32>
    %613 = arith.select %611, %609, %612 : vector<4x256xi1>, vector<4x256xf32>
    %614 = arith.addf %605, %613 : vector<4x256xf32>
    %615 = vector.extract_strided_slice %53 {offsets = [0, 81], sizes = [4, 256], strides = [1, 1]} : vector<4x512xf32> to vector<4x256xf32>
    %c53 = arith.constant 53 : index
    %616 = memref.load %arg4[%c53] : memref<98xf32, #tpu.memory_space<smem>>
    %617 = vector.broadcast %616 : f32 to vector<4x256xf32>
    %618 = arith.mulf %615, %617 : vector<4x256xf32>
    %cst_106 = arith.constant 0.000000e+00 : f32
    %619 = vector.shape_cast %115 : vector<1x256xi1> to vector<1x256xi1>
    %620 = vector.broadcast %619 : vector<1x256xi1> to vector<4x256xi1>
    %621 = vector.broadcast %cst_106 : f32 to vector<4x256xf32>
    %622 = arith.select %620, %618, %621 : vector<4x256xi1>, vector<4x256xf32>
    %623 = arith.addf %614, %622 : vector<4x256xf32>
    %624 = vector.extract_strided_slice %53 {offsets = [0, 82], sizes = [4, 256], strides = [1, 1]} : vector<4x512xf32> to vector<4x256xf32>
    %c54 = arith.constant 54 : index
    %625 = memref.load %arg4[%c54] : memref<98xf32, #tpu.memory_space<smem>>
    %626 = vector.broadcast %625 : f32 to vector<4x256xf32>
    %627 = arith.mulf %624, %626 : vector<4x256xf32>
    %cst_107 = arith.constant 0.000000e+00 : f32
    %628 = vector.shape_cast %124 : vector<1x256xi1> to vector<1x256xi1>
    %629 = vector.broadcast %628 : vector<1x256xi1> to vector<4x256xi1>
    %630 = vector.broadcast %cst_107 : f32 to vector<4x256xf32>
    %631 = arith.select %629, %627, %630 : vector<4x256xi1>, vector<4x256xf32>
    %632 = arith.addf %623, %631 : vector<4x256xf32>
    %633 = vector.extract_strided_slice %53 {offsets = [0, 83], sizes = [4, 256], strides = [1, 1]} : vector<4x512xf32> to vector<4x256xf32>
    %c55 = arith.constant 55 : index
    %634 = memref.load %arg4[%c55] : memref<98xf32, #tpu.memory_space<smem>>
    %635 = vector.broadcast %634 : f32 to vector<4x256xf32>
    %636 = arith.mulf %633, %635 : vector<4x256xf32>
    %cst_108 = arith.constant 0.000000e+00 : f32
    %637 = vector.shape_cast %133 : vector<1x256xi1> to vector<1x256xi1>
    %638 = vector.broadcast %637 : vector<1x256xi1> to vector<4x256xi1>
    %639 = vector.broadcast %cst_108 : f32 to vector<4x256xf32>
    %640 = arith.select %638, %636, %639 : vector<4x256xi1>, vector<4x256xf32>
    %641 = arith.addf %632, %640 : vector<4x256xf32>
    %642 = vector.extract_strided_slice %53 {offsets = [0, 93], sizes = [4, 256], strides = [1, 1]} : vector<4x512xf32> to vector<4x256xf32>
    %c56 = arith.constant 56 : index
    %643 = memref.load %arg4[%c56] : memref<98xf32, #tpu.memory_space<smem>>
    %644 = vector.broadcast %643 : f32 to vector<4x256xf32>
    %645 = arith.mulf %642, %644 : vector<4x256xf32>
    %cst_109 = arith.constant 0.000000e+00 : f32
    %646 = vector.shape_cast %79 : vector<1x256xi1> to vector<1x256xi1>
    %647 = vector.broadcast %646 : vector<1x256xi1> to vector<4x256xi1>
    %648 = vector.broadcast %cst_109 : f32 to vector<4x256xf32>
    %649 = arith.select %647, %645, %648 : vector<4x256xi1>, vector<4x256xf32>
    %650 = arith.addf %137, %649 : vector<4x256xf32>
    %651 = vector.extract_strided_slice %53 {offsets = [0, 94], sizes = [4, 256], strides = [1, 1]} : vector<4x512xf32> to vector<4x256xf32>
    %c57 = arith.constant 57 : index
    %652 = memref.load %arg4[%c57] : memref<98xf32, #tpu.memory_space<smem>>
    %653 = vector.broadcast %652 : f32 to vector<4x256xf32>
    %654 = arith.mulf %651, %653 : vector<4x256xf32>
    %cst_110 = arith.constant 0.000000e+00 : f32
    %655 = vector.shape_cast %88 : vector<1x256xi1> to vector<1x256xi1>
    %656 = vector.broadcast %655 : vector<1x256xi1> to vector<4x256xi1>
    %657 = vector.broadcast %cst_110 : f32 to vector<4x256xf32>
    %658 = arith.select %656, %654, %657 : vector<4x256xi1>, vector<4x256xf32>
    %659 = arith.addf %650, %658 : vector<4x256xf32>
    %660 = vector.extract_strided_slice %53 {offsets = [0, 95], sizes = [4, 256], strides = [1, 1]} : vector<4x512xf32> to vector<4x256xf32>
    %c58 = arith.constant 58 : index
    %661 = memref.load %arg4[%c58] : memref<98xf32, #tpu.memory_space<smem>>
    %662 = vector.broadcast %661 : f32 to vector<4x256xf32>
    %663 = arith.mulf %660, %662 : vector<4x256xf32>
    %cst_111 = arith.constant 0.000000e+00 : f32
    %664 = vector.shape_cast %97 : vector<1x256xi1> to vector<1x256xi1>
    %665 = vector.broadcast %664 : vector<1x256xi1> to vector<4x256xi1>
    %666 = vector.broadcast %cst_111 : f32 to vector<4x256xf32>
    %667 = arith.select %665, %663, %666 : vector<4x256xi1>, vector<4x256xf32>
    %668 = arith.addf %659, %667 : vector<4x256xf32>
    %669 = vector.extract_strided_slice %53 {offsets = [0, 96], sizes = [4, 256], strides = [1, 1]} : vector<4x512xf32> to vector<4x256xf32>
    %c59 = arith.constant 59 : index
    %670 = memref.load %arg4[%c59] : memref<98xf32, #tpu.memory_space<smem>>
    %671 = vector.broadcast %670 : f32 to vector<4x256xf32>
    %672 = arith.mulf %669, %671 : vector<4x256xf32>
    %cst_112 = arith.constant 0.000000e+00 : f32
    %673 = vector.shape_cast %106 : vector<1x256xi1> to vector<1x256xi1>
    %674 = vector.broadcast %673 : vector<1x256xi1> to vector<4x256xi1>
    %675 = vector.broadcast %cst_112 : f32 to vector<4x256xf32>
    %676 = arith.select %674, %672, %675 : vector<4x256xi1>, vector<4x256xf32>
    %677 = arith.addf %668, %676 : vector<4x256xf32>
    %678 = vector.extract_strided_slice %53 {offsets = [0, 97], sizes = [4, 256], strides = [1, 1]} : vector<4x512xf32> to vector<4x256xf32>
    %c60 = arith.constant 60 : index
    %679 = memref.load %arg4[%c60] : memref<98xf32, #tpu.memory_space<smem>>
    %680 = vector.broadcast %679 : f32 to vector<4x256xf32>
    %681 = arith.mulf %678, %680 : vector<4x256xf32>
    %cst_113 = arith.constant 0.000000e+00 : f32
    %682 = vector.shape_cast %115 : vector<1x256xi1> to vector<1x256xi1>
    %683 = vector.broadcast %682 : vector<1x256xi1> to vector<4x256xi1>
    %684 = vector.broadcast %cst_113 : f32 to vector<4x256xf32>
    %685 = arith.select %683, %681, %684 : vector<4x256xi1>, vector<4x256xf32>
    %686 = arith.addf %677, %685 : vector<4x256xf32>
    %687 = vector.extract_strided_slice %53 {offsets = [0, 98], sizes = [4, 256], strides = [1, 1]} : vector<4x512xf32> to vector<4x256xf32>
    %c61 = arith.constant 61 : index
    %688 = memref.load %arg4[%c61] : memref<98xf32, #tpu.memory_space<smem>>
    %689 = vector.broadcast %688 : f32 to vector<4x256xf32>
    %690 = arith.mulf %687, %689 : vector<4x256xf32>
    %cst_114 = arith.constant 0.000000e+00 : f32
    %691 = vector.shape_cast %124 : vector<1x256xi1> to vector<1x256xi1>
    %692 = vector.broadcast %691 : vector<1x256xi1> to vector<4x256xi1>
    %693 = vector.broadcast %cst_114 : f32 to vector<4x256xf32>
    %694 = arith.select %692, %690, %693 : vector<4x256xi1>, vector<4x256xf32>
    %695 = arith.addf %686, %694 : vector<4x256xf32>
    %696 = vector.extract_strided_slice %53 {offsets = [0, 99], sizes = [4, 256], strides = [1, 1]} : vector<4x512xf32> to vector<4x256xf32>
    %c62 = arith.constant 62 : index
    %697 = memref.load %arg4[%c62] : memref<98xf32, #tpu.memory_space<smem>>
    %698 = vector.broadcast %697 : f32 to vector<4x256xf32>
    %699 = arith.mulf %696, %698 : vector<4x256xf32>
    %cst_115 = arith.constant 0.000000e+00 : f32
    %700 = vector.shape_cast %133 : vector<1x256xi1> to vector<1x256xi1>
    %701 = vector.broadcast %700 : vector<1x256xi1> to vector<4x256xi1>
    %702 = vector.broadcast %cst_115 : f32 to vector<4x256xf32>
    %703 = arith.select %701, %699, %702 : vector<4x256xi1>, vector<4x256xf32>
    %704 = arith.addf %695, %703 : vector<4x256xf32>
    %705 = vector.extract_strided_slice %53 {offsets = [0, 109], sizes = [4, 256], strides = [1, 1]} : vector<4x512xf32> to vector<4x256xf32>
    %c63 = arith.constant 63 : index
    %706 = memref.load %arg4[%c63] : memref<98xf32, #tpu.memory_space<smem>>
    %707 = vector.broadcast %706 : f32 to vector<4x256xf32>
    %708 = arith.mulf %705, %707 : vector<4x256xf32>
    %cst_116 = arith.constant 0.000000e+00 : f32
    %709 = vector.shape_cast %79 : vector<1x256xi1> to vector<1x256xi1>
    %710 = vector.broadcast %709 : vector<1x256xi1> to vector<4x256xi1>
    %711 = vector.broadcast %cst_116 : f32 to vector<4x256xf32>
    %712 = arith.select %710, %708, %711 : vector<4x256xi1>, vector<4x256xf32>
    %713 = arith.addf %641, %712 : vector<4x256xf32>
    %714 = vector.extract_strided_slice %53 {offsets = [0, 110], sizes = [4, 256], strides = [1, 1]} : vector<4x512xf32> to vector<4x256xf32>
    %c64 = arith.constant 64 : index
    %715 = memref.load %arg4[%c64] : memref<98xf32, #tpu.memory_space<smem>>
    %716 = vector.broadcast %715 : f32 to vector<4x256xf32>
    %717 = arith.mulf %714, %716 : vector<4x256xf32>
    %cst_117 = arith.constant 0.000000e+00 : f32
    %718 = vector.shape_cast %88 : vector<1x256xi1> to vector<1x256xi1>
    %719 = vector.broadcast %718 : vector<1x256xi1> to vector<4x256xi1>
    %720 = vector.broadcast %cst_117 : f32 to vector<4x256xf32>
    %721 = arith.select %719, %717, %720 : vector<4x256xi1>, vector<4x256xf32>
    %722 = arith.addf %713, %721 : vector<4x256xf32>
    %723 = vector.extract_strided_slice %53 {offsets = [0, 111], sizes = [4, 256], strides = [1, 1]} : vector<4x512xf32> to vector<4x256xf32>
    %c65 = arith.constant 65 : index
    %724 = memref.load %arg4[%c65] : memref<98xf32, #tpu.memory_space<smem>>
    %725 = vector.broadcast %724 : f32 to vector<4x256xf32>
    %726 = arith.mulf %723, %725 : vector<4x256xf32>
    %cst_118 = arith.constant 0.000000e+00 : f32
    %727 = vector.shape_cast %97 : vector<1x256xi1> to vector<1x256xi1>
    %728 = vector.broadcast %727 : vector<1x256xi1> to vector<4x256xi1>
    %729 = vector.broadcast %cst_118 : f32 to vector<4x256xf32>
    %730 = arith.select %728, %726, %729 : vector<4x256xi1>, vector<4x256xf32>
    %731 = arith.addf %722, %730 : vector<4x256xf32>
    %732 = vector.extract_strided_slice %53 {offsets = [0, 112], sizes = [4, 256], strides = [1, 1]} : vector<4x512xf32> to vector<4x256xf32>
    %c66 = arith.constant 66 : index
    %733 = memref.load %arg4[%c66] : memref<98xf32, #tpu.memory_space<smem>>
    %734 = vector.broadcast %733 : f32 to vector<4x256xf32>
    %735 = arith.mulf %732, %734 : vector<4x256xf32>
    %cst_119 = arith.constant 0.000000e+00 : f32
    %736 = vector.shape_cast %106 : vector<1x256xi1> to vector<1x256xi1>
    %737 = vector.broadcast %736 : vector<1x256xi1> to vector<4x256xi1>
    %738 = vector.broadcast %cst_119 : f32 to vector<4x256xf32>
    %739 = arith.select %737, %735, %738 : vector<4x256xi1>, vector<4x256xf32>
    %740 = arith.addf %731, %739 : vector<4x256xf32>
    %741 = vector.extract_strided_slice %53 {offsets = [0, 113], sizes = [4, 256], strides = [1, 1]} : vector<4x512xf32> to vector<4x256xf32>
    %c67 = arith.constant 67 : index
    %742 = memref.load %arg4[%c67] : memref<98xf32, #tpu.memory_space<smem>>
    %743 = vector.broadcast %742 : f32 to vector<4x256xf32>
    %744 = arith.mulf %741, %743 : vector<4x256xf32>
    %cst_120 = arith.constant 0.000000e+00 : f32
    %745 = vector.shape_cast %115 : vector<1x256xi1> to vector<1x256xi1>
    %746 = vector.broadcast %745 : vector<1x256xi1> to vector<4x256xi1>
    %747 = vector.broadcast %cst_120 : f32 to vector<4x256xf32>
    %748 = arith.select %746, %744, %747 : vector<4x256xi1>, vector<4x256xf32>
    %749 = arith.addf %740, %748 : vector<4x256xf32>
    %750 = vector.extract_strided_slice %53 {offsets = [0, 114], sizes = [4, 256], strides = [1, 1]} : vector<4x512xf32> to vector<4x256xf32>
    %c68 = arith.constant 68 : index
    %751 = memref.load %arg4[%c68] : memref<98xf32, #tpu.memory_space<smem>>
    %752 = vector.broadcast %751 : f32 to vector<4x256xf32>
    %753 = arith.mulf %750, %752 : vector<4x256xf32>
    %cst_121 = arith.constant 0.000000e+00 : f32
    %754 = vector.shape_cast %124 : vector<1x256xi1> to vector<1x256xi1>
    %755 = vector.broadcast %754 : vector<1x256xi1> to vector<4x256xi1>
    %756 = vector.broadcast %cst_121 : f32 to vector<4x256xf32>
    %757 = arith.select %755, %753, %756 : vector<4x256xi1>, vector<4x256xf32>
    %758 = arith.addf %749, %757 : vector<4x256xf32>
    %759 = vector.extract_strided_slice %53 {offsets = [0, 115], sizes = [4, 256], strides = [1, 1]} : vector<4x512xf32> to vector<4x256xf32>
    %c69 = arith.constant 69 : index
    %760 = memref.load %arg4[%c69] : memref<98xf32, #tpu.memory_space<smem>>
    %761 = vector.broadcast %760 : f32 to vector<4x256xf32>
    %762 = arith.mulf %759, %761 : vector<4x256xf32>
    %cst_122 = arith.constant 0.000000e+00 : f32
    %763 = vector.shape_cast %133 : vector<1x256xi1> to vector<1x256xi1>
    %764 = vector.broadcast %763 : vector<1x256xi1> to vector<4x256xi1>
    %765 = vector.broadcast %cst_122 : f32 to vector<4x256xf32>
    %766 = arith.select %764, %762, %765 : vector<4x256xi1>, vector<4x256xf32>
    %767 = arith.addf %758, %766 : vector<4x256xf32>
    %768 = vector.extract_strided_slice %53 {offsets = [0, 125], sizes = [4, 256], strides = [1, 1]} : vector<4x512xf32> to vector<4x256xf32>
    %c70 = arith.constant 70 : index
    %769 = memref.load %arg4[%c70] : memref<98xf32, #tpu.memory_space<smem>>
    %770 = vector.broadcast %769 : f32 to vector<4x256xf32>
    %771 = arith.mulf %768, %770 : vector<4x256xf32>
    %cst_123 = arith.constant 0.000000e+00 : f32
    %772 = vector.shape_cast %79 : vector<1x256xi1> to vector<1x256xi1>
    %773 = vector.broadcast %772 : vector<1x256xi1> to vector<4x256xi1>
    %774 = vector.broadcast %cst_123 : f32 to vector<4x256xf32>
    %775 = arith.select %773, %771, %774 : vector<4x256xi1>, vector<4x256xf32>
    %776 = arith.addf %704, %775 : vector<4x256xf32>
    %777 = vector.extract_strided_slice %53 {offsets = [0, 126], sizes = [4, 256], strides = [1, 1]} : vector<4x512xf32> to vector<4x256xf32>
    %c71 = arith.constant 71 : index
    %778 = memref.load %arg4[%c71] : memref<98xf32, #tpu.memory_space<smem>>
    %779 = vector.broadcast %778 : f32 to vector<4x256xf32>
    %780 = arith.mulf %777, %779 : vector<4x256xf32>
    %cst_124 = arith.constant 0.000000e+00 : f32
    %781 = vector.shape_cast %88 : vector<1x256xi1> to vector<1x256xi1>
    %782 = vector.broadcast %781 : vector<1x256xi1> to vector<4x256xi1>
    %783 = vector.broadcast %cst_124 : f32 to vector<4x256xf32>
    %784 = arith.select %782, %780, %783 : vector<4x256xi1>, vector<4x256xf32>
    %785 = arith.addf %776, %784 : vector<4x256xf32>
    %786 = vector.extract_strided_slice %53 {offsets = [0, 127], sizes = [4, 256], strides = [1, 1]} : vector<4x512xf32> to vector<4x256xf32>
    %c72 = arith.constant 72 : index
    %787 = memref.load %arg4[%c72] : memref<98xf32, #tpu.memory_space<smem>>
    %788 = vector.broadcast %787 : f32 to vector<4x256xf32>
    %789 = arith.mulf %786, %788 : vector<4x256xf32>
    %cst_125 = arith.constant 0.000000e+00 : f32
    %790 = vector.shape_cast %97 : vector<1x256xi1> to vector<1x256xi1>
    %791 = vector.broadcast %790 : vector<1x256xi1> to vector<4x256xi1>
    %792 = vector.broadcast %cst_125 : f32 to vector<4x256xf32>
    %793 = arith.select %791, %789, %792 : vector<4x256xi1>, vector<4x256xf32>
    %794 = arith.addf %785, %793 : vector<4x256xf32>
    %795 = vector.extract_strided_slice %53 {offsets = [0, 128], sizes = [4, 256], strides = [1, 1]} : vector<4x512xf32> to vector<4x256xf32>
    %c73 = arith.constant 73 : index
    %796 = memref.load %arg4[%c73] : memref<98xf32, #tpu.memory_space<smem>>
    %797 = vector.broadcast %796 : f32 to vector<4x256xf32>
    %798 = arith.mulf %795, %797 : vector<4x256xf32>
    %cst_126 = arith.constant 0.000000e+00 : f32
    %799 = vector.shape_cast %106 : vector<1x256xi1> to vector<1x256xi1>
    %800 = vector.broadcast %799 : vector<1x256xi1> to vector<4x256xi1>
    %801 = vector.broadcast %cst_126 : f32 to vector<4x256xf32>
    %802 = arith.select %800, %798, %801 : vector<4x256xi1>, vector<4x256xf32>
    %803 = arith.addf %794, %802 : vector<4x256xf32>
    %804 = vector.extract_strided_slice %53 {offsets = [0, 129], sizes = [4, 256], strides = [1, 1]} : vector<4x512xf32> to vector<4x256xf32>
    %c74 = arith.constant 74 : index
    %805 = memref.load %arg4[%c74] : memref<98xf32, #tpu.memory_space<smem>>
    %806 = vector.broadcast %805 : f32 to vector<4x256xf32>
    %807 = arith.mulf %804, %806 : vector<4x256xf32>
    %cst_127 = arith.constant 0.000000e+00 : f32
    %808 = vector.shape_cast %115 : vector<1x256xi1> to vector<1x256xi1>
    %809 = vector.broadcast %808 : vector<1x256xi1> to vector<4x256xi1>
    %810 = vector.broadcast %cst_127 : f32 to vector<4x256xf32>
    %811 = arith.select %809, %807, %810 : vector<4x256xi1>, vector<4x256xf32>
    %812 = arith.addf %803, %811 : vector<4x256xf32>
    %813 = vector.extract_strided_slice %53 {offsets = [0, 130], sizes = [4, 256], strides = [1, 1]} : vector<4x512xf32> to vector<4x256xf32>
    %c75 = arith.constant 75 : index
    %814 = memref.load %arg4[%c75] : memref<98xf32, #tpu.memory_space<smem>>
    %815 = vector.broadcast %814 : f32 to vector<4x256xf32>
    %816 = arith.mulf %813, %815 : vector<4x256xf32>
    %cst_128 = arith.constant 0.000000e+00 : f32
    %817 = vector.shape_cast %124 : vector<1x256xi1> to vector<1x256xi1>
    %818 = vector.broadcast %817 : vector<1x256xi1> to vector<4x256xi1>
    %819 = vector.broadcast %cst_128 : f32 to vector<4x256xf32>
    %820 = arith.select %818, %816, %819 : vector<4x256xi1>, vector<4x256xf32>
    %821 = arith.addf %812, %820 : vector<4x256xf32>
    %822 = vector.extract_strided_slice %53 {offsets = [0, 131], sizes = [4, 256], strides = [1, 1]} : vector<4x512xf32> to vector<4x256xf32>
    %c76 = arith.constant 76 : index
    %823 = memref.load %arg4[%c76] : memref<98xf32, #tpu.memory_space<smem>>
    %824 = vector.broadcast %823 : f32 to vector<4x256xf32>
    %825 = arith.mulf %822, %824 : vector<4x256xf32>
    %cst_129 = arith.constant 0.000000e+00 : f32
    %826 = vector.shape_cast %133 : vector<1x256xi1> to vector<1x256xi1>
    %827 = vector.broadcast %826 : vector<1x256xi1> to vector<4x256xi1>
    %828 = vector.broadcast %cst_129 : f32 to vector<4x256xf32>
    %829 = arith.select %827, %825, %828 : vector<4x256xi1>, vector<4x256xf32>
    %830 = arith.addf %821, %829 : vector<4x256xf32>
    %831 = vector.extract_strided_slice %53 {offsets = [0, 141], sizes = [4, 256], strides = [1, 1]} : vector<4x512xf32> to vector<4x256xf32>
    %c77 = arith.constant 77 : index
    %832 = memref.load %arg4[%c77] : memref<98xf32, #tpu.memory_space<smem>>
    %833 = vector.broadcast %832 : f32 to vector<4x256xf32>
    %834 = arith.mulf %831, %833 : vector<4x256xf32>
    %cst_130 = arith.constant 0.000000e+00 : f32
    %835 = vector.shape_cast %79 : vector<1x256xi1> to vector<1x256xi1>
    %836 = vector.broadcast %835 : vector<1x256xi1> to vector<4x256xi1>
    %837 = vector.broadcast %cst_130 : f32 to vector<4x256xf32>
    %838 = arith.select %836, %834, %837 : vector<4x256xi1>, vector<4x256xf32>
    %839 = arith.addf %767, %838 : vector<4x256xf32>
    %840 = vector.extract_strided_slice %53 {offsets = [0, 142], sizes = [4, 256], strides = [1, 1]} : vector<4x512xf32> to vector<4x256xf32>
    %c78 = arith.constant 78 : index
    %841 = memref.load %arg4[%c78] : memref<98xf32, #tpu.memory_space<smem>>
    %842 = vector.broadcast %841 : f32 to vector<4x256xf32>
    %843 = arith.mulf %840, %842 : vector<4x256xf32>
    %cst_131 = arith.constant 0.000000e+00 : f32
    %844 = vector.shape_cast %88 : vector<1x256xi1> to vector<1x256xi1>
    %845 = vector.broadcast %844 : vector<1x256xi1> to vector<4x256xi1>
    %846 = vector.broadcast %cst_131 : f32 to vector<4x256xf32>
    %847 = arith.select %845, %843, %846 : vector<4x256xi1>, vector<4x256xf32>
    %848 = arith.addf %839, %847 : vector<4x256xf32>
    %849 = vector.extract_strided_slice %53 {offsets = [0, 143], sizes = [4, 256], strides = [1, 1]} : vector<4x512xf32> to vector<4x256xf32>
    %c79 = arith.constant 79 : index
    %850 = memref.load %arg4[%c79] : memref<98xf32, #tpu.memory_space<smem>>
    %851 = vector.broadcast %850 : f32 to vector<4x256xf32>
    %852 = arith.mulf %849, %851 : vector<4x256xf32>
    %cst_132 = arith.constant 0.000000e+00 : f32
    %853 = vector.shape_cast %97 : vector<1x256xi1> to vector<1x256xi1>
    %854 = vector.broadcast %853 : vector<1x256xi1> to vector<4x256xi1>
    %855 = vector.broadcast %cst_132 : f32 to vector<4x256xf32>
    %856 = arith.select %854, %852, %855 : vector<4x256xi1>, vector<4x256xf32>
    %857 = arith.addf %848, %856 : vector<4x256xf32>
    %858 = vector.extract_strided_slice %53 {offsets = [0, 144], sizes = [4, 256], strides = [1, 1]} : vector<4x512xf32> to vector<4x256xf32>
    %c80 = arith.constant 80 : index
    %859 = memref.load %arg4[%c80] : memref<98xf32, #tpu.memory_space<smem>>
    %860 = vector.broadcast %859 : f32 to vector<4x256xf32>
    %861 = arith.mulf %858, %860 : vector<4x256xf32>
    %cst_133 = arith.constant 0.000000e+00 : f32
    %862 = vector.shape_cast %106 : vector<1x256xi1> to vector<1x256xi1>
    %863 = vector.broadcast %862 : vector<1x256xi1> to vector<4x256xi1>
    %864 = vector.broadcast %cst_133 : f32 to vector<4x256xf32>
    %865 = arith.select %863, %861, %864 : vector<4x256xi1>, vector<4x256xf32>
    %866 = arith.addf %857, %865 : vector<4x256xf32>
    %867 = vector.extract_strided_slice %53 {offsets = [0, 145], sizes = [4, 256], strides = [1, 1]} : vector<4x512xf32> to vector<4x256xf32>
    %c81 = arith.constant 81 : index
    %868 = memref.load %arg4[%c81] : memref<98xf32, #tpu.memory_space<smem>>
    %869 = vector.broadcast %868 : f32 to vector<4x256xf32>
    %870 = arith.mulf %867, %869 : vector<4x256xf32>
    %cst_134 = arith.constant 0.000000e+00 : f32
    %871 = vector.shape_cast %115 : vector<1x256xi1> to vector<1x256xi1>
    %872 = vector.broadcast %871 : vector<1x256xi1> to vector<4x256xi1>
    %873 = vector.broadcast %cst_134 : f32 to vector<4x256xf32>
    %874 = arith.select %872, %870, %873 : vector<4x256xi1>, vector<4x256xf32>
    %875 = arith.addf %866, %874 : vector<4x256xf32>
    %876 = vector.extract_strided_slice %53 {offsets = [0, 146], sizes = [4, 256], strides = [1, 1]} : vector<4x512xf32> to vector<4x256xf32>
    %c82 = arith.constant 82 : index
    %877 = memref.load %arg4[%c82] : memref<98xf32, #tpu.memory_space<smem>>
    %878 = vector.broadcast %877 : f32 to vector<4x256xf32>
    %879 = arith.mulf %876, %878 : vector<4x256xf32>
    %cst_135 = arith.constant 0.000000e+00 : f32
    %880 = vector.shape_cast %124 : vector<1x256xi1> to vector<1x256xi1>
    %881 = vector.broadcast %880 : vector<1x256xi1> to vector<4x256xi1>
    %882 = vector.broadcast %cst_135 : f32 to vector<4x256xf32>
    %883 = arith.select %881, %879, %882 : vector<4x256xi1>, vector<4x256xf32>
    %884 = arith.addf %875, %883 : vector<4x256xf32>
    %885 = vector.extract_strided_slice %53 {offsets = [0, 147], sizes = [4, 256], strides = [1, 1]} : vector<4x512xf32> to vector<4x256xf32>
    %c83 = arith.constant 83 : index
    %886 = memref.load %arg4[%c83] : memref<98xf32, #tpu.memory_space<smem>>
    %887 = vector.broadcast %886 : f32 to vector<4x256xf32>
    %888 = arith.mulf %885, %887 : vector<4x256xf32>
    %cst_136 = arith.constant 0.000000e+00 : f32
    %889 = vector.shape_cast %133 : vector<1x256xi1> to vector<1x256xi1>
    %890 = vector.broadcast %889 : vector<1x256xi1> to vector<4x256xi1>
    %891 = vector.broadcast %cst_136 : f32 to vector<4x256xf32>
    %892 = arith.select %890, %888, %891 : vector<4x256xi1>, vector<4x256xf32>
    %893 = arith.addf %884, %892 : vector<4x256xf32>
    %894 = vector.extract_strided_slice %53 {offsets = [0, 157], sizes = [4, 256], strides = [1, 1]} : vector<4x512xf32> to vector<4x256xf32>
    %c84 = arith.constant 84 : index
    %895 = memref.load %arg4[%c84] : memref<98xf32, #tpu.memory_space<smem>>
    %896 = vector.broadcast %895 : f32 to vector<4x256xf32>
    %897 = arith.mulf %894, %896 : vector<4x256xf32>
    %cst_137 = arith.constant 0.000000e+00 : f32
    %898 = vector.shape_cast %79 : vector<1x256xi1> to vector<1x256xi1>
    %899 = vector.broadcast %898 : vector<1x256xi1> to vector<4x256xi1>
    %900 = vector.broadcast %cst_137 : f32 to vector<4x256xf32>
    %901 = arith.select %899, %897, %900 : vector<4x256xi1>, vector<4x256xf32>
    %902 = arith.addf %830, %901 : vector<4x256xf32>
    %903 = vector.extract_strided_slice %53 {offsets = [0, 158], sizes = [4, 256], strides = [1, 1]} : vector<4x512xf32> to vector<4x256xf32>
    %c85 = arith.constant 85 : index
    %904 = memref.load %arg4[%c85] : memref<98xf32, #tpu.memory_space<smem>>
    %905 = vector.broadcast %904 : f32 to vector<4x256xf32>
    %906 = arith.mulf %903, %905 : vector<4x256xf32>
    %cst_138 = arith.constant 0.000000e+00 : f32
    %907 = vector.shape_cast %88 : vector<1x256xi1> to vector<1x256xi1>
    %908 = vector.broadcast %907 : vector<1x256xi1> to vector<4x256xi1>
    %909 = vector.broadcast %cst_138 : f32 to vector<4x256xf32>
    %910 = arith.select %908, %906, %909 : vector<4x256xi1>, vector<4x256xf32>
    %911 = arith.addf %902, %910 : vector<4x256xf32>
    %912 = vector.extract_strided_slice %53 {offsets = [0, 159], sizes = [4, 256], strides = [1, 1]} : vector<4x512xf32> to vector<4x256xf32>
    %c86 = arith.constant 86 : index
    %913 = memref.load %arg4[%c86] : memref<98xf32, #tpu.memory_space<smem>>
    %914 = vector.broadcast %913 : f32 to vector<4x256xf32>
    %915 = arith.mulf %912, %914 : vector<4x256xf32>
    %cst_139 = arith.constant 0.000000e+00 : f32
    %916 = vector.shape_cast %97 : vector<1x256xi1> to vector<1x256xi1>
    %917 = vector.broadcast %916 : vector<1x256xi1> to vector<4x256xi1>
    %918 = vector.broadcast %cst_139 : f32 to vector<4x256xf32>
    %919 = arith.select %917, %915, %918 : vector<4x256xi1>, vector<4x256xf32>
    %920 = arith.addf %911, %919 : vector<4x256xf32>
    %921 = vector.extract_strided_slice %53 {offsets = [0, 160], sizes = [4, 256], strides = [1, 1]} : vector<4x512xf32> to vector<4x256xf32>
    %c87 = arith.constant 87 : index
    %922 = memref.load %arg4[%c87] : memref<98xf32, #tpu.memory_space<smem>>
    %923 = vector.broadcast %922 : f32 to vector<4x256xf32>
    %924 = arith.mulf %921, %923 : vector<4x256xf32>
    %cst_140 = arith.constant 0.000000e+00 : f32
    %925 = vector.shape_cast %106 : vector<1x256xi1> to vector<1x256xi1>
    %926 = vector.broadcast %925 : vector<1x256xi1> to vector<4x256xi1>
    %927 = vector.broadcast %cst_140 : f32 to vector<4x256xf32>
    %928 = arith.select %926, %924, %927 : vector<4x256xi1>, vector<4x256xf32>
    %929 = arith.addf %920, %928 : vector<4x256xf32>
    %930 = vector.extract_strided_slice %53 {offsets = [0, 161], sizes = [4, 256], strides = [1, 1]} : vector<4x512xf32> to vector<4x256xf32>
    %c88 = arith.constant 88 : index
    %931 = memref.load %arg4[%c88] : memref<98xf32, #tpu.memory_space<smem>>
    %932 = vector.broadcast %931 : f32 to vector<4x256xf32>
    %933 = arith.mulf %930, %932 : vector<4x256xf32>
    %cst_141 = arith.constant 0.000000e+00 : f32
    %934 = vector.shape_cast %115 : vector<1x256xi1> to vector<1x256xi1>
    %935 = vector.broadcast %934 : vector<1x256xi1> to vector<4x256xi1>
    %936 = vector.broadcast %cst_141 : f32 to vector<4x256xf32>
    %937 = arith.select %935, %933, %936 : vector<4x256xi1>, vector<4x256xf32>
    %938 = arith.addf %929, %937 : vector<4x256xf32>
    %939 = vector.extract_strided_slice %53 {offsets = [0, 162], sizes = [4, 256], strides = [1, 1]} : vector<4x512xf32> to vector<4x256xf32>
    %c89 = arith.constant 89 : index
    %940 = memref.load %arg4[%c89] : memref<98xf32, #tpu.memory_space<smem>>
    %941 = vector.broadcast %940 : f32 to vector<4x256xf32>
    %942 = arith.mulf %939, %941 : vector<4x256xf32>
    %cst_142 = arith.constant 0.000000e+00 : f32
    %943 = vector.shape_cast %124 : vector<1x256xi1> to vector<1x256xi1>
    %944 = vector.broadcast %943 : vector<1x256xi1> to vector<4x256xi1>
    %945 = vector.broadcast %cst_142 : f32 to vector<4x256xf32>
    %946 = arith.select %944, %942, %945 : vector<4x256xi1>, vector<4x256xf32>
    %947 = arith.addf %938, %946 : vector<4x256xf32>
    %948 = vector.extract_strided_slice %53 {offsets = [0, 163], sizes = [4, 256], strides = [1, 1]} : vector<4x512xf32> to vector<4x256xf32>
    %c90 = arith.constant 90 : index
    %949 = memref.load %arg4[%c90] : memref<98xf32, #tpu.memory_space<smem>>
    %950 = vector.broadcast %949 : f32 to vector<4x256xf32>
    %951 = arith.mulf %948, %950 : vector<4x256xf32>
    %cst_143 = arith.constant 0.000000e+00 : f32
    %952 = vector.shape_cast %133 : vector<1x256xi1> to vector<1x256xi1>
    %953 = vector.broadcast %952 : vector<1x256xi1> to vector<4x256xi1>
    %954 = vector.broadcast %cst_143 : f32 to vector<4x256xf32>
    %955 = arith.select %953, %951, %954 : vector<4x256xi1>, vector<4x256xf32>
    %956 = arith.addf %947, %955 : vector<4x256xf32>
    %957 = vector.extract_strided_slice %53 {offsets = [0, 173], sizes = [4, 256], strides = [1, 1]} : vector<4x512xf32> to vector<4x256xf32>
    %c91 = arith.constant 91 : index
    %958 = memref.load %arg4[%c91] : memref<98xf32, #tpu.memory_space<smem>>
    %959 = vector.broadcast %958 : f32 to vector<4x256xf32>
    %960 = arith.mulf %957, %959 : vector<4x256xf32>
    %cst_144 = arith.constant 0.000000e+00 : f32
    %961 = vector.shape_cast %79 : vector<1x256xi1> to vector<1x256xi1>
    %962 = vector.broadcast %961 : vector<1x256xi1> to vector<4x256xi1>
    %963 = vector.broadcast %cst_144 : f32 to vector<4x256xf32>
    %964 = arith.select %962, %960, %963 : vector<4x256xi1>, vector<4x256xf32>
    %965 = arith.addf %893, %964 : vector<4x256xf32>
    %966 = vector.extract_strided_slice %53 {offsets = [0, 174], sizes = [4, 256], strides = [1, 1]} : vector<4x512xf32> to vector<4x256xf32>
    %c92 = arith.constant 92 : index
    %967 = memref.load %arg4[%c92] : memref<98xf32, #tpu.memory_space<smem>>
    %968 = vector.broadcast %967 : f32 to vector<4x256xf32>
    %969 = arith.mulf %966, %968 : vector<4x256xf32>
    %cst_145 = arith.constant 0.000000e+00 : f32
    %970 = vector.shape_cast %88 : vector<1x256xi1> to vector<1x256xi1>
    %971 = vector.broadcast %970 : vector<1x256xi1> to vector<4x256xi1>
    %972 = vector.broadcast %cst_145 : f32 to vector<4x256xf32>
    %973 = arith.select %971, %969, %972 : vector<4x256xi1>, vector<4x256xf32>
    %974 = arith.addf %965, %973 : vector<4x256xf32>
    %975 = vector.extract_strided_slice %53 {offsets = [0, 175], sizes = [4, 256], strides = [1, 1]} : vector<4x512xf32> to vector<4x256xf32>
    %c93 = arith.constant 93 : index
    %976 = memref.load %arg4[%c93] : memref<98xf32, #tpu.memory_space<smem>>
    %977 = vector.broadcast %976 : f32 to vector<4x256xf32>
    %978 = arith.mulf %975, %977 : vector<4x256xf32>
    %cst_146 = arith.constant 0.000000e+00 : f32
    %979 = vector.shape_cast %97 : vector<1x256xi1> to vector<1x256xi1>
    %980 = vector.broadcast %979 : vector<1x256xi1> to vector<4x256xi1>
    %981 = vector.broadcast %cst_146 : f32 to vector<4x256xf32>
    %982 = arith.select %980, %978, %981 : vector<4x256xi1>, vector<4x256xf32>
    %983 = arith.addf %974, %982 : vector<4x256xf32>
    %984 = vector.extract_strided_slice %53 {offsets = [0, 176], sizes = [4, 256], strides = [1, 1]} : vector<4x512xf32> to vector<4x256xf32>
    %c94 = arith.constant 94 : index
    %985 = memref.load %arg4[%c94] : memref<98xf32, #tpu.memory_space<smem>>
    %986 = vector.broadcast %985 : f32 to vector<4x256xf32>
    %987 = arith.mulf %984, %986 : vector<4x256xf32>
    %cst_147 = arith.constant 0.000000e+00 : f32
    %988 = vector.shape_cast %106 : vector<1x256xi1> to vector<1x256xi1>
    %989 = vector.broadcast %988 : vector<1x256xi1> to vector<4x256xi1>
    %990 = vector.broadcast %cst_147 : f32 to vector<4x256xf32>
    %991 = arith.select %989, %987, %990 : vector<4x256xi1>, vector<4x256xf32>
    %992 = arith.addf %983, %991 : vector<4x256xf32>
    %993 = vector.extract_strided_slice %53 {offsets = [0, 177], sizes = [4, 256], strides = [1, 1]} : vector<4x512xf32> to vector<4x256xf32>
    %c95 = arith.constant 95 : index
    %994 = memref.load %arg4[%c95] : memref<98xf32, #tpu.memory_space<smem>>
    %995 = vector.broadcast %994 : f32 to vector<4x256xf32>
    %996 = arith.mulf %993, %995 : vector<4x256xf32>
    %cst_148 = arith.constant 0.000000e+00 : f32
    %997 = vector.shape_cast %115 : vector<1x256xi1> to vector<1x256xi1>
    %998 = vector.broadcast %997 : vector<1x256xi1> to vector<4x256xi1>
    %999 = vector.broadcast %cst_148 : f32 to vector<4x256xf32>
    %1000 = arith.select %998, %996, %999 : vector<4x256xi1>, vector<4x256xf32>
    %1001 = arith.addf %992, %1000 : vector<4x256xf32>
    %1002 = vector.extract_strided_slice %53 {offsets = [0, 178], sizes = [4, 256], strides = [1, 1]} : vector<4x512xf32> to vector<4x256xf32>
    %c96 = arith.constant 96 : index
    %1003 = memref.load %arg4[%c96] : memref<98xf32, #tpu.memory_space<smem>>
    %1004 = vector.broadcast %1003 : f32 to vector<4x256xf32>
    %1005 = arith.mulf %1002, %1004 : vector<4x256xf32>
    %cst_149 = arith.constant 0.000000e+00 : f32
    %1006 = vector.shape_cast %124 : vector<1x256xi1> to vector<1x256xi1>
    %1007 = vector.broadcast %1006 : vector<1x256xi1> to vector<4x256xi1>
    %1008 = vector.broadcast %cst_149 : f32 to vector<4x256xf32>
    %1009 = arith.select %1007, %1005, %1008 : vector<4x256xi1>, vector<4x256xf32>
    %1010 = arith.addf %1001, %1009 : vector<4x256xf32>
    %1011 = vector.extract_strided_slice %53 {offsets = [0, 179], sizes = [4, 256], strides = [1, 1]} : vector<4x512xf32> to vector<4x256xf32>
    %c97 = arith.constant 97 : index
    %1012 = memref.load %arg4[%c97] : memref<98xf32, #tpu.memory_space<smem>>
    %1013 = vector.broadcast %1012 : f32 to vector<4x256xf32>
    %1014 = arith.mulf %1011, %1013 : vector<4x256xf32>
    %cst_150 = arith.constant 0.000000e+00 : f32
    %1015 = vector.shape_cast %133 : vector<1x256xi1> to vector<1x256xi1>
    %1016 = vector.broadcast %1015 : vector<1x256xi1> to vector<4x256xi1>
    %1017 = vector.broadcast %cst_150 : f32 to vector<4x256xf32>
    %1018 = arith.select %1016, %1014, %1017 : vector<4x256xi1>, vector<4x256xf32>
    %1019 = arith.addf %1010, %1018 : vector<4x256xf32>
    %1020 = arith.addf %578, %515 : vector<4x256xf32>
    %1021 = arith.addf %1019, %956 : vector<4x256xf32>
    %1022 = arith.addf %1020, %1021 : vector<4x256xf32>
    %1023 = arith.negf %1022 : vector<4x256xf32>
    %1024 = math.exp %1023 : vector<4x256xf32>
    %cst_151 = arith.constant 1.000000e+00 : f32
    %1025 = vector.broadcast %cst_151 : f32 to vector<4x256xf32>
    %1026 = arith.addf %1025, %1024 : vector<4x256xf32>
    %1027 = arith.divf %1025, %1026 : vector<4x256xf32>
    %1028 = vector.shape_cast %1027 : vector<4x256xf32> to vector<4x1x256xf32>
    %1029 = vector.broadcast %1028 : vector<4x1x256xf32> to vector<4x32x256xf32>
    %1030 = arith.mulf %46, %1029 : vector<4x32x256xf32>
    %c0_152 = arith.constant 0 : index
    %c0_153 = arith.constant 0 : index
    %c0_154 = arith.constant 0 : index
    %1031 = vector.load %arg5[%c0_152, %c0_153, %c0_154] : memref<4x32x256xf32, #tpu.memory_space<vmem>>, vector<4x32x256xf32>
    tpu.vector_store %arg5[%c0_152, %c0_153, %c0_154], %1030 {strides = array<i32>} : memref<4x32x256xf32, #tpu.memory_space<vmem>>, vector<4x32x256xf32>,
    return
  }
  func.func @transform_0(%arg0: i32) -> (i32, i32, i32) {
    %c0_i32 = arith.constant 0 : i32
    %c0_i32_0 = arith.constant 0 : i32
    %c0_i32_1 = arith.constant 0 : i32
    return %arg0, %c0_i32, %c0_i32_0 : i32, i32, i32
  }
  func.func @transform_1(%arg0: i32) -> (i32, i32) {
    %c0_i32 = arith.constant 0 : i32
    %c0_i32_0 = arith.constant 0 : i32
    %c0_i32_1 = arith.constant 0 : i32
    return %c0_i32, %c0_i32_0 : i32, i32
  }
  func.func @transform_2(%arg0: i32) -> (i32, i32) {
    %c0_i32 = arith.constant 0 : i32
    %c0_i32_0 = arith.constant 0 : i32
    %c0_i32_1 = arith.constant 0 : i32
    return %c0_i32, %c0_i32_0 : i32, i32
  }
  func.func @transform_3(%arg0: i32) -> i32 {
    %c0_i32 = arith.constant 0 : i32
    %c0_i32_0 = arith.constant 0 : i32
    return %c0_i32 : i32
  }
  func.func @transform_4(%arg0: i32) -> (i32, i32, i32) {
    %c0_i32 = arith.constant 0 : i32
    %c0_i32_0 = arith.constant 0 : i32
    %c0_i32_1 = arith.constant 0 : i32
    return %arg0, %c0_i32, %c0_i32_0 : i32, i32, i32
  }
}

</mosaic_0001>

<bundles_post_ra>
// kernel: cbam_pallas.1
= control target key start
LH: loop header
LB: loop body
LE: loop exit
PB: predicated region body
PF: predicated region fallthrough
CT: control target
= control target key end

     0   :  { %9 = vsyncpa [#allocation3], 0  ;;  %s6938_s0 = inlined_call_operand.vmem [shape: f32[4,32,256], index: 0, kind: input, shape index: {}]   ;;  %s6939_s1 = inlined_call_operand.vmem [shape: f32[32,2], index: 1, kind: input, shape index: {}]   ;;  %s6940_s2 = inlined_call_operand.vmem [shape: f32[32,2], index: 2, kind: input, shape index: {}]   ;;  %s6941_s3 = inlined_call_operand.vmem [shape: f32[98], index: 3, kind: input, shape index: {}]   ;;  %s6942_s4 = inlined_call_operand.vmem [shape: f32[4,32,256], index: 4, kind: output, shape index: {}]  }
   0x1   :  { %s22_s17 = sshll.u32 %s6941_s3, 4  ;;  %s23_s17 = int_to_ptr.vmem [resolvable:$true] %s22_s17 }
   0x2   :  { %s3758_s18 = scalar_lea.vmem %s23_s17, 16  ;;  %p3763_p1 = scmp.lt.s32.totalorder %s23_s17, %s23_s17 }
   0x3   :  { %p3759_p0 = scmp.ne.s32.totalorder %s23_s17, %s3758_s18  ;;  %p3764_p2 = scmp.lt.s32.totalorder %s3758_s18, %s3758_s18 }
   0x5   :  { %p3765_p3 = por %p3764_p2, %p3763_p1 }
   0x7   :  { %p3766_p4 = pnand %p3765_p3, %p3759_p0 }
   0x9   :  { %3769 = shalt.err (!%p3766_p4)
}
   0xa   :  { %s3772_s19 = smov [#allocation2]  }
   0xb   :  { %25 = dma.vmem_to_smem %s23_s17, 16, %s3772_s19, [#allocation3]  }
   0xc   :  { %3770 = dma.done.wait [#allocation3], 16  }
   0xd   :  { %3771 = vsyncadd [#allocation3], 4294967280 }
   0xe   :  { %29 = sfence }
   0xf   :  { %v3854_v0 = vld [vmem:[%s6938_s0 + $0x20] sm:$0xff]  ;;  %v3859_v1 = vld [vmem:[%s6938_s0 + $0x28] sm:$0xff]  ;;  %v3876_v5 = vld [vmem:[%s6938_s0 + $0x30] sm:$0xff]  ;;  %s6949_s5 = smov 127   ;;  %s3498_s10 = sld [smem:[#allocation2 + $0x1]]  ;;  %vm7183_vm0 = vcmask 7168  }
  0x10   :  { %v3864_v2 = vld [vmem:[%s6938_s0] sm:$0xff]  ;;  %v68_v3 = vadd.f32 %v3859_v1, %v3854_v0  ;;  %v3871_v4 = vld [vmem:[%s6938_s0 + $0x8] sm:$0xff]  ;;  %v3881_v6 = vld [vmem:[%s6938_s0 + $0x38] sm:$0xff]  ;;  %v133_v51 = vmax.f32 %v3854_v0, %v3859_v1  ;;  %s1125_s13 = sld [smem:[#allocation2]]  ;;  %s3774_s26 = smov 50   ;;  %vm1017_vm1 = vcmask 1041409  }
  0x11   :  { %v62_v7 = vadd.f32 %v3871_v4, %v3864_v2  ;;  %v32_v8 = vld [vmem:[%s6938_s0 + $0x10] sm:$0xff]  ;;  %v33_v9 = vld [vmem:[%s6938_s0 + $0x18] sm:$0xff]  ;;  %v71_v10 = vadd.f32 %v3881_v6, %v3876_v5  ;;  %v38_v14 = vld [vmem:[%s6938_s0 + $0x40] sm:$0xff]  ;;  %v127_v49 = vmax.f32 %v3864_v2, %v3871_v4  ;;  %v136_v50 = vmax.f32 %v3876_v5, %v3881_v6  ;;  %s3500_s16 = sld [smem:[#allocation2 + $0x3]]  ;;  %s3775_s28 = smov 51  }
  0x12   :  { %69 = vadd.xlane.f32.xlu1 %v68_v3  ;;  %v65_v11 = vadd.f32 %v33_v9, %v32_v8  ;;  %v40_v12 = vld [vmem:[%s6938_s0 + $0x50] sm:$0xff]  ;;  %v41_v13 = vld [vmem:[%s6938_s0 + $0x58] sm:$0xff]  ;;  %v39_v15 = vld [vmem:[%s6938_s0 + $0x48] sm:$0xff]  ;;  %v130_v48 = vmax.f32 %v32_v8, %v33_v9  ;;  %s3502_s21 = sld [smem:[#allocation2 + $0x5]]  ;;  %s3776_s30 = smov 48   ;;  %vm1019_vm2 = vcmask 1042434  }
  0x13   :  { %63 = vadd.xlane.f32.xlu0 %v62_v7  ;;  %v77_v16 = vadd.f32 %v41_v13, %v40_v12  ;;  %v74_v17 = vadd.f32 %v39_v15, %v38_v14  ;;  %v44_v18 = vld [vmem:[%s6938_s0 + $0x70] sm:$0xff]  ;;  %v45_v19 = vld [vmem:[%s6938_s0 + $0x78] sm:$0xff]  ;;  %v42_v20 = vld [vmem:[%s6938_s0 + $0x60] sm:$0xff]  ;;  %v142_v52 = vmax.f32 %v40_v12, %v41_v13  ;;  %v139_v53 = vmax.f32 %v38_v14, %v39_v15  ;;  %s3501_s23 = sld [smem:[#allocation2 + $0x4]]  ;;  %s3777_s7 = smov 49  }
  0x14   :  { %v43_v21 = vld [vmem:[%s6938_s0 + $0x68] sm:$0xff]  ;;  %v83_v22 = vadd.f32 %v45_v19, %v44_v18  ;;  %v48_v24 = vld [vmem:[%s6938_s0 + $0x90] sm:$0xff]  ;;  %v49_v25 = vld [vmem:[%s6938_s0 + $0x98] sm:$0xff]  ;;  %v148_v54 = vmax.f32 %v44_v18, %v45_v19  ;;  %s3504_s24 = sld [smem:[#allocation2 + $0x7]]  ;;  %s3778_s9 = smov 46   ;;  %vm1021_vm3 = vcmask 1043459  }
  0x15   :  { %v80_v23 = vadd.f32 %v43_v21, %v42_v20  ;;  %v46_v26 = vld [vmem:[%s6938_s0 + $0x80] sm:$0xff]  ;;  %v47_v27 = vld [vmem:[%s6938_s0 + $0x88] sm:$0xff]  ;;  %v89_v28 = vadd.f32 %v49_v25, %v48_v24  ;;  %v52_v30 = vld [vmem:[%s6938_s0 + $0xb0] sm:$0xff]  ;;  %v145_v55 = vmax.f32 %v42_v20, %v43_v21  ;;  %v154_v56 = vmax.f32 %v48_v24, %v49_v25  ;;  %s3503_s25 = sld [smem:[#allocation2 + $0x6]]  ;;  %s3779_s11 = smov 47  }
  0x16   :  { %72 = vadd.xlane.f32.xlu1 %v71_v10  ;;  %v86_v29 = vadd.f32 %v47_v27, %v46_v26  ;;  %v53_v31 = vld [vmem:[%s6938_s0 + $0xb8] sm:$0xff]  ;;  %v50_v32 = vld [vmem:[%s6938_s0 + $0xa0] sm:$0xff]  ;;  %v51_v33 = vld [vmem:[%s6938_s0 + $0xa8] sm:$0xff]  ;;  %v151_v57 = vmax.f32 %v46_v26, %v47_v27  ;;  %v4016_v7 = vstv %s3498_s10  ;;  %s3506_s27 = sld [smem:[#allocation2 + $0x9]]  ;;  %s3781_s15 = smov 45   ;;  %vm7179_vm4 = vcmask 416768  }
  0x17   :  { %66 = vadd.xlane.f32.xlu0 %v65_v11  ;;  %v95_v34 = vadd.f32 %v53_v31, %v52_v30  ;;  %v92_v35 = vadd.f32 %v51_v33, %v50_v32  ;;  %v56_v36 = vld [vmem:[%s6938_s0 + $0xd0] sm:$0xff]  ;;  %v57_v37 = vld [vmem:[%s6938_s0 + $0xd8] sm:$0xff]  ;;  %v54_v38 = vld [vmem:[%s6938_s0 + $0xc0] sm:$0xff]  ;;  %v160_v58 = vmax.f32 %v52_v30, %v53_v31  ;;  %v157_v59 = vmax.f32 %v50_v32, %v51_v33  ;;  %s3505_s29 = sld [smem:[#allocation2 + $0x8]]  ;;  %s7105_s17 = smov 33  }
  0x18   :  { %v55_v39 = vld [vmem:[%s6938_s0 + $0xc8] sm:$0xff]  ;;  %v101_v40 = vadd.f32 %v57_v37, %v56_v36  ;;  %v60_v42 = vld [vmem:[%s6938_s0 + $0xf0] sm:$0xff]  ;;  %v61_v43 = vld [vmem:[%s6938_s0 + $0xf8] sm:$0xff]  ;;  %v166_v60 = vmax.f32 %v56_v36, %v57_v37  ;;  %7225 = vst [vmem:[#allocation5_spill] sm:$0xff] %v4016_v7  ;;  %v4025_v9 = vstv %s1125_s13  ;;  %v1154_v10 = vmul.f32 0.0, %v4016_v7  ;;  %s3508_s6 = sld [smem:[#allocation2 + $0xb]] }
  0x19   :  { %v98_v41 = vadd.f32 %v55_v39, %v54_v38  ;;  %v58_v44 = vld [vmem:[%s6938_s0 + $0xe0] sm:$0xff]  ;;  %v59_v45 = vld [vmem:[%s6938_s0 + $0xe8] sm:$0xff]  ;;  %v107_v46 = vadd.f32 %v61_v43, %v60_v42  ;;  %v163_v61 = vmax.f32 %v54_v38, %v55_v39  ;;  %v172_v62 = vmax.f32 %v60_v42, %v61_v43  ;;  %v3981_v1 = vld [vmem:[%s6939_s1 + $0x10] sm:$0xff]  ;;  %7226 = vst [vmem:[#allocation6_spill] sm:$0xff] %v4025_v9  ;;  %s3507_s8 = sld [smem:[#allocation2 + $0xa]]  ;;  %s3780_s13 = smov 35  }
  0x1a   :  { %78 = vadd.xlane.f32.xlu1 %v77_v16  ;;  %v104_v47 = vadd.f32 %v59_v45, %v58_v44  ;;  %v169_v63 = vmax.f32 %v58_v44, %v59_v45  ;;  %v3974_v0 = vld [vmem:[%s6939_s1 + $0x8] sm:$0xff]  ;;  %v3986_v2 = vld [vmem:[%s6939_s1] sm:$0xff]  ;;  %v3993_v3 = vld [vmem:[%s6939_s1 + $0x18] sm:$0xff]  ;;  %s3499_s1 = sld [smem:[#allocation2 + $0x2]]  ;;  %v4030_v11 = vstv %s3500_s16  ;;  %v1127_v12 = vmul.f32 0.0, %v4025_v9  ;;  %s7101_s20 = smov 31  }
  0x1b   :  { %75 = vadd.xlane.f32.xlu0 %v74_v17  ;;  %v4000_v4 = vld [vmem:[%s6940_s2] sm:$0xff]  ;;  %v4007_v5 = vld [vmem:[%s6940_s2 + $0x8] sm:$0xff]  ;;  %v4014_v6 = vld [vmem:[%s6940_s2 + $0x10] sm:$0xff]  ;;  %7227 = vst [vmem:[#allocation7_spill] sm:$0xff] %v4030_v11  ;;  %v1208_v14 = vmul.f32 0.0, %v4030_v11  ;;  %v4039_v15 = vstv %s3502_s21  ;;  %s3510_s10 = sld [smem:[#allocation2 + $0xd]] }
  0x1c   :  { %v4023_v8 = vld [vmem:[%s6940_s2 + $0x18] sm:$0xff]  ;;  %7229 = vst [vmem:[#allocation9_spill] sm:$0xff] %v4039_v15  ;;  %v4043_v17 = vstv %s3501_s23  ;;  %v1262_v18 = vmul.f32 0.0, %v4039_v15  ;;  %v4047_v19 = vstv %s3504_s24  ;;  %v4051_v21 = vstv %s3503_s25  ;;  %s3509_s12 = sld [smem:[#allocation2 + $0xc]]  ;;  %s7103_s22 = smov 32  }
  0x1d   :  { %7230 = vst [vmem:[#allocation10_spill] sm:$0xff] %v4043_v17  ;;  %7231 = vst [vmem:[#allocation11_spill] sm:$0xff] %v4047_v19  ;;  %v1235_v20 = vmul.f32 0.0, %v4043_v17  ;;  %v1289_v24 = vmul.f32 0.0, %v4051_v21  ;;  %v4059_v25 = vstv %s3505_s29  ;;  %s3512_s14 = sld [smem:[#allocation2 + $0xf]]  ;;  %s7097_s23 = smov 29  }
  0x1e   :  { %84 = vadd.xlane.f32.xlu1 %v83_v22  ;;  %7232 = vst [vmem:[#allocation12_spill] sm:$0xff] %v4051_v21  ;;  %v1316_v22 = vmul.f32 0.0, %v4047_v19  ;;  %7234 = vst [vmem:[#allocation14_spill] sm:$0xff] %v4059_v25  ;;  %v4063_v27 = vstv %s3508_s6  ;;  %s3511_s16 = sld [smem:[#allocation2 + $0xe]]  ;;  %s7099_s24 = smov 30   ;;  %vm7180_vm6 = vcmask 408576  }
  0x1f   :  { %81 = vadd.xlane.f32.xlu0 %v80_v23  ;;  %v4055_v23 = vstv %s3506_s27  ;;  %7235 = vst [vmem:[#allocation15_spill] sm:$0xff] %v4063_v27  ;;  %v1408_v30 = vmul.f32 0.0, %v4063_v27  ;;  %s3514_s18 = sld [smem:[#allocation2 + $0x11]]  ;;  %s7093_s25 = smov 18   ;;  %vm7178_vm10 = vcmask 400384   ;;  %vm7181_vm12 = vcmask 392192  }
  0x20   :  { %v4035_v13 = vstv %s3499_s1  ;;  %7233 = vst [vmem:[#allocation13_spill] sm:$0xff] %v4055_v23  ;;  %v1362_v26 = vmul.f32 0.0, %v4055_v23  ;;  %s7107_s1 = smov 34   ;;  %s3513_s19 = sld [smem:[#allocation2 + $0x10]] }
  0x21   :  { %7228 = vst [vmem:[#allocation8_spill] sm:$0xff] %v4035_v13  ;;  %v1181_v16 = vmul.f32 0.0, %v4035_v13  ;;  %v4071_v31 = vstv %s3510_s10  ;;  %s3516_s21 = sld [smem:[#allocation2 + $0x13]]  ;;  %s7095_s27 = smov 19  }
  0x22   :  { %90 = vadd.xlane.f32.xlu1 %v89_v28  ;;  %v1339_v28 = vmul.f32 0.0, %v4059_v25  ;;  %7237 = vst [vmem:[#allocation17_spill] sm:$0xff] %v4071_v31  ;;  %v4075_v33 = vstv %s3509_s12  ;;  %s3515_s3 = sld [smem:[#allocation2 + $0x12]]  ;;  %s7089_s29 = smov 16  }
  0x23   :  { %87 = vadd.xlane.f32.xlu0 %v86_v29  ;;  %v4067_v29 = vstv %s3507_s8  ;;  %7238 = vst [vmem:[#allocation18_spill] sm:$0xff] %v4075_v33  ;;  %v1431_v36 = vmul.f32 0.0, %v4075_v33  ;;  %s7091_s6 = smov 17   ;;  %s6943_s8 = smov 14  }
  0x24   :  { %7236 = vst [vmem:[#allocation16_spill] sm:$0xff] %v4067_v29  ;;  %v1385_v32 = vmul.f32 0.0, %v4067_v29  ;;  %v4083_v37 = vstv %s3511_s16  ;;  %s7087_s10 = smov 15   ;;  %s3517_s12 = sld [smem:[#allocation2 + $0x14]] }
  0x25   :  { %7240 = vst [vmem:[#allocation20_spill] sm:$0xff] %v4083_v37  ;;  %v4087_v39 = vstv %s3514_s18  ;;  %s3519_s16 = sld [smem:[#allocation2 + $0x16]] }
  0x26   :  { %96 = vadd.xlane.f32.xlu1 %v95_v34  ;;  %v1454_v34 = vmul.f32 0.0, %v4071_v31  ;;  %7241 = vst [vmem:[#allocation21_spill] sm:$0xff] %v4087_v39  ;;  %v1546_v42 = vmul.f32 0.0, %v4087_v39  ;;  %s3520_s18 = sld [smem:[#allocation2 + $0x17]] }
  0x27   :  { %93 = vadd.xlane.f32.xlu0 %v92_v35  ;;  %v4079_v35 = vstv %s3512_s14  ;;  %v4095_v43 = vstv %s3516_s21  ;;  %s3518_s14 = sld [smem:[#allocation2 + $0x15]] }
  0x28   :  { %7239 = vst [vmem:[#allocation19_spill] sm:$0xff] %v4079_v35  ;;  %v1500_v38 = vmul.f32 0.0, %v4079_v35  ;;  %7243 = vst [vmem:[#allocation23_spill] sm:$0xff] %v4095_v43  ;;  %v4099_v45 = vstv %s3515_s3  ;;  %s3522_s21 = sld [smem:[#allocation2 + $0x19]]  ;;  %s6945_s3 = smov 3  }
  0x29   :  { %7244 = vst [vmem:[#allocation24_spill] sm:$0xff] %v4099_v45 }
  0x2a   :  { %102 = vadd.xlane.f32.xlu1 %v101_v40  ;;  %v1477_v40 = vmul.f32 0.0, %v4083_v37 }
  0x2b   :  { %99 = vadd.xlane.f32.xlu0 %v98_v41  ;;  %v4091_v41 = vstv %s3513_s19  ;;  %s7085_s19 = smov 13  }
  0x2c   :  { %7242 = vst [vmem:[#allocation22_spill] sm:$0xff] %v4091_v41  ;;  %v1523_v44 = vmul.f32 0.0, %v4091_v41 }
  0x2e   :  { %108 = vadd.xlane.f32.xlu1 %v107_v46  ;;  %v1592_v46 = vmul.f32 0.0, %v4095_v43 }
  0x2f   :  { %105 = vadd.xlane.f32.xlu0 %v104_v47  ;;  %v1569_v47 = vmul.f32 0.0, %v4099_v45 }
  0x32   :  { %131 = vmax.xlane.f32.xlu1 %v130_v48 }
  0x33   :  { %128 = vmax.xlane.f32.xlu0 %v127_v49 }
  0x36   :  { %137 = vmax.xlane.f32.xlu1 %v136_v50  ;;  %v4107_v50 = vstv %s3517_s12  ;;  %s6951_s12 = smov 2  }
  0x37   :  { %134 = vmax.xlane.f32.xlu0 %v133_v51  ;;  %7245 = vst [vmem:[#allocation25_spill] sm:$0xff] %v4107_v50 }
  0x3a   :  { %143 = vmax.xlane.f32.xlu1 %v142_v52  ;;  %v1615_v52 = vmul.f32 0.0, %v4107_v50 }
  0x3b   :  { %140 = vmax.xlane.f32.xlu0 %v139_v53  ;;  %v4110_v53 = vstv %s3518_s14  ;;  %s3524_s14 = sld [smem:[#allocation2 + $0x1b]] }
  0x3c   :  { %7246 = vst [vmem:[#allocation26_spill] sm:$0xff] %v4110_v53 }
  0x3e   :  { %149 = vmax.xlane.f32.xlu1 %v148_v54 }
  0x3f   :  { %146 = vmax.xlane.f32.xlu0 %v145_v55  ;;  %v1638_v55 = vmul.f32 0.0, %v4110_v53 }
  0x42   :  { %155 = vmax.xlane.f32.xlu1 %v154_v56  ;;  %v4115_v56 = vstv %s3519_s16  ;;  %s4127_s16 = sld [smem:[#allocation2 + $0x1c]] }
  0x43   :  { %152 = vmax.xlane.f32.xlu0 %v151_v57  ;;  %7247 = vst [vmem:[#allocation27_spill] sm:$0xff] %v4115_v56 }
  0x46   :  { %161 = vmax.xlane.f32.xlu1 %v160_v58 }
  0x47   :  { %158 = vmax.xlane.f32.xlu0 %v157_v59 }
  0x4a   :  { %167 = vmax.xlane.f32.xlu1 %v166_v60  ;;  %v1661_v60 = vmul.f32 0.0, %v4115_v56 }
  0x4b   :  { %164 = vmax.xlane.f32.xlu0 %v163_v61  ;;  %v4122_v61 = vstv %s3520_s18  ;;  %s4142_s18 = sld [smem:[#allocation2 + $0x1d]] }
  0x4c   :  { %7248 = vst [vmem:[#allocation28_spill] sm:$0xff] %v4122_v61 }
  0x4e   :  { %173 = vmax.xlane.f32.xlu1 %v172_v62 }
  0x4f   :  { %170 = vmax.xlane.f32.xlu0 %v169_v63  ;;  %v1684_v63 = vmul.f32 0.0, %v4122_v61 }
  0x5f   :  { %398 = vrot.lane.b32.xlu1 %v3974_v0, %s6949_s5 }
  0x63   :  { %400 = vrot.lane.b32.xlu1 %v3981_v1, %s6949_s5 }
  0x65   :  { %396 = vrot.lane.b32.xlu0 %v3986_v2, %s6949_s5 }
  0x67   :  { %402 = vrot.lane.b32.xlu1 %v3993_v3, %s6949_s5 }
  0x69   :  { %556 = vrot.lane.b32.xlu0 %v4000_v4, %s6949_s5 }
  0x6b   :  { %558 = vrot.lane.b32.xlu1 %v4007_v5, %s6949_s5 }
  0x6d   :  { %560 = vrot.lane.b32.xlu0 %v4014_v6, %s6949_s5 }
  0x6f   :  { %562 = vrot.lane.b32.xlu1 %v4023_v8, %s6949_s5 }
  0x71   :  { %1164 = vrot.lane.b32.xlu0 %v1154_v10, %s3774_s26 }
  0x73   :  { %1137 = vrot.lane.b32.xlu1 %v1127_v12, %s3775_s28 }
  0x75   :  { %1218 = vrot.lane.b32.xlu0 %v1208_v14, %s3776_s30 }
  0x77   :  { %1191 = vrot.lane.b32.xlu1 %v1181_v16, %s3777_s7  ;;  %v4133_v16 = vstv %s3522_s21  ;;  %s4150_s21 = sld [smem:[#allocation2 + $0x1f]] }
  0x78   :  { %7249 = vst [vmem:[#allocation29_spill] sm:$0xff] %v4133_v16 }
  0x79   :  { %1272 = vrot.lane.b32.xlu0 %v1262_v18, %s3778_s9 }
  0x7b   :  { %1245 = vrot.lane.b32.xlu1 %v1235_v20, %s3779_s11 }
  0x7d   :  { %1322 = vrot.lane.b32.xlu0 %v1316_v22, %s3780_s13 }
  0x7f   :  { %1299 = vrot.lane.b32.xlu1 %v1289_v24, %s3781_s15 }
  0x81   :  { %1368 = vrot.lane.b32.xlu0 %v1362_v26, %s7105_s17  ;;  %v1716_v26 = vmul.f32 0.0, %v4133_v16 }
  0x83   :  { %1345 = vrot.lane.b32.xlu1 %v1339_v28, %s7107_s1  ;;  %v3798_v28 = vmov 0  }
  0x84   :  { %3649 = vset.pattern.permute.xlu1 %v3798_v28  ;;  %3648 = vset.pattern.permute.xlu0 %v3798_v28 }
  0x85   :  { %1414 = vrot.lane.b32.xlu0 %v1408_v30, %s7101_s20 }
  0x87   :  { %1391 = vrot.lane.b32.xlu1 %v1385_v32, %s7103_s22 }
  0x89   :  { %1460 = vrot.lane.b32.xlu0 %v1454_v34, %s7097_s23 }
  0x8b   :  { %1437 = vrot.lane.b32.xlu1 %v1431_v36, %s7099_s24 }
  0x8d   :  { %1506 = vrot.lane.b32.xlu0 %v1500_v38, %s7093_s25 }
  0x8f   :  { %1483 = vrot.lane.b32.xlu1 %v1477_v40, %s7095_s27 }
  0x91   :  { %1552 = vrot.lane.b32.xlu0 %v1546_v42, %s7089_s29  ;;  %v4156_v42 = vstv %s3524_s14  ;;  %s4171_s14 = sld [smem:[#allocation2 + $0x21]] }
  0x92   :  { %7251 = vst [vmem:[#allocation31_spill] sm:$0xff] %v4156_v42 }
  0x93   :  { %1529 = vrot.lane.b32.xlu1 %v1523_v44, %s7091_s6 }
  0x95   :  { %1598 = vrot.lane.b32.xlu0 %v1592_v46, %s6943_s8  ;;  %s3523_s8 = sld [smem:[#allocation2 + $0x1a]] }
  0x97   :  { %1575 = vrot.lane.b32.xlu1 %v1569_v47, %s7087_s10 }
  0x99   :  { %1644 = vrot.lane.b32.xlu0 %v1638_v55, %s6945_s3  ;;  %s6947_s3 = smov 1  }
  0x9b   :  { %v70_v48 = vpop.xlane.xlu1 %69  ;;  %1621 = vrot.lane.b32.xlu1 %v1615_v52, %s7085_s19  ;;  %v4144_v30 = vstv %s3523_s8  ;;  %s4158_s8 = sld [smem:[#allocation2 + $0x20]]  ;;  %v4169_v52 = vstv %s4127_s16 }
  0x9c   :  { %v64_v49 = vpop.xlane.xlu0 %63  ;;  %v4135_v18 = vmul.f32 0.00390625, %v70_v48  ;;  %7250 = vst [vmem:[#allocation30_spill] sm:$0xff] %v4144_v30  ;;  %v1739_v32 = vmul.f32 0.0, %v4144_v30  ;;  %7252 = vst [vmem:[#allocation32_spill] sm:$0xff] %v4169_v52  ;;  %s4189_s16 = sld [smem:[#allocation2 + $0x22]] }
  0x9d   :  { %v4117_v57 = vmul.f32 0.00390625, %v64_v49  ;;  %1690 = vrot.lane.b32.xlu0 %v1684_v63, %s6947_s3  ;;  %s4146_s3 = sld [smem:[#allocation2 + $0x1e]]  ;;  %v1762_v49 = vmul.f32 0.0, %v4156_v42 }
  0x9e   :  { %v185_v44 = vmul.f32 %v3981_v1, %v4135_v18 }
  0x9f   :  { %v73_v51 = vpop.xlane.xlu1 %72  ;;  %1667 = vrot.lane.b32.xlu1 %v1661_v60, %s6951_s12  ;;  %v183_v10 = vmul.f32 %v3986_v2, %v4117_v57  ;;  %s6953_s12 = smov 125   ;;  %v1785_v60 = vmul.f32 0.0, %v4169_v52 }
  0xa0   :  { %v67_v54 = vpop.xlane.xlu0 %66 }
  0xa1   :  { %v4119_v58 = vmul.f32 0.00390625, %v67_v54  ;;  %v216_v34 = vsel %vm7183_vm0, %v183_v10, 0.0  ;;  %v4173_v54 = vmul.f32 0.00390625, %v73_v51  ;;  %v219_v51 = vsel %vm7183_vm0, %v185_v44, 0.0 }
  0xa3   :  { %v79_v59 = vpop.xlane.xlu1 %78  ;;  %v184_v12 = vmul.f32 %v3974_v0, %v4119_v58  ;;  %1724 = vrot.lane.b32.xlu1 %v1716_v26, %s6949_s5  ;;  %s6963_s5 = smov 126   ;;  %v186_v44 = vmul.f32 %v3993_v3, %v4173_v54 }
  0xa4   :  { %v76_v62 = vpop.xlane.xlu0 %75  ;;  %v4137_v20 = vmul.f32 0.00390625, %v79_v59  ;;  %1747 = vrot.lane.b32.xlu0 %v1739_v32, %s6963_s5  ;;  %s4225_s5 = sld [smem:[#allocation2 + $0x24]] }
  0xa5   :  { %v4139_v22 = vmul.f32 0.00390625, %v76_v62  ;;  %v217_v36 = vsel %vm7183_vm0, %v184_v12, 0.0  ;;  %v4184_v12 = vstv %s4142_s18  ;;  %s7083_s18 = smov 114  }
  0xa6   :  { %v188_v46 = vmul.f32 %v3974_v0, %v4137_v20  ;;  %v218_v55 = vadd.f32 %v217_v36, %v216_v34  ;;  %7253 = vst [vmem:[#allocation33_spill] sm:$0xff] %v4184_v12 }
  0xa7   :  { %v85_v14 = vpop.xlane.xlu1 %84  ;;  %v187_v47 = vmul.f32 %v3986_v2, %v4139_v22  ;;  %1770 = vrot.lane.b32.xlu1 %v1762_v49, %s6953_s12  ;;  %s6961_s12 = smov 115  }
  0xa8   :  { %v82_v24 = vpop.xlane.xlu0 %81  ;;  %v230_v26 = vsel %vm7183_vm0, %v188_v46, 0.0  ;;  %v4194_v32 = vmul.f32 0.00390625, %v85_v14  ;;  %1793 = vrot.lane.b32.xlu0 %v1785_v60, %s6961_s12  ;;  %v220_v14 = vadd.f32 %v219_v51, %v218_v55  ;;  %s6977_s12 = smov 113  }
  0xa9   :  { %v4154_v38 = vmul.f32 0.00390625, %v82_v24  ;;  %v4187_v24 = vstv %s4146_s3  ;;  %v229_v28 = vsel %vm7183_vm0, %v187_v47, 0.0  ;;  %s4201_s3 = sld [smem:[#allocation2 + $0x23]] }
  0xaa   :  { %7254 = vst [vmem:[#allocation34_spill] sm:$0xff] %v4187_v24 }
  0xab   :  { %v91_v40 = vpop.xlane.xlu1 %90  ;;  %v189_v62 = vmul.f32 %v3981_v1, %v4154_v38 }
  0xac   :  { %v88_v48 = vpop.xlane.xlu0 %87  ;;  %v4175_v59 = vmul.f32 0.00390625, %v91_v40  ;;  %v1808_v40 = vmul.f32 0.0, %v4184_v12  ;;  %v231_v12 = vadd.f32 %v230_v26, %v229_v28 }
  0xad   :  { %v4181_v63 = vmul.f32 0.00390625, %v88_v48  ;;  %v1831_v48 = vmul.f32 0.0, %v4187_v24  ;;  %v232_v47 = vsel %vm7183_vm0, %v189_v62, 0.0  ;;  %v4215_v24 = vstv %s4158_s8  ;;  %s7051_s8 = smov 112  }
  0xae   :  { %v192_v46 = vmul.f32 %v3974_v0, %v4175_v59  ;;  %1816 = vrot.lane.b32.xlu1 %v1808_v40, %s7083_s18  ;;  %7256 = vst [vmem:[#allocation36_spill] sm:$0xff] %v4215_v24  ;;  %v4223_v62 = vstv %s4171_s14  ;;  %v190_v40 = vmul.f32 %v3993_v3, %v4194_v32  ;;  %v1877_v28 = vmul.f32 0.0, %v4215_v24  ;;  %s7049_s14 = smov 111  }
  0xaf   :  { %v97_v10 = vpop.xlane.xlu1 %96  ;;  %v191_v49 = vmul.f32 %v3986_v2, %v4181_v63  ;;  %1839 = vrot.lane.b32.xlu0 %v1831_v48, %s6977_s12  ;;  %7257 = vst [vmem:[#allocation37_spill] sm:$0xff] %v4223_v62  ;;  %s4251_s12 = sld [smem:[#allocation2 + $0x26]]  ;;  %v4259_v53 = vstv %s4201_s3  ;;  %s6997_s3 = smov 109  }
  0xb0   :  { %v94_v34 = vpop.xlane.xlu0 %93  ;;  %v243_v30 = vsel %vm7183_vm0, %v192_v46, 0.0  ;;  %v4234_v16 = vmul.f32 0.00390625, %v97_v10  ;;  %v4246_v46 = vstv %s4189_s16  ;;  %v221_v10 = vsel %vm7183_vm0, %v186_v44, 0.0  ;;  %7259 = vst [vmem:[#allocation39_spill] sm:$0xff] %v4259_v53  ;;  %s7047_s16 = smov 110  }
  0xb1   :  { %v4197_v36 = vmul.f32 0.00390625, %v94_v34  ;;  %v4212_v34 = vstv %s4150_s21  ;;  %s4238_s21 = sld [smem:[#allocation2 + $0x25]]  ;;  %v242_v61 = vsel %vm7183_vm0, %v191_v49, 0.0  ;;  %7258 = vst [vmem:[#allocation38_spill] sm:$0xff] %v4246_v46  ;;  %v222_v43 = vadd.f32 %v221_v10, %v220_v14 }
  0xb2   :  { %7255 = vst [vmem:[#allocation35_spill] sm:$0xff] %v4212_v34  ;;  %v1854_v26 = vmul.f32 0.0, %v4212_v34  ;;  %v244_v44 = vadd.f32 %v243_v30, %v242_v61  ;;  %v1946_v30 = vmul.f32 0.0, %v4259_v53  ;;  %v4276_v14 = vstv %s4225_s5  ;;  %s7045_s5 = smov 99  }
  0xb3   :  { %v103_v60 = vpop.xlane.xlu1 %102  ;;  %v193_v55 = vmul.f32 %v3981_v1, %v4197_v36  ;;  %1885 = vrot.lane.b32.xlu0 %v1877_v28, %s7049_s14  ;;  %7260 = vst [vmem:[#allocation40_spill] sm:$0xff] %v4276_v14  ;;  %v1969_v10 = vmul.f32 0.0, %v4276_v14  ;;  %s7372_s14 = smov 127  }
  0xb4   :  { %v4219_v51 = vmul.f32 0.00390625, %v103_v60  ;;  %v100_v52 = vpop.xlane.xlu0 %99  ;;  %v233_v60 = vadd.f32 %v232_v47, %v231_v12  ;;  %1862 = vrot.lane.b32.xlu1 %v1854_v26, %s7051_s8  ;;  %v1900_v12 = vmul.f32 0.0, %v4223_v62  ;;  %v1923_v26 = vmul.f32 0.0, %v4246_v46  ;;  %s7370_s8 = smov 1  }
  0xb5   :  { %v4229_v42 = vmul.f32 0.00390625, %v100_v52  ;;  %v245_v47 = vsel %vm7183_vm0, %v193_v55, 0.0  ;;  %v234_v62 = vsel %vm7183_vm0, %v190_v40, 0.0  ;;  %v4298_v14 = vstv %s4251_s12  ;;  %s7039_s12 = smov 96  }
  0xb6   :  { %v196_v48 = vmul.f32 %v3974_v0, %v4219_v51  ;;  %v235_v28 = vadd.f32 %v234_v62, %v233_v60  ;;  %7262 = vst [vmem:[#allocation42_spill] sm:$0xff] %v4298_v14 }
  0xb7   :  { %v195_v52 = vmul.f32 %v3986_v2, %v4229_v42  ;;  %v109_v56 = vpop.xlane.xlu1 %108  ;;  %1931 = vrot.lane.b32.xlu0 %v1923_v26, %s6997_s3  ;;  %v223_v26 = vrot.slane %v222_v43, 4  ;;  %s7043_s3 = smov 98  }
  0xb8   :  { %v106_v24 = vpop.xlane.xlu0 %105  ;;  %v4253_v49 = vmul.f32 0.00390625, %v109_v56  ;;  %v256_v55 = vsel %vm7183_vm0, %v196_v48, 0.0  ;;  %v194_v56 = vmul.f32 %v3993_v3, %v4234_v16  ;;  %1908 = vrot.lane.b32.xlu1 %v1900_v12, %s7047_s16  ;;  %s7366_s16 = smov 3  }
  0xb9   :  { %v4255_v34 = vmul.f32 0.00390625, %v106_v24  ;;  %v255_v50 = vsel %vm7183_vm0, %v195_v52, 0.0  ;;  %v246_v24 = vadd.f32 %v245_v47, %v244_v44  ;;  %v4287_v47 = vstv %s4238_s21  ;;  %s7041_s21 = smov 97  }
  0xba   :  { %v257_v62 = vadd.f32 %v256_v55, %v255_v50  ;;  %v198_v60 = vmul.f32 %v3993_v3, %v4253_v49  ;;  %7261 = vst [vmem:[#allocation41_spill] sm:$0xff] %v4287_v47  ;;  %v236_v44 = vrot.slane %v235_v28, 4  ;;  %v247_v50 = vsel %vm7183_vm0, %v194_v56, 0.0 }
  0xbb   :  { %v4266_v45 = vpop.xlane.xlu1 %131  ;;  %v197_v40 = vmul.f32 %v3981_v1, %v4255_v34  ;;  %v248_v46 = vadd.f32 %v247_v50, %v246_v24  ;;  %1977 = vrot.lane.b32.xlu0 %v1969_v10, %s7043_s3  ;;  %v224_v24 = vadd.f32 %v223_v26, %v222_v43  ;;  %v2015_v10 = vmul.f32 0.0, %v4298_v14  ;;  %s7378_s3 = smov 115  }
  0xbc   :  { %v4271_v61 = vpop.xlane.xlu0 %128  ;;  %v200_v48 = vmul.f32 %v3974_v0, %v4266_v45  ;;  %1954 = vrot.lane.b32.xlu1 %v1946_v30, %s7045_s5  ;;  %v260_v41 = vsel %vm7183_vm0, %v198_v60, 0.0  ;;  %v237_v50 = vadd.f32 %v236_v44, %v235_v28  ;;  %s7383_s5 = smov 113  }
  0xbd   :  { %v199_v52 = vmul.f32 %v3986_v2, %v4271_v61  ;;  %v258_v12 = vsel %vm7183_vm0, %v197_v40, 0.0  ;;  %v1992_v40 = vmul.f32 0.0, %v4287_v47  ;;  %v249_v47 = vrot.slane %v248_v46, 4 }
  0xbe   :  { %v259_v55 = vadd.f32 %v258_v12, %v257_v62  ;;  %v269_v56 = vsel %vm7183_vm0, %v200_v48, 0.0 }
  0xbf   :  { %v4290_v53 = vpop.xlane.xlu1 %137  ;;  %v268_v62 = vsel %vm7183_vm0, %v199_v52, 0.0  ;;  %2023 = vrot.lane.b32.xlu0 %v2015_v10, %s7039_s12  ;;  %s7376_s12 = smov 125  }
  0xc0   :  { %v4293_v39 = vpop.xlane.xlu0 %134  ;;  %v261_v12 = vadd.f32 %v260_v41, %v259_v55  ;;  %2000 = vrot.lane.b32.xlu1 %v1992_v40, %s7041_s21  ;;  %v270_v37 = vadd.f32 %v269_v56, %v268_v62  ;;  %v202_v60 = vmul.f32 %v3993_v3, %v4290_v53  ;;  %v225_v55 = vrot.slane %v224_v24, 2  ;;  %s7374_s21 = smov 126  }
  0xc1   :  { %v201_v30 = vmul.f32 %v3981_v1, %v4293_v39  ;;  %v238_v40 = vrot.slane %v237_v50, 2  ;;  %v250_v56 = vadd.f32 %v249_v47, %v248_v46 }
  0xc2   :  { %v262_v52 = vrot.slane %v261_v12, 4  ;;  %v273_v62 = vsel %vm7183_vm0, %v202_v60, 0.0 }
  0xc3   :  { %v4305_v35 = vpop.xlane.xlu1 %143  ;;  %v271_v48 = vsel %vm7183_vm0, %v201_v30, 0.0  ;;  %v251_v23 = vrot.slane %v250_v56, 2 }
  0xc4   :  { %v4312_v41 = vpop.xlane.xlu0 %140  ;;  %v204_v43 = vmul.f32 %v3974_v0, %v4305_v35  ;;  %v272_v26 = vadd.f32 %v271_v48, %v270_v37  ;;  %v263_v14 = vadd.f32 %v262_v52, %v261_v12  ;;  %v226_v48 = vadd.f32 %v225_v55, %v224_v24 }
  0xc5   :  { %v203_v28 = vmul.f32 %v3986_v2, %v4312_v41  ;;  %v239_v12 = vadd.f32 %v238_v40, %v237_v50  ;;  %v252_v55 = vadd.f32 %v251_v23, %v250_v56 }
  0xc6   :  { %v282_v31 = vsel %vm7183_vm0, %v204_v43, 0.0  ;;  %v274_v29 = vadd.f32 %v273_v62, %v272_v26  ;;  %v264_v52 = vrot.slane %v263_v14, 2  ;;  %v227_v24 = vrot.slane %v226_v48, 1 }
  0xc7   :  { %v4319_v44 = vpop.xlane.xlu1 %149  ;;  %v281_v33 = vsel %vm7183_vm0, %v203_v28, 0.0  ;;  %v240_v50 = vrot.slane %v239_v12, 1 }
  0xc8   :  { %v4322_v30 = vpop.xlane.xlu0 %146  ;;  %v283_v46 = vadd.f32 %v282_v31, %v281_v33  ;;  %v206_v43 = vmul.f32 %v3993_v3, %v4319_v44  ;;  %v275_v26 = vrot.slane %v274_v29, 4  ;;  %v265_v40 = vadd.f32 %v264_v52, %v263_v14 }
  0xc9   :  { %v205_v27 = vmul.f32 %v3981_v1, %v4322_v30  ;;  %v228_v56 = vadd.f32 %v227_v24, %v226_v48  ;;  %v241_v14 = vadd.f32 %v240_v50, %v239_v12 }
  0xca   :  { %v286_v19 = vsel %vm7183_vm0, %v206_v43, 0.0  ;;  %v276_v15 = vadd.f32 %v275_v26, %v274_v29  ;;  %v266_v52 = vrot.slane %v265_v40, 1 }
  0xcb   :  { %v284_v37 = vsel %vm7183_vm0, %v205_v27, 0.0  ;;  %v4329_v10 = vpop.xlane.xlu1 %155  ;;  %v320_v48 = vmax.f32 %v228_v56, 0.0  ;;  %v321_v12 = vmax.f32 %v241_v14, 0.0 }
  0xcc   :  { %v208_v47 = vmul.f32 %v3974_v0, %v4329_v10  ;;  %v4333_v60 = vpop.xlane.xlu0 %152  ;;  %v285_v27 = vadd.f32 %v284_v37, %v283_v46  ;;  %v277_v13 = vrot.slane %v276_v15, 2 }
  0xcd   :  { %v207_v28 = vmul.f32 %v3986_v2, %v4333_v60  ;;  %v4375_v56 = vmul.f32 %v320_v48, %v4014_v6 }
  0xce   :  { %v295_v31 = vsel %vm7183_vm0, %v208_v47, 0.0  ;;  %v287_v17 = vadd.f32 %v286_v19, %v285_v27  ;;  %v253_v47 = vrot.slane %v252_v55, 1  ;;  %v278_v50 = vadd.f32 %v277_v13, %v276_v15 }
  0xcf   :  { %v4339_v62 = vpop.xlane.xlu1 %161  ;;  %v294_v33 = vsel %vm7183_vm0, %v207_v28, 0.0  ;;  %7263 = vst [vmem:[#allocation43_spill] sm:$0xff] %v4375_v56 }
  0xd0   :  { %v4343_v25 = vpop.xlane.xlu0 %158  ;;  %v210_v37 = vmul.f32 %v3993_v3, %v4339_v62  ;;  %v296_v46 = vadd.f32 %v295_v31, %v294_v33  ;;  %v288_v7 = vrot.slane %v287_v17, 4  ;;  %v254_v24 = vadd.f32 %v253_v47, %v252_v55 }
  0xd1   :  { %v209_v21 = vmul.f32 %v3981_v1, %v4343_v25  ;;  %v267_v33 = vadd.f32 %v266_v52, %v265_v40  ;;  %v4372_v55 = vmul.f32 %v320_v48, %v4007_v5 }
  0xd2   :  { %v299_v29 = vsel %vm7183_vm0, %v210_v37, 0.0  ;;  %v322_v40 = vmax.f32 %v254_v24, 0.0 }
  0xd3   :  { %v4350_v23 = vpop.xlane.xlu1 %167  ;;  %v297_v28 = vsel %vm7183_vm0, %v209_v21, 0.0  ;;  %v4383_v13 = vmax.f32 %v267_v33, 0.0 }
  0xd4   :  { %v4353_v11 = vpop.xlane.xlu0 %164  ;;  %v298_v43 = vadd.f32 %v297_v28, %v296_v46  ;;  %v212_v26 = vmul.f32 %v3974_v0, %v4350_v23  ;;  %v289_v46 = vadd.f32 %v288_v7, %v287_v17  ;;  %v4378_v7 = vmul.f32 %v320_v48, %v4023_v8 }
  0xd5   :  { %v211_v27 = vmul.f32 %v3986_v2, %v4353_v11  ;;  %v4369_v2 = vmul.f32 %v320_v48, %v4000_v4  ;;  %v279_v17 = vrot.slane %v278_v50, 1  ;;  %v4395_v48 = vmul.f32 %v321_v12, %v4023_v8 }
  0xd6   :  { %v300_v19 = vadd.f32 %v299_v29, %v298_v43  ;;  %v308_v43 = vsel %vm7183_vm0, %v212_v26, 0.0  ;;  %v290_v47 = vrot.slane %v289_v46, 2  ;;  %v4389_v26 = vmul.f32 %v321_v12, %v4007_v5 }
  0xd7   :  { %v4360_v31 = vpop.xlane.xlu1 %173  ;;  %v307_v0 = vsel %vm7183_vm0, %v211_v27, 0.0  ;;  %v4392_v27 = vmul.f32 %v321_v12, %v4014_v6  ;;  %v4400_v33 = vmul.f32 %v322_v40, %v4000_v4  ;;  %v4409_v9 = vmul.f32 %v322_v40, %v4023_v8 }
  0xd8   :  { %v4362_v21 = vpop.xlane.xlu0 %170  ;;  %v301_v28 = vrot.slane %v300_v19, 4  ;;  %v309_v14 = vadd.f32 %v308_v43, %v307_v0  ;;  %v214_v52 = vmul.f32 %v3993_v3, %v4360_v31  ;;  %v4406_v3 = vmul.f32 %v322_v40, %v4014_v6 }
  0xd9   :  { %v213_v37 = vmul.f32 %v3981_v1, %v4362_v21  ;;  %v4381_v1 = vmul.f32 %v321_v12, %v4000_v4  ;;  %7264 = vst [vmem:[#allocation44_spill] sm:$0xff] %v4392_v27  ;;  %v4413_v12 = vmul.f32 %v4383_v13, %v4000_v4  ;;  %v4417_v27 = vadd.f32 %v279_v17, %v278_v50 }
  0xda   :  { %v4397_v24 = vadd.f32 %v301_v28, %v300_v19  ;;  %v4419_v56 = vadd.f32 %v290_v47, %v289_v46  ;;  %v312_v6 = vsel %vm7183_vm0, %v214_v52, 0.0 }
  0xdb   :  { %v310_v15 = vsel %vm7183_vm0, %v213_v37, 0.0  ;;  %v399_v29 = vpop.permute.xlu1 %398  ;;  %v4403_v37 = vmul.f32 %v322_v40, %v4007_v5  ;;  %7265 = vst [vmem:[#allocation45_spill] sm:$0xff] %v4413_v12 }
  0xdc   :  { %v311_v43 = vadd.f32 %v310_v15, %v309_v14  ;;  %v397_v0 = vpop.permute.xlu0 %396  ;;  %v409_v19 = vmul.f32 %v399_v29, %v4119_v58  ;;  %v413_v28 = vmul.f32 %v399_v29, %v4137_v20  ;;  %v417_v15 = vmul.f32 %v399_v29, %v4175_v59 }
  0xdd   :  { %v303_v14 = vrot.slane %v4397_v24, 2  ;;  %v421_v8 = vmul.f32 %v399_v29, %v4219_v51  ;;  %v408_v40 = vmul.f32 %v397_v0, %v4117_v57  ;;  %v412_v4 = vmul.f32 %v397_v0, %v4139_v22 }
  0xde   :  { %v4427_v12 = vadd.f32 %v312_v6, %v311_v43  ;;  %v425_v58 = vmul.f32 %v399_v29, %v4266_v45  ;;  %v429_v20 = vmul.f32 %v399_v29, %v4305_v35  ;;  %v433_v50 = vmul.f32 %v399_v29, %v4329_v10 }
  0xdf   :  { %v437_v46 = vmul.f32 %v399_v29, %v4350_v23  ;;  %v441_v59 = vsel %vm7183_vm0, %v409_v19, 0.0  ;;  %v454_v17 = vsel %vm7183_vm0, %v413_v28, 0.0  ;;  %v416_v51 = vmul.f32 %v397_v0, %v4181_v63  ;;  %v401_v29 = vpop.permute.xlu1 %400 }
  0xe0   :  { %v420_v57 = vmul.f32 %v397_v0, %v4229_v42  ;;  %v424_v22 = vmul.f32 %v397_v0, %v4271_v61  ;;  %v440_v47 = vsel %vm7183_vm0, %v408_v40, 0.0  ;;  %v453_v45 = vsel %vm7183_vm0, %v412_v4, 0.0 }
  0xe1   :  { %v467_v35 = vsel %vm7183_vm0, %v417_v15, 0.0  ;;  %v428_v10 = vmul.f32 %v397_v0, %v4312_v41  ;;  %v432_v23 = vmul.f32 %v397_v0, %v4333_v60  ;;  %v436_v52 = vmul.f32 %v397_v0, %v4353_v11 }
  0xe2   :  { %v314_v43 = vrot.slane %v4427_v12, 4  ;;  %v480_v63 = vsel %vm7183_vm0, %v421_v8, 0.0  ;;  %v493_v42 = vsel %vm7183_vm0, %v425_v58, 0.0  ;;  %v506_v61 = vsel %vm7183_vm0, %v429_v20, 0.0 }
  0xe3   :  { %v519_v19 = vsel %vm7183_vm0, %v433_v50, 0.0  ;;  %v532_v28 = vsel %vm7183_vm0, %v437_v46, 0.0  ;;  %v442_v6 = vadd.f32 %v441_v59, %v440_v47  ;;  %v455_v15 = vadd.f32 %v454_v17, %v453_v45 }
  0xe4   :  { %v466_v41 = vsel %vm7183_vm0, %v416_v51, 0.0  ;;  %v479_v60 = vsel %vm7183_vm0, %v420_v57, 0.0  ;;  %v492_v11 = vsel %vm7183_vm0, %v424_v22, 0.0  ;;  %v410_v0 = vmul.f32 %v401_v29, %v4135_v18 }
  0xe5   :  { %v505_v8 = vsel %vm7183_vm0, %v428_v10, 0.0  ;;  %v518_v40 = vsel %vm7183_vm0, %v432_v23, 0.0  ;;  %v531_v4 = vsel %vm7183_vm0, %v436_v52, 0.0  ;;  %v414_v58 = vmul.f32 %v401_v29, %v4154_v38  ;;  %v403_v23 = vpop.permute.xlu1 %402 }
  0xe6   :  { %v418_v20 = vmul.f32 %v401_v29, %v4197_v36  ;;  %v422_v50 = vmul.f32 %v401_v29, %v4255_v34  ;;  %v426_v46 = vmul.f32 %v401_v29, %v4293_v39  ;;  %v430_v59 = vmul.f32 %v401_v29, %v4322_v30 }
  0xe7   :  { %v468_v17 = vadd.f32 %v467_v35, %v466_v41  ;;  %v481_v51 = vadd.f32 %v480_v63, %v479_v60  ;;  %v434_v18 = vmul.f32 %v401_v29, %v4343_v25  ;;  %v438_v57 = vmul.f32 %v401_v29, %v4362_v21 }
  0xe8   :  { %v443_v22 = vsel %vm7183_vm0, %v410_v0, 0.0  ;;  %v456_v47 = vsel %vm7183_vm0, %v414_v58, 0.0  ;;  %v469_v38 = vsel %vm7183_vm0, %v418_v20, 0.0  ;;  %v482_v36 = vsel %vm7183_vm0, %v422_v50, 0.0 }
  0xe9   :  { %v494_v45 = vadd.f32 %v493_v42, %v492_v11  ;;  %v507_v34 = vadd.f32 %v506_v61, %v505_v8  ;;  %v520_v10 = vadd.f32 %v519_v19, %v518_v40  ;;  %v533_v39 = vadd.f32 %v532_v28, %v531_v4 }
  0xea   :  { %v495_v30 = vsel %vm7183_vm0, %v426_v46, 0.0  ;;  %v508_v35 = vsel %vm7183_vm0, %v430_v59, 0.0  ;;  %v521_v25 = vsel %vm7183_vm0, %v434_v18, 0.0  ;;  %v534_v21 = vsel %vm7183_vm0, %v438_v57, 0.0 }
  0xeb   :  { %v444_v52 = vadd.f32 %v443_v22, %v442_v6  ;;  %v457_v29 = vadd.f32 %v456_v47, %v455_v15  ;;  %v470_v63 = vadd.f32 %v469_v38, %v468_v17  ;;  %v483_v41 = vadd.f32 %v482_v36, %v481_v51 }
  0xec   :  { %v496_v60 = vadd.f32 %v495_v30, %v494_v45  ;;  %v509_v0 = vadd.f32 %v508_v35, %v507_v34  ;;  %v522_v58 = vadd.f32 %v521_v25, %v520_v10  ;;  %v535_v42 = vadd.f32 %v534_v21, %v533_v39 }
  0xed   :  { %v411_v61 = vmul.f32 %v403_v23, %v4173_v54  ;;  %v415_v19 = vmul.f32 %v403_v23, %v4194_v32  ;;  %v419_v28 = vmul.f32 %v403_v23, %v4234_v16  ;;  %v423_v11 = vmul.f32 %v403_v23, %v4253_v49 }
  0xee   :  { %v427_v8 = vmul.f32 %v403_v23, %v4290_v53  ;;  %v431_v40 = vmul.f32 %v403_v23, %v4319_v44  ;;  %v435_v6 = vmul.f32 %v403_v23, %v4339_v62  ;;  %v439_v15 = vmul.f32 %v403_v23, %v4360_v31 }
  0xef   :  { %v445_v4 = vsel %vm7183_vm0, %v411_v61, 0.0  ;;  %v458_v20 = vsel %vm7183_vm0, %v415_v19, 0.0  ;;  %v471_v54 = vsel %vm7183_vm0, %v419_v28, 0.0  ;;  %v484_v32 = vsel %vm7183_vm0, %v423_v11, 0.0 }
  0xf0   :  { %v446_v50 = vadd.f32 %v445_v4, %v444_v52  ;;  %v459_v16 = vadd.f32 %v458_v20, %v457_v29  ;;  %v472_v46 = vadd.f32 %v471_v54, %v470_v63  ;;  %v485_v49 = vadd.f32 %v484_v32, %v483_v41 }
  0xf1   :  { %v497_v53 = vsel %vm7183_vm0, %v427_v8, 0.0  ;;  %v510_v44 = vsel %vm7183_vm0, %v431_v40, 0.0  ;;  %v523_v62 = vsel %vm7183_vm0, %v435_v6, 0.0  ;;  %v536_v31 = vsel %vm7183_vm0, %v439_v15, 0.0 }
  0xf2   :  { %v447_v59 = vrot.slane %v446_v50, 4  ;;  %v460_v17 = vrot.slane %v459_v16, 4  ;;  %v473_v51 = vrot.slane %v472_v46, 4  ;;  %v486_v18 = vrot.slane %v485_v49, 4 }
  0xf3   :  { %v498_v57 = vadd.f32 %v497_v53, %v496_v60  ;;  %v511_v22 = vadd.f32 %v510_v44, %v509_v0  ;;  %v524_v47 = vadd.f32 %v523_v62, %v522_v58  ;;  %v537_v38 = vadd.f32 %v536_v31, %v535_v42 }
  0xf4   :  { %v448_v36 = vadd.f32 %v447_v59, %v446_v50  ;;  %v461_v45 = vadd.f32 %v460_v17, %v459_v16  ;;  %v474_v34 = vadd.f32 %v473_v51, %v472_v46  ;;  %v487_v10 = vadd.f32 %v486_v18, %v485_v49  ;;  %v4518_v18 = vpop.permute.xlu1 %558 }
  0xf5   :  { %v499_v39 = vrot.slane %v498_v57, 4  ;;  %v512_v30 = vrot.slane %v511_v22, 4  ;;  %v525_v35 = vrot.slane %v524_v47, 4  ;;  %v538_v25 = vrot.slane %v537_v38, 4 }
  0xf6   :  { %v292_v21 = vrot.slane %v4419_v56, 1  ;;  %v315_v23 = vadd.f32 %v314_v43, %v4427_v12  ;;  %v449_v52 = vrot.slane %v448_v36, 2  ;;  %v462_v29 = vrot.slane %v461_v45, 2 }
  0xf7   :  { %v475_v63 = vrot.slane %v474_v34, 2  ;;  %v500_v41 = vadd.f32 %v499_v39, %v498_v57  ;;  %v513_v60 = vadd.f32 %v512_v30, %v511_v22  ;;  %v526_v0 = vadd.f32 %v525_v35, %v524_v47 }
  0xf8   :  { %v304_v58 = vadd.f32 %v303_v14, %v4397_v24  ;;  %v450_v42 = vadd.f32 %v449_v52, %v448_v36  ;;  %v463_v61 = vadd.f32 %v462_v29, %v461_v45  ;;  %v539_v19 = vadd.f32 %v538_v25, %v537_v38  ;;  %v4530_v25 = vld [vmem:[%s6940_s2 + $0x10] sm:$0xff] }
  0xf9   :  { %v488_v28 = vrot.slane %v487_v10, 2  ;;  %v501_v11 = vrot.slane %v500_v41, 2  ;;  %v514_v8 = vrot.slane %v513_v60, 2  ;;  %v527_v40 = vrot.slane %v526_v0, 2 }
  0xfa   :  { %v4497_v12 = vmul.f32 %v4383_v13, %v4007_v5  ;;  %v316_v43 = vrot.slane %v315_v23, 2  ;;  %v451_v6 = vrot.slane %v450_v42, 1  ;;  %v464_v15 = vrot.slane %v463_v61, 1  ;;  %v4504_v5 = vld [vmem:[%s6940_s2 + $0x18] sm:$0xff] }
  0xfb   :  { %v324_v4 = vmax.f32 %v4417_v27, 0.0  ;;  %v476_v20 = vadd.f32 %v475_v63, %v474_v34  ;;  %v502_v54 = vadd.f32 %v501_v11, %v500_v41  ;;  %v515_v32 = vadd.f32 %v514_v8, %v513_v60  ;;  %v3724_v34 = vld [vmem:[%s6940_s2 + $0x8] sm:$0xff] }
  0xfc   :  { %v305_v24 = vrot.slane %v304_v58, 1  ;;  %v528_v14 = vadd.f32 %v527_v40, %v526_v0  ;;  %v540_v50 = vrot.slane %v539_v19, 2  ;;  %v452_v16 = vadd.f32 %v451_v6, %v450_v42 }
  0xfd   :  { %v293_v46 = vadd.f32 %v292_v21, %v4419_v56  ;;  %v489_v49 = vadd.f32 %v488_v28, %v487_v10  ;;  %v503_v53 = vrot.slane %v502_v54, 1  ;;  %v516_v44 = vrot.slane %v515_v32, 1  ;;  %v4515_v56 = vld [vmem:[%s6940_s2] sm:$0xff]  ;;  %s7368_s2 = smov 2  }
  0xfe   :  { %v4508_v27 = vmul.f32 %v4504_v5, %v4383_v13  ;;  %v317_v62 = vadd.f32 %v316_v43, %v315_v23  ;;  %v465_v31 = vadd.f32 %v464_v15, %v463_v61  ;;  %v4510_v59 = vmax.f32 %v452_v16, 0.0 }
  0xff   :  { %v344_v17 = vmul.f32 %v4515_v56, %v324_v4  ;;  %v477_v51 = vrot.slane %v476_v20, 1  ;;  %v504_v57 = vadd.f32 %v503_v53, %v502_v54  ;;  %v517_v22 = vadd.f32 %v516_v44, %v515_v32 }
 0x100   :  { %v306_v47 = vadd.f32 %v305_v24, %v304_v58  ;;  %v529_v38 = vrot.slane %v528_v14, 1  ;;  %v541_v36 = vadd.f32 %v540_v50, %v539_v19  ;;  %v569_v45 = vmul.f32 %v4518_v18, %v4510_v59  ;;  %v4543_v58 = vpop.permute.xlu0 %556 }
 0x101   :  { %v345_v10 = vmul.f32 %v3724_v34, %v324_v4  ;;  %v325_v39 = vmax.f32 %v293_v46, 0.0  ;;  %v490_v30 = vrot.slane %v489_v49, 1  ;;  %v4525_v35 = vmax.f32 %v504_v57, 0.0 }
 0x102   :  { %v4533_v21 = vmul.f32 %v4530_v25, %v324_v4  ;;  %v318_v23 = vrot.slane %v317_v62, 1  ;;  %v4535_v52 = vmax.f32 %v465_v31, 0.0  ;;  %v4537_v29 = vmax.f32 %v517_v22, 0.0  ;;  %v4568_v31 = vpop.permute.xlu1 %562 }
 0x103   :  { %v347_v63 = vmul.f32 %v4504_v5, %v324_v4  ;;  %v478_v41 = vadd.f32 %v477_v51, %v476_v20  ;;  %v585_v60 = vmul.f32 %v4518_v18, %v4525_v35  ;;  %v601_v0 = vadd.f32 %v569_v45, %v4372_v55 }
 0x104   :  { %v326_v42 = vmax.f32 %v306_v47, 0.0  ;;  %v542_v61 = vrot.slane %v541_v36, 1  ;;  %v530_v19 = vadd.f32 %v529_v38, %v528_v14  ;;  %v568_v28 = vmul.f32 %v4543_v58, %v4510_v59 }
 0x105   :  { %v348_v11 = vmul.f32 %v4515_v56, %v325_v39  ;;  %v349_v8 = vmul.f32 %v3724_v34, %v325_v39  ;;  %v491_v40 = vadd.f32 %v490_v30, %v489_v49  ;;  %v617_v43 = vadd.f32 %v585_v60, %v345_v10 }
 0x106   :  { %v319_v6 = vadd.f32 %v318_v23, %v317_v62  ;;  %v573_v15 = vmul.f32 %v4518_v18, %v4535_v52  ;;  %v589_v55 = vmul.f32 %v4518_v18, %v4537_v29  ;;  %v584_v4 = vmul.f32 %v4543_v58, %v4525_v35 }
 0x107   :  { %v4555_v20 = vmul.f32 %v4530_v25, %v325_v39  ;;  %v351_v54 = vmul.f32 %v4504_v5, %v325_v39  ;;  %v4558_v32 = vmax.f32 %v478_v41, 0.0  ;;  %v633_v24 = vadd.f32 %v617_v43, %v601_v0 }
 0x108   :  { %v4561_v14 = vmul.f32 %v4515_v56, %v326_v42  ;;  %v543_v50 = vadd.f32 %v542_v61, %v541_v36  ;;  %v4563_v16 = vmax.f32 %v530_v19, 0.0  ;;  %v600_v46 = vadd.f32 %v568_v28, %v4369_v2 }
 0x109   :  { %v353_v49 = vmul.f32 %v3724_v34, %v326_v42  ;;  %v4566_v53 = vmax.f32 %v491_v40, 0.0  ;;  %v3483_v44 = vmul.f32 -1.442695, %v633_v24  ;;  %v616_v62 = vadd.f32 %v584_v4, %v344_v17 }
 0x10a   :  { %v4571_v51 = vmul.f32 %v4530_v25, %v326_v42  ;;  %v4573_v57 = vmax.f32 %v319_v6, 0.0  ;;  %v605_v22 = vadd.f32 %v573_v15, %v4389_v26  ;;  %v621_v47 = vadd.f32 %v589_v55, %v349_v8 }
 0x10b   :  { %v355_v38 = vmul.f32 %v4504_v5, %v326_v42  ;;  %v577_v2 = vmul.f32 %v4518_v18, %v4558_v32  ;;  %3650 = vpow2.f32 %v3483_v44  ;;  %v632_v36 = vadd.f32 %v616_v62, %v600_v46 }
 0x10c   :  { %v4579_v45 = vmax.f32 %v543_v50, 0.0  ;;  %v593_v17 = vmul.f32 %v4518_v18, %v4563_v16  ;;  %v571_v10 = vmul.f32 %v4568_v31, %v4510_v59  ;;  %v575_v39 = vmul.f32 %v4568_v31, %v4535_v52 }
 0x10d   :  { %v581_v26 = vmul.f32 %v4518_v18, %v4566_v53  ;;  %v572_v30 = vmul.f32 %v4543_v58, %v4535_v52  ;;  %v588_v23 = vmul.f32 %v4543_v58, %v4537_v29  ;;  %v3482_v41 = vmul.f32 -1.442695, %v632_v36  ;;  %v7266_v36 = vld [vmem:[#allocation43_spill] sm:$0xff] }
 0x10e   :  { %v4595_v60 = vmul.f32 %v4515_v56, %v4573_v57  ;;  %v357_v0 = vmul.f32 %v3724_v34, %v4573_v57  ;;  %v4600_v42 = vmul.f32 %v4504_v5, %v4573_v57  ;;  %v637_v61 = vadd.f32 %v621_v47, %v605_v22  ;;  %v4611_v5 = vpop.permute.xlu0 %560 }
 0x10f   :  { %v609_v19 = vadd.f32 %v577_v2, %v4403_v37  ;;  %3652 = vpow2.f32 %v3482_v41  ;;  %v587_v28 = vmul.f32 %v4568_v31, %v4525_v35  ;;  %v591_v8 = vmul.f32 %v4568_v31, %v4537_v29 }
 0x110   :  { %v597_v56 = vmul.f32 %v4518_v18, %v4579_v45  ;;  %v625_v40 = vadd.f32 %v593_v17, %v353_v49  ;;  %v603_v34 = vadd.f32 %v571_v10, %v4378_v7  ;;  %v607_v43 = vadd.f32 %v575_v39, %v4395_v48  ;;  %v7267_v10 = vld [vmem:[#allocation44_spill] sm:$0xff] }
 0x111   :  { %v613_v6 = vadd.f32 %v581_v26, %v4497_v12  ;;  %v604_v37 = vadd.f32 %v572_v30, %v4381_v1  ;;  %v620_v15 = vadd.f32 %v588_v23, %v348_v11  ;;  %v619_v55 = vadd.f32 %v587_v28, %v347_v63 }
 0x112   :  { %v3487_v4 = vmul.f32 -1.442695, %v637_v61  ;;  %v576_v24 = vmul.f32 %v4543_v58, %v4558_v32  ;;  %v579_v18 = vmul.f32 %v4568_v31, %v4558_v32  ;;  %v623_v50 = vadd.f32 %v591_v8, %v351_v54 }
 0x113   :  { %v595_v7 = vmul.f32 %v4568_v31, %v4563_v16  ;;  %v635_v48 = vadd.f32 %v619_v55, %v603_v34  ;;  %v570_v46 = vmul.f32 %v4611_v5, %v4510_v59  ;;  %v574_v1 = vmul.f32 %v4611_v5, %v4535_v52 }
 0x114   :  { %v629_v12 = vadd.f32 %v597_v56, %v357_v0  ;;  %v641_v63 = vadd.f32 %v625_v40, %v609_v19  ;;  %v592_v11 = vmul.f32 %v4543_v58, %v4563_v16  ;;  %v639_v49 = vadd.f32 %v623_v50, %v607_v43 }
 0x115   :  { %v636_v44 = vadd.f32 %v620_v15, %v604_v37  ;;  %v3485_v62 = vmul.f32 -1.442695, %v635_v48  ;;  %v586_v54 = vmul.f32 %v4611_v5, %v4525_v35  ;;  %v590_v22 = vmul.f32 %v4611_v5, %v4537_v29 }
 0x116   :  { %3654 = vpow2.f32 %v3487_v4  ;;  %v608_v59 = vadd.f32 %v576_v24, %v4400_v33  ;;  %v611_v47 = vadd.f32 %v579_v18, %v4409_v9  ;;  %v3489_v52 = vmul.f32 -1.442695, %v639_v49  ;;  %v7268_v4 = vld [vmem:[#allocation45_spill] sm:$0xff] }
 0x117   :  { %v627_v2 = vadd.f32 %v595_v7, %v355_v38  ;;  %3656 = vpow2.f32 %v3485_v62  ;;  %v602_v17 = vadd.f32 %v570_v46, %v7266_v36  ;;  %v606_v39 = vadd.f32 %v574_v1, %v7267_v10 }
 0x118   :  { %v3651_v26 = vpop.eup %3650  ;;  %v624_v30 = vadd.f32 %v592_v11, %v4561_v14  ;;  %v583_v35 = vmul.f32 %v4568_v31, %v4566_v53  ;;  %v618_v29 = vadd.f32 %v586_v54, %v4533_v21  ;;  %v622_v23 = vadd.f32 %v590_v22, %v4555_v20 }
 0x119   :  { %v3486_v33 = vmul.f32 -1.442695, %v636_v44  ;;  %v599_v9 = vmul.f32 %v4568_v31, %v4579_v45  ;;  %v578_v38 = vmul.f32 %v4611_v5, %v4558_v32  ;;  %v697_v41 = vadd.f32 1.0, %v3651_v26 }
 0x11a   :  { %3658 = vpow2.f32 %v3489_v52  ;;  %v594_v0 = vmul.f32 %v4611_v5, %v4563_v16  ;;  %v634_v14 = vadd.f32 %v618_v29, %v602_v17  ;;  %v638_v61 = vadd.f32 %v622_v23, %v606_v39 }
 0x11b   :  { %v3491_v19 = vmul.f32 -1.442695, %v641_v63  ;;  %v580_v21 = vmul.f32 %v4543_v58, %v4566_v53  ;;  %v643_v28 = vadd.f32 %v627_v2, %v611_v47  ;;  %3660 = vrcp.f32 %v697_v41 }
 0x11c   :  { %v3653_v20 = vpop.eup %3652  ;;  %v645_v8 = vadd.f32 %v629_v12, %v613_v6  ;;  %v596_v31 = vmul.f32 %v4543_v58, %v4579_v45  ;;  %v640_v56 = vadd.f32 %v624_v30, %v608_v59  ;;  %v3484_v32 = vmul.f32 -1.442695, %v634_v14 }
 0x11d   :  { %3662 = vpow2.f32 %v3486_v33  ;;  %v615_v40 = vadd.f32 %v583_v35, %v4508_v27  ;;  %v631_v16 = vadd.f32 %v599_v9, %v4600_v42  ;;  %v3488_v34 = vmul.f32 -1.442695, %v638_v61 }
 0x11e   :  { %v610_v43 = vadd.f32 %v578_v38, %v4406_v3  ;;  %v626_v37 = vadd.f32 %v594_v0, %v4571_v51  ;;  %3664 = vpow2.f32 %v3484_v32  ;;  %v696_v15 = vadd.f32 1.0, %v3653_v20 }
 0x11f   :  { %3666 = vpow2.f32 %v3491_v19  ;;  %v3493_v55 = vmul.f32 -1.442695, %v643_v28  ;;  %v3495_v6 = vmul.f32 -1.442695, %v645_v8  ;;  %v612_v24 = vadd.f32 %v580_v21, %v7268_v4  ;;  %v4664_v19 = vpop.permute.xlu0 %1164 }
 0x120   :  { %v628_v58 = vadd.f32 %v596_v31, %v4595_v60  ;;  %v647_v18 = vadd.f32 %v631_v16, %v615_v40  ;;  %v582_v27 = vmul.f32 %v4611_v5, %v4566_v53  ;;  %v598_v42 = vmul.f32 %v4611_v5, %v4579_v45  ;;  %7269 = vst [vmem:[#allocation43_spill] sm:$0xff] %v4664_v19 }
 0x121   :  { %3668 = vpow2.f32 %v3488_v34  ;;  %v3490_v3 = vmul.f32 -1.442695, %v640_v56  ;;  %v642_v50 = vadd.f32 %v626_v37, %v610_v43  ;;  %v342_v7 = vmul.f32 %v4530_v25, %v4383_v13  ;;  %v4666_v56 = vpop.permute.xlu1 %1137 }
 0x122   :  { %3670 = vrcp.f32 %v696_v15  ;;  %v358_v48 = vmul.f32 %v4530_v25, %v4573_v57  ;;  %v644_v46 = vadd.f32 %v628_v58, %v612_v24  ;;  %v3497_v1 = vmul.f32 -1.442695, %v647_v18  ;;  %7270 = vst [vmem:[#allocation44_spill] sm:$0xff] %v4666_v56 }
 0x123   :  { %v3655_v51 = vpop.eup %3654  ;;  %3672 = vpow2.f32 %v3493_v55  ;;  %v614_v53 = vadd.f32 %v582_v27, %v342_v7  ;;  %v3492_v45 = vmul.f32 -1.442695, %v642_v50  ;;  %v4668_v32 = vpop.permute.xlu0 %1218  ;;  %vm7185_vm0 = vcmask 146432  }
 0x124   :  { %v3657_v60 = vpop.eup %3656  ;;  %3674 = vpow2.f32 %v3495_v6  ;;  %v630_v12 = vadd.f32 %v598_v42, %v358_v48  ;;  %v701_v11 = vadd.f32 1.0, %v3655_v51  ;;  %v3494_v44 = vmul.f32 -1.442695, %v644_v46  ;;  %7271 = vst [vmem:[#allocation45_spill] sm:$0xff] %v4668_v32 }
 0x125   :  { %v699_v63 = vadd.f32 1.0, %v3657_v60  ;;  %3676 = vpow2.f32 %v3490_v3  ;;  %v4670_v43 = vpop.permute.xlu1 %1191 }
 0x126   :  { %v646_v13 = vadd.f32 %v630_v12, %v614_v53  ;;  %7272 = vst [vmem:[#allocation46_spill] sm:$0xff] %v4670_v43 }
 0x127   :  { %v3659_v5 = vpop.eup %3658  ;;  %3678 = vrcp.f32 %v699_v63  ;;  %v4672_v15 = vpop.permute.xlu0 %1272 }
 0x128   :  { %v3661_v49 = vpop.eup %3660  ;;  %3680 = vpow2.f32 %v3497_v1  ;;  %v703_v57 = vadd.f32 1.0, %v3659_v5  ;;  %v3496_v59 = vmul.f32 -1.442695, %v646_v13  ;;  %7273 = vst [vmem:[#allocation47_spill] sm:$0xff] %v4672_v15 }
 0x129   :  { %751 = vperm.xlu1 %3649, %v3661_v49   ;;  %3682 = vpow2.f32 %v3492_v45  ;;  %v4674_v24 = vpop.permute.xlu1 %1245 }
 0x12a   :  { %v3663_v62 = vpop.eup %3662  ;;  %3684 = vrcp.f32 %v701_v11  ;;  %7274 = vst [vmem:[#allocation48_spill] sm:$0xff] %v4674_v24 }
 0x12b   :  { %v3665_v25 = vpop.eup %3664  ;;  %3686 = vpow2.f32 %v3494_v44  ;;  %v700_v52 = vadd.f32 1.0, %v3663_v62  ;;  %v4676_v58 = vpop.permute.xlu0 %1322 }
 0x12c   :  { %v3667_v54 = vpop.eup %3666  ;;  %v698_v22 = vadd.f32 1.0, %v3665_v25  ;;  %7275 = vst [vmem:[#allocation49_spill] sm:$0xff] %v4676_v58 }
 0x12d   :  { %v705_v36 = vadd.f32 1.0, %v3667_v54  ;;  %v4678_v27 = vpop.permute.xlu1 %1299 }
 0x12e   :  { %v3669_v47 = vpop.eup %3668  ;;  %3688 = vrcp.f32 %v698_v22  ;;  %7276 = vst [vmem:[#allocation50_spill] sm:$0xff] %v4678_v27 }
 0x12f   :  { %v3671_v2 = vpop.eup %3670  ;;  %3690 = vrcp.f32 %v703_v57  ;;  %v702_v39 = vadd.f32 1.0, %v3669_v47  ;;  %v4680_v3 = vpop.permute.xlu0 %1368 }
 0x130   :  { %v3673_v17 = vpop.eup %3672  ;;  %746 = vperm.xlu0 %3648, %v3671_v2   ;;  %3692 = vpow2.f32 %v3496_v59  ;;  %7277 = vst [vmem:[#allocation51_spill] sm:$0xff] %v4680_v3 }
 0x131   :  { %v3675_v10 = vpop.eup %3674  ;;  %3694 = vrcp.f32 %v700_v52  ;;  %v707_v30 = vadd.f32 1.0, %v3673_v17  ;;  %v4682_v50 = vpop.permute.xlu1 %1345 }
 0x132   :  { %v3677_v26 = vpop.eup %3676  ;;  %3696 = vrcp.f32 %v705_v36  ;;  %v709_v9 = vadd.f32 1.0, %v3675_v10  ;;  %7278 = vst [vmem:[#allocation52_spill] sm:$0xff] %v4682_v50 }
 0x133   :  { %3698 = vrcp.f32 %v702_v39  ;;  %v704_v23 = vadd.f32 1.0, %v3677_v26  ;;  %v4684_v51 = vpop.permute.xlu0 %1414 }
 0x134   :  { %v3679_v35 = vpop.eup %3678  ;;  %3700 = vrcp.f32 %v707_v30  ;;  %7279 = vst [vmem:[#allocation53_spill] sm:$0xff] %v4684_v51 }
 0x135   :  { %761 = vperm.xlu0 %3648, %v3679_v35   ;;  %v3681_v29 = vpop.eup %3680  ;;  %3702 = vrcp.f32 %v704_v23  ;;  %v4686_v7 = vpop.permute.xlu1 %1391 }
 0x136   :  { %v3683_v33 = vpop.eup %3682  ;;  %3704 = vrcp.f32 %v709_v9  ;;  %v711_v61 = vadd.f32 1.0, %v3681_v29  ;;  %7280 = vst [vmem:[#allocation54_spill] sm:$0xff] %v4686_v7  ;;  %v3726_v29 = vld [vmem:[%s6938_s0 + $0x10] sm:$0xff] }
 0x137   :  { %v3685_v38 = vpop.eup %3684  ;;  %v706_v0 = vadd.f32 1.0, %v3683_v33  ;;  %v4688_v48 = vpop.permute.xlu0 %1460  ;;  %v3727_v33 = vld [vmem:[%s6938_s0 + $0x18] sm:$0xff] }
 0x138   :  { %v3687_v41 = vpop.eup %3686  ;;  %7281 = vst [vmem:[#allocation55_spill] sm:$0xff] %v4688_v48 }
 0x139   :  { %771 = vperm.xlu0 %3648, %v3685_v38   ;;  %3706 = vrcp.f32 %v706_v0  ;;  %v708_v20 = vadd.f32 1.0, %v3687_v41  ;;  %v4690_v60 = vpop.permute.xlu1 %1437  ;;  %v3728_v38 = vld [vmem:[%s6938_s0] sm:$0xff]  ;;  %v3729_v0 = vld [vmem:[%s6938_s0 + $0x8] sm:$0xff] }
 0x13a   :  { %3708 = vrcp.f32 %v711_v61  ;;  %7282 = vst [vmem:[#allocation56_spill] sm:$0xff] %v4690_v60 }
 0x13b   :  { %v3689_v14 = vpop.eup %3688  ;;  %3710 = vrcp.f32 %v708_v20  ;;  %v4692_v46 = vpop.permute.xlu0 %1506 }
 0x13c   :  { %v3691_v21 = vpop.eup %3690  ;;  %756 = vperm.xlu1 %3649, %v3689_v14   ;;  %7283 = vst [vmem:[#allocation57_spill] sm:$0xff] %v4692_v46 }
 0x13d   :  { %781 = vperm.xlu0 %3648, %v3691_v21   ;;  %v3693_v28 = vpop.eup %3692  ;;  %v4694_v1 = vpop.permute.xlu1 %1483 }
 0x13e   :  { %v3695_v8 = vpop.eup %3694  ;;  %v710_v40 = vadd.f32 1.0, %v3693_v28  ;;  %7284 = vst [vmem:[#allocation58_spill] sm:$0xff] %v4694_v1 }
 0x13f   :  { %v3697_v31 = vpop.eup %3696  ;;  %v4696_v53 = vpop.permute.xlu0 %1552 }
 0x140   :  { %766 = vperm.xlu1 %3649, %v3695_v8   ;;  %v3699_v16 = vpop.eup %3698  ;;  %3712 = vrcp.f32 %v710_v40  ;;  %7285 = vst [vmem:[#allocation59_spill] sm:$0xff] %v4696_v53  ;;  %v3730_v40 = vld [vmem:[%s6938_s0 + $0x20] sm:$0xff] }
 0x141   :  { %791 = vperm.xlu0 %3648, %v3697_v31   ;;  %v3701_v34 = vpop.eup %3700  ;;  %v4698_v12 = vpop.permute.xlu1 %1529 }
 0x142   :  { %v3703_v37 = vpop.eup %3702  ;;  %7286 = vst [vmem:[#allocation60_spill] sm:$0xff] %v4698_v12 }
 0x143   :  { %v3705_v55 = vpop.eup %3704  ;;  %v4700_v63 = vpop.permute.xlu0 %1598 }
 0x144   :  { %776 = vperm.xlu1 %3649, %v3699_v16   ;;  %7287 = vst [vmem:[#allocation61_spill] sm:$0xff] %v4700_v63 }
 0x145   :  { %801 = vperm.xlu0 %3648, %v3701_v34   ;;  %v4702_v45 = vpop.permute.xlu1 %1575  ;;  %v3731_v34 = vld [vmem:[%s6938_s0 + $0x28] sm:$0xff] }
 0x146   :  { %v3707_v6 = vpop.eup %3706  ;;  %7288 = vst [vmem:[#allocation62_spill] sm:$0xff] %v4702_v45 }
 0x147   :  { %v3709_v4 = vpop.eup %3708  ;;  %v4704_v5 = vpop.permute.xlu0 %1644 }
 0x148   :  { %786 = vperm.xlu1 %3649, %v3703_v37   ;;  %v3711_v18 = vpop.eup %3710  ;;  %7289 = vst [vmem:[#allocation63_spill] sm:$0xff] %v4704_v5 }
 0x149   :  { %811 = vperm.xlu0 %3648, %v3705_v55   ;;  %v4706_v11 = vpop.permute.xlu1 %1621  ;;  %v3732_v55 = vld [vmem:[%s6938_s0 + $0x30] sm:$0xff] }
 0x14a   :  { %7290 = vst [vmem:[#allocation64_spill] sm:$0xff] %v4706_v11 }
 0x14b   :  { %v4708_v49 = vpop.permute.xlu0 %1690 }
 0x14c   :  { %796 = vperm.xlu1 %3649, %v3707_v6   ;;  %7291 = vst [vmem:[#allocation65_spill] sm:$0xff] %v4708_v49 }
 0x14d   :  { %821 = vperm.xlu0 %3648, %v3709_v4   ;;  %v3713_v42 = vpop.eup %3712  ;;  %v4710_v44 = vpop.permute.xlu1 %1667  ;;  %v3733_v4 = vld [vmem:[%s6938_s0 + $0x38] sm:$0xff] }
 0x14e   :  { %7292 = vst [vmem:[#allocation66_spill] sm:$0xff] %v4710_v44 }
 0x14f   :  { %v4712_v13 = vpop.permute.xlu0 %1747 }
 0x150   :  { %806 = vperm.xlu1 %3649, %v3711_v18   ;;  %7293 = vst [vmem:[#allocation67_spill] sm:$0xff] %v4712_v13 }
 0x151   :  { %v4714_v62 = vpop.permute.xlu1 %1724 }
 0x152   :  { %7294 = vst [vmem:[#allocation68_spill] sm:$0xff] %v4714_v62 }
 0x153   :  { %v4716_v25 = vpop.permute.xlu0 %1793 }
 0x154   :  { %816 = vperm.xlu1 %3649, %v3713_v42   ;;  %7295 = vst [vmem:[#allocation69_spill] sm:$0xff] %v4716_v25 }
 0x155   :  { %v4718_v57 = vpop.permute.xlu1 %1770 }
 0x156   :  { %7296 = vst [vmem:[#allocation70_spill] sm:$0xff] %v4718_v57 }
 0x157   :  { %v4720_v54 = vpop.permute.xlu0 %1839 }
 0x158   :  { %7297 = vst [vmem:[#allocation71_spill] sm:$0xff] %v4720_v54 }
 0x159   :  { %v4722_v22 = vpop.permute.xlu1 %1816 }
 0x15a   :  { %7298 = vst [vmem:[#allocation72_spill] sm:$0xff] %v4722_v22 }
 0x15b   :  { %v4724_v59 = vpop.permute.xlu0 %1885 }
 0x15c   :  { %7299 = vst [vmem:[#allocation73_spill] sm:$0xff] %v4724_v59 }
 0x15d   :  { %v4726_v47 = vpop.permute.xlu1 %1862 }
 0x15e   :  { %7300 = vst [vmem:[#allocation74_spill] sm:$0xff] %v4726_v47 }
 0x15f   :  { %v4728_v52 = vpop.permute.xlu0 %1931 }
 0x160   :  { %7301 = vst [vmem:[#allocation75_spill] sm:$0xff] %v4728_v52 }
 0x161   :  { %v4730_v2 = vpop.permute.xlu1 %1908 }
 0x162   :  { %7302 = vst [vmem:[#allocation76_spill] sm:$0xff] %v4730_v2 }
 0x163   :  { %v4732_v36 = vpop.permute.xlu0 %1977 }
 0x164   :  { %7303 = vst [vmem:[#allocation77_spill] sm:$0xff] %v4732_v36 }
 0x165   :  { %v4734_v17 = vpop.permute.xlu1 %1954 }
 0x166   :  { %7304 = vst [vmem:[#allocation78_spill] sm:$0xff] %v4734_v17 }
 0x167   :  { %v4736_v10 = vpop.permute.xlu0 %2023 }
 0x168   :  { %7305 = vst [vmem:[#allocation79_spill] sm:$0xff] %v4736_v10 }
 0x169   :  { %v4738_v26 = vpop.permute.xlu1 %2000 }
 0x16a   :  { %7306 = vst [vmem:[#allocation80_spill] sm:$0xff] %v4738_v26 }
 0x1a4   :  { %v752_v30 = vpop.permute.xlu1 %751 }
 0x1a5   :  { %v4743_v23 = vmul.f32 %v3726_v29, %v752_v30  ;;  %v4748_v9 = vmul.f32 %v3727_v33, %v752_v30 }
 0x1a7   :  { %7307 = vst [vmem:[#allocation81_spill] sm:$0xff] %v4743_v23  ;;  %7308 = vst [vmem:[#allocation82_spill] sm:$0xff] %v4748_v9 }
 0x1ab   :  { %v747_v39 = vpop.permute.xlu0 %746 }
 0x1ac   :  { %v4753_v41 = vmul.f32 %v3728_v38, %v747_v39  ;;  %v4758_v14 = vmul.f32 %v3729_v0, %v747_v39  ;;  %v3734_v38 = vld [vmem:[%s6938_s0 + $0x50] sm:$0xff] }
 0x1ae   :  { %7309 = vst [vmem:[#allocation83_spill] sm:$0xff] %v4753_v41  ;;  %7310 = vst [vmem:[#allocation84_spill] sm:$0xff] %v4758_v14  ;;  %v856_v61 = vadd.f32 %v4743_v23, %v4753_v41  ;;  %v865_v21 = vadd.f32 %v4748_v9, %v4758_v14  ;;  %v937_v8 = vmax.f32 %v4753_v41, %v4743_v23 }
 0x1af   :  { %v946_v31 = vmax.f32 %v4758_v14, %v4748_v9 }
 0x1b0   :  { %v762_v35 = vpop.permute.xlu0 %761 }
 0x1b1   :  { %v4781_v6 = vmul.f32 %v3732_v55, %v762_v35  ;;  %v4786_v18 = vmul.f32 %v3733_v4, %v762_v35  ;;  %v3735_v35 = vld [vmem:[%s6938_s0 + $0x58] sm:$0xff]  ;;  %v3737_v55 = vld [vmem:[%s6938_s0 + $0x48] sm:$0xff] }
 0x1b3   :  { %7313 = vst [vmem:[#allocation87_spill] sm:$0xff] %v4781_v6  ;;  %7314 = vst [vmem:[#allocation88_spill] sm:$0xff] %v4786_v18 }
 0x1b4   :  { %v772_v20 = vpop.permute.xlu0 %771 }
 0x1b5   :  { %v4795_v0 = vmul.f32 %v3734_v38, %v772_v20 }
 0x1b7   :  { %v757_v28 = vpop.permute.xlu1 %756  ;;  %7315 = vst [vmem:[#allocation89_spill] sm:$0xff] %v4795_v0 }
 0x1b8   :  { %v4771_v16 = vmul.f32 %v3730_v40, %v757_v28  ;;  %v4776_v37 = vmul.f32 %v3731_v34, %v757_v28  ;;  %v4800_v28 = vmul.f32 %v3735_v35, %v772_v20  ;;  %v3736_v40 = vld [vmem:[%s6938_s0 + $0x40] sm:$0xff]  ;;  %v782_v4 = vpop.permute.xlu0 %781 }
 0x1ba   :  { %7311 = vst [vmem:[#allocation85_spill] sm:$0xff] %v4771_v16  ;;  %7312 = vst [vmem:[#allocation86_spill] sm:$0xff] %v4776_v37  ;;  %v857_v42 = vadd.f32 %v856_v61, %v4771_v16  ;;  %v866_v39 = vadd.f32 %v865_v21, %v4776_v37  ;;  %v938_v30 = vmax.f32 %v937_v8, %v4771_v16 }
 0x1bb   :  { %v947_v29 = vmax.f32 %v946_v31, %v4776_v37  ;;  %v767_v33 = vpop.permute.xlu1 %766  ;;  %7316 = vst [vmem:[#allocation90_spill] sm:$0xff] %v4800_v28 }
 0x1bc   :  { %v858_v61 = vadd.f32 %v857_v42, %v4781_v6  ;;  %v867_v21 = vadd.f32 %v866_v39, %v4786_v18  ;;  %v939_v8 = vmax.f32 %v938_v30, %v4781_v6  ;;  %v4809_v34 = vmul.f32 %v3736_v40, %v767_v33 }
 0x1bd   :  { %v948_v31 = vmax.f32 %v947_v29, %v4786_v18  ;;  %v4814_v20 = vmul.f32 %v3737_v55, %v767_v33  ;;  %v3738_v55 = vld [vmem:[%s6938_s0 + $0x60] sm:$0xff] }
 0x1be   :  { %7317 = vst [vmem:[#allocation91_spill] sm:$0xff] %v4809_v34  ;;  %v859_v42 = vrot.slane %v858_v61, 4  ;;  %v868_v38 = vrot.slane %v867_v21, 4  ;;  %v940_v39 = vrot.slane %v939_v8, 4  ;;  %v874_v18 = vadd.f32 %v4795_v0, %v4809_v34 }
 0x1bf   :  { %7318 = vst [vmem:[#allocation92_spill] sm:$0xff] %v4814_v20  ;;  %v949_v35 = vrot.slane %v948_v31, 4  ;;  %v777_v30 = vpop.permute.xlu1 %776  ;;  %v883_v40 = vadd.f32 %v4800_v28, %v4814_v20  ;;  %v955_v37 = vmax.f32 %v4809_v34, %v4795_v0  ;;  %v964_v33 = vmax.f32 %v4814_v20, %v4800_v28  ;;  %v3740_v0 = vld [vmem:[%s6938_s0 + $0x70] sm:$0xff]  ;;  %v3741_v28 = vld [vmem:[%s6938_s0 + $0x78] sm:$0xff] }
 0x1c0   :  { %v941_v6 = vmax.f32 %v939_v8, %v940_v39  ;;  %v4827_v16 = vmul.f32 %v3738_v55, %v777_v30  ;;  %v3739_v8 = vld [vmem:[%s6938_s0 + $0x68] sm:$0xff]  ;;  %v860_v39 = vadd.f32 %v859_v42, %v858_v61  ;;  %v4837_v34 = vmul.f32 %v3740_v0, %v782_v4 }
 0x1c1   :  { %v950_v29 = vmax.f32 %v948_v31, %v949_v35  ;;  %v4832_v31 = vmul.f32 %v3739_v8, %v777_v30  ;;  %v869_v35 = vadd.f32 %v868_v38, %v867_v21  ;;  %v4842_v55 = vmul.f32 %v3741_v28, %v782_v4  ;;  %v792_v21 = vpop.permute.xlu0 %791 }
 0x1c2   :  { %7319 = vst [vmem:[#allocation93_spill] sm:$0xff] %v4827_v16  ;;  %7321 = vst [vmem:[#allocation95_spill] sm:$0xff] %v4837_v34  ;;  %v875_v20 = vadd.f32 %v874_v18, %v4827_v16  ;;  %v956_v30 = vmax.f32 %v955_v37, %v4827_v16  ;;  %v942_v42 = vrot.slane %v941_v6, 2  ;;  %v861_v4 = vrot.slane %v860_v39, 2 }
 0x1c3   :  { %7320 = vst [vmem:[#allocation94_spill] sm:$0xff] %v4832_v31  ;;  %7322 = vst [vmem:[#allocation96_spill] sm:$0xff] %v4842_v55  ;;  %v884_v9 = vadd.f32 %v883_v40, %v4832_v31  ;;  %v965_v61 = vmax.f32 %v964_v33, %v4832_v31  ;;  %v951_v38 = vrot.slane %v950_v29, 2  ;;  %v787_v8 = vpop.permute.xlu1 %786  ;;  %v870_v18 = vrot.slane %v869_v35, 2  ;;  %v3742_v31 = vld [vmem:[%s6938_s0 + $0x90] sm:$0xff] }
 0x1c4   :  { %v876_v0 = vadd.f32 %v875_v20, %v4837_v34  ;;  %v957_v14 = vmax.f32 %v956_v30, %v4837_v34  ;;  %v943_v16 = vmax.f32 %v941_v6, %v942_v42  ;;  %v4855_v26 = vmul.f32 %v3742_v31, %v792_v21  ;;  %v3744_v6 = vld [vmem:[%s6938_s0 + $0x80] sm:$0xff]  ;;  %v3745_v31 = vld [vmem:[%s6938_s0 + $0x88] sm:$0xff] }
 0x1c5   :  { %v885_v23 = vadd.f32 %v884_v9, %v4842_v55  ;;  %v966_v28 = vmax.f32 %v965_v61, %v4842_v55  ;;  %v952_v33 = vmax.f32 %v950_v29, %v951_v38  ;;  %v3743_v9 = vld [vmem:[%s6938_s0 + $0x98] sm:$0xff]  ;;  %v802_v52 = vpop.permute.xlu0 %801  ;;  %v4865_v29 = vmul.f32 %v3744_v6, %v787_v8 }
 0x1c6   :  { %v877_v41 = vrot.slane %v876_v0, 4  ;;  %v958_v10 = vrot.slane %v957_v14, 4  ;;  %7323 = vst [vmem:[#allocation97_spill] sm:$0xff] %v4855_v26  ;;  %v4860_v20 = vmul.f32 %v3743_v9, %v792_v21  ;;  %v4870_v42 = vmul.f32 %v3745_v31, %v787_v8  ;;  %v3747_v8 = vld [vmem:[%s6938_s0 + $0xb8] sm:$0xff]  ;;  %v3748_v31 = vld [vmem:[%s6938_s0 + $0xa0] sm:$0xff] }
 0x1c7   :  { %v886_v40 = vrot.slane %v885_v23, 4  ;;  %v967_v37 = vrot.slane %v966_v28, 4  ;;  %7325 = vst [vmem:[#allocation99_spill] sm:$0xff] %v4865_v29  ;;  %v797_v38 = vpop.permute.xlu1 %796  ;;  %v4872_v21 = vadd.f32 %v861_v4, %v860_v39  ;;  %v973_v9 = vmax.f32 %v4865_v29, %v4855_v26 }
 0x1c8   :  { %7324 = vst [vmem:[#allocation98_spill] sm:$0xff] %v4860_v20  ;;  %v878_v30 = vadd.f32 %v877_v41, %v876_v0  ;;  %v959_v55 = vmax.f32 %v957_v14, %v958_v10  ;;  %7326 = vst [vmem:[#allocation100_spill] sm:$0xff] %v4870_v42  ;;  %v4874_v41 = vadd.f32 %v870_v18, %v869_v35  ;;  %v944_v14 = vrot.slane %v943_v16, 1 }
 0x1c9   :  { %v887_v61 = vadd.f32 %v886_v40, %v885_v23  ;;  %v968_v34 = vmax.f32 %v966_v28, %v967_v37  ;;  %v953_v0 = vrot.slane %v952_v33, 1  ;;  %v3746_v28 = vld [vmem:[%s6938_s0 + $0xb0] sm:$0xff]  ;;  %v4884_v37 = vmul.f32 %v3747_v8, %v802_v52  ;;  %v812_v2 = vpop.permute.xlu0 %811 }
 0x1ca   :  { %v960_v10 = vrot.slane %v959_v55, 2  ;;  %v4879_v40 = vmul.f32 %v3746_v28, %v802_v52  ;;  %v879_v39 = vrot.slane %v878_v30, 2  ;;  %v892_v35 = vadd.f32 %v4855_v26, %v4865_v29  ;;  %v3749_v28 = vld [vmem:[%s6938_s0 + $0xa8] sm:$0xff] }
 0x1cb   :  { %v969_v23 = vrot.slane %v968_v34, 2  ;;  %7328 = vst [vmem:[#allocation102_spill] sm:$0xff] %v4884_v37  ;;  %v888_v4 = vrot.slane %v887_v61, 2  ;;  %v901_v18 = vadd.f32 %v4860_v20, %v4870_v42  ;;  %v982_v6 = vmax.f32 %v4870_v42, %v4860_v20  ;;  %v807_v47 = vpop.permute.xlu1 %806 }
 0x1cc   :  { %7327 = vst [vmem:[#allocation101_spill] sm:$0xff] %v4879_v40  ;;  %v4897_v52 = vmul.f32 %v3748_v31, %v797_v38  ;;  %v4902_v8 = vmul.f32 %v3749_v28, %v797_v38  ;;  %v961_v26 = vmax.f32 %v959_v55, %v960_v10  ;;  %v4910_v59 = vmax.f32 %v943_v16, %v944_v14  ;;  %v3750_v16 = vld [vmem:[%s6938_s0 + $0xc0] sm:$0xff] }
 0x1cd   :  { %v970_v29 = vmax.f32 %v968_v34, %v969_v23  ;;  %v4912_v57 = vmax.f32 %v952_v33, %v953_v0  ;;  %v4914_v38 = vadd.f32 %v879_v39, %v878_v30  ;;  %v4916_v28 = vadd.f32 %v888_v4, %v887_v61  ;;  %v3751_v30 = vld [vmem:[%s6938_s0 + $0xc8] sm:$0xff]  ;;  %v3752_v4 = vld [vmem:[%s6938_s0 + $0xd0] sm:$0xff]  ;;  %v822_v13 = vpop.permute.xlu0 %821 }
 0x1ce   :  { %7329 = vst [vmem:[#allocation103_spill] sm:$0xff] %v4897_v52  ;;  %7330 = vst [vmem:[#allocation104_spill] sm:$0xff] %v4902_v8  ;;  %v893_v20 = vadd.f32 %v892_v35, %v4897_v52  ;;  %v902_v42 = vadd.f32 %v901_v18, %v4902_v8  ;;  %v974_v17 = vmax.f32 %v973_v9, %v4897_v52  ;;  %v962_v35 = vrot.slane %v961_v26, 1 }
 0x1cf   :  { %v983_v31 = vmax.f32 %v982_v6, %v4902_v8  ;;  %v971_v18 = vrot.slane %v970_v29, 1  ;;  %v4925_v33 = vmul.f32 %v3750_v16, %v807_v47  ;;  %v881_v0 = vrot.slane %v4914_v38, 1 }
 0x1d0   :  { %v894_v34 = vadd.f32 %v893_v20, %v4879_v40  ;;  %v903_v55 = vadd.f32 %v902_v42, %v4884_v37  ;;  %v975_v10 = vmax.f32 %v974_v17, %v4879_v40  ;;  %v4930_v20 = vmul.f32 %v3751_v30, %v807_v47  ;;  %v3753_v47 = vld [vmem:[%s6938_s0 + $0xd8] sm:$0xff] }
 0x1d1   :  { %v984_v23 = vmax.f32 %v983_v31, %v4884_v37  ;;  %7331 = vst [vmem:[#allocation105_spill] sm:$0xff] %v4925_v33  ;;  %v890_v39 = vrot.slane %v4916_v28, 1  ;;  %v4937_v9 = vmul.f32 %v3752_v4, %v812_v2  ;;  %v4942_v6 = vmul.f32 %v3753_v47, %v812_v2  ;;  %v817_v37 = vpop.permute.xlu1 %816 }
 0x1d2   :  { %7332 = vst [vmem:[#allocation106_spill] sm:$0xff] %v4930_v20  ;;  %v895_v61 = vrot.slane %v894_v34, 4  ;;  %v904_v42 = vrot.slane %v903_v55, 4  ;;  %v976_v17 = vrot.slane %v975_v10, 4  ;;  %v963_v40 = vmax.f32 %v961_v26, %v962_v35  ;;  %v3754_v26 = vld [vmem:[%s6938_s0 + $0xe0] sm:$0xff] }
 0x1d3   :  { %v985_v14 = vrot.slane %v984_v23, 4  ;;  %7333 = vst [vmem:[#allocation107_spill] sm:$0xff] %v4937_v9  ;;  %7334 = vst [vmem:[#allocation108_spill] sm:$0xff] %v4942_v6  ;;  %v972_v8 = vmax.f32 %v970_v29, %v971_v18  ;;  %v910_v52 = vadd.f32 %v4937_v9, %v4925_v33  ;;  %v919_v4 = vadd.f32 %v4942_v6, %v4930_v20  ;;  %v3756_v18 = vld [vmem:[%s6938_s0 + $0xf0] sm:$0xff] }
 0x1d4   :  { %v896_v31 = vadd.f32 %v895_v61, %v894_v34  ;;  %v905_v16 = vadd.f32 %v904_v42, %v903_v55  ;;  %v977_v30 = vmax.f32 %v975_v10, %v976_v17  ;;  %v991_v2 = vmax.f32 %v4925_v33, %v4937_v9  ;;  %v3755_v55 = vld [vmem:[%s6938_s0 + $0xe8] sm:$0xff]  ;;  %v3757_v42 = vld [vmem:[%s6938_s0 + $0xf8] sm:$0xff]  ;;  %s7363_s0 = smov 14  }
 0x1d5   :  { %v986_v36 = vmax.f32 %v984_v23, %v985_v14  ;;  %v1000_v34 = vmax.f32 %v4930_v20, %v4942_v6  ;;  %v4955_v29 = vmul.f32 %v3754_v26, %v817_v37  ;;  %v4960_v10 = vmul.f32 %v3755_v55, %v817_v37 }
 0x1d6   :  { %v897_v54 = vrot.slane %v896_v31, 2  ;;  %v906_v62 = vrot.slane %v905_v16, 2  ;;  %v978_v22 = vrot.slane %v977_v30, 2  ;;  %v4965_v61 = vmul.f32 %v3756_v18, %v822_v13 }
 0x1d7   :  { %v987_v25 = vrot.slane %v986_v36, 2  ;;  %7335 = vst [vmem:[#allocation109_spill] sm:$0xff] %v4955_v29  ;;  %7336 = vst [vmem:[#allocation110_spill] sm:$0xff] %v4960_v10  ;;  %v4970_v17 = vmul.f32 %v3757_v42, %v822_v13  ;;  %v911_v14 = vadd.f32 %v910_v52, %v4955_v29  ;;  %v920_v47 = vadd.f32 %v919_v4, %v4960_v10 }
 0x1d8   :  { %v979_v23 = vmax.f32 %v977_v30, %v978_v22  ;;  %7337 = vst [vmem:[#allocation111_spill] sm:$0xff] %v4965_v61  ;;  %v992_v37 = vmax.f32 %v991_v2, %v4955_v29  ;;  %v898_v22 = vadd.f32 %v897_v54, %v896_v31  ;;  %v1036_v52 = vsel %vm1017_vm1, %v963_v40, %v4910_v59 }
 0x1d9   :  { %v988_v35 = vmax.f32 %v986_v36, %v987_v25  ;;  %7338 = vst [vmem:[#allocation112_spill] sm:$0xff] %v4970_v17  ;;  %v1001_v25 = vmax.f32 %v1000_v34, %v4960_v10  ;;  %v907_v36 = vadd.f32 %v906_v62, %v905_v16  ;;  %v912_v55 = vadd.f32 %v911_v14, %v4965_v61 }
 0x1da   :  { %v980_v30 = vrot.slane %v979_v23, 1  ;;  %v921_v18 = vadd.f32 %v920_v47, %v4970_v17  ;;  %v993_v6 = vmax.f32 %v992_v37, %v4965_v61  ;;  %v1039_v4 = vsel %vm1017_vm1, %v972_v8, %v4912_v57 }
 0x1db   :  { %v989_v26 = vrot.slane %v988_v35, 1  ;;  %v1002_v13 = vmax.f32 %v1001_v25, %v4970_v17  ;;  %v913_v54 = vrot.slane %v912_v55, 4  ;;  %v899_v42 = vrot.slane %v898_v22, 1 }
 0x1dc   :  { %v981_v2 = vmax.f32 %v979_v23, %v980_v30  ;;  %v922_v62 = vrot.slane %v921_v18, 4  ;;  %v994_v31 = vrot.slane %v993_v6, 4  ;;  %v908_v14 = vrot.slane %v907_v36, 1 }
 0x1dd   :  { %v990_v34 = vmax.f32 %v988_v35, %v989_v26  ;;  %v1003_v16 = vrot.slane %v1002_v13, 4  ;;  %v914_v61 = vadd.f32 %v913_v54, %v912_v55  ;;  %v882_v59 = vadd.f32 %v881_v0, %v4914_v38 }
 0x1de   :  { %v1037_v47 = vsel %vm1019_vm2, %v981_v2, %v1036_v52  ;;  %v923_v25 = vadd.f32 %v922_v62, %v921_v18  ;;  %v995_v17 = vmax.f32 %v993_v6, %v994_v31  ;;  %v891_v57 = vadd.f32 %v890_v39, %v4916_v28 }
 0x1df   :  { %v1040_v37 = vsel %vm1019_vm2, %v990_v34, %v1039_v4  ;;  %v1004_v10 = vmax.f32 %v1002_v13, %v1003_v16  ;;  %v915_v40 = vrot.slane %v914_v61, 2  ;;  %v7339_v30 = vrot.slane %v4872_v21, 1 }
 0x1e0   :  { %v924_v8 = vrot.slane %v923_v25, 2  ;;  %v996_v23 = vrot.slane %v995_v17, 2  ;;  %v7340_v52 = vrot.slane %v4874_v41, 1  ;;  %v900_v55 = vadd.f32 %v899_v42, %v898_v22 }
 0x1e1   :  { %v1005_v35 = vrot.slane %v1004_v10, 2  ;;  %v864_v26 = vadd.f32 %v7339_v30, %v4872_v21  ;;  %v909_v18 = vadd.f32 %v908_v14, %v907_v36  ;;  %v916_v6 = vadd.f32 %v915_v40, %v914_v61 }
 0x1e2   :  { %v873_v4 = vadd.f32 %v7340_v52, %v4874_v41  ;;  %v925_v13 = vadd.f32 %v924_v8, %v923_v25  ;;  %v997_v2 = vmax.f32 %v995_v17, %v996_v23  ;;  %v931_v0 = vmul.f32 0.03125, %v882_v59  ;;  %v7343_v8 = vld [vmem:[#allocation6_spill] sm:$0xff] }
 0x1e3   :  { %v1006_v38 = vmax.f32 %v1004_v10, %v1005_v35  ;;  %v932_v28 = vmul.f32 0.03125, %v891_v57  ;;  %v917_v39 = vrot.slane %v916_v6, 1  ;;  %v929_v31 = vmul.f32 0.03125, %v864_v26  ;;  %v7345_v35 = vld [vmem:[#allocation8_spill] sm:$0xff] }
 0x1e4   :  { %v926_v34 = vrot.slane %v925_v13, 1  ;;  %v998_v54 = vrot.slane %v997_v2, 1  ;;  %v930_v16 = vmul.f32 0.03125, %v873_v4  ;;  %v933_v21 = vmul.f32 0.03125, %v900_v55  ;;  %v7346_v4 = vld [vmem:[#allocation7_spill] sm:$0xff] }
 0x1e5   :  { %v1007_v62 = vrot.slane %v1006_v38, 1  ;;  %v934_v30 = vmul.f32 0.03125, %v909_v18  ;;  %v918_v29 = vadd.f32 %v917_v39, %v916_v6  ;;  %v1018_v61 = vsel %vm1017_vm1, %v931_v0, %v929_v31  ;;  %v7347_v6 = vld [vmem:[#allocation10_spill] sm:$0xff]  ;;  %v7349_v39 = vld [vmem:[#allocation12_spill] sm:$0xff] }
 0x1e6   :  { %v927_v9 = vadd.f32 %v926_v34, %v925_v13  ;;  %v999_v41 = vmax.f32 %v997_v2, %v998_v54  ;;  %v1023_v17 = vsel %vm1017_vm1, %v932_v28, %v930_v16  ;;  %v1020_v25 = vsel %vm1019_vm2, %v933_v21, %v1018_v61  ;;  %v7351_v21 = vld [vmem:[#allocation14_spill] sm:$0xff] }
 0x1e7   :  { %v1008_v22 = vmax.f32 %v1006_v38, %v1007_v62  ;;  %v935_v10 = vmul.f32 0.03125, %v918_v29  ;;  %v1024_v59 = vsel %vm1019_vm2, %v934_v30, %v1023_v17  ;;  %v7348_v38 = vld [vmem:[#allocation9_spill] sm:$0xff]  ;;  %v7350_v62 = vld [vmem:[#allocation11_spill] sm:$0xff]  ;;  %vm7182_vm1 = vcmask 384000  }
 0x1e8   :  { %v936_v36 = vmul.f32 0.03125, %v927_v9  ;;  %v4997_v42 = vsel %vm1021_vm3, %v999_v41, %v1037_v47  ;;  %v7344_v47 = vld [vmem:[#allocation5_spill] sm:$0xff]  ;;  %vm7189_vm2 = vcmask 375808  }
 0x1e9   :  { %v5000_v14 = vsel %vm1021_vm3, %v1008_v22, %v1040_v37  ;;  %v5005_v57 = vsel %vm1021_vm3, %v935_v10, %v1020_v25  ;;  %v7352_v22 = vld [vmem:[#allocation13_spill] sm:$0xff]  ;;  %v7353_v10 = vld [vmem:[#allocation16_spill] sm:$0xff] }
 0x1ea   :  { %7341 = vst [vmem:[#allocation113_spill] sm:$0xff] %v5005_v57  ;;  %v5008_v40 = vsel %vm1021_vm3, %v936_v36, %v1024_v59  ;;  %v1128_v9 = vmul.f32 %v7343_v8, %v5005_v57  ;;  %v1155_v37 = vmul.f32 %v7344_v47, %v5005_v57  ;;  %v1182_v52 = vmul.f32 %v7345_v35, %v5005_v57  ;;  %v7354_v59 = vld [vmem:[#allocation15_spill] sm:$0xff] }
 0x1eb   :  { %7342 = vst [vmem:[#allocation114_spill] sm:$0xff] %v5008_v40  ;;  %v1129_v29 = vmul.f32 %v7343_v8, %v5008_v40  ;;  %v1156_v23 = vmul.f32 %v7344_v47, %v5008_v40  ;;  %v1183_v26 = vmul.f32 %v7345_v35, %v5008_v40  ;;  %v1209_v55 = vmul.f32 %v7346_v4, %v5005_v57 }
 0x1ec   :  { %1139 = vrot.lane.b32.xlu0 %v1128_v9, %s3775_s28  ;;  %v1210_v18 = vmul.f32 %v7346_v4, %v5008_v40  ;;  %v1237_v13 = vmul.f32 %v7347_v6, %v5008_v40  ;;  %v1236_v2 = vmul.f32 %v7347_v6, %v5005_v57  ;;  %v1263_v0 = vmul.f32 %v7348_v38, %v5005_v57  ;;  %v7355_v9 = vld [vmem:[#allocation18_spill] sm:$0xff] }
 0x1ed   :  { %1141 = vrot.lane.b32.xlu1 %v1129_v29, %s3775_s28  ;;  %v1264_v28 = vmul.f32 %v7348_v38, %v5008_v40  ;;  %v1291_v34 = vmul.f32 %v7349_v39, %v5008_v40  ;;  %v1290_v54 = vmul.f32 %v7349_v39, %v5005_v57  ;;  %v1317_v31 = vmul.f32 %v7350_v62, %v5005_v57 }
 0x1ee   :  { %v1318_v16 = vmul.f32 %v7350_v62, %v5008_v40  ;;  %v1341_v30 = vmul.f32 %v7351_v21, %v5008_v40  ;;  %v1340_v41 = vmul.f32 %v7351_v21, %v5005_v57  ;;  %v1363_v61 = vmul.f32 %v7352_v22, %v5005_v57 }
 0x1ef   :  { %v1364_v17 = vmul.f32 %v7352_v22, %v5008_v40  ;;  %v1387_v36 = vmul.f32 %v7353_v10, %v5008_v40  ;;  %v1386_v25 = vmul.f32 %v7353_v10, %v5005_v57  ;;  %v1409_v8 = vmul.f32 %v7354_v59, %v5005_v57 }
 0x1f0   :  { %1168 = vrot.lane.b32.xlu0 %v1156_v23, %s3774_s26  ;;  %v1410_v29 = vmul.f32 %v7354_v59, %v5008_v40  ;;  %v1433_v47 = vmul.f32 %v7355_v9, %v5008_v40  ;;  %v7356_v23 = vld [vmem:[#allocation17_spill] sm:$0xff] }
 0x1f1   :  { %1166 = vrot.lane.b32.xlu1 %v1155_v37, %s3774_s26  ;;  %v1432_v37 = vmul.f32 %v7355_v9, %v5005_v57  ;;  %v1455_v35 = vmul.f32 %v7356_v23, %v5005_v57 }
 0x1f4   :  { %1193 = vrot.lane.b32.xlu0 %v1182_v52, %s3777_s7  ;;  %v7357_v52 = vld [vmem:[#allocation20_spill] sm:$0xff] }
 0x1f5   :  { %1195 = vrot.lane.b32.xlu1 %v1183_v26, %s3777_s7  ;;  %v1456_v26 = vmul.f32 %v7356_v23, %v5008_v40  ;;  %v1479_v4 = vmul.f32 %v7357_v52, %v5008_v40 }
 0x1f8   :  { %1222 = vrot.lane.b32.xlu0 %v1210_v18, %s3776_s30  ;;  %v7358_v18 = vld [vmem:[#allocation19_spill] sm:$0xff] }
 0x1f9   :  { %1220 = vrot.lane.b32.xlu1 %v1209_v55, %s3776_s30  ;;  %v1478_v55 = vmul.f32 %v7357_v52, %v5005_v57  ;;  %v1501_v6 = vmul.f32 %v7358_v18, %v5005_v57 }
 0x1fc   :  { %1247 = vrot.lane.b32.xlu0 %v1236_v2, %s3779_s11  ;;  %v7359_v2 = vld [vmem:[#allocation22_spill] sm:$0xff] }
 0x1fd   :  { %1249 = vrot.lane.b32.xlu1 %v1237_v13, %s3779_s11  ;;  %v1502_v13 = vmul.f32 %v7358_v18, %v5008_v40  ;;  %v1525_v38 = vmul.f32 %v7359_v2, %v5008_v40 }
 0x200   :  { %1276 = vrot.lane.b32.xlu0 %v1264_v28, %s3778_s9  ;;  %v7360_v28 = vld [vmem:[#allocation21_spill] sm:$0xff] }
 0x201   :  { %1274 = vrot.lane.b32.xlu1 %v1263_v0, %s3778_s9  ;;  %v1524_v0 = vmul.f32 %v7359_v2, %v5005_v57  ;;  %v1547_v39 = vmul.f32 %v7360_v28, %v5005_v57 }
 0x204   :  { %1301 = vrot.lane.b32.xlu0 %v1290_v54, %s3781_s15  ;;  %v7361_v54 = vld [vmem:[#allocation24_spill] sm:$0xff] }
 0x205   :  { %1303 = vrot.lane.b32.xlu1 %v1291_v34, %s3781_s15  ;;  %v1548_v34 = vmul.f32 %v7360_v28, %v5008_v40  ;;  %v1571_v62 = vmul.f32 %v7361_v54, %v5008_v40 }
 0x208   :  { %1326 = vrot.lane.b32.xlu0 %v1318_v16, %s3780_s13  ;;  %v7362_v16 = vld [vmem:[#allocation23_spill] sm:$0xff] }
 0x209   :  { %1324 = vrot.lane.b32.xlu1 %v1317_v31, %s3780_s13  ;;  %v1570_v31 = vmul.f32 %v7361_v54, %v5005_v57  ;;  %v1593_v21 = vmul.f32 %v7362_v16, %v5005_v57 }
 0x20c   :  { %1347 = vrot.lane.b32.xlu0 %v1340_v41, %s7107_s1  ;;  %v7364_v41 = vld [vmem:[#allocation25_spill] sm:$0xff] }
 0x20d   :  { %1349 = vrot.lane.b32.xlu1 %v1341_v30, %s7107_s1  ;;  %v1594_v30 = vmul.f32 %v7362_v16, %v5008_v40  ;;  %v1617_v22 = vmul.f32 %v7364_v41, %v5008_v40  ;;  %s7111_s1 = smov 94  }
 0x210   :  { %1372 = vrot.lane.b32.xlu0 %v1364_v17, %s7105_s17  ;;  %v7365_v17 = vld [vmem:[#allocation26_spill] sm:$0xff] }
 0x211   :  { %1370 = vrot.lane.b32.xlu1 %v1363_v61, %s7105_s17  ;;  %v1616_v61 = vmul.f32 %v7364_v41, %v5005_v57  ;;  %v1639_v10 = vmul.f32 %v7365_v17, %v5005_v57  ;;  %v7386_v41 = vld [vmem:[#allocation35_spill] sm:$0xff]  ;;  %s7109_s17 = smov 95  }
 0x214   :  { %1393 = vrot.lane.b32.xlu0 %v1386_v25, %s7103_s22  ;;  %v7367_v25 = vld [vmem:[#allocation27_spill] sm:$0xff] }
 0x215   :  { %1395 = vrot.lane.b32.xlu1 %v1387_v36, %s7103_s22  ;;  %v1640_v36 = vmul.f32 %v7365_v17, %v5008_v40  ;;  %v1663_v59 = vmul.f32 %v7367_v25, %v5008_v40  ;;  %s3538_s22 = sld [smem:[#allocation2 + $0x29]] }
 0x218   :  { %1418 = vrot.lane.b32.xlu0 %v1410_v29, %s7101_s20  ;;  %v7369_v29 = vld [vmem:[#allocation28_spill] sm:$0xff] }
 0x219   :  { %1416 = vrot.lane.b32.xlu1 %v1409_v8, %s7101_s20  ;;  %v1662_v8 = vmul.f32 %v7367_v25, %v5005_v57  ;;  %v1685_v9 = vmul.f32 %v7369_v29, %v5005_v57  ;;  %s7415_s20 = smov 96  }
 0x21c   :  { %1439 = vrot.lane.b32.xlu0 %v1432_v37, %s7099_s24  ;;  %v7371_v37 = vld [vmem:[#allocation29_spill] sm:$0xff] }
 0x21d   :  { %1441 = vrot.lane.b32.xlu1 %v1433_v47, %s7099_s24  ;;  %v1686_v47 = vmul.f32 %v7369_v29, %v5008_v40  ;;  %v1714_v23 = vmul.f32 %v7371_v37, %v5005_v57  ;;  %s7411_s24 = smov 97  }
 0x220   :  { %1464 = vrot.lane.b32.xlu0 %v1456_v26, %s7097_s23  ;;  %v7373_v26 = vld [vmem:[#allocation30_spill] sm:$0xff] }
 0x221   :  { %1462 = vrot.lane.b32.xlu1 %v1455_v35, %s7097_s23  ;;  %v1715_v35 = vmul.f32 %v7371_v37, %v5008_v40  ;;  %v1738_v52 = vmul.f32 %v7373_v26, %v5008_v40  ;;  %s3537_s23 = sld [smem:[#allocation2 + $0x28]] }
 0x224   :  { %1485 = vrot.lane.b32.xlu0 %v1478_v55, %s7095_s27  ;;  %v7375_v55 = vld [vmem:[#allocation31_spill] sm:$0xff] }
 0x225   :  { %1487 = vrot.lane.b32.xlu1 %v1479_v4, %s7095_s27  ;;  %v1737_v4 = vmul.f32 %v7373_v26, %v5005_v57  ;;  %v1760_v18 = vmul.f32 %v7375_v55, %v5005_v57  ;;  %v7398_v26 = vld [vmem:[#allocation38_spill] sm:$0xff]  ;;  %s7407_s27 = smov 98  }
 0x228   :  { %1510 = vrot.lane.b32.xlu0 %v1502_v13, %s7093_s25  ;;  %v7377_v13 = vld [vmem:[#allocation32_spill] sm:$0xff] }
 0x229   :  { %1508 = vrot.lane.b32.xlu1 %v1501_v6, %s7093_s25  ;;  %v1761_v6 = vmul.f32 %v7375_v55, %v5008_v40  ;;  %v1784_v2 = vmul.f32 %v7377_v13, %v5008_v40  ;;  %s3536_s25 = sld [smem:[#allocation2 + $0x27]] }
 0x22c   :  { %1531 = vrot.lane.b32.xlu0 %v1524_v0, %s7091_s6  ;;  %v7379_v0 = vld [vmem:[#allocation33_spill] sm:$0xff] }
 0x22d   :  { %1533 = vrot.lane.b32.xlu1 %v1525_v38, %s7091_s6  ;;  %v1783_v38 = vmul.f32 %v7377_v13, %v5005_v57  ;;  %v1806_v28 = vmul.f32 %v7379_v0, %v5005_v57  ;;  %s7403_s6 = smov 99  }
 0x230   :  { %1556 = vrot.lane.b32.xlu0 %v1548_v34, %s7089_s29 }
 0x231   :  { %1554 = vrot.lane.b32.xlu1 %v1547_v39, %s7089_s29  ;;  %v1807_v39 = vmul.f32 %v7379_v0, %v5008_v40  ;;  %s7399_s29 = smov 109  }
 0x234   :  { %1577 = vrot.lane.b32.xlu0 %v1570_v31, %s7087_s10 }
 0x235   :  { %1579 = vrot.lane.b32.xlu1 %v1571_v62, %s7087_s10  ;;  %v7382_v62 = vld [vmem:[#allocation34_spill] sm:$0xff]  ;;  %s7395_s10 = smov 110  }
 0x236   :  { %v1830_v31 = vmul.f32 %v7382_v62, %v5008_v40  ;;  %v1829_v16 = vmul.f32 %v7382_v62, %v5005_v57 }
 0x238   :  { %1602 = vrot.lane.b32.xlu0 %v1594_v30, %s7363_s0 }
 0x239   :  { %1600 = vrot.lane.b32.xlu1 %v1593_v21, %s7363_s0 }
 0x23c   :  { %1623 = vrot.lane.b32.xlu0 %v1616_v61, %s7085_s19  ;;  %v1853_v61 = vmul.f32 %v7386_v41, %v5008_v40 }
 0x23d   :  { %1625 = vrot.lane.b32.xlu1 %v1617_v22, %s7085_s19  ;;  %v1852_v22 = vmul.f32 %v7386_v41, %v5005_v57  ;;  %s7391_s19 = smov 111   ;;  %v7410_v41 = vld [vmem:[#allocation41_spill] sm:$0xff] }
 0x240   :  { %1648 = vrot.lane.b32.xlu0 %v1640_v36, %s7366_s16  ;;  %v7390_v36 = vld [vmem:[#allocation36_spill] sm:$0xff] }
 0x241   :  { %1646 = vrot.lane.b32.xlu1 %v1639_v10, %s7366_s16  ;;  %v1876_v25 = vmul.f32 %v7390_v36, %v5008_v40 }
 0x244   :  { %1669 = vrot.lane.b32.xlu0 %v1662_v8, %s7368_s2 }
 0x245   :  { %1671 = vrot.lane.b32.xlu1 %v1663_v59, %s7368_s2  ;;  %v1875_v59 = vmul.f32 %v7390_v36, %v5005_v57 }
 0x248   :  { %1694 = vrot.lane.b32.xlu0 %v1686_v47, %s7370_s8 }
 0x249   :  { %1692 = vrot.lane.b32.xlu1 %v1685_v9, %s7370_s8  ;;  %v7394_v9 = vld [vmem:[#allocation37_spill] sm:$0xff] }
 0x24a   :  { %v1898_v47 = vmul.f32 %v7394_v9, %v5005_v57  ;;  %v1899_v37 = vmul.f32 %v7394_v9, %v5008_v40 }
 0x24c   :  { %1722 = vrot.lane.b32.xlu0 %v1715_v35, %s7372_s14 }
 0x24d   :  { %1720 = vrot.lane.b32.xlu1 %v1714_v23, %s7372_s14 }
 0x250   :  { %1743 = vrot.lane.b32.xlu0 %v1737_v4, %s7374_s21  ;;  %v1921_v4 = vmul.f32 %v7398_v26, %v5005_v57 }
 0x251   :  { %1745 = vrot.lane.b32.xlu1 %v1738_v52, %s7374_s21  ;;  %v1922_v52 = vmul.f32 %v7398_v26, %v5008_v40 }
 0x254   :  { %1768 = vrot.lane.b32.xlu0 %v1761_v6, %s7376_s12  ;;  %v7402_v6 = vld [vmem:[#allocation39_spill] sm:$0xff] }
 0x255   :  { %1766 = vrot.lane.b32.xlu1 %v1760_v18, %s7376_s12  ;;  %v1944_v13 = vmul.f32 %v7402_v6, %v5005_v57 }
 0x258   :  { %1789 = vrot.lane.b32.xlu0 %v1783_v38, %s7378_s3 }
 0x259   :  { %1791 = vrot.lane.b32.xlu1 %v1784_v2, %s7378_s3  ;;  %v1945_v2 = vmul.f32 %v7402_v6, %v5008_v40 }
 0x25c   :  { %1814 = vrot.lane.b32.xlu0 %v1807_v39, %s7083_s18 }
 0x25d   :  { %1812 = vrot.lane.b32.xlu1 %v1806_v28, %s7083_s18  ;;  %s7387_s18 = smov 112   ;;  %v7406_v28 = vld [vmem:[#allocation40_spill] sm:$0xff] }
 0x25e   :  { %v5186_v54 = vpop.permute.xlu0 %1139  ;;  %v1968_v39 = vmul.f32 %v7406_v28, %v5008_v40  ;;  %v1967_v62 = vmul.f32 %v7406_v28, %v5005_v57 }
 0x25f   :  { %v5184_v34 = vpop.permute.xlu1 %1141  ;;  %7381 = vst [vmem:[#allocation5_spill] sm:$0xff] %v5186_v54 }
 0x260   :  { %7380 = vst [vmem:[#allocation6_spill] sm:$0xff] %v5184_v34  ;;  %1835 = vrot.lane.b32.xlu0 %v1829_v16, %s7383_s5 }
 0x261   :  { %1837 = vrot.lane.b32.xlu1 %v1830_v31, %s7383_s5 }
 0x262   :  { %v5196_v30 = vpop.permute.xlu0 %1168 }
 0x263   :  { %v5194_v21 = vpop.permute.xlu1 %1166  ;;  %7385 = vst [vmem:[#allocation7_spill] sm:$0xff] %v5196_v30 }
 0x264   :  { %7384 = vst [vmem:[#allocation8_spill] sm:$0xff] %v5194_v21  ;;  %1860 = vrot.lane.b32.xlu0 %v1853_v61, %s7387_s18  ;;  %v1991_v61 = vmul.f32 %v7410_v41, %v5008_v40 }
 0x265   :  { %1858 = vrot.lane.b32.xlu1 %v1852_v22, %s7387_s18  ;;  %v1990_v22 = vmul.f32 %v7410_v41, %v5005_v57 }
 0x266   :  { %v5206_v10 = vpop.permute.xlu0 %1193 }
 0x267   :  { %v5204_v17 = vpop.permute.xlu1 %1195  ;;  %7389 = vst [vmem:[#allocation9_spill] sm:$0xff] %v5206_v10 }
 0x268   :  { %7388 = vst [vmem:[#allocation10_spill] sm:$0xff] %v5204_v17  ;;  %1881 = vrot.lane.b32.xlu0 %v1875_v59, %s7391_s19  ;;  %v7414_v59 = vld [vmem:[#allocation42_spill] sm:$0xff] }
 0x269   :  { %1883 = vrot.lane.b32.xlu1 %v1876_v25, %s7391_s19  ;;  %v2014_v9 = vmul.f32 %v7414_v59, %v5008_v40 }
 0x26a   :  { %v5216_v29 = vpop.permute.xlu0 %1222 }
 0x26b   :  { %v5214_v8 = vpop.permute.xlu1 %1220  ;;  %7393 = vst [vmem:[#allocation11_spill] sm:$0xff] %v5216_v29 }
 0x26c   :  { %7392 = vst [vmem:[#allocation12_spill] sm:$0xff] %v5214_v8  ;;  %1906 = vrot.lane.b32.xlu0 %v1899_v37, %s7395_s10  ;;  %v2035_v37 = vstv %s3536_s25  ;;  %s3539_s25 = sld [smem:[#allocation2 + $0x2a]] }
 0x26d   :  { %1904 = vrot.lane.b32.xlu1 %v1898_v47, %s7395_s10  ;;  %v2013_v47 = vmul.f32 %v7414_v59, %v5005_v57  ;;  %v2037_v6 = vmul.f32 %v2035_v37, %v5008_v40 }
 0x26e   :  { %v5226_v35 = vpop.permute.xlu0 %1247 }
 0x26f   :  { %v5224_v23 = vpop.permute.xlu1 %1249  ;;  %7397 = vst [vmem:[#allocation13_spill] sm:$0xff] %v5226_v35 }
 0x270   :  { %7396 = vst [vmem:[#allocation14_spill] sm:$0xff] %v5224_v23  ;;  %1927 = vrot.lane.b32.xlu0 %v1921_v4, %s7399_s29  ;;  %v2036_v4 = vmul.f32 %v2035_v37, %v5005_v57 }
 0x271   :  { %1929 = vrot.lane.b32.xlu1 %v1922_v52, %s7399_s29 }
 0x272   :  { %v5236_v18 = vpop.permute.xlu0 %1276 }
 0x273   :  { %v5234_v55 = vpop.permute.xlu1 %1274  ;;  %7401 = vst [vmem:[#allocation15_spill] sm:$0xff] %v5236_v18 }
 0x274   :  { %7400 = vst [vmem:[#allocation16_spill] sm:$0xff] %v5234_v55  ;;  %1952 = vrot.lane.b32.xlu0 %v1945_v2, %s7403_s6  ;;  %v2038_v2 = vmul.f32 0.0, %v2035_v37 }
 0x275   :  { %1950 = vrot.lane.b32.xlu1 %v1944_v13, %s7403_s6  ;;  %v2058_v13 = vstv %s3537_s23  ;;  %s3540_s23 = sld [smem:[#allocation2 + $0x2b]] }
 0x276   :  { %v5246_v0 = vpop.permute.xlu0 %1301  ;;  %v2061_v41 = vmul.f32 0.0, %v2058_v13  ;;  %v2060_v59 = vmul.f32 %v2058_v13, %v5008_v40 }
 0x277   :  { %v5244_v38 = vpop.permute.xlu1 %1303  ;;  %7405 = vst [vmem:[#allocation17_spill] sm:$0xff] %v5246_v0  ;;  %v7171_v0 = vlaneseq }
 0x278   :  { %7404 = vst [vmem:[#allocation18_spill] sm:$0xff] %v5244_v38  ;;  %1973 = vrot.lane.b32.xlu0 %v1967_v62, %s7407_s27  ;;  %v2059_v62 = vmul.f32 %v2058_v13, %v5005_v57 }
 0x279   :  { %1975 = vrot.lane.b32.xlu1 %v1968_v39, %s7407_s27 }
 0x27a   :  { %v5256_v16 = vpop.permute.xlu0 %1326 }
 0x27b   :  { %v5254_v31 = vpop.permute.xlu1 %1324  ;;  %7409 = vst [vmem:[#allocation19_spill] sm:$0xff] %v5256_v16 }
 0x27c   :  { %7408 = vst [vmem:[#allocation20_spill] sm:$0xff] %v5254_v31  ;;  %1998 = vrot.lane.b32.xlu0 %v1991_v61, %s7411_s24 }
 0x27d   :  { %1996 = vrot.lane.b32.xlu1 %v1990_v22, %s7411_s24 }
 0x27e   :  { %v5266_v25 = vpop.permute.xlu0 %1347 }
 0x27f   :  { %v5264_v36 = vpop.permute.xlu1 %1349  ;;  %7413 = vst [vmem:[#allocation21_spill] sm:$0xff] %v5266_v25 }
 0x280   :  { %7412 = vst [vmem:[#allocation22_spill] sm:$0xff] %v5264_v36  ;;  %2019 = vrot.lane.b32.xlu0 %v2013_v47, %s7415_s20 }
 0x281   :  { %2021 = vrot.lane.b32.xlu1 %v2014_v9, %s7415_s20  ;;  %v2081_v9 = vstv %s3538_s22  ;;  %s3541_s22 = sld [smem:[#allocation2 + $0x2c]] }
 0x282   :  { %v5276_v52 = vpop.permute.xlu0 %1372  ;;  %v2084_v13 = vmul.f32 0.0, %v2081_v9 }
 0x283   :  { %v5274_v26 = vpop.permute.xlu1 %1370  ;;  %7417 = vst [vmem:[#allocation23_spill] sm:$0xff] %v5276_v52 }
 0x284   :  { %7416 = vst [vmem:[#allocation24_spill] sm:$0xff] %v5274_v26  ;;  %2044 = vrot.lane.b32.xlu0 %v2037_v6, %s7109_s17  ;;  %v2083_v6 = vmul.f32 %v2081_v9, %v5008_v40 }
 0x285   :  { %2042 = vrot.lane.b32.xlu1 %v2036_v4, %s7109_s17  ;;  %v2082_v4 = vmul.f32 %v2081_v9, %v5005_v57  ;;  %v2127_v9 = vstv %s3540_s23  ;;  %s3543_s23 = sld [smem:[#allocation2 + $0x2e]] }
 0x286   :  { %v5284_v39 = vpop.permute.xlu0 %1393 }
 0x287   :  { %v5282_v28 = vpop.permute.xlu1 %1395  ;;  %7419 = vst [vmem:[#allocation26_spill] sm:$0xff] %v5284_v39  ;;  %v2150_v63 = vstv %s3541_s22  ;;  %s3544_s22 = sld [smem:[#allocation2 + $0x2f]] }
 0x288   :  { %7418 = vst [vmem:[#allocation25_spill] sm:$0xff] %v5282_v28  ;;  %2065 = vrot.lane.b32.xlu0 %v2059_v62, %s7111_s1  ;;  %v2153_v45 = vmul.f32 0.0, %v2150_v63 }
 0x289   :  { %2046 = vrot.lane.b32.xlu1 %v2038_v2, %s7109_s17  ;;  %v2104_v2 = vstv %s3539_s25  ;;  %s7115_s17 = smov 93   ;;  %s3542_s25 = sld [smem:[#allocation2 + $0x2d]] }
 0x28a   :  { %v5291_v61 = vpop.permute.xlu0 %1418  ;;  %v2107_v20 = vmul.f32 0.0, %v2104_v2 }
 0x28b   :  { %v5289_v22 = vpop.permute.xlu1 %1416  ;;  %7421 = vst [vmem:[#allocation28_spill] sm:$0xff] %v5291_v61  ;;  %v2196_v48 = vstv %s3543_s23  ;;  %s3546_s23 = sld [smem:[#allocation2 + $0x31]] }
 0x28c   :  { %7420 = vst [vmem:[#allocation27_spill] sm:$0xff] %v5289_v22  ;;  %2069 = vrot.lane.b32.xlu0 %v2061_v41, %s7111_s1  ;;  %v2105_v41 = vmul.f32 %v2104_v2, %v5005_v57 }
 0x28d   :  { %2067 = vrot.lane.b32.xlu1 %v2060_v59, %s7111_s1  ;;  %s7117_s1 = smov 83  }
 0x28e   :  { %v5298_v37 = vpop.permute.xlu0 %1439 }
 0x28f   :  { %v5296_v47 = vpop.permute.xlu1 %1441  ;;  %7423 = vst [vmem:[#allocation30_spill] sm:$0xff] %v5298_v37 }
 0x290   :  { %7422 = vst [vmem:[#allocation29_spill] sm:$0xff] %v5296_v47  ;;  %2090 = vrot.lane.b32.xlu0 %v2083_v6, %s7115_s17 }
 0x291   :  { %2088 = vrot.lane.b32.xlu1 %v2082_v4, %s7115_s17  ;;  %v2106_v4 = vmul.f32 %v2104_v2, %v5008_v40  ;;  %v2130_v2 = vmul.f32 0.0, %v2127_v9 }
 0x292   :  { %v5306_v59 = vpop.permute.xlu0 %1464 }
 0x293   :  { %v5304_v62 = vpop.permute.xlu1 %1462  ;;  %7425 = vst [vmem:[#allocation32_spill] sm:$0xff] %v5306_v59 }
 0x294   :  { %7424 = vst [vmem:[#allocation31_spill] sm:$0xff] %v5304_v62  ;;  %2111 = vrot.lane.b32.xlu0 %v2105_v41, %s7117_s1  ;;  %v2129_v41 = vmul.f32 %v2127_v9, %v5008_v40 }
 0x295   :  { %2092 = vrot.lane.b32.xlu1 %v2084_v13, %s7115_s17  ;;  %v2128_v13 = vmul.f32 %v2127_v9, %v5005_v57  ;;  %s7119_s17 = smov 82   ;;  %v2173_v9 = vstv %s3542_s25  ;;  %s3545_s25 = sld [smem:[#allocation2 + $0x30]] }
 0x296   :  { %v5313_v11 = vpop.permute.xlu0 %1485 }
 0x297   :  { %v5311_v33 = vpop.permute.xlu1 %1487  ;;  %7427 = vst [vmem:[#allocation34_spill] sm:$0xff] %v5313_v11 }
 0x298   :  { %7426 = vst [vmem:[#allocation33_spill] sm:$0xff] %v5311_v33  ;;  %2115 = vrot.lane.b32.xlu0 %v2107_v20, %s7117_s1  ;;  %v2151_v20 = vmul.f32 %v2150_v63, %v5005_v57 }
 0x299   :  { %2113 = vrot.lane.b32.xlu1 %v2106_v4, %s7117_s1  ;;  %s7121_s1 = smov 81  }
 0x29a   :  { %v5320_v49 = vpop.permute.xlu0 %1510 }
 0x29b   :  { %v5318_v6 = vpop.permute.xlu1 %1508  ;;  %7429 = vst [vmem:[#allocation36_spill] sm:$0xff] %v5320_v49 }
 0x29c   :  { %7428 = vst [vmem:[#allocation35_spill] sm:$0xff] %v5318_v6  ;;  %2136 = vrot.lane.b32.xlu0 %v2129_v41, %s7119_s17 }
 0x29d   :  { %2134 = vrot.lane.b32.xlu1 %v2128_v13, %s7119_s17  ;;  %v2152_v13 = vmul.f32 %v2150_v63, %v5008_v40  ;;  %v2176_v63 = vmul.f32 0.0, %v2173_v9 }
 0x29e   :  { %v5328_v4 = vpop.permute.xlu0 %1531 }
 0x29f   :  { %v5326_v44 = vpop.permute.xlu1 %1533  ;;  %7431 = vst [vmem:[#allocation38_spill] sm:$0xff] %v5328_v4 }
 0x2a0   :  { %7430 = vst [vmem:[#allocation37_spill] sm:$0xff] %v5326_v44  ;;  %2157 = vrot.lane.b32.xlu0 %v2151_v20, %s7121_s1  ;;  %v2175_v20 = vmul.f32 %v2173_v9, %v5008_v40 }
 0x2a1   :  { %2138 = vrot.lane.b32.xlu1 %v2130_v2, %s7119_s17  ;;  %v2174_v2 = vmul.f32 %v2173_v9, %v5005_v57  ;;  %s7126_s17 = smov 80   ;;  %v2219_v9 = vstv %s3544_s22  ;;  %s3547_s22 = sld [smem:[#allocation2 + $0x32]] }
 0x2a2   :  { %v5335_v53 = vpop.permute.xlu0 %1556 }
 0x2a3   :  { %v5333_v5 = vpop.permute.xlu1 %1554  ;;  %7433 = vst [vmem:[#allocation40_spill] sm:$0xff] %v5335_v53 }
 0x2a4   :  { %7432 = vst [vmem:[#allocation39_spill] sm:$0xff] %v5333_v5  ;;  %2161 = vrot.lane.b32.xlu0 %v2153_v45, %s7121_s1  ;;  %v2197_v45 = vmul.f32 %v2196_v48, %v5005_v57 }
 0x2a5   :  { %2159 = vrot.lane.b32.xlu1 %v2152_v13, %s7121_s1  ;;  %s7128_s1 = smov 79  }
 0x2a6   :  { %v5342_v59 = vpop.permute.xlu0 %1577 }
 0x2a7   :  { %v5340_v41 = vpop.permute.xlu1 %1579  ;;  %7435 = vst [vmem:[#allocation42_spill] sm:$0xff] %v5342_v59 }
 0x2a8   :  { %7434 = vst [vmem:[#allocation41_spill] sm:$0xff] %v5340_v41  ;;  %2182 = vrot.lane.b32.xlu0 %v2175_v20, %s7126_s17  ;;  %v2199_v41 = vmul.f32 0.0, %v2196_v48 }
 0x2a9   :  { %2180 = vrot.lane.b32.xlu1 %v2174_v2, %s7126_s17  ;;  %v2198_v2 = vmul.f32 %v2196_v48, %v5008_v40  ;;  %v2222_v48 = vmul.f32 0.0, %v2219_v9 }
 0x2aa   :  { %v5350_v13 = vpop.permute.xlu0 %1602 }
 0x2ab   :  { %v5348_v53 = vpop.permute.xlu1 %1600  ;;  %7437 = vst [vmem:[#allocation116_spill] sm:$0xff] %v5350_v13 }
 0x2ac   :  { %7436 = vst [vmem:[#allocation115_spill] sm:$0xff] %v5348_v53  ;;  %2203 = vrot.lane.b32.xlu0 %v2197_v45, %s7128_s1  ;;  %v2221_v45 = vmul.f32 %v2219_v9, %v5008_v40  ;;  %v2242_v53 = vstv %s3545_s25  ;;  %s3548_s25 = sld [smem:[#allocation2 + $0x33]] }
 0x2ad   :  { %2184 = vrot.lane.b32.xlu1 %v2176_v63, %s7126_s17  ;;  %v2220_v63 = vmul.f32 %v2219_v9, %v5005_v57  ;;  %s3820_s17 = smov 78   ;;  %v2265_v9 = vstv %s3546_s23  ;;  %s3549_s23 = sld [smem:[#allocation2 + $0x34]] }
 0x2ae   :  { %v5357_v5 = vpop.permute.xlu0 %1623 }
 0x2af   :  { %v5355_v59 = vpop.permute.xlu1 %1625  ;;  %7439 = vst [vmem:[#allocation118_spill] sm:$0xff] %v5357_v5  ;;  %v2245_v5 = vmul.f32 0.0, %v2242_v53 }
 0x2b0   :  { %7438 = vst [vmem:[#allocation117_spill] sm:$0xff] %v5355_v59  ;;  %2207 = vrot.lane.b32.xlu0 %v2199_v41, %s7128_s1  ;;  %v2243_v41 = vmul.f32 %v2242_v53, %v5005_v57 }
 0x2b1   :  { %2205 = vrot.lane.b32.xlu1 %v2198_v2, %s7128_s1  ;;  %s3821_s1 = smov 77  }
 0x2b2   :  { %v5364_v13 = vpop.permute.xlu0 %1648 }
 0x2b3   :  { %v5362_v20 = vpop.permute.xlu1 %1646  ;;  %7441 = vst [vmem:[#allocation120_spill] sm:$0xff] %v5364_v13 }
 0x2b4   :  { %7440 = vst [vmem:[#allocation119_spill] sm:$0xff] %v5362_v20  ;;  %2228 = vrot.lane.b32.xlu0 %v2221_v45, %s3820_s17  ;;  %v2266_v45 = vmul.f32 0.0, %v2265_v9 }
 0x2b5   :  { %2226 = vrot.lane.b32.xlu1 %v2220_v63, %s3820_s17  ;;  %v2244_v63 = vmul.f32 %v2242_v53, %v5008_v40 }
 0x2b6   :  { %v5372_v2 = vpop.permute.xlu0 %1669 }
 0x2b7   :  { %v5370_v59 = vpop.permute.xlu1 %1671  ;;  %7443 = vst [vmem:[#allocation122_spill] sm:$0xff] %v5372_v2 }
 0x2b8   :  { %7442 = vst [vmem:[#allocation121_spill] sm:$0xff] %v5370_v59  ;;  %2249 = vrot.lane.b32.xlu0 %v2243_v41, %s3821_s1  ;;  %v2287_v41 = vstv %s3547_s22  ;;  %s7472_s22 = smov 34  }
 0x2b9   :  { %2230 = vrot.lane.b32.xlu1 %v2222_v48, %s3820_s17  ;;  %v2267_v48 = vmul.f32 %v2265_v9, %v4997_v42 }
 0x2ba   :  { %v5379_v13 = vpop.permute.xlu0 %1694 }
 0x2bb   :  { %v5377_v20 = vpop.permute.xlu1 %1692  ;;  %7445 = vst [vmem:[#allocation124_spill] sm:$0xff] %v5379_v13 }
 0x2bc   :  { %7444 = vst [vmem:[#allocation123_spill] sm:$0xff] %v5377_v20  ;;  %2253 = vrot.lane.b32.xlu0 %v2245_v5, %s3821_s1  ;;  %v2288_v20 = vmul.f32 0.0, %v2287_v41  ;;  %v2268_v5 = vmul.f32 %v2265_v9, %v5000_v14 }
 0x2bd   :  { %2251 = vrot.lane.b32.xlu1 %v2244_v63, %s3821_s1 }
 0x2be   :  { %v5386_v2 = vpop.permute.xlu0 %1722 }
 0x2bf   :  { %v5384_v57 = vpop.permute.xlu1 %1720  ;;  %7447 = vst [vmem:[#allocation126_spill] sm:$0xff] %v5386_v2  ;;  %v2309_v2 = vstv %s3548_s25  ;;  %s7475_s25 = smov 33  }
 0x2c0   :  { %7446 = vst [vmem:[#allocation125_spill] sm:$0xff] %v5384_v57  ;;  %2274 = vrot.lane.b32.xlu0 %v2267_v48, %s3775_s28  ;;  %v2290_v48 = vmul.f32 %v2287_v41, %v5000_v14 }
 0x2c1   :  { %2272 = vrot.lane.b32.xlu1 %v2266_v45, %s3775_s28  ;;  %v2289_v45 = vmul.f32 %v2287_v41, %v4997_v42 }
 0x2c2   :  { %v5393_v40 = vpop.permute.xlu0 %1743 }
 0x2c3   :  { %v5391_v53 = vpop.permute.xlu1 %1745  ;;  %7449 = vst [vmem:[#allocation128_spill] sm:$0xff] %v5393_v40  ;;  %v2310_v40 = vmul.f32 0.0, %v2309_v2 }
 0x2c4   :  { %7448 = vst [vmem:[#allocation127_spill] sm:$0xff] %v5391_v53  ;;  %2294 = vrot.lane.b32.xlu0 %v2288_v20, %s3774_s26  ;;  %v2311_v20 = vmul.f32 %v2309_v2, %v4997_v42 }
 0x2c5   :  { %2276 = vrot.lane.b32.xlu1 %v2268_v5, %s3775_s28  ;;  %v2331_v5 = vstv %s3549_s23  ;;  %s3550_s28 = sld [smem:[#allocation2 + $0x35]] }
 0x2c6   :  { %v5400_v57 = vpop.permute.xlu0 %1768  ;;  %s3558_s23 = sld [smem:[#allocation2 + $0x3d]] }
 0x2c7   :  { %v5398_v63 = vpop.permute.xlu1 %1766  ;;  %7451 = vst [vmem:[#allocation130_spill] sm:$0xff] %v5400_v57 }
 0x2c8   :  { %7450 = vst [vmem:[#allocation129_spill] sm:$0xff] %v5398_v63  ;;  %2298 = vrot.lane.b32.xlu0 %v2290_v48, %s3774_s26  ;;  %v2332_v63 = vmul.f32 0.0, %v2331_v5 }
 0x2c9   :  { %2296 = vrot.lane.b32.xlu1 %v2289_v45, %s3774_s26  ;;  %v2312_v45 = vmul.f32 %v2309_v2, %v5000_v14  ;;  %s3551_s26 = sld [smem:[#allocation2 + $0x36]] }
 0x2ca   :  { %v5408_v53 = vpop.permute.xlu0 %1789 }
 0x2cb   :  { %v5406_v9 = vpop.permute.xlu1 %1791  ;;  %7453 = vst [vmem:[#allocation132_spill] sm:$0xff] %v5408_v53 }
 0x2cc   :  { %7452 = vst [vmem:[#allocation131_spill] sm:$0xff] %v5406_v9  ;;  %2318 = vrot.lane.b32.xlu0 %v2311_v20, %s3777_s7  ;;  %v2334_v20 = vmul.f32 %v2331_v5, %v5000_v14  ;;  %v2353_v9 = vstv %s3550_s28  ;;  %s7480_s28 = smov 32  }
 0x2cd   :  { %2316 = vrot.lane.b32.xlu1 %v2310_v40, %s3777_s7  ;;  %v2333_v40 = vmul.f32 %v2331_v5, %v4997_v42 }
 0x2ce   :  { %v5415_v57 = vpop.permute.xlu0 %1814 }
 0x2cf   :  { %v5413_v41 = vpop.permute.xlu1 %1812  ;;  %7455 = vst [vmem:[#allocation134_spill] sm:$0xff] %v5415_v57 }
 0x2d0   :  { %7454 = vst [vmem:[#allocation133_spill] sm:$0xff] %v5413_v41  ;;  %2338 = vrot.lane.b32.xlu0 %v2332_v63, %s3776_s30  ;;  %v2354_v41 = vmul.f32 0.0, %v2353_v9  ;;  %v2355_v63 = vmul.f32 %v2353_v9, %v4997_v42 }
 0x2d1   :  { %2320 = vrot.lane.b32.xlu1 %v2312_v45, %s3777_s7  ;;  %v2375_v45 = vstv %s3551_s26  ;;  %s3552_s7 = sld [smem:[#allocation2 + $0x37]] }
 0x2d2   :  { %v5422_v53 = vpop.permute.xlu0 %1835  ;;  %s3559_s26 = sld [smem:[#allocation2 + $0x3e]] }
 0x2d3   :  { %v5420_v48 = vpop.permute.xlu1 %1837  ;;  %7457 = vst [vmem:[#allocation136_spill] sm:$0xff] %v5422_v53  ;;  %v2376_v53 = vmul.f32 0.0, %v2375_v45 }
 0x2d4   :  { %7456 = vst [vmem:[#allocation135_spill] sm:$0xff] %v5420_v48  ;;  %2342 = vrot.lane.b32.xlu0 %v2334_v20, %s3776_s30 }
 0x2d5   :  { %2340 = vrot.lane.b32.xlu1 %v2333_v40, %s3776_s30  ;;  %v2356_v40 = vmul.f32 %v2353_v9, %v5000_v14  ;;  %s3553_s30 = sld [smem:[#allocation2 + $0x38]] }
 0x2d6   :  { %v5430_v57 = vpop.permute.xlu0 %1860 }
 0x2d7   :  { %v5428_v2 = vpop.permute.xlu1 %1858  ;;  %7459 = vst [vmem:[#allocation138_spill] sm:$0xff] %v5430_v57  ;;  %v2397_v57 = vstv %s3552_s7  ;;  %s7483_s7 = smov 31  }
 0x2d8   :  { %7458 = vst [vmem:[#allocation137_spill] sm:$0xff] %v5428_v2  ;;  %2362 = vrot.lane.b32.xlu0 %v2355_v63, %s3779_s11  ;;  %v2378_v63 = vmul.f32 %v2375_v45, %v5000_v14 }
 0x2d9   :  { %2360 = vrot.lane.b32.xlu1 %v2354_v41, %s3779_s11  ;;  %v2377_v41 = vmul.f32 %v2375_v45, %v4997_v42 }
 0x2da   :  { %v5437_v48 = vpop.permute.xlu0 %1881 }
 0x2db   :  { %v5435_v5 = vpop.permute.xlu1 %1883  ;;  %7461 = vst [vmem:[#allocation140_spill] sm:$0xff] %v5437_v48  ;;  %v2398_v48 = vmul.f32 0.0, %v2397_v57 }
 0x2dc   :  { %7460 = vst [vmem:[#allocation139_spill] sm:$0xff] %v5435_v5  ;;  %2382 = vrot.lane.b32.xlu0 %v2376_v53, %s3778_s9  ;;  %v2399_v53 = vmul.f32 %v2397_v57, %v4997_v42 }
 0x2dd   :  { %2364 = vrot.lane.b32.xlu1 %v2356_v40, %s3779_s11  ;;  %v2419_v40 = vstv %s3553_s30  ;;  %s3554_s11 = sld [smem:[#allocation2 + $0x39]] }
 0x2de   :  { %v5444_v2 = vpop.permute.xlu0 %1906  ;;  %s3560_s30 = sld [smem:[#allocation2 + $0x3f]] }
 0x2df   :  { %v5442_v20 = vpop.permute.xlu1 %1904  ;;  %7463 = vst [vmem:[#allocation142_spill] sm:$0xff] %v5444_v2 }
 0x2e0   :  { %7462 = vst [vmem:[#allocation141_spill] sm:$0xff] %v5442_v20  ;;  %2386 = vrot.lane.b32.xlu0 %v2378_v63, %s3778_s9  ;;  %v2420_v20 = vmul.f32 0.0, %v2419_v40 }
 0x2e1   :  { %2384 = vrot.lane.b32.xlu1 %v2377_v41, %s3778_s9  ;;  %v2400_v41 = vmul.f32 %v2397_v57, %v5000_v14  ;;  %s3555_s9 = sld [smem:[#allocation2 + $0x3a]] }
 0x2e2   :  { %v5452_v5 = vpop.permute.xlu0 %1927 }
 0x2e3   :  { %v5450_v9 = vpop.permute.xlu1 %1929  ;;  %7465 = vst [vmem:[#allocation144_spill] sm:$0xff] %v5452_v5 }
 0x2e4   :  { %7464 = vst [vmem:[#allocation143_spill] sm:$0xff] %v5450_v9  ;;  %2406 = vrot.lane.b32.xlu0 %v2399_v53, %s3781_s15  ;;  %v2422_v53 = vmul.f32 %v2419_v40, %v5000_v14  ;;  %v2441_v9 = vstv %s3554_s11  ;;  %s7488_s11 = smov 30  }
 0x2e5   :  { %2404 = vrot.lane.b32.xlu1 %v2398_v48, %s3781_s15  ;;  %v2421_v48 = vmul.f32 %v2419_v40, %v4997_v42 }
 0x2e6   :  { %v5459_v2 = vpop.permute.xlu0 %1952 }
 0x2e7   :  { %v5457_v45 = vpop.permute.xlu1 %1950  ;;  %7467 = vst [vmem:[#allocation146_spill] sm:$0xff] %v5459_v2 }
 0x2e8   :  { %7466 = vst [vmem:[#allocation145_spill] sm:$0xff] %v5457_v45  ;;  %2426 = vrot.lane.b32.xlu0 %v2420_v20, %s3780_s13  ;;  %v2442_v45 = vmul.f32 0.0, %v2441_v9  ;;  %v2443_v20 = vmul.f32 %v2441_v9, %v4997_v42 }
 0x2e9   :  { %2408 = vrot.lane.b32.xlu1 %v2400_v41, %s3781_s15  ;;  %v2463_v41 = vstv %s3555_s9  ;;  %s3556_s15 = sld [smem:[#allocation2 + $0x3b]] }
 0x2ea   :  { %v5466_v5 = vpop.permute.xlu0 %1973  ;;  %s3561_s9 = sld [smem:[#allocation2 + $0x40]] }
 0x2eb   :  { %v5464_v63 = vpop.permute.xlu1 %1975  ;;  %7469 = vst [vmem:[#allocation148_spill] sm:$0xff] %v5466_v5  ;;  %v2464_v5 = vmul.f32 0.0, %v2463_v41 }
 0x2ec   :  { %7468 = vst [vmem:[#allocation147_spill] sm:$0xff] %v5464_v63  ;;  %2430 = vrot.lane.b32.xlu0 %v2422_v53, %s3780_s13 }
 0x2ed   :  { %2428 = vrot.lane.b32.xlu1 %v2421_v48, %s3780_s13  ;;  %v2444_v48 = vmul.f32 %v2441_v9, %v5000_v14  ;;  %s3557_s13 = sld [smem:[#allocation2 + $0x3c]] }
 0x2ee   :  { %v5474_v2 = vpop.permute.xlu0 %1998 }
 0x2ef   :  { %v5472_v57 = vpop.permute.xlu1 %1996  ;;  %7471 = vst [vmem:[#allocation150_spill] sm:$0xff] %v5474_v2  ;;  %v2485_v2 = vstv %s3556_s15  ;;  %s7491_s15 = smov 29  }
 0x2f0   :  { %7470 = vst [vmem:[#allocation149_spill] sm:$0xff] %v5472_v57  ;;  %2450 = vrot.lane.b32.xlu0 %v2443_v20, %s7472_s22  ;;  %v2466_v20 = vmul.f32 %v2463_v41, %v5000_v14 }
 0x2f1   :  { %2448 = vrot.lane.b32.xlu1 %v2442_v45, %s7472_s22  ;;  %v2465_v45 = vmul.f32 %v2463_v41, %v4997_v42 }
 0x2f2   :  { %v5481_v63 = vpop.permute.xlu0 %2019 }
 0x2f3   :  { %v5479_v40 = vpop.permute.xlu1 %2021  ;;  %7474 = vst [vmem:[#allocation152_spill] sm:$0xff] %v5481_v63  ;;  %v2486_v63 = vmul.f32 0.0, %v2485_v2 }
 0x2f4   :  { %7473 = vst [vmem:[#allocation151_spill] sm:$0xff] %v5479_v40  ;;  %2470 = vrot.lane.b32.xlu0 %v2464_v5, %s7475_s25  ;;  %v2487_v5 = vmul.f32 %v2485_v2, %v4997_v42 }
 0x2f5   :  { %2452 = vrot.lane.b32.xlu1 %v2444_v48, %s7472_s22  ;;  %v2507_v48 = vstv %s3557_s13  ;;  %s3562_s22 = sld [smem:[#allocation2 + $0x41]]  ;;  %s7496_s13 = smov 19  }
 0x2f6   :  { %v5488_v57 = vpop.permute.xlu0 %2044 }
 0x2f7   :  { %v5486_v53 = vpop.permute.xlu1 %2042  ;;  %7477 = vst [vmem:[#allocation154_spill] sm:$0xff] %v5488_v57 }
 0x2f8   :  { %7476 = vst [vmem:[#allocation153_spill] sm:$0xff] %v5486_v53  ;;  %2474 = vrot.lane.b32.xlu0 %v2466_v20, %s7475_s25  ;;  %v2508_v53 = vmul.f32 0.0, %v2507_v48 }
 0x2f9   :  { %2472 = vrot.lane.b32.xlu1 %v2465_v45, %s7475_s25  ;;  %v2488_v45 = vmul.f32 %v2485_v2, %v5000_v14  ;;  %s3563_s25 = sld [smem:[#allocation2 + $0x42]] }
 0x2fa   :  { %v5496_v40 = vpop.permute.xlu0 %2065 }
 0x2fb   :  { %v5494_v9 = vpop.permute.xlu1 %2046  ;;  %7479 = vst [vmem:[#allocation156_spill] sm:$0xff] %v5496_v40 }
 0x2fc   :  { %7478 = vst [vmem:[#allocation155_spill] sm:$0xff] %v5494_v9  ;;  %2494 = vrot.lane.b32.xlu0 %v2487_v5, %s7480_s28  ;;  %v2510_v5 = vmul.f32 %v2507_v48, %v5000_v14  ;;  %v2529_v9 = vstv %s3558_s23  ;;  %s7499_s23 = smov 18  }
 0x2fd   :  { %2492 = vrot.lane.b32.xlu1 %v2486_v63, %s7480_s28  ;;  %v2509_v63 = vmul.f32 %v2507_v48, %v4997_v42 }
 0x2fe   :  { %v5503_v57 = vpop.permute.xlu0 %2069 }
 0x2ff   :  { %v5501_v41 = vpop.permute.xlu1 %2067  ;;  %7482 = vst [vmem:[#allocation158_spill] sm:$0xff] %v5503_v57  ;;  %v2530_v57 = vmul.f32 0.0, %v2529_v9 }
 0x300   :  { %7481 = vst [vmem:[#allocation157_spill] sm:$0xff] %v5501_v41  ;;  %2514 = vrot.lane.b32.xlu0 %v2508_v53, %s7483_s7  ;;  %v2531_v53 = vmul.f32 %v2529_v9, %v4997_v42 }
 0x301   :  { %2496 = vrot.lane.b32.xlu1 %v2488_v45, %s7480_s28  ;;  %v2551_v45 = vstv %s3559_s26  ;;  %s3564_s28 = sld [smem:[#allocation2 + $0x43]]  ;;  %s7504_s26 = smov 17  }
 0x302   :  { %v5510_v40 = vpop.permute.xlu0 %2090 }
 0x303   :  { %v5508_v20 = vpop.permute.xlu1 %2088  ;;  %7485 = vst [vmem:[#allocation160_spill] sm:$0xff] %v5510_v40 }
 0x304   :  { %7484 = vst [vmem:[#allocation159_spill] sm:$0xff] %v5508_v20  ;;  %2518 = vrot.lane.b32.xlu0 %v2510_v5, %s7483_s7  ;;  %v2552_v20 = vmul.f32 0.0, %v2551_v45 }
 0x305   :  { %2516 = vrot.lane.b32.xlu1 %v2509_v63, %s7483_s7  ;;  %v2532_v63 = vmul.f32 %v2529_v9, %v5000_v14  ;;  %s3565_s7 = sld [smem:[#allocation2 + $0x44]] }
 0x306   :  { %v5518_v41 = vpop.permute.xlu0 %2111 }
 0x307   :  { %v5516_v2 = vpop.permute.xlu1 %2092  ;;  %7487 = vst [vmem:[#allocation162_spill] sm:$0xff] %v5518_v41  ;;  %v2573_v41 = vstv %s3560_s30  ;;  %s7507_s30 = smov 16  }
 0x308   :  { %7486 = vst [vmem:[#allocation161_spill] sm:$0xff] %v5516_v2  ;;  %2538 = vrot.lane.b32.xlu0 %v2531_v53, %s7488_s11  ;;  %v2554_v53 = vmul.f32 %v2551_v45, %v5000_v14 }
 0x309   :  { %2536 = vrot.lane.b32.xlu1 %v2530_v57, %s7488_s11  ;;  %v2553_v57 = vmul.f32 %v2551_v45, %v4997_v42 }
 0x30a   :  { %v5525_v40 = vpop.permute.xlu0 %2115 }
 0x30b   :  { %v5523_v48 = vpop.permute.xlu1 %2113  ;;  %7490 = vst [vmem:[#allocation164_spill] sm:$0xff] %v5525_v40  ;;  %v2574_v40 = vmul.f32 0.0, %v2573_v41 }
 0x30c   :  { %7489 = vst [vmem:[#allocation163_spill] sm:$0xff] %v5523_v48  ;;  %2558 = vrot.lane.b32.xlu0 %v2552_v20, %s7491_s15  ;;  %v2575_v20 = vmul.f32 %v2573_v41, %v4997_v42 }
 0x30d   :  { %2540 = vrot.lane.b32.xlu1 %v2532_v63, %s7488_s11  ;;  %v2595_v63 = vstv %s3561_s9  ;;  %s3566_s11 = sld [smem:[#allocation2 + $0x45]]  ;;  %s7512_s9 = smov 15  }
 0x30e   :  { %v5532_v2 = vpop.permute.xlu0 %2136 }
 0x30f   :  { %v5530_v5 = vpop.permute.xlu1 %2134  ;;  %7493 = vst [vmem:[#allocation166_spill] sm:$0xff] %v5532_v2 }
 0x310   :  { %7492 = vst [vmem:[#allocation165_spill] sm:$0xff] %v5530_v5  ;;  %2562 = vrot.lane.b32.xlu0 %v2554_v53, %s7491_s15  ;;  %v2596_v5 = vmul.f32 0.0, %v2595_v63 }
 0x311   :  { %2560 = vrot.lane.b32.xlu1 %v2553_v57, %s7491_s15  ;;  %v2576_v57 = vmul.f32 %v2573_v41, %v5000_v14  ;;  %s3567_s15 = sld [smem:[#allocation2 + $0x46]] }
 0x312   :  { %v5540_v48 = vpop.permute.xlu0 %2157 }
 0x313   :  { %v5538_v9 = vpop.permute.xlu1 %2138  ;;  %7495 = vst [vmem:[#allocation168_spill] sm:$0xff] %v5540_v48  ;;  %v2617_v48 = vstv %s3562_s22  ;;  %s3568_s22 = sld [smem:[#allocation2 + $0x47]] }
 0x314   :  { %7494 = vst [vmem:[#allocation167_spill] sm:$0xff] %v5538_v9  ;;  %2582 = vrot.lane.b32.xlu0 %v2575_v20, %s7496_s13  ;;  %v2598_v20 = vmul.f32 %v2595_v63, %v5000_v14 }
 0x315   :  { %2580 = vrot.lane.b32.xlu1 %v2574_v40, %s7496_s13  ;;  %v2597_v40 = vmul.f32 %v2595_v63, %v4997_v42 }
 0x316   :  { %v5547_v2 = vpop.permute.xlu0 %2161 }
 0x317   :  { %v5545_v45 = vpop.permute.xlu1 %2159  ;;  %7498 = vst [vmem:[#allocation170_spill] sm:$0xff] %v5547_v2  ;;  %v2618_v2 = vmul.f32 0.0, %v2617_v48 }
 0x318   :  { %7497 = vst [vmem:[#allocation169_spill] sm:$0xff] %v5545_v45  ;;  %2602 = vrot.lane.b32.xlu0 %v2596_v5, %s7499_s23  ;;  %v2619_v5 = vmul.f32 %v2617_v48, %v4997_v42 }
 0x319   :  { %2584 = vrot.lane.b32.xlu1 %v2576_v57, %s7496_s13  ;;  %v2639_v57 = vstv %s3563_s25  ;;  %s7515_s13 = smov 13   ;;  %v2749_v44 = vstv %s3568_s22  ;;  %s3571_s25 = sld [smem:[#allocation2 + $0x4a]] }
 0x31a   :  { %v5554_v9 = vpop.permute.xlu0 %2182  ;;  %v2750_v12 = vmul.f32 0.0, %v2749_v44  ;;  %s7523_s22 = smov 80  }
 0x31b   :  { %v5552_v53 = vpop.permute.xlu1 %2180  ;;  %7501 = vst [vmem:[#allocation172_spill] sm:$0xff] %v5554_v9 }
 0x31c   :  { %7500 = vst [vmem:[#allocation171_spill] sm:$0xff] %v5552_v53  ;;  %2606 = vrot.lane.b32.xlu0 %v2598_v20, %s7499_s23  ;;  %v2640_v53 = vmul.f32 0.0, %v2639_v57 }
 0x31d   :  { %2604 = vrot.lane.b32.xlu1 %v2597_v40, %s7499_s23  ;;  %v2620_v40 = vmul.f32 %v2617_v48, %v5000_v14  ;;  %s7516_s23 = smov 114  }
 0x31e   :  { %v5562_v45 = vpop.permute.xlu0 %2203 }
 0x31f   :  { %v5560_v41 = vpop.permute.xlu1 %2184  ;;  %7503 = vst [vmem:[#allocation174_spill] sm:$0xff] %v5562_v45  ;;  %v2661_v45 = vstv %s3564_s28  ;;  %v2801_v6 = vstv %s3571_s25  ;;  %s3572_s28 = sld [smem:[#allocation2 + $0x4b]] }
 0x320   :  { %7502 = vst [vmem:[#allocation173_spill] sm:$0xff] %v5560_v41  ;;  %2626 = vrot.lane.b32.xlu0 %v2619_v5, %s7504_s26  ;;  %v2642_v5 = vmul.f32 %v2639_v57, %v5000_v14  ;;  %s3593_s25 = sld [smem:[#allocation2 + $0x60]] }
 0x321   :  { %2624 = vrot.lane.b32.xlu1 %v2618_v2, %s7504_s26  ;;  %v2641_v2 = vmul.f32 %v2639_v57, %v4997_v42 }
 0x322   :  { %v5569_v9 = vpop.permute.xlu0 %2207 }
 0x323   :  { %v5567_v63 = vpop.permute.xlu1 %2205  ;;  %7506 = vst [vmem:[#allocation176_spill] sm:$0xff] %v5569_v9  ;;  %v2662_v9 = vmul.f32 0.0, %v2661_v45 }
 0x324   :  { %7505 = vst [vmem:[#allocation175_spill] sm:$0xff] %v5567_v63  ;;  %2646 = vrot.lane.b32.xlu0 %v2640_v53, %s7507_s30  ;;  %v2663_v53 = vmul.f32 %v2661_v45, %v4997_v42 }
 0x325   :  { %2628 = vrot.lane.b32.xlu1 %v2620_v40, %s7504_s26  ;;  %v2683_v40 = vstv %s3565_s7  ;;  %s3573_s26 = sld [smem:[#allocation2 + $0x4c]] }
 0x326   :  { %v5576_v41 = vpop.permute.xlu0 %2228  ;;  %s3581_s7 = sld [smem:[#allocation2 + $0x54]] }
 0x327   :  { %v5574_v20 = vpop.permute.xlu1 %2226  ;;  %7509 = vst [vmem:[#allocation178_spill] sm:$0xff] %v5576_v41 }
 0x328   :  { %7508 = vst [vmem:[#allocation177_spill] sm:$0xff] %v5574_v20  ;;  %2650 = vrot.lane.b32.xlu0 %v2642_v5, %s7507_s30  ;;  %v2684_v20 = vmul.f32 0.0, %v2683_v40 }
 0x329   :  { %2648 = vrot.lane.b32.xlu1 %v2641_v2, %s7507_s30  ;;  %v2664_v2 = vmul.f32 %v2661_v45, %v5000_v14  ;;  %s3588_s30 = sld [smem:[#allocation2 + $0x5b]] }
 0x32a   :  { %v5584_v63 = vpop.permute.xlu0 %2249 }
 0x32b   :  { %v5582_v48 = vpop.permute.xlu1 %2230  ;;  %7511 = vst [vmem:[#allocation180_spill] sm:$0xff] %v5584_v63 }
 0x32c   :  { %7510 = vst [vmem:[#allocation179_spill] sm:$0xff] %v5582_v48  ;;  %2670 = vrot.lane.b32.xlu0 %v2663_v53, %s7512_s9  ;;  %v2686_v53 = vmul.f32 %v2683_v40, %v5000_v14  ;;  %v2705_v48 = vstv %s3566_s11  ;;  %v5751_v8 = vstv %s3581_s7  ;;  %s3584_s11 = sld [smem:[#allocation2 + $0x57]] }
 0x32d   :  { %2668 = vrot.lane.b32.xlu1 %v2662_v9, %s7512_s9  ;;  %v2685_v9 = vmul.f32 %v2683_v40, %v4997_v42 }
 0x32e   :  { %v5591_v41 = vpop.permute.xlu0 %2253 }
 0x32f   :  { %v5589_v57 = vpop.permute.xlu1 %2251  ;;  %7514 = vst [vmem:[#allocation182_spill] sm:$0xff] %v5591_v41  ;;  %v2706_v41 = vmul.f32 0.0, %v2705_v48  ;;  %v5753_v24 = vstv %s3588_s30 }
 0x330   :  { %7513 = vst [vmem:[#allocation181_spill] sm:$0xff] %v5589_v57  ;;  %2690 = vrot.lane.b32.xlu0 %v2684_v20, %s7363_s0  ;;  %v2707_v20 = vmul.f32 %v2705_v48, %v4997_v42 }
 0x331   :  { %2672 = vrot.lane.b32.xlu1 %v2664_v2, %s7512_s9  ;;  %v2727_v2 = vstv %s3567_s15  ;;  %s3591_s9 = sld [smem:[#allocation2 + $0x5e]] }
 0x332   :  { %v5598_v63 = vpop.permute.xlu0 %2274  ;;  %v2728_v13 = vmul.f32 0.0, %v2727_v2  ;;  %s3592_s15 = sld [smem:[#allocation2 + $0x5f]] }
 0x333   :  { %v5596_v5 = vpop.permute.xlu1 %2272 }
 0x334   :  { %2694 = vrot.lane.b32.xlu0 %v2686_v53, %s7363_s0 }
 0x335   :  { %2692 = vrot.lane.b32.xlu1 %v2685_v9, %s7363_s0  ;;  %v2708_v9 = vmul.f32 %v2705_v48, %v5000_v14  ;;  %s3569_s0 = sld [smem:[#allocation2 + $0x48]] }
 0x336   :  { %v5606_v57 = vpop.permute.xlu0 %2294 }
 0x337   :  { %v5604_v45 = vpop.permute.xlu1 %2276 }
 0x338   :  { %2714 = vrot.lane.b32.xlu0 %v2707_v20, %s7515_s13  ;;  %v2730_v20 = vmul.f32 %v2727_v2, %v5000_v14 }
 0x339   :  { %2712 = vrot.lane.b32.xlu1 %v2706_v41, %s7515_s13  ;;  %v2729_v41 = vmul.f32 %v2727_v2, %v4997_v42 }
 0x33a   :  { %v5613_v59 = vpop.permute.xlu0 %2298 }
 0x33b   :  { %v5611_v40 = vpop.permute.xlu1 %2296 }
 0x33c   :  { %2734 = vrot.lane.b32.xlu0 %v2728_v13, %s7366_s16  ;;  %v2751_v13 = vmul.f32 %v2749_v44, %v4997_v42  ;;  %v2300_v34 = vsel %vm7180_vm6, %v5606_v57, %v5611_v40  ;;  %v2301_v56 = vsel %vm7180_vm6, %v5611_v40, %v5613_v59  ;;  %v2278_v57 = vsel %vm7179_vm4, %v5596_v5, %v5598_v63 }
 0x33d   :  { %2716 = vrot.lane.b32.xlu1 %v2708_v9, %s7515_s13  ;;  %v2771_v9 = vstv %s3569_s0  ;;  %vm7184_vm6 = vcmask 154624   ;;  %s6035_s13 = sld [smem:[#allocation2 + $0x49]]  ;;  %s7525_s0 = smov 95  }
 0x33e   :  { %v5620_v62 = vpop.permute.xlu0 %2318  ;;  %v2772_v47 = vmul.f32 0.0, %v2771_v9 }
 0x33f   :  { %v5618_v53 = vpop.permute.xlu1 %2316 }
 0x340   :  { %2738 = vrot.lane.b32.xlu0 %v2730_v20, %s7366_s16  ;;  %v2322_v30 = vsel %vm7178_vm10, %v5618_v53, %v5620_v62 }
 0x341   :  { %2736 = vrot.lane.b32.xlu1 %v2729_v41, %s7366_s16  ;;  %v2752_v41 = vmul.f32 %v2749_v44, %v5000_v14  ;;  %s3574_s16 = sld [smem:[#allocation2 + $0x4d]] }
 0x342   :  { %v5628_v4 = vpop.permute.xlu0 %2338 }
 0x343   :  { %v5626_v48 = vpop.permute.xlu1 %2320 }
 0x344   :  { %2758 = vrot.lane.b32.xlu0 %v2751_v13, %s7368_s2  ;;  %v2774_v13 = vmul.f32 %v2771_v9, %v5000_v14  ;;  %v2323_v59 = vsel %vm7178_vm10, %v5620_v62, %v5626_v48  ;;  %vm7188_vm10 = vcmask 367616  }
 0x345   :  { %2756 = vrot.lane.b32.xlu1 %v2750_v12, %s7368_s2  ;;  %v2773_v12 = vmul.f32 %v2771_v9, %v4997_v42  ;;  %v2804_v9 = vmul.f32 0.0, %v2801_v6 }
 0x346   :  { %v5635_v49 = vpop.permute.xlu0 %2342 }
 0x347   :  { %v5633_v2 = vpop.permute.xlu1 %2340  ;;  %v2867_v37 = vstv %s3574_s16  ;;  %s7529_s16 = smov 79  }
 0x348   :  { %2778 = vrot.lane.b32.xlu0 %v2772_v47, %s7370_s8  ;;  %v2803_v47 = vmul.f32 %v2801_v6, %v5000_v14  ;;  %v2870_v51 = vmul.f32 0.0, %v2867_v37 }
 0x349   :  { %2760 = vrot.lane.b32.xlu1 %v2752_v41, %s7368_s2  ;;  %v2802_v41 = vmul.f32 %v2801_v6, %v4997_v42  ;;  %s3575_s2 = sld [smem:[#allocation2 + $0x4e]] }
 0x34a   :  { %v5642_v46 = vpop.permute.xlu0 %2362 }
 0x34b   :  { %v5640_v20 = vpop.permute.xlu1 %2360 }
 0x34c   :  { %2782 = vrot.lane.b32.xlu0 %v2774_v13, %s7370_s8  ;;  %v2868_v13 = vmul.f32 %v2867_v37, %v4997_v42 }
 0x34d   :  { %2780 = vrot.lane.b32.xlu1 %v2773_v12, %s7370_s8  ;;  %s3576_s8 = sld [smem:[#allocation2 + $0x4f]] }
 0x34e   :  { %v5650_v44 = vpop.permute.xlu0 %2382 }
 0x34f   :  { %v5648_v60 = vpop.permute.xlu1 %2364 }
 0x350   :  { %2810 = vrot.lane.b32.xlu0 %v2803_v47, %s7372_s14  ;;  %v2889_v47 = vstv %s3575_s2  ;;  %s3587_s2 = sld [smem:[#allocation2 + $0x5a]] }
 0x351   :  { %2808 = vrot.lane.b32.xlu1 %v2802_v41, %s7372_s14  ;;  %v2869_v41 = vmul.f32 %v2867_v37, %v5000_v14  ;;  %v2892_v37 = vmul.f32 0.0, %v2889_v47 }
 0x352   :  { %v5658_v12 = vpop.permute.xlu0 %2386 }
 0x353   :  { %v5656_v61 = vpop.permute.xlu1 %2384  ;;  %v2911_v11 = vstv %s3576_s8  ;;  %s7530_s8 = smov 94  }
 0x354   :  { %2874 = vrot.lane.b32.xlu0 %v2868_v13, %s7378_s3  ;;  %v2891_v13 = vmul.f32 %v2889_v47, %v5000_v14  ;;  %v2914_v7 = vmul.f32 0.0, %v2911_v11 }
 0x355   :  { %2812 = vrot.lane.b32.xlu1 %v2804_v9, %s7372_s14  ;;  %v2890_v9 = vmul.f32 %v2889_v47, %v4997_v42  ;;  %s3577_s14 = sld [smem:[#allocation2 + $0x50]] }
 0x356   :  { %v5665_v33 = vpop.permute.xlu0 %2406 }
 0x357   :  { %v5663_v22 = vpop.permute.xlu1 %2404 }
 0x358   :  { %2878 = vrot.lane.b32.xlu0 %v2870_v51, %s7378_s3  ;;  %v2912_v51 = vmul.f32 %v2911_v11, %v4997_v42 }
 0x359   :  { %2876 = vrot.lane.b32.xlu1 %v2869_v41, %s7378_s3  ;;  %s3578_s3 = sld [smem:[#allocation2 + $0x51]] }
 0x35a   :  { %v5672_v1 = vpop.permute.xlu0 %2426 }
 0x35b   :  { %v5670_v6 = vpop.permute.xlu1 %2408 }
 0x35c   :  { %2898 = vrot.lane.b32.xlu0 %v2891_v13, %s7516_s23  ;;  %v2933_v13 = vstv %s3577_s14  ;;  %s3594_s14 = sld [smem:[#allocation2 + $0x61]] }
 0x35d   :  { %2896 = vrot.lane.b32.xlu1 %v2890_v9, %s7516_s23  ;;  %v2913_v9 = vmul.f32 %v2911_v11, %v5000_v14  ;;  %v2936_v11 = vmul.f32 0.0, %v2933_v13 }
 0x35e   :  { %v5680_v41 = vpop.permute.xlu0 %2430 }
 0x35f   :  { %v5678_v28 = vpop.permute.xlu1 %2428  ;;  %v2955_v38 = vstv %s3578_s3 }
 0x360   :  { %2918 = vrot.lane.b32.xlu0 %v2912_v51, %s7383_s5  ;;  %v2935_v51 = vmul.f32 %v2933_v13, %v5000_v14  ;;  %v2958_v3 = vmul.f32 0.0, %v2955_v38 }
 0x361   :  { %2900 = vrot.lane.b32.xlu1 %v2892_v37, %s7516_s23  ;;  %v2934_v37 = vmul.f32 %v2933_v13, %v4997_v42  ;;  %v1045_v13 = vand.u32 127, %v7171_v0  ;;  %s7531_s23 = smov 93  }
 0x362   :  { %v5687_v52 = vpop.permute.xlu0 %2450 }
 0x363   :  { %v5685_v39 = vpop.permute.xlu1 %2448  ;;  %v1046_v50 = vadd.s32 128, %v1045_v13 }
 0x364   :  { %2922 = vrot.lane.b32.xlu0 %v2914_v7, %s7383_s5  ;;  %v2956_v7 = vmul.f32 %v2955_v38, %v4997_v42 }
 0x365   :  { %2920 = vrot.lane.b32.xlu1 %v2913_v9, %s7383_s5  ;;  %s3579_s5 = sld [smem:[#allocation2 + $0x52]]  ;;  %v5728_v15 = vand.u32 15, %v1046_v50 }
 0x366   :  { %v5694_v16 = vpop.permute.xlu0 %2470 }
 0x367   :  { %v5692_v47 = vpop.permute.xlu1 %2452  ;;  %v5742_v29 = vadd.s32 4294967293, %v5728_v15  ;;  %v5745_v50 = vadd.s32 4294967294, %v5728_v15  ;;  %v5763_v17 = vadd.s32 1, %v5728_v15 }
 0x368   :  { %2942 = vrot.lane.b32.xlu0 %v2935_v51, %s7387_s18  ;;  %v2823_v51 = vstv %s3572_s28 }
 0x369   :  { %2940 = vrot.lane.b32.xlu1 %v2934_v37, %s7387_s18  ;;  %v2957_v37 = vmul.f32 %v2955_v38, %v5000_v14  ;;  %v2825_v31 = vmul.f32 %v2823_v51, %v5000_v14  ;;  %v2826_v38 = vmul.f32 0.0, %v2823_v51  ;;  %vm1074_vm8 = vcmp.ge.s32.totalorder %v5742_v29, 0 }
 0x36a   :  { %v5702_v9 = vpop.permute.xlu0 %2474  ;;  %vm7222_vm9 = vcmp.ge.s32.totalorder %v5745_v50, 0  ;;  %vm7218_vm15 = vcmp.lt.s32.totalorder %v5763_v17, 16 }
 0x36b   :  { %v5700_v27 = vpop.permute.xlu1 %2472  ;;  %v2977_v25 = vstv %s3579_s5 }
 0x36c   :  { %2962 = vrot.lane.b32.xlu0 %v2956_v7, %s7391_s19  ;;  %v2824_v7 = vmul.f32 %v2823_v51, %v4997_v42  ;;  %v2978_v18 = vmul.f32 %v2977_v25, %v4997_v42  ;;  %v2980_v55 = vmul.f32 0.0, %v2977_v25  ;;  %v2979_v51 = vmul.f32 %v2977_v25, %v5000_v14 }
 0x36d   :  { %2944 = vrot.lane.b32.xlu1 %v2936_v11, %s7387_s18  ;;  %s3580_s18 = sld [smem:[#allocation2 + $0x53]]  ;;  %v5757_v25 = vadd.s32 4294967295, %v5728_v15 }
 0x36e   :  { %v5709_v36 = vpop.permute.xlu0 %2494 }
 0x36f   :  { %v5707_v26 = vpop.permute.xlu1 %2492  ;;  %vm7212_vm13 = vcmp.ge.s32.totalorder %v5757_v25, 0 }
 0x370   :  { %2966 = vrot.lane.b32.xlu0 %v2958_v3, %s7391_s19  ;;  %v1051_v3 = vand.u32 15, %v1045_v13 }
 0x371   :  { %2964 = vrot.lane.b32.xlu1 %v2957_v37, %s7391_s19  ;;  %s7518_s19 = smov 83  }
 0x372   :  { %v5717_v11 = vpop.permute.xlu0 %2514  ;;  %v5732_v23 = vadd.s32 4294967293, %v1051_v3  ;;  %v5759_v35 = vadd.s32 1, %v1051_v3  ;;  %v5804_v53 = vadd.s32 2, %v1051_v3 }
 0x373   :  { %v5715_v58 = vpop.permute.xlu1 %2496  ;;  %v2999_v32 = vstv %s3580_s18 }
 0x374   :  { %2832 = vrot.lane.b32.xlu0 %v2825_v31, %s7374_s21  ;;  %vm1073_vm5 = vcmp.ge.s32.totalorder %v5732_v23, 0  ;;  %vm1105_vm14 = vcmp.lt.s32.totalorder %v5759_v35, 16  ;;  %v3002_v48 = vmul.f32 0.0, %v2999_v32  ;;  %vm7221_vm3 = vcmp.lt.s32.totalorder %v5804_v53, 16  ;;  %v7744_v23 = vld [vmem:[#allocation79_spill] sm:$0xff] }
 0x375   :  { %2830 = vrot.lane.b32.xlu1 %v2824_v7, %s7374_s21  ;;  %v5734_v7 = vadd.s32 4294967294, %v1051_v3 }
 0x376   :  { %v5725_v0 = vpop.permute.xlu0 %2518 }
 0x377   :  { %v5723_v37 = vpop.permute.xlu1 %2516  ;;  %vm7215_vm7 = vcmp.ge.s32.totalorder %v5734_v7, 0 }
 0x378   :  { %2984 = vrot.lane.b32.xlu0 %v2978_v18, %s7395_s10  ;;  %v5747_v18 = vadd.s32 4294967295, %v1051_v3 }
 0x379   :  { %2834 = vrot.lane.b32.xlu1 %v2826_v38, %s7374_s21  ;;  %v2845_v38 = vstv %s3573_s26  ;;  %s3590_s21 = sld [smem:[#allocation2 + $0x5d]] }
 0x37a   :  { %v5738_v13 = vpop.permute.xlu0 %2538  ;;  %v2846_v43 = vmul.f32 %v2845_v38, %v4997_v42  ;;  %v2847_v10 = vmul.f32 %v2845_v38, %v5000_v14  ;;  %vm7192_vm11 = vcmp.ge.s32.totalorder %v5747_v18, 0  ;;  %v2848_v54 = vmul.f32 0.0, %v2845_v38 }
 0x37b   :  { %v5736_v31 = vpop.permute.xlu1 %2536  ;;  %v3000_v38 = vmul.f32 %v2999_v32, %v4997_v42  ;;  %v2326_v62 = vsel %vm7192_vm11, %v2322_v30, 0.0 }
 0x37c   :  { %2988 = vrot.lane.b32.xlu0 %v2980_v55, %s7395_s10 }
 0x37d   :  { %2986 = vrot.lane.b32.xlu1 %v2979_v51, %s7395_s10  ;;  %s3589_s10 = sld [smem:[#allocation2 + $0x5c]] }
 0x37e   :  { %v5767_v55 = vpop.permute.xlu0 %2558 }
 0x37f   :  { %v5765_v51 = vpop.permute.xlu1 %2540 }
 0x380   :  { %2854 = vrot.lane.b32.xlu0 %v2847_v10, %s7376_s12  ;;  %v2304_v10 = vsel %vm7215_vm7, %v2300_v34, 0.0  ;;  %v2282_v34 = vsel %vm1073_vm5, %v2278_v57, 0.0  ;;  %v5824_v57 = vadd.s32 2, %v5728_v15 }
 0x381   :  { %2852 = vrot.lane.b32.xlu1 %v2846_v43, %s7376_s12  ;;  %v2279_v43 = vsel %vm7179_vm4, %v5598_v63, %v5604_v45  ;;  %v2305_v63 = vsel %vm7222_vm9, %v2301_v56, 0.0  ;;  %v5808_v45 = vadd.s32 3, %v1051_v3  ;;  %v2306_v21 = vadd.f32 %v2304_v10, %v2282_v34 }
 0x382   :  { %v5801_v5 = vpop.permute.xlu0 %2562  ;;  %v2283_v19 = vsel %vm1074_vm8, %v2279_v43, 0.0  ;;  %v2327_v56 = vsel %vm7212_vm13, %v2323_v59, 0.0  ;;  %v2366_v3 = vsel %vm7182_vm1, %v5640_v20, %v5642_v46  ;;  %v3001_v43 = vmul.f32 %v2999_v32, %v5000_v14 }
 0x383   :  { %v5799_v40 = vpop.permute.xlu1 %2560  ;;  %7517 = vst [vmem:[#allocation183_spill] sm:$0xff] %v5801_v5  ;;  %v2307_v30 = vadd.f32 %v2305_v63, %v2283_v19  ;;  %v5832_v10 = vadd.s32 3, %v5728_v15  ;;  %v2328_v59 = vadd.f32 %v2326_v62, %v2306_v21  ;;  %v2388_v20 = vsel %vm7189_vm2, %v5650_v44, %v5656_v61 }
 0x384   :  { %3006 = vrot.lane.b32.xlu0 %v3000_v38, %s7399_s29  ;;  %v2370_v63 = vsel %vm1105_vm14, %v2366_v3, 0.0  ;;  %vm7216_vm4 = vcmp.lt.s32.totalorder %v5808_v45, 16  ;;  %v2345_v15 = vsel %vm7181_vm12, %v5633_v2, %v5635_v49  ;;  %v2410_v21 = vsel %vm7188_vm10, %v5663_v22, %v5665_v33 }
 0x385   :  { %2856 = vrot.lane.b32.xlu1 %v2848_v54, %s7376_s12  ;;  %v2344_v54 = vsel %vm7181_vm12, %v5628_v4, %v5633_v2  ;;  %v2329_v19 = vadd.f32 %v2327_v56, %v2307_v30  ;;  %v2367_v4 = vsel %vm7182_vm1, %v5642_v46, %v5648_v60  ;;  %v2392_v44 = vsel %vm7221_vm3, %v2388_v20, 0.0  ;;  %s7519_s12 = smov 82  }
 0x386   :  { %v2583_v5 = vpop.permute.xlu0 %2582  ;;  %v2350_v32 = vadd.f32 %v2344_v54, %v2328_v59  ;;  %v3022_v34 = vmul.f32 %v5751_v8, %v4997_v42  ;;  %v3023_v62 = vmul.f32 %v5751_v8, %v5000_v14  ;;  %v2371_v49 = vsel %vm7218_vm15, %v2367_v4, 0.0 }
 0x387   :  { %v2581_v38 = vpop.permute.xlu1 %2580  ;;  %v2389_v22 = vsel %vm7189_vm2, %v5656_v61, %v5658_v12  ;;  %vm7220_vm12 = vcmp.lt.s32.totalorder %v5824_v57, 16  ;;  %v2351_v56 = vadd.f32 %v2345_v15, %v2329_v19  ;;  %v2414_v3 = vsel %vm7216_vm4, %v2410_v21, 0.0 }
 0x388   :  { %3010 = vrot.lane.b32.xlu0 %v3002_v48, %s7399_s29  ;;  %v2372_v48 = vadd.f32 %v2370_v63, %v2350_v32  ;;  %v2586_v2 = vsel %vm7184_vm6, %v2581_v38, %v2583_v5  ;;  %v3024_v30 = vmul.f32 0.0, %v5751_v8  ;;  %vm7191_vm1 = vcmp.lt.s32.totalorder %v5832_v10, 16 }
 0x389   :  { %3008 = vrot.lane.b32.xlu1 %v3001_v43, %s7399_s29  ;;  %s5863_s29 = sld [smem:[#allocation2 + $0x55]]  ;;  %v2411_v12 = vsel %vm7188_vm10, %v5665_v33, %v5670_v6  ;;  %v2373_v54 = vadd.f32 %v2371_v49, %v2351_v56  ;;  %v2393_v38 = vsel %vm7220_vm12, %v2389_v22, 0.0  ;;  %v2590_v43 = vsel %vm1073_vm5, %v2586_v2, 0.0 }
 0x38a   :  { %v2603_v46 = vpop.permute.xlu0 %2602  ;;  %v2394_v61 = vadd.f32 %v2392_v44, %v2372_v48  ;;  %v3176_v8 = vmul.f32 %v5753_v24, %v4997_v42  ;;  %v2415_v33 = vsel %vm7191_vm1, %v2411_v12, 0.0  ;;  %v3178_v15 = vmul.f32 0.0, %v5753_v24 }
 0x38b   :  { %v2585_v60 = vpop.permute.xlu1 %2584  ;;  %v2395_v21 = vadd.f32 %v2393_v38, %v2373_v54  ;;  %vm7194_vm10 = vcmask 285696   ;;  %vm7196_vm2 = vcmask 269312   ;;  %vm7193_vm1 = vcmask 113664  }
 0x38c   :  { %3030 = vrot.lane.b32.xlu0 %v3023_v62, %s7403_s6  ;;  %v2416_v19 = vadd.f32 %v2414_v3, %v2394_v61  ;;  %v2587_v63 = vsel %vm7184_vm6, %v2583_v5, %v2585_v60  ;;  %vm7186_vm6 = vcmask 138240  }
 0x38d   :  { %3028 = vrot.lane.b32.xlu1 %v3022_v34, %s7403_s6  ;;  %v2591_v44 = vsel %vm1074_vm8, %v2587_v63, 0.0  ;;  %v3177_v34 = vmul.f32 %v5753_v24, %v5000_v14  ;;  %v2417_v62 = vadd.f32 %v2415_v33, %v2395_v21 }
 0x38e   :  { %v2607_v20 = vpop.permute.xlu0 %2606  ;;  %v2592_v5 = vadd.f32 %v2590_v43, %v2416_v19 }
 0x38f   :  { %v2605_v59 = vpop.permute.xlu1 %2604  ;;  %v3043_v22 = vstv %s5863_s29  ;;  %v2593_v3 = vadd.f32 %v2591_v44, %v2417_v62 }
 0x390   :  { %v2608_v4 = vsel %vm7185_vm0, %v2603_v46, %v2605_v59  ;;  %v2609_v32 = vsel %vm7185_vm0, %v2605_v59, %v2607_v20  ;;  %3182 = vrot.lane.b32.xlu0 %v3176_v8, %s7518_s19  ;;  %v3044_v24 = vmul.f32 %v3043_v22, %v4997_v42  ;;  %v3045_v54 = vmul.f32 %v3043_v22, %v5000_v14 }
 0x391   :  { %v2612_v6 = vsel %vm7215_vm7, %v2608_v4, 0.0  ;;  %3032 = vrot.lane.b32.xlu1 %v3024_v30, %s7403_s6  ;;  %v2613_v2 = vsel %vm7222_vm9, %v2609_v32, 0.0  ;;  %v3197_v59 = vstv %s3589_s10  ;;  %s3583_s6 = sld [smem:[#allocation2 + $0x56]]  ;;  %v3046_v8 = vmul.f32 0.0, %v3043_v22 }
 0x392   :  { %v2627_v46 = vpop.permute.xlu0 %2626  ;;  %v2614_v48 = vadd.f32 %v2612_v6, %v2592_v5  ;;  %v2615_v38 = vadd.f32 %v2613_v2, %v2593_v3  ;;  %vm7187_vm0 = vcmask 130048   ;;  %v3198_v32 = vmul.f32 %v3197_v59, %v4997_v42 }
 0x393   :  { %v2625_v60 = vpop.permute.xlu1 %2624  ;;  %v3200_v5 = vmul.f32 0.0, %v3197_v59 }
 0x394   :  { %v2630_v49 = vsel %vm7186_vm6, %v2625_v60, %v2627_v46  ;;  %3186 = vrot.lane.b32.xlu0 %v3178_v15, %s7518_s19 }
 0x395   :  { %v2634_v56 = vsel %vm7192_vm11, %v2630_v49, 0.0  ;;  %3184 = vrot.lane.b32.xlu1 %v3177_v34, %s7518_s19 }
 0x396   :  { %v2636_v30 = vadd.f32 %v2634_v56, %v2614_v48  ;;  %v2647_v12 = vpop.permute.xlu0 %2646 }
 0x397   :  { %v2629_v61 = vpop.permute.xlu1 %2628  ;;  %v3065_v62 = vstv %s3583_s6 }
 0x398   :  { %v2631_v43 = vsel %vm7186_vm6, %v2627_v46, %v2629_v61  ;;  %3052 = vrot.lane.b32.xlu0 %v3045_v54, %s7407_s27  ;;  %vm7190_vm6 = vcmask 121856   ;;  %v3199_v46 = vmul.f32 %v3197_v59, %v5000_v14  ;;  %v3066_v3 = vmul.f32 %v3065_v62, %v4997_v42 }
 0x399   :  { %v2635_v20 = vsel %vm7212_vm13, %v2631_v43, 0.0  ;;  %3050 = vrot.lane.b32.xlu1 %v3044_v24, %s7407_s27  ;;  %v2432_v24 = vsel %vm7194_vm10, %v5672_v1, %v5678_v28  ;;  %v2476_v54 = vsel %vm7196_vm2, %v5694_v16, %v5700_v27 }
 0x39a   :  { %v2637_v19 = vadd.f32 %v2635_v20, %v2615_v38  ;;  %v2651_v4 = vpop.permute.xlu0 %2650  ;;  %v3068_v38 = vmul.f32 0.0, %v3065_v62  ;;  %v3087_v20 = vstv %s3584_s11 }
 0x39b   :  { %v2649_v63 = vpop.permute.xlu1 %2648 }
 0x39c   :  { %v2652_v33 = vsel %vm7187_vm0, %v2647_v12, %v2649_v63  ;;  %v2653_v6 = vsel %vm7187_vm0, %v2649_v63, %v2651_v4  ;;  %3204 = vrot.lane.b32.xlu0 %v3198_v32, %s7519_s12  ;;  %vm7195_vm0 = vcmask 277504   ;;  %v3219_v12 = vstv %s3590_s21 }
 0x39d   :  { %v2658_v15 = vadd.f32 %v2652_v33, %v2636_v30  ;;  %v2659_v21 = vadd.f32 %v2653_v6, %v2637_v19  ;;  %3054 = vrot.lane.b32.xlu1 %v3046_v8, %s7407_s27  ;;  %v2454_v22 = vsel %vm7195_vm0, %v5685_v39, %v5687_v52  ;;  %v3067_v30 = vmul.f32 %v3065_v62, %v5000_v14  ;;  %s7520_s27 = smov 81  }
 0x39e   :  { %v2671_v60 = vpop.permute.xlu0 %2670  ;;  %v2458_v43 = vsel %vm7215_vm7, %v2454_v22, 0.0  ;;  %v5939_v8 = vstv %s3591_s9  ;;  %v3220_v16 = vmul.f32 %v3219_v12, %v4997_v42  ;;  %v3222_v63 = vmul.f32 0.0, %v3219_v12 }
 0x39f   :  { %v2669_v44 = vpop.permute.xlu1 %2668  ;;  %v2436_v4 = vsel %vm1073_vm5, %v2432_v24, 0.0  ;;  %v2480_v32 = vsel %vm7192_vm11, %v2476_v54, 0.0  ;;  %vm7208_vm11 = vcmask 252928   ;;  %v2477_v62 = vsel %vm7196_vm2, %v5700_v27, %v5702_v9 }
 0x3a0   :  { %v2674_v34 = vsel %vm7190_vm6, %v2669_v44, %v2671_v60  ;;  %3208 = vrot.lane.b32.xlu0 %v3200_v5, %s7519_s12  ;;  %v2481_v9 = vsel %vm7212_vm13, %v2477_v62, 0.0  ;;  %vm7521_vm2 = vcmp.lt.s32.totalorder %v5832_v10, 16  ;;  %v3243_v62 = vmul.f32 %v5939_v8, %v5000_v14 }
 0x3a1   :  { %v2678_v48 = vsel %vm1105_vm14, %v2674_v34, 0.0  ;;  %3206 = vrot.lane.b32.xlu1 %v3199_v46, %s7519_s12  ;;  %v3221_v34 = vmul.f32 %v3219_v12, %v5000_v14 }
 0x3a2   :  { %v2680_v49 = vadd.f32 %v2678_v48, %v2658_v15  ;;  %v2691_v56 = vpop.permute.xlu0 %2690  ;;  %v2460_v15 = vadd.f32 %v2458_v43, %v2436_v4  ;;  %v2521_v43 = vsel %vm7208_vm11, %v5723_v37, %v5725_v0 }
 0x3a3   :  { %v2673_v2 = vpop.permute.xlu1 %2672  ;;  %v2525_v4 = vsel %vm7218_vm15, %v2521_v43, 0.0 }
 0x3a4   :  { %v2675_v61 = vsel %vm7190_vm6, %v2671_v60, %v2673_v2  ;;  %3074 = vrot.lane.b32.xlu0 %v3067_v30, %s7411_s24  ;;  %vm7211_vm6 = vcmask 261120  }
 0x3a5   :  { %v2679_v39 = vsel %vm7218_vm15, %v2675_v61, 0.0  ;;  %3072 = vrot.lane.b32.xlu1 %v3066_v3, %s7411_s24 }
 0x3a6   :  { %v2681_v59 = vadd.f32 %v2679_v39, %v2659_v21  ;;  %v2695_v19 = vpop.permute.xlu0 %2694  ;;  %v2455_v21 = vsel %vm7195_vm0, %v5687_v52, %v5692_v47  ;;  %v2433_v52 = vsel %vm7194_vm10, %v5678_v28, %v5680_v41  ;;  %v2482_v47 = vadd.f32 %v2480_v32, %v2460_v15  ;;  %v7522_v15 = vld [vmem:[#allocation183_spill] sm:$0xff] }
 0x3a7   :  { %v2693_v1 = vpop.permute.xlu1 %2692  ;;  %v2459_v2 = vsel %vm7222_vm9, %v2455_v21, 0.0  ;;  %vm7207_vm10 = vcmask 244736   ;;  %vm7198_vm0 = vcmask 236544   ;;  %v3088_v41 = vmul.f32 %v3087_v20, %v4997_v42 }
 0x3a8   :  { %v2696_v33 = vsel %vm7193_vm1, %v2691_v56, %v2693_v1  ;;  %v2697_v6 = vsel %vm7193_vm1, %v2693_v1, %v2695_v19  ;;  %3226 = vrot.lane.b32.xlu0 %v3220_v16, %s7520_s27  ;;  %vm7197_vm1 = vcmask 105472   ;;  %v2520_v56 = vsel %vm7208_vm11, %v5717_v11, %v5723_v37 }
 0x3a9   :  { %v2700_v5 = vsel %vm7221_vm3, %v2696_v33, 0.0  ;;  %v2701_v44 = vsel %vm7220_vm12, %v2697_v6, 0.0  ;;  %3076 = vrot.lane.b32.xlu1 %v3068_v38, %s7411_s24  ;;  %v2542_v11 = vsel %vm7207_vm10, %v5736_v31, %v5738_v13  ;;  %v2524_v12 = vsel %vm1105_vm14, %v2520_v56, 0.0  ;;  %s6000_s24 = sld [smem:[#allocation2 + $0x58]] }
 0x3aa   :  { %v2702_v60 = vadd.f32 %v2700_v5, %v2680_v49  ;;  %v2703_v46 = vadd.f32 %v2701_v44, %v2681_v59  ;;  %v2715_v22 = vpop.permute.xlu0 %2714  ;;  %v2498_v49 = vsel %vm7211_vm6, %v5707_v26, %v5709_v36  ;;  %v2437_v26 = vsel %vm1074_vm8, %v2433_v52, 0.0 }
 0x3ab   :  { %v2713_v48 = vpop.permute.xlu1 %2712  ;;  %v2461_v30 = vadd.f32 %v2459_v2, %v2437_v26  ;;  %v2504_v61 = vadd.f32 %v2498_v49, %v2482_v47  ;;  %v3089_v39 = vmul.f32 %v3087_v20, %v5000_v14  ;;  %v2499_v38 = vsel %vm7211_vm6, %v5709_v36, %v5715_v58 }
 0x3ac   :  { %v2718_v28 = vsel %vm7197_vm1, %v2713_v48, %v2715_v22  ;;  %3230 = vrot.lane.b32.xlu0 %v3222_v63, %s7520_s27  ;;  %v2564_v31 = vsel %vm7198_vm0, %v5767_v55, %v5799_v40  ;;  %v2546_v19 = vsel %vm7221_vm3, %v2542_v11, 0.0  ;;  %v3090_v58 = vmul.f32 0.0, %v3087_v20 }
 0x3ad   :  { %v2722_v27 = vsel %vm7216_vm4, %v2718_v28, 0.0  ;;  %3228 = vrot.lane.b32.xlu1 %v3221_v34, %s7520_s27  ;;  %v2483_v1 = vadd.f32 %v2481_v9, %v2461_v30  ;;  %v2526_v0 = vadd.f32 %v2524_v12, %v2504_v61  ;;  %v2543_v36 = vsel %vm7207_vm10, %v5738_v13, %v5765_v51 }
 0x3ae   :  { %v5985_v3 = vadd.f32 %v2722_v27, %v2702_v60  ;;  %v2735_v54 = vpop.permute.xlu0 %2734  ;;  %v3242_v55 = vmul.f32 %v5939_v8, %v4997_v42  ;;  %v2568_v32 = vsel %vm7216_vm4, %v2564_v31, 0.0  ;;  %v2565_v13 = vsel %vm7198_vm0, %v5799_v40, %v7522_v15 }
 0x3af   :  { %v2717_v24 = vpop.permute.xlu1 %2716  ;;  %v2505_v63 = vadd.f32 %v2499_v38, %v2483_v1  ;;  %v2548_v6 = vadd.f32 %v2546_v19, %v2526_v0  ;;  %v2547_v5 = vsel %vm7220_vm12, %v2543_v36, 0.0  ;;  %v3244_v60 = vmul.f32 0.0, %v5939_v8 }
 0x3b0   :  { %v2719_v59 = vsel %vm7197_vm1, %v2715_v22, %v2717_v24  ;;  %3096 = vrot.lane.b32.xlu0 %v3089_v39, %s7415_s20  ;;  %vm7199_vm1 = vcmask 23552   ;;  %vm7524_vm0 = vcmp.lt.s32.totalorder %v5832_v10, 16  ;;  %v3109_v49 = vstv %s6000_s24 }
 0x3b1   :  { %v2723_v16 = vsel %vm7521_vm2, %v2719_v59, 0.0  ;;  %3094 = vrot.lane.b32.xlu1 %v3088_v41, %s7415_s20  ;;  %v2570_v40 = vadd.f32 %v2568_v32, %v2548_v6  ;;  %vm7200_vm2 = vcmask 15360   ;;  %v2569_v34 = vsel %vm7524_vm0, %v2565_v13, 0.0 }
 0x3b2   :  { %v6011_v37 = vadd.f32 %v2723_v16, %v2703_v46  ;;  %v2739_v20 = vpop.permute.xlu0 %2738  ;;  %v2527_v46 = vadd.f32 %v2525_v4, %v2505_v63  ;;  %v3110_v9 = vmul.f32 %v3109_v49, %v4997_v42  ;;  %v3111_v11 = vmul.f32 %v3109_v49, %v5000_v14 }
 0x3b3   :  { %v2737_v33 = vpop.permute.xlu1 %2736  ;;  %v3263_v12 = vstv %s3592_s15  ;;  %v2793_v59 = vstv %s6035_s13  ;;  %vm7526_vm0 = vcmask 7168   ;;  %vm7210_vm10 = vcmask 900096  }
 0x3b4   :  { %v2740_v51 = vsel %vm7199_vm1, %v2735_v54, %v2737_v33  ;;  %v2741_v21 = vsel %vm7199_vm1, %v2737_v33, %v2739_v20  ;;  %3248 = vrot.lane.b32.xlu0 %v3242_v55, %s7523_s22  ;;  %v2549_v48 = vadd.f32 %v2547_v5, %v2527_v46  ;;  %v3112_v54 = vmul.f32 0.0, %v3109_v49  ;;  %vm7527_vm1 = vmmov %vm7526_vm0 }
 0x3b5   :  { %v2744_v44 = vsel %vm1073_vm5, %v2740_v51, 0.0  ;;  %3098 = vrot.lane.b32.xlu1 %v3090_v58, %s7415_s20  ;;  %v2745_v56 = vsel %vm1074_vm8, %v2741_v21, 0.0  ;;  %s3586_s20 = sld [smem:[#allocation2 + $0x59]]  ;;  %v3264_v31 = vmul.f32 %v3263_v12, %v4997_v42  ;;  %v3266_v0 = vmul.f32 0.0, %v3263_v12 }
 0x3b6   :  { %v2759_v47 = vpop.permute.xlu0 %2758  ;;  %v2746_v22 = vadd.f32 %v2744_v44, %v2570_v40  ;;  %v2571_v27 = vadd.f32 %v2569_v34, %v2549_v48  ;;  %v2794_v63 = vmul.f32 %v2793_v59, %v4997_v42  ;;  %v2795_v4 = vmul.f32 %v2793_v59, %v5000_v14 }
 0x3b7   :  { %v2757_v52 = vpop.permute.xlu1 %2756  ;;  %v3265_v20 = vmul.f32 %v3263_v12, %v5000_v14  ;;  %v3307_v59 = vstv %s3594_s14  ;;  %vm7540_vm11 = vcmask 416768   ;;  %vm7559_vm6 = vcmp.lt.s32.totalorder %v5832_v10, 16 }
 0x3b8   :  { %v2762_v2 = vsel %vm7200_vm2, %v2757_v52, %v2759_v47  ;;  %3252 = vrot.lane.b32.xlu0 %v3244_v60, %s7523_s22  ;;  %v2747_v30 = vadd.f32 %v2745_v56, %v2571_v27  ;;  %v3285_v52 = vstv %s3593_s25 }
 0x3b9   :  { %v2766_v28 = vsel %vm7215_vm7, %v2762_v2, 0.0  ;;  %3250 = vrot.lane.b32.xlu1 %v3243_v62, %s7523_s22  ;;  %v3286_v49 = vmul.f32 %v3285_v52, %v4997_v42 }
 0x3ba   :  { %v2768_v41 = vadd.f32 %v2766_v28, %v2746_v22  ;;  %v2779_v26 = vpop.permute.xlu0 %2778 }
 0x3bb   :  { %v2761_v8 = vpop.permute.xlu1 %2760  ;;  %v3131_v51 = vstv %s3586_s20 }
 0x3bc   :  { %v2763_v61 = vsel %vm7200_vm2, %v2759_v47, %v2761_v8  ;;  %3118 = vrot.lane.b32.xlu0 %v3111_v11, %s7525_s0  ;;  %vm7528_vm2 = vcmp.ge.s32.totalorder %v5747_v18, 0  ;;  %v3132_v46 = vmul.f32 %v3131_v51, %v4997_v42  ;;  %v3133_v40 = vmul.f32 %v3131_v51, %v5000_v14 }
 0x3bd   :  { %v2767_v24 = vsel %vm7222_vm9, %v2763_v61, 0.0  ;;  %3116 = vrot.lane.b32.xlu1 %v3110_v9, %s7525_s0  ;;  %v3134_v62 = vmul.f32 0.0, %v3131_v51  ;;  %v3288_v8 = vmul.f32 0.0, %v3285_v52  ;;  %v3287_v61 = vmul.f32 %v3285_v52, %v5000_v14 }
 0x3be   :  { %v2769_v39 = vadd.f32 %v2767_v24, %v2747_v30  ;;  %v2783_v43 = vpop.permute.xlu0 %2782  ;;  %v3153_v24 = vstv %s3587_s2 }
 0x3bf   :  { %v2781_v38 = vpop.permute.xlu1 %2780 }
 0x3c0   :  { %v2784_v1 = vsel %vm7526_vm0, %v2779_v26, %v2781_v38  ;;  %v2785_v19 = vsel %vm7527_vm1, %v2781_v38, %v2783_v43  ;;  %3270 = vrot.lane.b32.xlu0 %v3264_v31, %s7529_s16  ;;  %vm7201_vm0 = vcmask 1039360   ;;  %vm7203_vm1 = vcmask 941056  }
 0x3c1   :  { %v2788_v16 = vsel %vm7528_vm2, %v2784_v1, 0.0  ;;  %v2789_v58 = vsel %vm7212_vm13, %v2785_v19, 0.0  ;;  %3120 = vrot.lane.b32.xlu1 %v3112_v54, %s7525_s0  ;;  %vm7202_vm2 = vcmask 932864   ;;  %v3155_v43 = vmul.f32 %v3153_v24, %v5000_v14 }
 0x3c2   :  { %v2790_v36 = vadd.f32 %v2788_v16, %v2768_v41  ;;  %v2791_v55 = vadd.f32 %v2789_v58, %v2769_v39  ;;  %v2811_v33 = vpop.permute.xlu0 %2810  ;;  %v3156_v19 = vmul.f32 0.0, %v3153_v24 }
 0x3c3   :  { %v2809_v32 = vpop.permute.xlu1 %2808 }
 0x3c4   :  { %v2798_v6 = vadd.f32 %v2794_v63, %v2790_v36  ;;  %v2814_v15 = vsel %vm7201_vm0, %v2809_v32, %v2811_v33  ;;  %v2799_v13 = vadd.f32 %v2795_v4, %v2791_v55  ;;  %3274 = vrot.lane.b32.xlu0 %v3266_v0, %s7529_s16  ;;  %v3308_v36 = vmul.f32 %v3307_v59, %v4997_v42 }
 0x3c5   :  { %v2818_v21 = vsel %vm1105_vm14, %v2814_v15, 0.0  ;;  %3272 = vrot.lane.b32.xlu1 %v3265_v20, %s7529_s16 }
 0x3c6   :  { %v6070_v5 = vadd.f32 %v2818_v21, %v2798_v6  ;;  %v2875_v60 = vpop.permute.xlu0 %2874 }
 0x3c7   :  { %v2813_v44 = vpop.permute.xlu1 %2812 }
 0x3c8   :  { %v2815_v34 = vsel %vm7201_vm0, %v2811_v33, %v2813_v44  ;;  %3140 = vrot.lane.b32.xlu0 %v3133_v40, %s7530_s8  ;;  %vm7204_vm0 = vcmask 924672   ;;  %v3310_v33 = vmul.f32 0.0, %v3307_v59 }
 0x3c9   :  { %v2819_v47 = vsel %vm7218_vm15, %v2815_v34, 0.0  ;;  %3138 = vrot.lane.b32.xlu1 %v3132_v46, %s7530_s8 }
 0x3ca   :  { %v6079_v48 = vadd.f32 %v2819_v47, %v2799_v13  ;;  %v2879_v2 = vpop.permute.xlu0 %2878  ;;  %v3309_v13 = vmul.f32 %v3307_v59, %v5000_v14  ;;  %v7541_v59 = vld [vmem:[#allocation6_spill] sm:$0xff] }
 0x3cb   :  { %v2877_v22 = vpop.permute.xlu1 %2876 }
 0x3cc   :  { %v2880_v56 = vsel %vm7203_vm1, %v2875_v60, %v2877_v22  ;;  %v2881_v28 = vsel %vm7203_vm1, %v2877_v22, %v2879_v2  ;;  %3292 = vrot.lane.b32.xlu0 %v3286_v49, %s3820_s17  ;;  %vm7205_vm1 = vcmask 916480  }
 0x3cd   :  { %v2884_v27 = vsel %vm1073_vm5, %v2880_v56, 0.0  ;;  %v2885_v41 = vsel %vm1074_vm8, %v2881_v28, 0.0  ;;  %3142 = vrot.lane.b32.xlu1 %v3134_v62, %s7530_s8 }
 0x3ce   :  { %v2886_v26 = vadd.f32 %v2884_v27, %v5985_v3  ;;  %v2887_v9 = vadd.f32 %v2885_v41, %v6011_v37  ;;  %v2899_v30 = vpop.permute.xlu0 %2898  ;;  %v3154_v37 = vmul.f32 %v3153_v24, %v4997_v42  ;;  %v7534_v24 = vld [vmem:[#allocation43_spill] sm:$0xff] }
 0x3cf   :  { %v2897_v11 = vpop.permute.xlu1 %2896 }
 0x3d0   :  { %v2902_v12 = vsel %vm7202_vm2, %v2897_v11, %v2899_v30  ;;  %3296 = vrot.lane.b32.xlu0 %v3288_v8, %s3820_s17 }
 0x3d1   :  { %v2906_v54 = vsel %vm7215_vm7, %v2902_v12, 0.0  ;;  %3294 = vrot.lane.b32.xlu1 %v3287_v61, %s3820_s17  ;;  %v7533_v12 = vld [vmem:[#allocation8_spill] sm:$0xff]  ;;  %s6355_s17 = sld [smem:[#allocation2 + $0x18]] }
 0x3d2   :  { %v2908_v39 = vadd.f32 %v2906_v54, %v2886_v26  ;;  %v2919_v3 = vpop.permute.xlu0 %2918 }
 0x3d3   :  { %v2901_v38 = vpop.permute.xlu1 %2900 }
 0x3d4   :  { %v2903_v31 = vsel %vm7202_vm2, %v2899_v30, %v2901_v38  ;;  %3162 = vrot.lane.b32.xlu0 %v3155_v43, %s7531_s23  ;;  %vm7532_vm2 = vcmp.ge.s32.totalorder %v5747_v18, 0  ;;  %v7539_v43 = vld [vmem:[#allocation44_spill] sm:$0xff] }
 0x3d5   :  { %v2907_v1 = vsel %vm7222_vm9, %v2903_v31, 0.0  ;;  %3160 = vrot.lane.b32.xlu1 %v3154_v37, %s7531_s23  ;;  %v7538_v37 = vld [vmem:[#allocation5_spill] sm:$0xff] }
 0x3d6   :  { %v2909_v16 = vadd.f32 %v2907_v1, %v2887_v9  ;;  %v2923_v0 = vpop.permute.xlu0 %2922  ;;  %v1144_v31 = vsel %vm7540_vm11, %v7539_v43, %v7538_v37 }
 0x3d7   :  { %v2921_v58 = vpop.permute.xlu1 %2920 }
 0x3d8   :  { %v2924_v55 = vsel %vm7204_vm0, %v2919_v3, %v2921_v58  ;;  %v2925_v63 = vsel %vm7204_vm0, %v2921_v58, %v2923_v0  ;;  %3314 = vrot.lane.b32.xlu0 %v3308_v36, %s3821_s1  ;;  %vm7209_vm0 = vcmask 1031168   ;;  %v7544_v58 = vld [vmem:[#allocation46_spill] sm:$0xff] }
 0x3d9   :  { %v2928_v4 = vsel %vm7532_vm2, %v2924_v55, 0.0  ;;  %v2929_v32 = vsel %vm7212_vm13, %v2925_v63, 0.0  ;;  %3164 = vrot.lane.b32.xlu1 %v3156_v19, %s7531_s23  ;;  %vm7206_vm2 = vcmask 908288   ;;  %v7546_v36 = vld [vmem:[#allocation10_spill] sm:$0xff] }
 0x3da   :  { %v2930_v20 = vadd.f32 %v2928_v4, %v2908_v39  ;;  %v2931_v6 = vadd.f32 %v2929_v32, %v2909_v16  ;;  %v2943_v42 = vpop.permute.xlu0 %2942  ;;  %v7536_v39 = vld [vmem:[#allocation7_spill] sm:$0xff]  ;;  %v7543_v16 = vld [vmem:[#allocation9_spill] sm:$0xff] }
 0x3db   :  { %v2941_v15 = vpop.permute.xlu1 %2940 }
 0x3dc   :  { %v2946_v51 = vsel %vm7205_vm1, %v2941_v15, %v2943_v42  ;;  %3318 = vrot.lane.b32.xlu0 %v3310_v33, %s3821_s1  ;;  %v1148_v15 = vsel %vm1073_vm5, %v1144_v31, 0.0 }
 0x3dd   :  { %v2952_v21 = vadd.f32 %v2946_v51, %v2930_v20  ;;  %3316 = vrot.lane.b32.xlu1 %v3309_v13, %s3821_s1 }
 0x3de   :  { %v2963_v60 = vpop.permute.xlu0 %2962 }
 0x3df   :  { %v2945_v44 = vpop.permute.xlu1 %2944 }
 0x3e0   :  { %v2947_v46 = vsel %vm7205_vm1, %v2943_v42, %v2945_v44  ;;  %vm7535_vm1 = vcmask 408576  }
 0x3e1   :  { %v2953_v40 = vadd.f32 %v2947_v46, %v2931_v6  ;;  %v1171_v54 = vsel %vm7535_vm1, %v7534_v24, %v7533_v12 }
 0x3e2   :  { %v2967_v52 = vpop.permute.xlu0 %2966  ;;  %v1175_v32 = vsel %vm7215_vm7, %v1171_v54, 0.0 }
 0x3e3   :  { %v2965_v34 = vpop.permute.xlu1 %2964  ;;  %v1177_v46 = vadd.f32 %v1175_v32, %v1148_v15  ;;  %v7572_v15 = vld [vmem:[#allocation22_spill] sm:$0xff] }
 0x3e4   :  { %v2968_v47 = vsel %vm7206_vm2, %v2963_v60, %v2965_v34  ;;  %v2969_v62 = vsel %vm7206_vm2, %v2965_v34, %v2967_v52  ;;  %vm7537_vm2 = vmmov %vm7535_vm1  ;;  %vm7545_vm1 = vcmask 400384  }
 0x3e5   :  { %v2972_v14 = vsel %vm1105_vm14, %v2968_v47, 0.0  ;;  %v2973_v22 = vsel %vm7218_vm15, %v2969_v62, 0.0  ;;  %v1172_v38 = vsel %vm7537_vm2, %v7533_v12, %v7536_v39  ;;  %v1198_v0 = vsel %vm7545_vm1, %v7544_v58, %v7543_v16  ;;  %vm7547_vm2 = vmmov %vm7545_vm1 }
 0x3e6   :  { %v2974_v2 = vadd.f32 %v2972_v14, %v2952_v21  ;;  %v2975_v49 = vadd.f32 %v2973_v22, %v2953_v40  ;;  %v2833_v28 = vpop.permute.xlu0 %2832  ;;  %v1199_v55 = vsel %vm7547_vm2, %v7543_v16, %v7546_v36  ;;  %v1176_v33 = vsel %vm7222_vm9, %v1172_v38, 0.0  ;;  %v7549_v14 = vld [vmem:[#allocation13_spill] sm:$0xff]  ;;  %v7550_v22 = vld [vmem:[#allocation48_spill] sm:$0xff] }
 0x3e7   :  { %v2831_v56 = vpop.permute.xlu1 %2830  ;;  %v1203_v44 = vsel %vm7212_vm13, %v1199_v55, 0.0  ;;  %vm7551_vm1 = vcmask 384000   ;;  %vm7554_vm2 = vcmask 392192   ;;  %vm7214_vm13 = vcmask 809984   ;;  %v7566_v16 = vld [vmem:[#allocation52_spill] sm:$0xff] }
 0x3e8   :  { %v2836_v27 = vsel %vm7209_vm0, %v2831_v56, %v2833_v28  ;;  %v7568_v55 = vld [vmem:[#allocation20_spill] sm:$0xff] }
 0x3e9   :  { %v2840_v41 = vsel %vm7221_vm3, %v2836_v27, 0.0  ;;  %v7553_v27 = vld [vmem:[#allocation45_spill] sm:$0xff] }
 0x3ea   :  { %v2842_v8 = vadd.f32 %v2840_v41, %v6070_v5  ;;  %v2985_v9 = vpop.permute.xlu0 %2984 }
 0x3eb   :  { %v2835_v26 = vpop.permute.xlu1 %2834 }
 0x3ec   :  { %v2837_v11 = vsel %vm7209_vm0, %v2833_v28, %v2835_v26  ;;  %vm7542_vm0 = vmmov %vm7540_vm11  ;;  %vm1772_vm11 = vcmask 1022976   ;;  %v7552_v28 = vld [vmem:[#allocation12_spill] sm:$0xff]  ;;  %v7555_v26 = vld [vmem:[#allocation11_spill] sm:$0xff] }
 0x3ed   :  { %v2841_v30 = vsel %vm7220_vm12, %v2837_v11, 0.0  ;;  %v1145_v1 = vsel %vm7542_vm0, %v7538_v37, %v7541_v59  ;;  %vm7548_vm0 = vcmp.ge.s32.totalorder %v5747_v18, 0  ;;  %v1225_v41 = vsel %vm7554_vm2, %v7553_v27, %v7552_v28  ;;  %v7557_v11 = vld [vmem:[#allocation14_spill] sm:$0xff]  ;;  %v7561_v37 = vld [vmem:[#allocation47_spill] sm:$0xff] }
 0x3ee   :  { %v2843_v61 = vadd.f32 %v2841_v30, %v6079_v48  ;;  %v2989_v5 = vpop.permute.xlu0 %2988  ;;  %v1149_v51 = vsel %vm1074_vm8, %v1145_v1, 0.0  ;;  %v1202_v21 = vsel %vm7548_vm0, %v1198_v0, 0.0  ;;  %vm7556_vm0 = vmmov %vm7554_vm2  ;;  %vm7562_vm2 = vcmask 375808   ;;  %v7563_v1 = vld [vmem:[#allocation15_spill] sm:$0xff] }
 0x3ef   :  { %v2987_v3 = vpop.permute.xlu1 %2986  ;;  %v1178_v40 = vadd.f32 %v1176_v33, %v1149_v51  ;;  %v1204_v47 = vadd.f32 %v1202_v21, %v1177_v46  ;;  %v7575_v51 = vld [vmem:[#allocation51_spill] sm:$0xff] }
 0x3f0   :  { %v2990_v48 = vsel %vm7210_vm10, %v2985_v9, %v2987_v3  ;;  %v2991_v19 = vsel %vm7210_vm10, %v2987_v3, %v2989_v5  ;;  %v1226_v9 = vsel %vm7556_vm0, %v7552_v28, %v7555_v26  ;;  %vm7558_vm10 = vmmov %vm7551_vm1  ;;  %v7560_v5 = vld [vmem:[#allocation16_spill] sm:$0xff]  ;;  %vm7570_vm0 = vcmask 285696   ;;  %v7584_v28 = vld [vmem:[#allocation23_spill] sm:$0xff] }
 0x3f1   :  { %v2994_v63 = vsel %vm7221_vm3, %v2990_v48, 0.0  ;;  %v2995_v4 = vsel %vm7220_vm12, %v2991_v19, 0.0  ;;  %v1205_v62 = vadd.f32 %v1203_v44, %v1178_v40  ;;  %v1231_v39 = vadd.f32 %v1225_v41, %v1204_v47  ;;  %v7565_v19 = vld [vmem:[#allocation21_spill] sm:$0xff]  ;;  %v7578_v47 = vld [vmem:[#allocation50_spill] sm:$0xff] }
 0x3f2   :  { %v2996_v20 = vadd.f32 %v2994_v63, %v2974_v2  ;;  %v2997_v6 = vadd.f32 %v2995_v4, %v2975_v49  ;;  %v2855_v13 = vpop.permute.xlu0 %2854  ;;  %v1252_v2 = vsel %vm7551_vm1, %v7550_v22, %v7549_v14  ;;  %vm7213_vm1 = vcmask 891904   ;;  %v7569_v63 = vld [vmem:[#allocation49_spill] sm:$0xff] }
 0x3f3   :  { %v2853_v42 = vpop.permute.xlu1 %2852  ;;  %v1256_v24 = vsel %vm1105_vm14, %v1252_v2, 0.0  ;;  %v1232_v38 = vadd.f32 %v1226_v9, %v1205_v62  ;;  %v1279_v43 = vsel %vm7562_vm2, %v7561_v37, %v7560_v5  ;;  %v1329_v4 = vsel %vm7570_vm0, %v7569_v63, %v7568_v55 }
 0x3f4   :  { %v2858_v60 = vsel %vm1772_vm11, %v2853_v42, %v2855_v13  ;;  %v1258_v36 = vadd.f32 %v1256_v24, %v1231_v39  ;;  %v1283_v46 = vsel %vm7221_vm3, %v1279_v43, 0.0  ;;  %vm7579_vm0 = vcmask 367616  }
 0x3f5   :  { %v2862_v34 = vsel %vm7216_vm4, %v2858_v60, 0.0  ;;  %v1333_v26 = vsel %vm1073_vm5, %v1329_v4, 0.0  ;;  %v7591_v4 = vld [vmem:[#allocation25_spill] sm:$0xff] }
 0x3f6   :  { %v2864_v52 = vadd.f32 %v2862_v34, %v2842_v8  ;;  %v3007_v56 = vpop.permute.xlu0 %3006  ;;  %v1253_v8 = vsel %vm7558_vm10, %v7549_v14, %v7557_v11  ;;  %vm7567_vm10 = vcmask 277504   ;;  %v7577_v34 = vld [vmem:[#allocation17_spill] sm:$0xff] }
 0x3f7   :  { %v2857_v49 = vpop.permute.xlu1 %2856  ;;  %v1257_v3 = vsel %vm7218_vm15, %v1253_v8, 0.0  ;;  %v1352_v58 = vsel %vm7567_vm10, %v7566_v16, %v7565_v19  ;;  %v1306_v62 = vsel %vm7579_vm0, %v7578_v47, %v7577_v34  ;;  %v7589_v16 = vld [vmem:[#allocation54_spill] sm:$0xff] }
 0x3f8   :  { %v2859_v30 = vsel %vm1772_vm11, %v2855_v13, %v2857_v49  ;;  %v7574_v13 = vld [vmem:[#allocation24_spill] sm:$0xff]  ;;  %v1356_v14 = vsel %vm7215_vm7, %v1352_v58, 0.0  ;;  %v7580_v49 = vld [vmem:[#allocation18_spill] sm:$0xff] }
 0x3f9   :  { %v2863_v12 = vsel %vm7559_vm6, %v2859_v30, 0.0  ;;  %vm7564_vm6 = vmmov %vm7562_vm2  ;;  %vm7571_vm2 = vcmp.lt.s32.totalorder %v5832_v10, 16  ;;  %v1259_v30 = vadd.f32 %v1257_v3, %v1232_v38  ;;  %v1358_v24 = vadd.f32 %v1356_v14, %v1333_v26 }
 0x3fa   :  { %v2865_v54 = vadd.f32 %v2863_v12, %v2843_v61  ;;  %v3011_v59 = vpop.permute.xlu0 %3010  ;;  %v1280_v48 = vsel %vm7564_vm6, %v7560_v5, %v7563_v1  ;;  %vm7573_vm6 = vmmov %vm7567_vm10  ;;  %vm7576_vm10 = vcmask 269312   ;;  %v1285_v12 = vadd.f32 %v1283_v46, %v1258_v36 }
 0x3fb   :  { %v3009_v31 = vpop.permute.xlu1 %3008  ;;  %v1353_v42 = vsel %vm7573_vm6, %v7565_v19, %v7572_v15  ;;  %v1375_v21 = vsel %vm7576_vm10, %v7575_v51, %v7574_v13  ;;  %v1284_v40 = vsel %vm7220_vm12, %v1280_v48, 0.0  ;;  %vm7583_vm6 = vcmask 285696   ;;  %v7588_v19 = vld [vmem:[#allocation26_spill] sm:$0xff] }
 0x3fc   :  { %v3012_v61 = vsel %vm7213_vm1, %v3007_v56, %v3009_v31  ;;  %v3013_v0 = vsel %vm7213_vm1, %v3009_v31, %v3011_v59  ;;  %v1376_v27 = vsel %vm7576_vm10, %v7574_v13, %v7584_v28  ;;  %v1357_v9 = vsel %vm7222_vm9, %v1353_v42, 0.0  ;;  %v7594_v15 = vld [vmem:[#allocation58_spill] sm:$0xff]  ;;  %v7596_v13 = vld [vmem:[#allocation33_spill] sm:$0xff] }
 0x3fd   :  { %v3016_v32 = vsel %vm7216_vm4, %v3012_v61, 0.0  ;;  %v3017_v33 = vsel %vm7571_vm2, %v3013_v0, 0.0  ;;  %vm7581_vm2 = vmmov %vm7579_vm0  ;;  %vm7585_vm0 = vcmp.ge.s32.totalorder %v5747_v18, 0  ;;  %v1310_v5 = vsel %vm7216_vm4, %v1306_v62, 0.0  ;;  %v7601_v62 = vld [vmem:[#allocation28_spill] sm:$0xff] }
 0x3fe   :  { %v3018_v44 = vadd.f32 %v3016_v32, %v2996_v20  ;;  %v6215_v60 = vadd.f32 %v3017_v33, %v2997_v6  ;;  %v3031_v2 = vpop.permute.xlu0 %3030  ;;  %v1307_v20 = vsel %vm7581_vm2, %v7577_v34, %v7580_v49  ;;  %v7582_v6 = vld [vmem:[#allocation19_spill] sm:$0xff]  ;;  %v1379_v11 = vsel %vm7585_vm0, %v1375_v21, 0.0  ;;  %v7593_v33 = vld [vmem:[#allocation34_spill] sm:$0xff]  ;;  %v7599_v34 = vld [vmem:[#allocation53_spill] sm:$0xff] }
 0x3ff   :  { %v3029_v22 = vpop.permute.xlu1 %3028  ;;  %v1330_v56 = vsel %vm7583_vm6, %v7568_v55, %v7582_v6  ;;  %vm7586_vm2 = vcmp.lt.s32.totalorder %v5832_v10, 16  ;;  %vm7587_vm6 = vcmp.ge.s32.totalorder %v5757_v25, 0  ;;  %v1286_v48 = vadd.f32 %v1284_v40, %v1259_v30  ;;  %v7604_v49 = vld [vmem:[#allocation56_spill] sm:$0xff]  ;;  %v7606_v6 = vld [vmem:[#allocation35_spill] sm:$0xff] }
 0x400   :  { %v3034_v41 = vsel %vm7214_vm13, %v3029_v22, %v3031_v2  ;;  %v1311_v37 = vsel %vm7586_vm2, %v1307_v20, 0.0  ;;  %v1334_v43 = vsel %vm1074_vm8, %v1330_v56, 0.0  ;;  %v1380_v31 = vsel %vm7587_vm6, %v1376_v27, 0.0  ;;  %v7607_v56 = vld [vmem:[#allocation57_spill] sm:$0xff]  ;;  %v7609_v27 = vld [vmem:[#allocation36_spill] sm:$0xff] }
 0x401   :  { %v3038_v8 = vsel %vm1073_vm5, %v3034_v41, 0.0  ;;  %v1359_v38 = vadd.f32 %v1357_v9, %v1334_v43  ;;  %v1381_v3 = vadd.f32 %v1379_v11, %v1358_v24  ;;  %vm7590_vm10 = vcmask 261120   ;;  %v7611_v24 = vld [vmem:[#allocation29_spill] sm:$0xff]  ;;  %v7614_v43 = vld [vmem:[#allocation60_spill] sm:$0xff] }
 0x402   :  { %v6244_v39 = vadd.f32 %v3038_v8, %v2864_v52  ;;  %v3183_v1 = vpop.permute.xlu0 %3182  ;;  %v1398_v58 = vsel %vm7590_vm10, %v7589_v16, %v7588_v19  ;;  %v1312_v0 = vadd.f32 %v1310_v5, %v1285_v12  ;;  %v1313_v36 = vadd.f32 %v1311_v37, %v1286_v48  ;;  %vm7592_vm0 = vmmov %vm7590_vm10  ;;  %v7613_v37 = vld [vmem:[#allocation38_spill] sm:$0xff]  ;;  %v7618_v16 = vld [vmem:[#allocation31_spill] sm:$0xff] }
 0x403   :  { %v3033_v59 = vpop.permute.xlu1 %3032  ;;  %v1382_v55 = vadd.f32 %v1380_v31, %v1359_v38  ;;  %v1399_v32 = vsel %vm7592_vm0, %v7588_v19, %v7591_v4  ;;  %vm7595_vm2 = vcmask 154624   ;;  %vm7217_vm10 = vcmask 678912  }
 0x404   :  { %v3035_v52 = vsel %vm7214_vm13, %v3031_v2, %v3033_v59  ;;  %v1490_v42 = vsel %vm7595_vm2, %v7594_v15, %v7593_v33  ;;  %vm7597_vm6 = vmmov %vm7595_vm2  ;;  %v1404_v40 = vadd.f32 %v1398_v58, %v1381_v3  ;;  %vm7600_vm1 = vcmask 252928   ;;  %v7603_v2 = vld [vmem:[#allocation30_spill] sm:$0xff]  ;;  %v7616_v59 = vld [vmem:[#allocation37_spill] sm:$0xff] }
 0x405   :  { %v3039_v61 = vsel %vm1074_vm8, %v3035_v52, 0.0  ;;  %v1491_v51 = vsel %vm7597_vm6, %v7593_v33, %v7596_v13  ;;  %vm7602_vm0 = vmmov %vm7600_vm1  ;;  %vm7605_vm2 = vcmask 244736   ;;  %vm7608_vm6 = vcmask 146432   ;;  %v7619_v58 = vld [vmem:[#allocation55_spill] sm:$0xff] }
 0x406   :  { %v6260_v63 = vadd.f32 %v3039_v61, %v2865_v54  ;;  %v6273_v46 = vpop.permute.xlu0 %3186  ;;  %v7598_v54 = vld [vmem:[#allocation27_spill] sm:$0xff]  ;;  %v1444_v20 = vsel %vm7605_vm2, %v7604_v49, %v7603_v2  ;;  %v1513_v28 = vsel %vm7608_vm6, %v7607_v56, %v7606_v6  ;;  %vm7610_vm13 = vmmov %vm7608_vm6  ;;  %v1405_v9 = vadd.f32 %v1399_v32, %v1382_v55  ;;  %v7621_v55 = vld [vmem:[#allocation32_spill] sm:$0xff] }
 0x407   :  { %v6271_v21 = vpop.permute.xlu1 %3184  ;;  %v1421_v47 = vsel %vm7600_vm1, %v7599_v34, %v7598_v54  ;;  %v1422_v14 = vsel %vm7602_vm0, %v7598_v54, %v7601_v62  ;;  %v1514_v41 = vsel %vm7610_vm13, %v7606_v6, %v7609_v27  ;;  %v1494_v11 = vsel %vm1073_vm5, %v1490_v42, 0.0  ;;  %vm7612_vm1 = vmmov %vm7605_vm2  ;;  %v7627_v6 = vld [vmem:[#allocation119_spill] sm:$0xff] }
 0x408   :  { %v3188_v22 = vsel %vm7217_vm10, %v3183_v1, %v6271_v21  ;;  %v1495_v8 = vsel %vm1074_vm8, %v1491_v51, 0.0  ;;  %v1425_v12 = vsel %vm1105_vm14, %v1421_v47, 0.0  ;;  %v1445_v5 = vsel %vm7612_vm1, %v7603_v2, %v7611_v24  ;;  %v7630_v27 = vld [vmem:[#allocation59_spill] sm:$0xff] }
 0x409   :  { %v3192_v26 = vsel %vm1073_vm5, %v3188_v22, 0.0  ;;  %vm7615_vm13 = vcmask 138240   ;;  %v1448_v3 = vsel %vm7221_vm3, %v1444_v20, 0.0  ;;  %v1517_v52 = vsel %vm7215_vm7, %v1513_v28, 0.0  ;;  %v7626_v20 = vld [vmem:[#allocation120_spill] sm:$0xff]  ;;  %v7629_v28 = vld [vmem:[#allocation39_spill] sm:$0xff] }
 0x40a   :  { %v6298_v30 = vadd.f32 %v3192_v26, %v3018_v44  ;;  %v1536_v31 = vsel %vm7615_vm13, %v7614_v43, %v7613_v37  ;;  %vm7617_vm0 = vmmov %vm7615_vm13  ;;  %v6313_v38 = vpop.permute.xlu0 %3052  ;;  %v1426_v44 = vsel %vm7218_vm15, %v1422_v14, 0.0  ;;  %v1518_v19 = vsel %vm7222_vm9, %v1514_v41, 0.0  ;;  %v7632_v26 = vld [vmem:[#allocation40_spill] sm:$0xff] }
 0x40b   :  { %v1537_v1 = vsel %vm7617_vm0, %v7613_v37, %v7616_v59  ;;  %v6311_v48 = vpop.permute.xlu1 %3050  ;;  %vm7620_vm2 = vcmask 236544   ;;  %v1496_v32 = vadd.f32 %v1494_v11, %v1312_v0  ;;  %v1497_v33 = vadd.f32 %v1495_v8, %v1313_v36  ;;  %v7634_v11 = vld [vmem:[#allocation63_spill] sm:$0xff]  ;;  %v7637_v37 = vld [vmem:[#allocation122_spill] sm:$0xff] }
 0x40c   :  { %v1467_v61 = vsel %vm7620_vm2, %v7619_v58, %v7618_v16  ;;  %vm7622_vm6 = vmmov %vm7620_vm2  ;;  %v1427_v15 = vadd.f32 %v1425_v12, %v1404_v40  ;;  %v1449_v42 = vsel %vm7220_vm12, %v1445_v5, 0.0  ;;  %vm7623_vm1 = vcmp.ge.s32.totalorder %v5747_v18, 0  ;;  %v7636_v5 = vld [vmem:[#allocation121_spill] sm:$0xff]  ;;  %v7644_v58 = vld [vmem:[#allocation66_spill] sm:$0xff] }
 0x40d   :  { %v1468_v4 = vsel %vm7622_vm6, %v7618_v16, %v7621_v55  ;;  %v1540_v13 = vsel %vm7623_vm1, %v1536_v31, 0.0  ;;  %vm7624_vm13 = vcmp.ge.s32.totalorder %v5757_v25, 0  ;;  %v1428_v54 = vadd.f32 %v1426_v44, %v1405_v9  ;;  %v7640_v44 = vld [vmem:[#allocation62_spill] sm:$0xff] }
 0x40e   :  { %v1541_v51 = vsel %vm7624_vm13, %v1537_v1, 0.0  ;;  %v1519_v34 = vadd.f32 %v1517_v52, %v1496_v32  ;;  %v1520_v47 = vadd.f32 %v1518_v19, %v1497_v33  ;;  %v6337_v14 = vpop.permute.xlu0 %3204  ;;  %v1450_v22 = vadd.f32 %v1448_v3, %v1427_v15  ;;  %v7639_v1 = vld [vmem:[#allocation42_spill] sm:$0xff]  ;;  %v7642_v52 = vld [vmem:[#allocation41_spill] sm:$0xff]  ;;  %v7646_v33 = vld [vmem:[#allocation124_spill] sm:$0xff] }
 0x40f   :  { %v6335_v62 = vpop.permute.xlu1 %3054  ;;  %v1471_v0 = vsel %vm7216_vm4, %v1467_v61, 0.0  ;;  %vm7625_vm0 = vcmp.lt.s32.totalorder %v5832_v10, 16  ;;  %v1451_v40 = vadd.f32 %v1449_v42, %v1428_v54  ;;  %vm7628_vm2 = vcmask 23552   ;;  %v7647_v15 = vld [vmem:[#allocation123_spill] sm:$0xff] }
 0x410   :  { %v1472_v36 = vsel %vm7625_vm0, %v1468_v4, 0.0  ;;  %v1542_v2 = vadd.f32 %v1540_v13, %v1519_v34  ;;  %v1543_v49 = vadd.f32 %v1541_v51, %v1520_v47  ;;  %v1652_v56 = vsel %vm7628_vm2, %v7627_v6, %v7626_v20  ;;  %vm7635_vm13 = vmmov %vm7628_vm2  ;;  %v7649_v13 = vld [vmem:[#allocation115_spill] sm:$0xff]  ;;  %v7650_v51 = vld [vmem:[#allocation61_spill] sm:$0xff] }
 0x411   :  { %vm7631_vm6 = vcmask 130048   ;;  %v1651_v8 = vsel %vm7635_vm13, %v7634_v11, %v7627_v6  ;;  %v1473_v12 = vadd.f32 %v1471_v0, %v1450_v22  ;;  %v1474_v24 = vadd.f32 %v1472_v36, %v1451_v40  ;;  %v7652_v34 = vld [vmem:[#allocation116_spill] sm:$0xff]  ;;  %v7654_v0 = vld [vmem:[#allocation65_spill] sm:$0xff] }
 0x412   :  { %v1559_v41 = vsel %vm7631_vm6, %v7630_v27, %v7629_v28  ;;  %vm7633_vm1 = vmmov %vm7631_vm6  ;;  %vm7638_vm0 = vcmask 15360   ;;  %v6362_v59 = vpop.permute.xlu0 %3208  ;;  %vm7641_vm2 = vcmask 121856   ;;  %v1656_v16 = vsel %vm1074_vm8, %v1652_v56, 0.0  ;;  %v7657_v27 = vld [vmem:[#allocation64_spill] sm:$0xff] }
 0x413   :  { %v1560_v9 = vsel %vm7633_vm1, %v7629_v28, %v7632_v26  ;;  %v1675_v43 = vsel %vm7638_vm0, %v7637_v37, %v7636_v5  ;;  %v6360_v31 = vpop.permute.xlu1 %3206  ;;  %v1582_v3 = vsel %vm7641_vm2, %v7640_v44, %v7639_v1  ;;  %vm7643_vm6 = vmmov %vm7641_vm2  ;;  %v1565_v55 = vadd.f32 %v1559_v41, %v1542_v2  ;;  %v7656_v28 = vld [vmem:[#allocation118_spill] sm:$0xff]  ;;  %v7659_v26 = vld [vmem:[#allocation117_spill] sm:$0xff] }
 0x414   :  { %v1583_v19 = vsel %vm7643_vm6, %v7639_v1, %v7642_v52  ;;  %vm7645_vm1 = vmmov %vm7638_vm0  ;;  %v1566_v4 = vadd.f32 %v1560_v9, %v1543_v49  ;;  %v1655_v32 = vsel %vm1073_vm5, %v1651_v8, 0.0  ;;  %vm7648_vm13 = vcmask 7168  }
 0x415   :  { %v1674_v61 = vsel %vm7645_vm1, %v7644_v58, %v7637_v37  ;;  %v1697_v42 = vsel %vm7648_vm13, %v7647_v15, %v7646_v33  ;;  %vm7651_vm0 = vcmask 113664   ;;  %v1679_v22 = vsel %vm7222_vm9, %v1675_v43, 0.0  ;;  %vm7655_vm6 = vmmov %vm7648_vm13  ;;  %v7664_v58 = vld [vmem:[#allocation69_spill] sm:$0xff] }
 0x416   :  { %v1605_v54 = vsel %vm7651_vm0, %v7650_v51, %v7649_v13  ;;  %vm7653_vm2 = vmmov %vm7651_vm0  ;;  %v1696_v36 = vsel %vm7655_vm6, %v7654_v0, %v7647_v15  ;;  %v1586_v40 = vsel %vm1105_vm14, %v1582_v3, 0.0  ;;  %v1587_v2 = vsel %vm7218_vm15, %v1583_v19, 0.0  ;;  %v6399_v56 = vpop.permute.xlu0 %3074  ;;  %v7671_v0 = vld [vmem:[#allocation126_spill] sm:$0xff] }
 0x417   :  { %v1606_v47 = vsel %vm7653_vm2, %v7649_v13, %v7652_v34  ;;  %v1658_v49 = vadd.f32 %v1656_v16, %v1474_v24  ;;  %v1678_v20 = vsel %vm7215_vm7, %v1674_v61, 0.0  ;;  %v6397_v6 = vpop.permute.xlu1 %3072  ;;  %vm7658_vm1 = vcmask 105472   ;;  %v7665_v61 = vld [vmem:[#allocation131_spill] sm:$0xff]  ;;  %v7667_v13 = vld [vmem:[#allocation132_spill] sm:$0xff] }
 0x418   :  { %v1628_v41 = vsel %vm7658_vm1, %v7657_v27, %v7656_v28  ;;  %vm7660_vm13 = vmmov %vm7658_vm1  ;;  %v1657_v11 = vadd.f32 %v1655_v32, %v1473_v12  ;;  %vm7661_vm0 = vcmp.ge.s32.totalorder %v5757_v25, 0  ;;  %v1609_v24 = vsel %vm7221_vm3, %v1605_v54, 0.0  ;;  %v7669_v54 = vld [vmem:[#allocation114_spill] sm:$0xff] }
 0x419   :  { %v1629_v9 = vsel %vm7660_vm13, %v7656_v28, %v7659_v26  ;;  %v1701_v8 = vsel %vm7661_vm0, %v1697_v42, 0.0  ;;  %v1610_v5 = vsel %vm7220_vm12, %v1606_v47, 0.0  ;;  %v1681_v37 = vadd.f32 %v1679_v22, %v1658_v49  ;;  %v7670_v47 = vld [vmem:[#allocation113_spill] sm:$0xff]  ;;  %v7675_v49 = vld [vmem:[#allocation134_spill] sm:$0xff] }
 0x41a   :  { %vm7662_vm2 = vcmp.ge.s32.totalorder %v5747_v18, 0  ;;  %v1588_v1 = vadd.f32 %v1586_v40, %v1565_v55  ;;  %v1589_v44 = vadd.f32 %v1587_v2, %v1566_v4  ;;  %v1680_v3 = vadd.f32 %v1678_v20, %v1657_v11  ;;  %v6425_v15 = vpop.permute.xlu0 %3226  ;;  %v7674_v2 = vld [vmem:[#allocation72_spill] sm:$0xff]  ;;  %v7677_v26 = vld [vmem:[#allocation133_spill] sm:$0xff] }
 0x41b   :  { %v1700_v43 = vsel %vm7662_vm2, %v1696_v36, 0.0  ;;  %v1705_v52 = vstv %s6355_s17  ;;  %v1632_v12 = vsel %vm7216_vm4, %v1628_v41, 0.0  ;;  %vm7663_vm6 = vcmp.lt.s32.totalorder %v5832_v10, 16  ;;  %v6423_v33 = vpop.permute.xlu1 %3076  ;;  %v7672_v36 = vld [vmem:[#allocation125_spill] sm:$0xff] }
 0x41c   :  { %v1633_v19 = vsel %vm7663_vm6, %v1629_v9, 0.0  ;;  %v1703_v16 = vadd.f32 %v1701_v8, %v1681_v37  ;;  %vm7666_vm1 = vcmask 941056   ;;  %v1611_v42 = vadd.f32 %v1609_v24, %v1588_v1  ;;  %v7679_v8 = vld [vmem:[#allocation68_spill] sm:$0xff]  ;;  %v7681_v37 = vld [vmem:[#allocation71_spill] sm:$0xff] }
 0x41d   :  { %v1797_v32 = vsel %vm7666_vm1, %v7665_v61, %v7664_v58  ;;  %v1612_v55 = vadd.f32 %v1610_v5, %v1589_v44  ;;  %v1702_v4 = vadd.f32 %v1700_v43, %v1680_v3  ;;  %vm7668_vm13 = vmmov %vm7666_vm1  ;;  %v1707_v34 = vmul.f32 %v1705_v52, %v7669_v54  ;;  %v7682_v43 = vld [vmem:[#allocation135_spill] sm:$0xff] }
 0x41e   :  { %v1796_v51 = vsel %vm7668_vm13, %v7667_v13, %v7665_v61  ;;  %v1706_v22 = vmul.f32 %v1705_v52, %v7670_v47  ;;  %vm7673_vm0 = vcmask 1039360   ;;  %vm7676_vm2 = vcmask 932864   ;;  %v6453_v3 = vpop.permute.xlu0 %3230  ;;  %v7686_v61 = vld [vmem:[#allocation67_spill] sm:$0xff]  ;;  %v7692_v47 = vld [vmem:[#allocation129_spill] sm:$0xff] }
 0x41f   :  { %v1727_v40 = vsel %vm7673_vm0, %v7672_v36, %v7671_v0  ;;  %v1820_v20 = vsel %vm7676_vm2, %v7675_v49, %v7674_v2  ;;  %v1634_v28 = vadd.f32 %v1632_v12, %v1611_v42  ;;  %v1635_v27 = vadd.f32 %v1633_v19, %v1612_v55  ;;  %vm7678_vm6 = vmmov %vm7676_vm2  ;;  %v6451_v44 = vpop.permute.xlu1 %3228  ;;  %v7689_v55 = vld [vmem:[#allocation128_spill] sm:$0xff] }
 0x420   :  { %v1801_v41 = vsel %vm1074_vm8, %v1797_v32, 0.0  ;;  %v1819_v9 = vsel %vm7678_vm6, %v7677_v26, %v7675_v49  ;;  %v1711_v11 = vadd.f32 %v1707_v34, %v1703_v16  ;;  %vm7680_vm1 = vmmov %vm7673_vm0  ;;  %v1800_v5 = vsel %vm1073_vm5, %v1796_v51, 0.0  ;;  %v7684_v16 = vld [vmem:[#allocation136_spill] sm:$0xff]  ;;  %v7687_v32 = vld [vmem:[#allocation127_spill] sm:$0xff] }
 0x421   :  { %v1728_v24 = vsel %vm7680_vm1, %v7671_v0, %v7679_v8  ;;  %vm7683_vm13 = vcmask 924672   ;;  %vm7219_vm0 = vcmask 801792   ;;  %v1710_v52 = vadd.f32 %v1706_v22, %v1702_v4  ;;  %v7691_v34 = vld [vmem:[#allocation130_spill] sm:$0xff] }
 0x422   :  { %v1843_v1 = vsel %vm7683_vm13, %v7682_v43, %v7681_v37  ;;  %v1731_v12 = vsel %vm1105_vm14, %v1727_v40, 0.0  ;;  %v1824_v19 = vsel %vm7222_vm9, %v1820_v20, 0.0  ;;  %vm7685_vm2 = vmmov %vm7683_vm13  ;;  %vm7688_vm6 = vcmask 1031168   ;;  %v7694_v40 = vld [vmem:[#allocation70_spill] sm:$0xff] }
 0x423   :  { %v1842_v58 = vsel %vm7685_vm2, %v7684_v16, %v7682_v43  ;;  %v1751_v42 = vsel %vm7688_vm6, %v7687_v32, %v7686_v61  ;;  %vm7690_vm1 = vmmov %vm7688_vm6  ;;  %v1803_v51 = vadd.f32 %v1801_v41, %v1635_v27  ;;  %v1823_v4 = vsel %vm7215_vm7, %v1819_v9, 0.0  ;;  %v6482_v27 = vpop.permute.xlu1 %3094  ;;  %v6484_v41 = vpop.permute.xlu0 %3096  ;;  %v7696_v43 = vld [vmem:[#allocation73_spill] sm:$0xff] }
 0x424   :  { %v1750_v13 = vsel %vm7690_vm1, %v7689_v55, %v7687_v32  ;;  %v1732_v54 = vsel %vm7218_vm15, %v1728_v24, 0.0  ;;  %v1773_v22 = vsel %vm1772_vm11, %v7692_v47, %v7691_v34  ;;  %v1802_v0 = vadd.f32 %v1800_v5, %v1634_v28  ;;  %v7703_v32 = vld [vmem:[#allocation140_spill] sm:$0xff]  ;;  %v7708_v47 = vld [vmem:[#allocation142_spill] sm:$0xff] }
 0x425   :  { %vm7693_vm13 = vcmp.ge.s32.totalorder %v5757_v25, 0  ;;  %v1774_v2 = vsel %vm1772_vm11, %v7691_v34, %v7694_v40  ;;  %v1826_v49 = vadd.f32 %v1824_v19, %v1803_v51  ;;  %vm7695_vm2 = vcmp.ge.s32.totalorder %v5747_v18, 0  ;;  %v7712_v40 = vld [vmem:[#allocation146_spill] sm:$0xff] }
 0x426   :  { %v1847_v36 = vsel %vm7693_vm13, %v1843_v1, 0.0  ;;  %v1846_v20 = vsel %vm7695_vm2, %v1842_v58, 0.0  ;;  %vm2002_vm6 = vcmask 793600   ;;  %v1733_v26 = vadd.f32 %v1731_v12, %v1710_v52  ;;  %v7697_v1 = vld [vmem:[#allocation139_spill] sm:$0xff]  ;;  %v7700_v12 = vld [vmem:[#allocation74_spill] sm:$0xff] }
 0x427   :  { %v1755_v28 = vsel %vm7220_vm12, %v1751_v42, 0.0  ;;  %v1754_v9 = vsel %vm7221_vm3, %v1750_v13, 0.0  ;;  %v1825_v8 = vadd.f32 %v1823_v4, %v1802_v0  ;;  %v1734_v24 = vadd.f32 %v1732_v54, %v1711_v11  ;;  %v7701_v58 = vld [vmem:[#allocation138_spill] sm:$0xff]  ;;  %v7705_v13 = vld [vmem:[#allocation137_spill] sm:$0xff]  ;;  %v6506_v4 = vpop.permute.xlu1 %3098  ;;  %v6508_v54 = vpop.permute.xlu0 %3248 }
 0x428   :  { %v1777_v5 = vsel %vm7216_vm4, %v1773_v22, 0.0  ;;  %v1849_v37 = vadd.f32 %v1847_v36, %v1826_v49  ;;  %vm7698_vm11 = vcmask 908288   ;;  %vm7699_vm1 = vcmp.lt.s32.totalorder %v5832_v10, 16  ;;  %7707 = vst [vmem:[#allocation183_spill] sm:$0xff] %v6508_v54  ;;  %v7709_v22 = vld [vmem:[#allocation141_spill] sm:$0xff]  ;;  %v7711_v36 = vld [vmem:[#allocation78_spill] sm:$0xff] }
 0x429   :  { %v1889_v19 = vsel %vm7698_vm11, %v7697_v1, %v7696_v43  ;;  %v1778_v16 = vsel %vm7699_vm1, %v1774_v2, 0.0  ;;  %v1848_v52 = vadd.f32 %v1846_v20, %v1825_v8  ;;  %vm7702_vm13 = vcmask 916480   ;;  %vm7704_vm2 = vmmov %vm7698_vm11  ;;  %v7714_v8 = vld [vmem:[#allocation76_spill] sm:$0xff]  ;;  %v7716_v43 = vld [vmem:[#allocation145_spill] sm:$0xff] }
 0x42a   :  { %v1866_v61 = vsel %vm7702_vm13, %v7701_v58, %v7700_v12  ;;  %v1888_v11 = vsel %vm7704_vm2, %v7703_v32, %v7697_v1  ;;  %v1757_v42 = vadd.f32 %v1755_v28, %v1734_v24  ;;  %v1756_v55 = vadd.f32 %v1754_v9, %v1733_v26  ;;  %vm7706_vm7 = vmmov %vm7702_vm13  ;;  %v7719_v12 = vld [vmem:[#allocation147_spill] sm:$0xff] }
 0x42b   :  { %v1865_v51 = vsel %vm7706_vm7, %v7705_v13, %v7701_v58  ;;  %vm2140_vm4 = vcmask 670720   ;;  %v1893_v34 = vsel %vm7218_vm15, %v1889_v19, 0.0  ;;  %vm7710_vm11 = vcmask 900096   ;;  %v7718_v19 = vld [vmem:[#allocation77_spill] sm:$0xff]  ;;  %v7724_v13 = vld [vmem:[#allocation75_spill] sm:$0xff] }
 0x42c   :  { %v1911_v0 = vsel %vm7710_vm11, %v7709_v22, %v7708_v47  ;;  %vm7713_vm1 = vcmask 809984   ;;  %vm2025_vm13 = vcmask 785408   ;;  %vm2048_vm2 = vcmask 777216   ;;  %vm7715_vm7 = vmmov %vm7710_vm11  ;;  %v7727_v22 = vld [vmem:[#allocation80_spill] sm:$0xff] }
 0x42d   :  { %v1958_v2 = vsel %vm7713_vm1, %v7712_v40, %v7711_v36  ;;  %vm2163_vm10 = vcmask 662528   ;;  %v1779_v49 = vadd.f32 %v1777_v5, %v1756_v55  ;;  %v1780_v20 = vadd.f32 %v1778_v16, %v1757_v42  ;;  %vm7717_vm11 = vmmov %vm7713_vm1  ;;  %v7720_v16 = vld [vmem:[#allocation143_spill] sm:$0xff]  ;;  %v6538_v42 = vpop.permute.xlu0 %3252 }
 0x42e   :  { %v1872_v26 = vadd.f32 %v1866_v61, %v1849_v37  ;;  %v1892_v28 = vsel %vm1105_vm14, %v1888_v11, 0.0  ;;  %v1871_v9 = vadd.f32 %v1865_v51, %v1848_v52  ;;  %v1912_v24 = vsel %vm7715_vm7, %v7708_v47, %v7714_v8  ;;  %v7721_v61 = vld [vmem:[#allocation144_spill] sm:$0xff]  ;;  %v6536_v11 = vpop.permute.xlu1 %3250  ;;  %7723 = vst [vmem:[#allocation8_spill] sm:$0xff] %v6538_v42 }
 0x42f   :  { %v1957_v1 = vsel %vm7717_vm11, %v7716_v43, %v7712_v40  ;;  %v1981_v58 = vsel %vm7219_vm0, %v7719_v12, %v7718_v19  ;;  %vm2071_vm1 = vcmask 769024   ;;  %v1915_v37 = vsel %vm7221_vm3, %v1911_v0, 0.0  ;;  %v7728_v0 = vld [vmem:[#allocation150_spill] sm:$0xff] }
 0x430   :  { %v1895_v5 = vadd.f32 %v1893_v34, %v1872_v26  ;;  %vm7722_vm15 = vcmask 891904   ;;  %v1962_v32 = vsel %vm1074_vm8, %v1958_v2, 0.0  ;;  %v1894_v55 = vadd.f32 %v1892_v28, %v1871_v9  ;;  %v7726_v34 = vld [vmem:[#allocation148_spill] sm:$0xff]  ;;  %v7729_v28 = vld [vmem:[#allocation163_spill] sm:$0xff]  ;;  %v7730_v9 = vld [vmem:[#allocation162_spill] sm:$0xff] }
 0x431   :  { %v1934_v52 = vsel %vm7722_vm15, %v7721_v61, %v7720_v16  ;;  %vm7725_vm7 = vmmov %vm7722_vm15  ;;  %v1980_v47 = vsel %vm7219_vm0, %v7726_v34, %v7719_v12  ;;  %v2004_v36 = vsel %vm2002_vm6, %v7728_v0, %v7727_v22  ;;  %v1916_v40 = vsel %vm7220_vm12, %v1912_v24, 0.0 }
 0x432   :  { %v1935_v51 = vsel %vm7725_vm7, %v7720_v16, %v7724_v13  ;;  %v1961_v2 = vsel %vm1073_vm5, %v1957_v1, 0.0  ;;  %v1985_v26 = vsel %vm7222_vm9, %v1981_v58, 0.0  ;;  %vm7731_vm11 = vcmask 678912   ;;  %v7733_v16 = vld [vmem:[#allocation149_spill] sm:$0xff]  ;;  %v7737_v13 = vld [vmem:[#allocation166_spill] sm:$0xff] }
 0x433   :  { %v2118_v8 = vsel %vm7731_vm11, %v7730_v9, %v7729_v28  ;;  %vm2186_vm7 = vcmask 654336   ;;  %v1917_v43 = vadd.f32 %v1915_v37, %v1894_v55  ;;  %vm7732_vm0 = vcmp.lt.s32.totalorder %v5808_v45, 16  ;;  %v7738_v37 = vld [vmem:[#allocation165_spill] sm:$0xff] }
 0x434   :  { %v1938_v19 = vsel %vm7732_vm0, %v1934_v52, 0.0  ;;  %v1964_v12 = vadd.f32 %v1962_v32, %v1780_v20  ;;  %v2003_v24 = vsel %vm2002_vm6, %v7733_v16, %v7728_v0  ;;  %vm2232_vm12 = vcmask 637952   ;;  %v6572_v52 = vpop.permute.xlu1 %3116  ;;  %v6574_v20 = vpop.permute.xlu0 %3118  ;;  %v7742_v16 = vld [vmem:[#allocation169_spill] sm:$0xff] }
 0x435   :  { %vm7734_vm3 = vcmp.lt.s32.totalorder %v5832_v10, 16  ;;  %vm7735_vm15 = vcmp.ge.s32.totalorder %v5734_v7, 0  ;;  %vm7736_vm9 = vcmp.ge.s32.totalorder %v5757_v25, 0  ;;  %v2141_v55 = vsel %vm2140_vm4, %v7738_v37, %v7737_v13  ;;  %v7743_v37 = vld [vmem:[#allocation168_spill] sm:$0xff] }
 0x436   :  { %v1939_v1 = vsel %vm7734_vm3, %v1935_v51, 0.0  ;;  %v1984_v58 = vsel %vm7735_vm15, %v1980_v47, 0.0  ;;  %v2008_v61 = vsel %vm7736_vm9, %v2004_v36, 0.0  ;;  %v1918_v32 = vadd.f32 %v1916_v40, %v1895_v5  ;;  %v7740_v36 = vld [vmem:[#allocation164_spill] sm:$0xff]  ;;  %vm7741_vm9 = vmmov %vm7731_vm11 }
 0x437   :  { %v1963_v34 = vadd.f32 %v1961_v2, %v1779_v49  ;;  %v1987_v22 = vadd.f32 %v1985_v26, %v1964_v12  ;;  %vm7224_vm0 = vcmask 760832   ;;  %v2122_v51 = vsel %vm1073_vm5, %v2118_v8, 0.0  ;;  %v7745_v2 = vld [vmem:[#allocation151_spill] sm:$0xff]  ;;  %v7746_v8 = vld [vmem:[#allocation154_spill] sm:$0xff] }
 0x438   :  { %v1940_v0 = vadd.f32 %v1938_v19, %v1917_v43  ;;  %vm7739_vm3 = vcmp.ge.s32.totalorder %v5747_v18, 0  ;;  %v2119_v9 = vsel %vm7741_vm9, %v7729_v28, %v7740_v36  ;;  %v2164_v42 = vsel %vm2163_vm10, %v7743_v37, %v7742_v16  ;;  %v7747_v43 = vld [vmem:[#allocation153_spill] sm:$0xff]  ;;  %v7748_v28 = vld [vmem:[#allocation167_spill] sm:$0xff]  ;;  %v6597_v36 = vpop.permute.xlu1 %3120 }
 0x439   :  { %v2007_v47 = vsel %vm7739_vm3, %v2003_v24, 0.0  ;;  %v1941_v54 = vadd.f32 %v1939_v1, %v1918_v32  ;;  %v1986_v5 = vadd.f32 %v1984_v58, %v1963_v34  ;;  %v2010_v49 = vadd.f32 %v2008_v61, %v1987_v22  ;;  %v6599_v1 = vpop.permute.xlu0 %3270  ;;  %v7750_v61 = vld [vmem:[#allocation155_spill] sm:$0xff]  ;;  %vm7751_vm5 = vmmov %vm7739_vm3  ;;  %v7752_v22 = vld [vmem:[#allocation152_spill] sm:$0xff] }
 0x43a   :  { %v2145_v40 = vsel %vm7735_vm15, %v2141_v55, 0.0  ;;  %v2027_v26 = vsel %vm2025_vm13, %v7745_v2, %v7744_v23  ;;  %v2049_v19 = vsel %vm2048_vm2, %v7747_v43, %v7746_v8  ;;  %v2124_v12 = vadd.f32 %v2122_v51, %v1940_v0  ;;  %7749 = vst [vmem:[#allocation43_spill] sm:$0xff] %v6599_v1  ;;  %v7754_v0 = vld [vmem:[#allocation156_spill] sm:$0xff]  ;;  %v7756_v43 = vld [vmem:[#allocation158_spill] sm:$0xff] }
 0x43b   :  { %v2142_v24 = vsel %vm2140_vm4, %v7737_v13, %v7748_v28  ;;  %v2009_v58 = vadd.f32 %v2007_v47, %v1986_v5  ;;  %v2050_v55 = vsel %vm2048_vm2, %v7746_v8, %v7750_v61  ;;  %v2123_v32 = vsel %vm1074_vm8, %v2119_v9, 0.0  ;;  %v7753_v13 = vld [vmem:[#allocation157_spill] sm:$0xff]  ;;  %v7755_v47 = vld [vmem:[#allocation170_spill] sm:$0xff]  ;;  %v7773_v1 = vld [vmem:[#allocation160_spill] sm:$0xff] }
 0x43c   :  { %v2168_v34 = vsel %vm7751_vm5, %v2164_v42, 0.0  ;;  %v2026_v51 = vsel %vm2025_vm13, %v7752_v22, %v7745_v2  ;;  %v2072_v37 = vsel %vm2071_vm1, %v7754_v0, %v7753_v13  ;;  %v2147_v23 = vadd.f32 %v2145_v40, %v2124_v12  ;;  %v7759_v12 = vld [vmem:[#allocation175_spill] sm:$0xff]  ;;  %v7760_v22 = vld [vmem:[#allocation174_spill] sm:$0xff]  ;;  %v7766_v0 = vld [vmem:[#allocation172_spill] sm:$0xff] }
 0x43d   :  { %v2165_v5 = vsel %vm2163_vm10, %v7742_v16, %v7755_v47  ;;  %v2033_v8 = vadd.f32 %v2027_v26, %v2010_v49  ;;  %v2053_v9 = vsel %vm1105_vm14, %v2049_v19, 0.0  ;;  %v2073_v42 = vsel %vm2071_vm1, %v7753_v13, %v7756_v43  ;;  %v6629_v49 = vpop.permute.xlu1 %3272  ;;  %v6631_v26 = vpop.permute.xlu0 %3274  ;;  %v7770_v43 = vld [vmem:[#allocation178_spill] sm:$0xff] }
 0x43e   :  { %vm7757_vm11 = vcmp.ge.s32.totalorder %v5745_v50, 0  ;;  %vm7758_vm3 = vcmp.lt.s32.totalorder %v5763_v17, 16  ;;  %v2125_v61 = vadd.f32 %v2123_v32, %v1941_v54  ;;  %v2170_v40 = vadd.f32 %v2168_v34, %v2147_v23  ;;  %7762 = vst [vmem:[#allocation7_spill] sm:$0xff] %v6629_v49  ;;  %7763 = vst [vmem:[#allocation5_spill] sm:$0xff] %v6631_v26  ;;  %v7769_v23 = vld [vmem:[#allocation176_spill] sm:$0xff]  ;;  %v7772_v26 = vld [vmem:[#allocation173_spill] sm:$0xff] }
 0x43f   :  { %v2146_v2 = vsel %vm7757_vm11, %v2142_v24, 0.0  ;;  %v2054_v28 = vsel %vm7758_vm3, %v2050_v55, 0.0  ;;  %vm7761_vm9 = vcmask 646144   ;;  %vm2255_vm15 = vcmask 629760   ;;  %v7767_v55 = vld [vmem:[#allocation171_spill] sm:$0xff] }
 0x440   :  { %v2210_v16 = vsel %vm7761_vm9, %v7760_v22, %v7759_v12  ;;  %v2032_v19 = vadd.f32 %v2026_v51, %v2009_v58  ;;  %vm7764_vm5 = vcmp.lt.s32.totalorder %v5804_v53, 16  ;;  %vm7765_vm11 = vcmp.ge.s32.totalorder %v5757_v25, 0  ;;  %v7771_v58 = vld [vmem:[#allocation177_spill] sm:$0xff] }
 0x441   :  { %v2076_v13 = vsel %vm7764_vm5, %v2072_v37, 0.0  ;;  %v2169_v24 = vsel %vm7765_vm11, %v2165_v5, 0.0  ;;  %v2187_v54 = vsel %vm2186_vm7, %v7767_v55, %v7766_v0  ;;  %vm7768_vm3 = vcmp.lt.s32.totalorder %v5824_v57, 16 }
 0x442   :  { %v2077_v32 = vsel %vm7768_vm3, %v2073_v42, 0.0  ;;  %v2148_v34 = vadd.f32 %v2146_v2, %v2125_v61  ;;  %v2211_v47 = vsel %vm7761_vm9, %v7759_v12, %v7769_v23  ;;  %v2233_v51 = vsel %vm2232_vm12, %v7771_v58, %v7770_v43  ;;  %v7774_v42 = vld [vmem:[#allocation159_spill] sm:$0xff]  ;;  %v7775_v61 = vld [vmem:[#allocation161_spill] sm:$0xff]  ;;  %v6659_v58 = vpop.permute.xlu1 %3138 }
 0x443   :  { %v2055_v37 = vadd.f32 %v2053_v9, %v2032_v19  ;;  %v2056_v22 = vadd.f32 %v2054_v28, %v2033_v8  ;;  %v2188_v5 = vsel %vm2186_vm7, %v7766_v0, %v7772_v26  ;;  %v2214_v55 = vsel %vm1105_vm14, %v2210_v16, 0.0  ;;  %v6661_v8 = vpop.permute.xlu0 %3140 }
 0x444   :  { %v2095_v2 = vsel %vm7224_vm0, %v7774_v42, %v7773_v1  ;;  %v2096_v12 = vsel %vm7224_vm0, %v7773_v1, %v7775_v61  ;;  %v2171_v23 = vadd.f32 %v2169_v24, %v2148_v34  ;;  %v2193_v49 = vadd.f32 %v2187_v54, %v2170_v40  ;;  %v7778_v42 = vld [vmem:[#allocation179_spill] sm:$0xff] }
 0x445   :  { %v6663_v9 = vadd.f32 %v2076_v13, %v2055_v37  ;;  %v6665_v28 = vadd.f32 %v2077_v32, %v2056_v22  ;;  %vm7776_vm5 = vcmp.lt.s32.totalorder %v5763_v17, 16  ;;  %vm7777_vm11 = vcmp.lt.s32.totalorder %v5804_v53, 16  ;;  %v7787_v37 = vld [vmem:[#allocation181_spill] sm:$0xff] }
 0x446   :  { %v2215_v16 = vsel %vm7776_vm5, %v2211_v47, 0.0  ;;  %v2237_v26 = vsel %vm7777_vm11, %v2233_v51, 0.0  ;;  %v2194_v19 = vadd.f32 %v2188_v5, %v2171_v23  ;;  %v2216_v0 = vadd.f32 %v2214_v55, %v2193_v49  ;;  %v3143_v47 = vpop.permute.xlu1 %3142  ;;  %v7789_v5 = vld [vmem:[#allocation182_spill] sm:$0xff] }
 0x447   :  { %v2234_v1 = vsel %vm2232_vm12, %v7770_v43, %v7778_v42  ;;  %vm7779_vm3 = vcmask 678912   ;;  %vm7780_vm9 = vcmp.lt.s32.totalorder %v5808_v45, 16  ;;  %vm7781_vm0 = vcmp.lt.s32.totalorder %v5832_v10, 16  ;;  %v3293_v43 = vpop.permute.xlu0 %3292 }
 0x448   :  { %v3189_v40 = vsel %vm7779_vm3, %v6271_v21, %v6273_v46  ;;  %v6679_v13 = vsel %vm7780_vm9, %v2095_v2, 0.0  ;;  %v6683_v24 = vsel %vm7781_vm0, %v2096_v12, 0.0  ;;  %vm7782_vm5 = vcmask 801792  }
 0x449   :  { %v3056_v49 = vsel %vm7782_vm5, %v6311_v48, %v6313_v38  ;;  %vm7783_vm11 = vmmov %vm7782_vm5  ;;  %v2217_v32 = vadd.f32 %v2215_v16, %v2194_v19  ;;  %v6691_v34 = vadd.f32 %v2237_v26, %v2216_v0  ;;  %v3210_v21 = vsel %vm2140_vm4, %v6337_v14, %v6360_v31 }
 0x44a   :  { %v3057_v54 = vsel %vm7783_vm11, %v6313_v38, %v6335_v62  ;;  %v3211_v46 = vsel %vm2140_vm4, %v6360_v31, %v6362_v59  ;;  %vm7784_vm0 = vcmp.lt.s32.totalorder %v5824_v57, 16  ;;  %v3193_v51 = vsel %vm1074_vm8, %v3189_v40, 0.0  ;;  %v3295_v61 = vpop.permute.xlu1 %3294 }
 0x44b   :  { %v2238_v48 = vsel %vm7784_vm0, %v2234_v1, 0.0  ;;  %v3078_v38 = vsel %vm2002_vm6, %v6397_v6, %v6399_v56  ;;  %v3079_v62 = vsel %vm2002_vm6, %v6399_v56, %v6423_v33  ;;  %vm7785_vm3 = vcmp.ge.s32.totalorder %v5734_v7, 0  ;;  %v7788_v6 = vld [vmem:[#allocation180_spill] sm:$0xff]  ;;  %v3297_v12 = vpop.permute.xlu0 %3296 }
 0x44c   :  { %v3060_v14 = vsel %vm7785_vm3, %v3056_v49, 0.0  ;;  %vm7786_vm4 = vcmp.ge.s32.totalorder %v5745_v50, 0  ;;  %v3232_v59 = vsel %vm2163_vm10, %v6425_v15, %v6451_v44  ;;  %v3233_v29 = vsel %vm2163_vm10, %v6451_v44, %v6453_v3  ;;  %vm7790_vm8 = vmmov %vm7785_vm3 }
 0x44d   :  { %v3061_v31 = vsel %vm7786_vm4, %v3057_v54, 0.0  ;;  %v2256_v22 = vsel %vm2255_vm15, %v7788_v6, %v7787_v37  ;;  %v2257_v56 = vsel %vm2255_vm15, %v7787_v37, %v7789_v5  ;;  %v3214_v33 = vsel %vm7790_vm8, %v3210_v21, 0.0  ;;  %vm7791_vm6 = vmmov %vm7786_vm4  ;;  %v7799_v21 = vld [vmem:[#allocation8_spill] sm:$0xff] }
 0x44e   :  { %v3215_v55 = vsel %vm7791_vm6, %v3211_v46, 0.0  ;;  %v2240_v2 = vadd.f32 %v2238_v48, %v2217_v32  ;;  %v3195_v15 = vadd.f32 %v3193_v51, %v6215_v60  ;;  %vm7792_vm9 = vcmp.ge.s32.totalorder %v5747_v18, 0  ;;  %v3161_v49 = vpop.permute.xlu1 %3160  ;;  %v7798_v32 = vld [vmem:[#allocation183_spill] sm:$0xff]  ;;  %v7803_v51 = vld [vmem:[#allocation5_spill] sm:$0xff] }
 0x44f   :  { %v3082_v44 = vsel %vm7792_vm9, %v3078_v38, 0.0  ;;  %vm7793_vm10 = vcmp.ge.s32.totalorder %v5757_v25, 0  ;;  %v3062_v23 = vadd.f32 %v3060_v14, %v6244_v39  ;;  %v3063_v16 = vadd.f32 %v3061_v31, %v6260_v63  ;;  %vm7794_vm5 = vmmov %vm7792_vm9  ;;  %v3163_v54 = vpop.permute.xlu0 %3162  ;;  %v7801_v46 = vld [vmem:[#allocation43_spill] sm:$0xff] }
 0x450   :  { %v3083_v3 = vsel %vm7793_vm10, %v3079_v62, 0.0  ;;  %v3236_v7 = vsel %vm7794_vm5, %v3232_v59, 0.0  ;;  %vm7795_vm11 = vmmov %vm7793_vm10  ;;  %vm7796_vm0 = vcmp.lt.s32.totalorder %v5808_v45, 16  ;;  %vm7797_vm3 = vcmp.lt.s32.totalorder %v5832_v10, 16 }
 0x451   :  { %v3237_v50 = vsel %vm7795_vm11, %v3233_v29, 0.0  ;;  %v2260_v60 = vsel %vm7796_vm0, %v2256_v22, 0.0  ;;  %v2261_v26 = vsel %vm7797_vm3, %v2257_v56, 0.0  ;;  %v3216_v19 = vadd.f32 %v3214_v33, %v6298_v30  ;;  %vm7813_vm10 = vmmov %vm7796_vm0 }
 0x452   :  { %v3217_v0 = vadd.f32 %v3215_v55, %v3195_v15  ;;  %v3084_v42 = vadd.f32 %v3082_v44, %v3062_v23  ;;  %v3085_v1 = vadd.f32 %v3083_v3, %v3063_v16  ;;  %v3100_v39 = vsel %vm2025_vm13, %v6482_v27, %v6484_v41  ;;  %v3165_v22 = vpop.permute.xlu1 %3164  ;;  %vm7814_vm5 = vmmov %vm7797_vm3 }
 0x453   :  { %v3101_v18 = vsel %vm2025_vm13, %v6484_v41, %v6506_v4  ;;  %v3238_v25 = vadd.f32 %v3236_v7, %v3216_v19  ;;  %v3122_v40 = vsel %vm2048_vm2, %v6572_v52, %v6574_v20  ;;  %v3123_v30 = vsel %vm2048_vm2, %v6574_v20, %v6597_v36  ;;  %v7800_v4 = vld [vmem:[#allocation7_spill] sm:$0xff]  ;;  %vm7815_vm11 = vmmov %vm7796_vm0 }
 0x454   :  { %v3239_v63 = vadd.f32 %v3237_v50, %v3217_v0  ;;  %v3254_v27 = vsel %vm2186_vm7, %v7798_v32, %v6536_v11  ;;  %v3255_v41 = vsel %vm2186_vm7, %v6536_v11, %v7799_v21  ;;  %vm7802_vm13 = vcmask 646144   ;;  %vm7816_vm0 = vmmov %vm7797_vm3 }
 0x455   :  { %v3276_v48 = vsel %vm7802_vm13, %v7801_v46, %v7800_v4  ;;  %vm7804_vm4 = vmmov %vm7802_vm13  ;;  %v3106_v38 = vadd.f32 %v3100_v39, %v3084_v42  ;;  %v3107_v20 = vadd.f32 %v3101_v18, %v3085_v1  ;;  %v3144_v36 = vsel %vm2071_vm1, %v6659_v58, %v6661_v8 }
 0x456   :  { %v3277_v52 = vsel %vm7804_vm4, %v7800_v4, %v7803_v51  ;;  %v3145_v62 = vsel %vm2071_vm1, %v6661_v8, %v3143_v47  ;;  %v3126_v11 = vsel %vm1105_vm14, %v3122_v40, 0.0  ;;  %vm7805_vm2 = vcmp.lt.s32.totalorder %v5763_v17, 16  ;;  %v3315_v8 = vpop.permute.xlu0 %3314  ;;  %v3317_v50 = vpop.permute.xlu1 %3316 }
 0x457   :  { %v3127_v14 = vsel %vm7805_vm2, %v3123_v30, 0.0  ;;  %v3298_v31 = vsel %vm2232_vm12, %v3293_v43, %v3295_v61  ;;  %v3299_v59 = vsel %vm2232_vm12, %v3295_v61, %v3297_v12  ;;  %v3260_v29 = vadd.f32 %v3254_v27, %v3238_v25  ;;  %vm7806_vm7 = vmmov %vm7805_vm2 }
 0x458   :  { %v3261_v37 = vadd.f32 %v3255_v41, %v3239_v63  ;;  %v3280_v6 = vsel %vm1105_vm14, %v3276_v48, 0.0  ;;  %v3281_v58 = vsel %vm7806_vm7, %v3277_v52, 0.0  ;;  %vm7807_vm1 = vcmp.lt.s32.totalorder %v5804_v53, 16 }
 0x459   :  { %v3148_v47 = vsel %vm7807_vm1, %v3144_v36, 0.0  ;;  %vm7808_vm8 = vcmp.lt.s32.totalorder %v5824_v57, 16  ;;  %vm7809_vm6 = vcmask 760832   ;;  %v3128_v33 = vadd.f32 %v3126_v11, %v3106_v38  ;;  %vm7811_vm12 = vmmov %vm7807_vm1 }
 0x45a   :  { %v3149_v5 = vsel %vm7808_vm8, %v3145_v62, 0.0  ;;  %v3166_v43 = vsel %vm7809_vm6, %v3161_v49, %v3163_v54  ;;  %vm7810_vm9 = vmmov %vm7809_vm6  ;;  %v3129_v55 = vadd.f32 %v3127_v14, %v3107_v20  ;;  %v3302_v35 = vsel %vm7811_vm12, %v3298_v31, 0.0  ;;  %v3319_v19 = vpop.permute.xlu0 %3318 }
 0x45b   :  { %v3167_v56 = vsel %vm7810_vm9, %v3163_v54, %v3165_v22  ;;  %vm7812_vm14 = vmmov %vm7808_vm8  ;;  %v2262_v15 = vadd.f32 %v2260_v60, %v6691_v34  ;;  %v2263_v44 = vadd.f32 %v2261_v26, %v2240_v2  ;;  %v3282_v3 = vadd.f32 %v3280_v6, %v3260_v29 }
 0x45c   :  { %v3303_v17 = vsel %vm7812_vm14, %v3299_v59, 0.0  ;;  %v3283_v61 = vadd.f32 %v3281_v58, %v3261_v37  ;;  %v3150_v12 = vadd.f32 %v3148_v47, %v3128_v33  ;;  %v3151_v23 = vadd.f32 %v3149_v5, %v3129_v55  ;;  %v7818_v5 = vld [vmem:[#allocation83_spill] sm:$0xff]  ;;  %v7820_v55 = vld [vmem:[#allocation81_spill] sm:$0xff] }
 0x45d   :  { %v3170_v16 = vsel %vm7813_vm10, %v3166_v43, 0.0  ;;  %v3171_v7 = vsel %vm7814_vm5, %v3167_v56, 0.0  ;;  %v3304_v53 = vadd.f32 %v3302_v35, %v3282_v3  ;;  %v3320_v57 = vsel %vm2255_vm15, %v3315_v8, %v3317_v50  ;;  %v7819_v56 = vld [vmem:[#allocation84_spill] sm:$0xff] }
 0x45e   :  { %v3305_v0 = vadd.f32 %v3303_v17, %v3283_v61  ;;  %v3321_v42 = vsel %vm2255_vm15, %v3317_v50, %v3319_v19  ;;  %v2101_v34 = vadd.f32 %v6679_v13, %v6663_v9  ;;  %v2102_v2 = vadd.f32 %v6683_v24, %v6665_v28  ;;  %v7822_v61 = vld [vmem:[#allocation85_spill] sm:$0xff]  ;;  %v7825_v19 = vld [vmem:[#allocation88_spill] sm:$0xff] }
 0x45f   :  { %v3324_v60 = vsel %vm7815_vm11, %v3320_v57, 0.0  ;;  %v3325_v26 = vsel %vm7816_vm0, %v3321_v42, 0.0  ;;  %v3172_v1 = vadd.f32 %v3170_v16, %v3150_v12  ;;  %v3173_v39 = vadd.f32 %v3171_v7, %v3151_v23  ;;  %v7823_v23 = vld [vmem:[#allocation86_spill] sm:$0xff]  ;;  %v7824_v7 = vld [vmem:[#allocation87_spill] sm:$0xff]  ;;  %v7827_v42 = vld [vmem:[#allocation92_spill] sm:$0xff] }
 0x460   :  { %v3326_v18 = vadd.f32 %v3324_v60, %v3304_v53  ;;  %v3327_v25 = vadd.f32 %v3325_v26, %v3305_v0  ;;  %v3328_v63 = vadd.f32 %v2262_v15, %v2101_v34  ;;  %v3329_v40 = vadd.f32 %v2263_v44, %v2102_v2  ;;  %v7821_v44 = vld [vmem:[#allocation82_spill] sm:$0xff]  ;;  %v7826_v0 = vld [vmem:[#allocation91_spill] sm:$0xff]  ;;  %v7828_v2 = vld [vmem:[#allocation89_spill] sm:$0xff] }
 0x461   :  { %v3822_v10 = vmov 1966171168   ;;  %v7817_v4 = vlaneseq  ;;  %v7829_v26 = vld [vmem:[#allocation90_spill] sm:$0xff] }
 0x462   :  { %v3330_v30 = vadd.f32 %v3326_v18, %v3172_v1  ;;  %v3331_v49 = vadd.f32 %v3327_v25, %v3173_v39  ;;  %v3350_v21 = vunpack.c.l.s4 %v3822_v10  ;;  %v7830_v39 = vld [vmem:[#allocation93_spill] sm:$0xff]  ;;  %v7831_v25 = vld [vmem:[#allocation94_spill] sm:$0xff] }
 0x463   :  { %v3353_v46 = vshrl.u32 %v7817_v4, 7  ;;  %v7839_v4 = vld [vmem:[#allocation104_spill] sm:$0xff] }
 0x464   :  { %v3332_v54 = vadd.f32 %v3330_v30, %v3328_v63  ;;  %v3333_v32 = vadd.f32 %v3331_v49, %v3329_v40  ;;  %v3351_v41 = vunpack.c.0.s8 %v3350_v21  ;;  %v7832_v40 = vld [vmem:[#allocation95_spill] sm:$0xff]  ;;  %v7833_v49 = vld [vmem:[#allocation96_spill] sm:$0xff] }
 0x465   :  { %v3375_v20 = vsub.s32 0, %v3353_v46  ;;  %v3379_v36 = vsub.s32 1, %v3353_v46  ;;  %v7838_v21 = vld [vmem:[#allocation103_spill] sm:$0xff] }
 0x466   :  { %v3595_v9 = vmul.f32 -1.442695, %v3332_v54  ;;  %v3596_v13 = vmul.f32 -1.442695, %v3333_v32  ;;  %v3354_v51 = vsub.s32 %v3351_v41, %v3353_v46  ;;  %v7834_v32 = vld [vmem:[#allocation99_spill] sm:$0xff] }
 0x468   :  { %3714 = vpow2.f32 %v3595_v9 }
 0x469   :  { %3716 = vpow2.f32 %v3596_v13  ;;  %v7835_v13 = vld [vmem:[#allocation100_spill] sm:$0xff] }
 0x475   :  { %v3715_v28 = vpop.eup %3714 }
 0x476   :  { %v3717_v45 = vpop.eup %3716  ;;  %v3340_v24 = vadd.f32 1.0, %v3715_v28 }
 0x477   :  { %v3341_v27 = vadd.f32 1.0, %v3717_v45  ;;  %v7836_v45 = vld [vmem:[#allocation97_spill] sm:$0xff] }
 0x478   :  { %3718 = vrcp.f32 %v3340_v24 }
 0x479   :  { %3720 = vrcp.f32 %v3341_v27  ;;  %v7837_v27 = vld [vmem:[#allocation98_spill] sm:$0xff] }
 0x485   :  { %v3719_v48 = vpop.eup %3718 }
 0x486   :  { %v3721_v52 = vpop.eup %3720 }
 0x487   :  { %v3348_v38 = vcombine.low %v3719_v48, %v3721_v52  ;;  %v7840_v48 = vld [vmem:[#allocation101_spill] sm:$0xff]  ;;  %v7841_v52 = vld [vmem:[#allocation102_spill] sm:$0xff] }
 0x489   :  { %v3355_v62 = vrot.slane %v3348_v38, %v3354_v51 }
 0x48b   :  { %v3356_v11 = vcombine.high %v3355_v62, %v3355_v62  ;;  %v3363_v14 = vrot.slane %v3355_v62, %v3354_v51  ;;  %v7843_v62 = vld [vmem:[#allocation106_spill] sm:$0xff] }
 0x48d   :  { %v3370_v31 = vrot.slane %v3356_v11, %v3354_v51  ;;  %v3371_v59 = vcombine.high %v3363_v14, %v3363_v14  ;;  %v3376_v29 = vrot.slane %v3363_v14, %v3375_v20  ;;  %v3380_v37 = vrot.slane %v3363_v14, %v3379_v36  ;;  %v7844_v14 = vld [vmem:[#allocation107_spill] sm:$0xff] }
 0x48f   :  { %v3372_v6 = vcombine.high %v3370_v31, %v3370_v31  ;;  %v3384_v58 = vrot.slane %v3370_v31, %v3375_v20  ;;  %v3388_v22 = vrot.slane %v3370_v31, %v3379_v36  ;;  %v3392_v8 = vrot.slane %v3371_v59, %v3375_v20 }
 0x490   :  { %v3396_v47 = vrot.slane %v3371_v59, %v3379_v36  ;;  %v3413_v43 = vmul.f32 %v3376_v29, %v7818_v5  ;;  %v3414_v33 = vmul.f32 %v3380_v37, %v7819_v56  ;;  %v3415_v35 = vmul.f32 %v3376_v29, %v7820_v55  ;;  %v7845_v59 = vld [vmem:[#allocation108_spill] sm:$0xff] }
 0x491   :  { %v3400_v17 = vrot.slane %v3372_v6, %v3375_v20  ;;  %v3404_v15 = vrot.slane %v3372_v6, %v3379_v36  ;;  %v3416_v3 = vmul.f32 %v3380_v37, %v7821_v44  ;;  %v3417_v12 = vmul.f32 %v3376_v29, %v7822_v61  ;;  %v7842_v20 = vld [vmem:[#allocation105_spill] sm:$0xff]  ;;  %v7849_v5 = vld [vmem:[#allocation112_spill] sm:$0xff] }
 0x492   :  { %v3418_v16 = vmul.f32 %v3380_v37, %v7823_v23  ;;  %v3419_v50 = vmul.f32 %v3376_v29, %v7824_v7  ;;  %v3420_v53 = vmul.f32 %v3380_v37, %v7825_v19  ;;  %v3421_v57 = vmul.f32 %v3384_v58, %v7826_v0  ;;  %3445 = vst [vmem:[%s6942_s4] sm:$0xff] %v3413_v43  ;;  %v7846_v37 = vld [vmem:[#allocation109_spill] sm:$0xff] }
 0x493   :  { %3446 = vst [vmem:[%s6942_s4 + $0x8] sm:$0xff] %v3414_v33  ;;  %3447 = vst [vmem:[%s6942_s4 + $0x10] sm:$0xff] %v3415_v35  ;;  %v3422_v34 = vmul.f32 %v3388_v22, %v7827_v42  ;;  %v3423_v60 = vmul.f32 %v3384_v58, %v7828_v2  ;;  %v3424_v1 = vmul.f32 %v3388_v22, %v7829_v26 }
 0x494   :  { %v3425_v18 = vmul.f32 %v3384_v58, %v7830_v39  ;;  %3448 = vst [vmem:[%s6942_s4 + $0x18] sm:$0xff] %v3416_v3  ;;  %3449 = vst [vmem:[%s6942_s4 + $0x20] sm:$0xff] %v3417_v12  ;;  %v3426_v63 = vmul.f32 %v3388_v22, %v7831_v25  ;;  %v3427_v30 = vmul.f32 %v3384_v58, %v7832_v40  ;;  %v7847_v58 = vld [vmem:[#allocation110_spill] sm:$0xff] }
 0x495   :  { %v3428_v54 = vmul.f32 %v3388_v22, %v7833_v49  ;;  %v3429_v9 = vmul.f32 %v3392_v8, %v7834_v32  ;;  %3450 = vst [vmem:[%s6942_s4 + $0x28] sm:$0xff] %v3418_v16  ;;  %3451 = vst [vmem:[%s6942_s4 + $0x30] sm:$0xff] %v3419_v50  ;;  %v3430_v28 = vmul.f32 %v3396_v47, %v7835_v13 }
 0x496   :  { %3452 = vst [vmem:[%s6942_s4 + $0x38] sm:$0xff] %v3420_v53  ;;  %3453 = vst [vmem:[%s6942_s4 + $0x40] sm:$0xff] %v3421_v57  ;;  %v3431_v24 = vmul.f32 %v3392_v8, %v7836_v45  ;;  %v3432_v10 = vmul.f32 %v3396_v47, %v7837_v27  ;;  %v3433_v41 = vmul.f32 %v3392_v8, %v7838_v21 }
 0x497   :  { %3454 = vst [vmem:[%s6942_s4 + $0x48] sm:$0xff] %v3422_v34  ;;  %3455 = vst [vmem:[%s6942_s4 + $0x50] sm:$0xff] %v3423_v60  ;;  %v3434_v46 = vmul.f32 %v3396_v47, %v7839_v4  ;;  %v3435_v51 = vmul.f32 %v3392_v8, %v7840_v48  ;;  %v3436_v38 = vmul.f32 %v3396_v47, %v7841_v52  ;;  %v7848_v8 = vld [vmem:[#allocation111_spill] sm:$0xff] }
 0x498   :  { %3456 = vst [vmem:[%s6942_s4 + $0x58] sm:$0xff] %v3424_v1  ;;  %3457 = vst [vmem:[%s6942_s4 + $0x60] sm:$0xff] %v3425_v18  ;;  %v3437_v36 = vmul.f32 %v3400_v17, %v7842_v20  ;;  %v3438_v11 = vmul.f32 %v3404_v15, %v7843_v62  ;;  %v3439_v31 = vmul.f32 %v3400_v17, %v7844_v14 }
 0x499   :  { %3458 = vst [vmem:[%s6942_s4 + $0x68] sm:$0xff] %v3426_v63  ;;  %3459 = vst [vmem:[%s6942_s4 + $0x70] sm:$0xff] %v3427_v30  ;;  %v3440_v29 = vmul.f32 %v3404_v15, %v7845_v59  ;;  %v3441_v6 = vmul.f32 %v3400_v17, %v7846_v37  ;;  %v3442_v22 = vmul.f32 %v3404_v15, %v7847_v58 }
 0x49a   :  { %3460 = vst [vmem:[%s6942_s4 + $0x78] sm:$0xff] %v3428_v54  ;;  %3461 = vst [vmem:[%s6942_s4 + $0x80] sm:$0xff] %v3429_v9  ;;  %v3443_v47 = vmul.f32 %v3400_v17, %v7848_v8  ;;  %v3444_v43 = vmul.f32 %v3404_v15, %v7849_v5 }
 0x49b   :  { %3462 = vst [vmem:[%s6942_s4 + $0x88] sm:$0xff] %v3430_v28  ;;  %3463 = vst [vmem:[%s6942_s4 + $0x90] sm:$0xff] %v3431_v24 }
 0x49c   :  { %3464 = vst [vmem:[%s6942_s4 + $0x98] sm:$0xff] %v3432_v10  ;;  %3465 = vst [vmem:[%s6942_s4 + $0xa0] sm:$0xff] %v3433_v41 }
 0x49d   :  { %3466 = vst [vmem:[%s6942_s4 + $0xa8] sm:$0xff] %v3434_v46  ;;  %3467 = vst [vmem:[%s6942_s4 + $0xb0] sm:$0xff] %v3435_v51 }
 0x49e   :  { %3468 = vst [vmem:[%s6942_s4 + $0xb8] sm:$0xff] %v3436_v38  ;;  %3469 = vst [vmem:[%s6942_s4 + $0xc0] sm:$0xff] %v3437_v36 }
 0x49f   :  { %3470 = vst [vmem:[%s6942_s4 + $0xc8] sm:$0xff] %v3438_v11  ;;  %3471 = vst [vmem:[%s6942_s4 + $0xd0] sm:$0xff] %v3439_v31 }
 0x4a0   :  { %3472 = vst [vmem:[%s6942_s4 + $0xd8] sm:$0xff] %v3440_v29  ;;  %3473 = vst [vmem:[%s6942_s4 + $0xe0] sm:$0xff] %v3441_v6 }
 0x4a1   :  { %3474 = vst [vmem:[%s6942_s4 + $0xe8] sm:$0xff] %v3442_v22  ;;  %3475 = vst [vmem:[%s6942_s4 + $0xf0] sm:$0xff] %v3443_v47 }
 0x4a2   :  { %3476 = vst [vmem:[%s6942_s4 + $0xf8] sm:$0xff] %v3444_v43 }
 0x4a3   :  { %3481 = vsyncpa [#allocation3], 1 }

</bundles_post_ra>
